<compile_context>
chip_gen: v5e
topology: v5e:2x2
jax: 0.10.0
libtpu: 0.0.40
codegen_flags: <defaults>
</compile_context>

<pallas_src>
import functools

import numpy as np
import jax
import jax.numpy as jnp
from jax.experimental import pallas as pl
from jax.experimental.pallas import tpu as pltpu

# ----------------------------- configuration (small demo sizes) -----------------------------
CONV_DIM = 4          # conv branch channels
TRANS_DIM = 8         # transformer branch channels
HEAD_DIM = 4          # -> n_heads = 2
WINDOW = 4            # window size
IMG = 16              # input_resolution (H = W)
B = 2                 # batch
TYPE = 'W'            # 'W' or 'SW' (forced to 'W' when IMG <= WINDOW, like the module)


def _log2(n):
    b = int(n).bit_length() - 1
    assert (1 << b) == n, f"{n} must be a power of two"
    return b


# ------------------------------ packed-parameter layout -------------------------------------
def _build_layout(cd, td):
    """All weights/biases packed into one (rows, width) f32 matrix with 8-aligned row starts."""
    C = cd + td
    entries = [
        ('w11t', (C, C)),        ('b11', (C, 1)),
        ('w12t', (C, C)),        ('b12', (C, 1)),
        ('wc1',  (9 * 8, cd)),   ('wc2', (9 * 8, cd)),      # one (cout,cin) tap per 8-row slot
        ('wqkv', (td, 3 * td)),  ('bqkv', (1, 3 * td)),
        ('wo',   (td, td)),      ('bo',   (1, td)),
        ('wm1',  (td, 4 * td)),  ('bm1',  (1, 4 * td)),
        ('wm2',  (4 * td, td)),  ('bm2',  (1, td)),
        ('ln1_g', (1, td)),      ('ln1_b', (1, td)),
        ('ln2_g', (1, td)),      ('ln2_b', (1, td)),
    ]
    layout, row, width = {}, 0, 0
    for name, shp in entries:
        layout[name] = (row, shp)
        row += ((shp[0] + 7) // 8) * 8
        width = max(width, shp[1])
    return layout, row, width


PAR_LAYOUT, PAR_ROWS, PAR_WIDTH = _build_layout(CONV_DIM, TRANS_DIM)


# ===================================== fused Pallas kernel ===================================

def _fused_kernel(x_ref, bias_ref, par_ref, o_ref, *, H, W, cd, td, nh, hd, p, shift):
    """One image per grid step.  x_ref/o_ref: (C, HW) channels-on-sublanes, HW lane-dense."""
    HW = H * W
    C = cd + td
    p2 = p * p
    nw = (H // p) * (W // p)
    nww = W // p
    f32 = jnp.float32

    def par(name):
        r, (rr, cc) = PAR_LAYOUT[name]
        return par_ref[r:r + rr, 0:cc]

    # ---- hoisted weights (loaded once; review: avoid re-slicing inside loops) ----
    w11t, b11 = par('w11t'), par('b11')
    w12t, b12 = par('w12t'), par('b12')
    wqkv, bqkv = par('wqkv'), par('bqkv')
    wo, bo = par('wo'), par('bo')
    wm1, bm1 = par('wm1'), par('bm1')
    wm2, bm2 = par('wm2'), par('bm2')
    g1, be1 = par('ln1_g'), par('ln1_b')
    g2, be2 = par('ln2_g'), par('ln2_b')
    r_wc1 = PAR_LAYOUT['wc1'][0]
    r_wc2 = PAR_LAYOUT['wc2'][0]

    x = x_ref[...]                                           # (C, HW)

    # ---------------- conv1_1 (1x1 conv == channel matmul, lane-dense) ----------------
    y = jnp.dot(w11t, x, preferred_element_type=f32) + b11   # (C, HW)
    conv_x = y[0:cd, :]                                      # (cd, HW)
    trans_x = y[cd:C, :]                                     # (td, HW)

    # ---------------- conv branch: 3x3 -> ReLU -> 3x3 (+ residual), roll-based taps ----------
    lane = jax.lax.broadcasted_iota(jnp.int32, (1, HW), 1)
    row = lane >> _log2(W)
    col = lane & (W - 1)
    m_left = (col > 0).astype(f32)
    m_right = (col < (W - 1)).astype(f32)
    m_top = (row > 0).astype(f32)
    m_bot = (row < (H - 1)).astype(f32)

    def conv3x3(src, row0):
        """src (cin, HW); weight taps at par rows row0 + 8*t, each (cout, cin)."""
        acc = jnp.zeros((cd, HW), f32)
        t = 0
        for dy in (-1, 0, 1):
            for dx in (-1, 0, 1):
                w_tap = par_ref[row0 + 8 * t: row0 + 8 * t + cd, 0:cd]
                d = dy * W + dx
                tap = src if d == 0 else pltpu.roll(src, (-d) % HW, 1)
                if dy == -1:
                    tap = tap * m_top
                elif dy == 1:
                    tap = tap * m_bot
                if dx == -1:
                    tap = tap * m_left
                elif dx == 1:
                    tap = tap * m_right
                acc = acc + jnp.dot(w_tap, tap, preferred_element_type=f32)
                t += 1
        return acc

    mid = jnp.maximum(conv3x3(conv_x, r_wc1), 0.0)
    cb = conv3x3(mid, r_wc2) + conv_x                        # (cd, HW)

    # ---------------- (shifted-)window permutation as an iota-built one-hot ----------------
    # slot j (window-major order) -> raster index perm[j];  G[j, i] = (i == perm[j]).
    jj = jax.lax.broadcasted_iota(jnp.int32, (HW, 1), 0)
    win = jj >> _log2(p2)
    pos = jj & (p2 - 1)
    wi = win >> _log2(nww)
    wj = win & (nww - 1)
    pi = pos >> _log2(p)
    pj = pos & (p - 1)
    hr = ((wi * p + pi) + shift) & (H - 1)
    wr = ((wj * p + pj) + shift) & (W - 1)
    perm = hr * W + wr                                       # (HW, 1)
    ii = jax.lax.broadcasted_iota(jnp.int32, (1, HW), 1)
    G = (perm == ii).astype(f32)                             # (HW_slot, HW_raster)

    # ---------------- transformer branch (window-token-major for the attention core) --------
    def layer_norm(v, g, b):
        mu = jnp.mean(v, axis=-1, keepdims=True)
        var = jnp.mean((v - mu) * (v - mu), axis=-1, keepdims=True)
        return (v - mu) * jax.lax.rsqrt(var + 1e-5) * g + b

    # gather + transpose in one MXU matmul:  xw[j, c] = trans_x[c, perm[j]]
    xw = jax.lax.dot_general(G, trans_x, (((1,), (1,)), ((), ())),
                             preferred_element_type=f32)     # (HW, td), window order
    xn = layer_norm(xw, g1, be1)
    qkv = jnp.dot(xn, wqkv, preferred_element_type=f32) + bqkv   # (HW, 3*td)

    scale = hd ** (-0.5)
    heads = []
    for h in range(nh):
        q3 = qkv[:, h * hd:(h + 1) * hd].reshape(nw, p2, hd)
        k3 = qkv[:, td + h * hd: td + (h + 1) * hd].reshape(nw, p2, hd)
        v3 = qkv[:, 2 * td + h * hd: 2 * td + (h + 1) * hd].reshape(nw, p2, hd)
        # block-diagonal windowed attention: 16 independent 16x16 softmaxes per head
        sim = jax.lax.dot_general(q3, k3, (((2,), (2,)), ((0,), (0,))),
                                  preferred_element_type=f32) * scale
        sim = sim + bias_ref[h]                              # rel-pos (+ SW mask) bias
        mx = jnp.max(sim, axis=-1, keepdims=True)
        e = jnp.exp(sim - mx)
        s = jnp.sum(e, axis=-1, keepdims=True)
        probs = e * pl.reciprocal(s, approx=True)
        o3 = jax.lax.dot_general(probs, v3, (((2,), (1,)), ((0,), (0,))),
                                 preferred_element_type=f32)  # (nw, p2, hd)
        heads.append(o3.reshape(HW, hd))
    attn = jnp.concatenate(heads, axis=1)                    # (HW, td)

    x1 = xw + jnp.dot(attn, wo, preferred_element_type=f32) + bo
    xn2 = layer_norm(x1, g2, be2)
    hmid = jnp.dot(xn2, wm1, preferred_element_type=f32) + bm1
    hmid = 0.5 * hmid * (1.0 + jax.lax.erf(hmid * 0.7071067811865476))
    x2 = x1 + jnp.dot(hmid, wm2, preferred_element_type=f32) + bm2   # (HW, td), window order

    # ---------------- concat + conv1_2 (1x1) + residual, back to lane-dense raster -----------
    # trans-branch term of conv1_2, with the inverse window permutation folded into the matmuls:
    t1 = jax.lax.dot_general(w12t[:, cd:C], x2, (((1,), (1,)), ((), ())),
                             preferred_element_type=f32)     # (C, HW) window order
    trans_term = jnp.dot(t1, G, preferred_element_type=f32)  # (C, HW) raster order
    out = x + jnp.dot(w12t[:, 0:cd], cb, preferred_element_type=f32) + trans_term + b12
    # TODO(synk): GaussianNoise(0.05) / DropPath act only in training mode; eval is identity.
    o_ref[...] = out.astype(o_ref.dtype)


# ===================================== module forward ========================================

def conv_trans_block_forward(x_nchw, params):
    Bn, C, H, W = x_nchw.shape
    HW = H * W
    for n in (H, W, WINDOW, W // WINDOW):
        _log2(n)
    x_flat = x_nchw.reshape(Bn, C, HW)                       # free view, no transpose
    bias = params['attn_bias_k']                             # (nh, nw, p2, p2) -- 32 KiB
    packed = params['packed']                                # (PAR_ROWS, PAR_WIDTH)
    shift = WINDOW // 2 if params['type'] == 'SW' else 0

    kernel = functools.partial(_fused_kernel, H=H, W=W, cd=CONV_DIM, td=TRANS_DIM,
                               nh=params['n_heads'], hd=HEAD_DIM, p=WINDOW, shift=shift)
    out = pl.pallas_call(
        kernel,
        out_shape=jax.ShapeDtypeStruct((Bn, C, HW), x_flat.dtype),
        grid=(Bn,),
        in_specs=[
            pl.BlockSpec((None, C, HW), lambda b: (b, 0, 0)),          # per-image, lane-dense
            pl.BlockSpec(bias.shape, lambda b: (0, 0, 0, 0)),          # grid-invariant
            pl.BlockSpec(packed.shape, lambda b: (0, 0)),              # grid-invariant
        ],
        out_specs=pl.BlockSpec((None, C, HW), lambda b: (b, 0, 0)),    # 256-wide unmasked stores
        compiler_params=pltpu.CompilerParams(dimension_semantics=("parallel",)),
    )(x_flat, bias, packed)
    return out.reshape(Bn, C, H, W)                          # free view, no transpose


# ===================================== parameters ============================================

def init_params(key):
    C = CONV_DIM + TRANS_DIM
    Ct = TRANS_DIM
    nh = Ct // HEAD_DIM
    p = WINDOW
    ks = jax.random.split(key, 18)

    def rnd(k, shape, s=0.1):
        return jax.random.normal(k, shape, jnp.float32) * s

    params = dict(
        type=('W' if IMG <= WINDOW else TYPE),
        n_heads=nh,
        # conv1_1 / conv1_2  (stored as (Cin, Cout) for the reference y = x @ w + b)
        w11=rnd(ks[0], (C, C)), b11=rnd(ks[1], (C,), 0.02),
        w12=rnd(ks[2], (C, C)), b12=rnd(ks[3], (C,), 0.02),
        # conv_block 3x3 weights, layout (kh, kw, Cin, Cout), no bias
        wc1=rnd(ks[4], (3, 3, CONV_DIM, CONV_DIM)),
        wc2=rnd(ks[5], (3, 3, CONV_DIM, CONV_DIM)),
        # transformer block
        ln1_g=1.0 + rnd(ks[6], (Ct,), 0.05), ln1_b=rnd(ks[7], (Ct,), 0.05),
        wqkv=rnd(ks[8], (Ct, 3 * Ct)), bqkv=rnd(ks[9], (3 * Ct,), 0.02),
        wo=rnd(ks[10], (Ct, Ct)), bo=rnd(ks[11], (Ct,), 0.02),
        ln2_g=1.0 + rnd(ks[12], (Ct,), 0.05), ln2_b=rnd(ks[13], (Ct,), 0.05),
        wm1=rnd(ks[14], (Ct, 4 * Ct)), bm1=rnd(ks[15], (4 * Ct,), 0.02),
        wm2=rnd(ks[16], (4 * Ct, Ct)), bm2=rnd(ks[17], (Ct,), 0.02),
    )

    # ---- per-window relative-position bias (+ SW attention mask): (nw, nh, p2, p2) ----
    rel = jax.random.normal(jax.random.PRNGKey(42), (nh, 2 * p - 1, 2 * p - 1),
                            jnp.float32) * 0.02
    coords = np.array([[i, j] for i in range(p) for j in range(p)])
    relation = coords[:, None, :] - coords[None, :, :] + p - 1
    rel_emb = np.asarray(rel)[:, relation[:, :, 0], relation[:, :, 1]]      # (nh, p2, p2)

    hw = ww = IMG // p
    nw = hw * ww
    shift = p // 2 if params['type'] == 'SW' else 0
    mask = np.zeros((hw, ww, p, p, p, p), bool)
    if shift:
        s = p - shift
        mask[-1, :, :s, :, s:, :] = True
        mask[-1, :, s:, :, :s, :] = True
        mask[:, -1, :, :s, :, s:] = True
        mask[:, -1, :, s:, :, :s] = True
    mask = mask.reshape(nw, p * p, p * p)
    win_bias = (rel_emb[None] +
                np.where(mask[:, None], -1e30, 0.0)).astype(np.float32)     # (nw, nh, p2, p2)
    params['attn_bias'] = jnp.asarray(win_bias)                             # reference layout
    params['attn_bias_k'] = jnp.asarray(np.transpose(win_bias, (1, 0, 2, 3)))  # (nh, nw, p2, p2)

    # ---- pack kernel-orientation weights into one f32 matrix ----
    def pack_conv(w):
        arr = np.zeros((9 * 8, CONV_DIM), np.float32)
        w = np.asarray(w, np.float32)
        t = 0
        for kh in range(3):
            for kw in range(3):
                arr[8 * t: 8 * t + CONV_DIM, :] = w[kh, kw].T               # (cout, cin)
                t += 1
        return arr

    kern = {
        'w11t': np.asarray(params['w11']).T, 'b11': np.asarray(params['b11']).reshape(C, 1),
        'w12t': np.asarray(params['w12']).T, 'b12': np.asarray(params['b12']).reshape(C, 1),
        'wc1': pack_conv(params['wc1']), 'wc2': pack_conv(params['wc2']),
        'wqkv': np.asarray(params['wqkv']), 'bqkv': np.asarray(params['bqkv']).reshape(1, -1),
        'wo': np.asarray(params['wo']), 'bo': np.asarray(params['bo']).reshape(1, -1),
        'wm1': np.asarray(params['wm1']), 'bm1': np.asarray(params['bm1']).reshape(1, -1),
        'wm2': np.asarray(params['wm2']), 'bm2': np.asarray(params['bm2']).reshape(1, -1),
        'ln1_g': np.asarray(params['ln1_g']).reshape(1, -1),
        'ln1_b': np.asarray(params['ln1_b']).reshape(1, -1),
        'ln2_g': np.asarray(params['ln2_g']).reshape(1, -1),
        'ln2_b': np.asarray(params['ln2_b']).reshape(1, -1),
    }
    packed = np.zeros((PAR_ROWS, PAR_WIDTH), np.float32)
    for name, (row, shp) in PAR_LAYOUT.items():
        arr = np.asarray(kern[name], np.float32).reshape(shp)
        packed[row:row + shp[0], :shp[1]] = arr
    params['packed'] = jnp.asarray(packed)
    return params


# ============================= pure-JAX reference (for verification) =========================

def reference_forward(x_nchw, params):
    Bn, C, H, W = x_nchw.shape
    cd, td = CONV_DIM, TRANS_DIM
    x = jnp.transpose(x_nchw, (0, 2, 3, 1))
    y = jnp.einsum('bhwc,cd->bhwd', x, params['w11']) + params['b11']
    conv_x, trans_x = y[..., :cd], y[..., cd:]

    def conv3(z, w):
        return jax.lax.conv_general_dilated(z, w, (1, 1), 'SAME',
                                            dimension_numbers=('NHWC', 'HWIO', 'NHWC'))
    cb = conv3(jax.nn.relu(conv3(conv_x, params['wc1'])), params['wc2']) + conv_x

    p = WINDOW
    shift = p // 2 if params['type'] == 'SW' else 0
    t = jnp.roll(trans_x, (-shift, -shift), axis=(1, 2)) if shift else trans_x
    hw, ww = H // p, W // p
    xw = t.reshape(Bn, hw, p, ww, p, td).transpose(0, 1, 3, 2, 4, 5).reshape(Bn, hw * ww, p * p, td)

    def ln(v, g, b):
        mu = v.mean(-1, keepdims=True)
        var = ((v - mu) ** 2).mean(-1, keepdims=True)
        return (v - mu) / jnp.sqrt(var + 1e-5) * g + b

    nh, hd = params['n_heads'], HEAD_DIM
    xn = ln(xw, params['ln1_g'], params['ln1_b'])
    qkv = (xn @ params['wqkv'] + params['bqkv']).reshape(Bn, hw * ww, p * p, 3, nh, hd)
    q, k, v = qkv[..., 0, :, :], qkv[..., 1, :, :], qkv[..., 2, :, :]
    sim = jnp.einsum('bwphd,bwqhd->bwhpq', q, k) * (hd ** -0.5) + params['attn_bias'][None]
    probs = jax.nn.softmax(sim, axis=-1)
    out = jnp.einsum('bwhpq,bwqhd->bwphd', probs, v).reshape(Bn, hw * ww, p * p, td)
    msa = out @ params['wo'] + params['bo']
    x1 = xw + msa
    hmid = ln(x1, params['ln2_g'], params['ln2_b']) @ params['wm1'] + params['bm1']
    hmid = 0.5 * hmid * (1.0 + jax.lax.erf(hmid * 0.7071067811865476))
    x2 = x1 + (hmid @ params['wm2'] + params['bm2'])
    tb = x2.reshape(Bn, hw, ww, p, p, td).transpose(0, 1, 3, 2, 4, 5).reshape(Bn, H, W, td)
    if shift:
        tb = jnp.roll(tb, (shift, shift), axis=(1, 2))

    cat = jnp.concatenate([cb, tb], axis=-1)
    res = jnp.einsum('bhwc,cd->bhwd', cat, params['w12']) + params['b12']
    return jnp.transpose(x + res, (0, 3, 1, 2))


# ========================================== main =============================================

if __name__ == "__main__":
    key = jax.random.PRNGKey(0)
    pkey, xkey = jax.random.split(key)
    params = init_params(pkey)
    x = jax.random.normal(xkey, (B, CONV_DIM + TRANS_DIM, IMG, IMG), jnp.float32)

    fwd = jax.jit(lambda a: conv_trans_block_forward(a, params))
    out = jax.block_until_ready(fwd(x))

    ref = reference_forward(x, params)
    err = float(jnp.max(jnp.abs(out - ref)))
    assert out.shape == x.shape and out.dtype == jnp.float32
    # tolerance loosened slightly vs 2e-4 because the softmax denominator uses the
    # EUP approximate reciprocal (pl.reciprocal(approx=True)); structural errors are O(0.1+).
    assert err < 2e-3, f"max abs err vs reference: {err}"
    print("KERNEL_OK")
</pallas_src>

<mosaic_0001>
module attributes {stable_mosaic.version = 11 : i64} {
  func.func @_fused_kernel(%arg0: i32, %arg1: memref<1x12x256xf32, #tpu.memory_space<vmem>>, %arg2: memref<2x16x16x16xf32, #tpu.memory_space<vmem>>, %arg3: memref<328x32xf32, #tpu.memory_space<vmem>>, %arg4: memref<1x12x256xf32, #tpu.memory_space<vmem>>) attributes {dimension_semantics = [#tpu.dimension_semantics<parallel>], iteration_bounds = array<i64: 2>, scalar_prefetch = 0 : i64, scratch_operands = 0 : i64, tpu.core_type = #tpu.core_type<tc>, window_params = [{transform_indices = @transform_0, window_bounds = array<i64: 1, 12, 256>}, {pipeline_mode = #tpu.pipeline_mode<synchronous>, transform_indices = @transform_1, window_bounds = array<i64: 2, 16, 16, 16>}, {pipeline_mode = #tpu.pipeline_mode<synchronous>, transform_indices = @transform_2, window_bounds = array<i64: 328, 32>}, {transform_indices = @transform_3, window_bounds = array<i64: 1, 12, 256>}]} {
    %c0 = arith.constant 0 : index
    %c0_0 = arith.constant 0 : index
    %0 = vector.load %arg3[%c0, %c0_0] : memref<328x32xf32, #tpu.memory_space<vmem>>, vector<12x12xf32>
    %c16 = arith.constant 16 : index
    %c0_1 = arith.constant 0 : index
    %1 = vector.load %arg3[%c16, %c0_1] : memref<328x32xf32, #tpu.memory_space<vmem>>, vector<12x1xf32>
    %c32 = arith.constant 32 : index
    %c0_2 = arith.constant 0 : index
    %2 = vector.load %arg3[%c32, %c0_2] : memref<328x32xf32, #tpu.memory_space<vmem>>, vector<12x12xf32>
    %c48 = arith.constant 48 : index
    %c0_3 = arith.constant 0 : index
    %3 = vector.load %arg3[%c48, %c0_3] : memref<328x32xf32, #tpu.memory_space<vmem>>, vector<12x1xf32>
    %c208 = arith.constant 208 : index
    %c0_4 = arith.constant 0 : index
    %4 = vector.load %arg3[%c208, %c0_4] : memref<328x32xf32, #tpu.memory_space<vmem>>, vector<8x24xf32>
    %c216 = arith.constant 216 : index
    %c0_5 = arith.constant 0 : index
    %5 = vector.load %arg3[%c216, %c0_5] : memref<328x32xf32, #tpu.memory_space<vmem>>, vector<1x24xf32>
    %c224 = arith.constant 224 : index
    %c0_6 = arith.constant 0 : index
    %6 = vector.load %arg3[%c224, %c0_6] : memref<328x32xf32, #tpu.memory_space<vmem>>, vector<8x8xf32>
    %c232 = arith.constant 232 : index
    %c0_7 = arith.constant 0 : index
    %7 = vector.load %arg3[%c232, %c0_7] : memref<328x32xf32, #tpu.memory_space<vmem>>, vector<1x8xf32>
    %c240 = arith.constant 240 : index
    %c0_8 = arith.constant 0 : index
    %8 = vector.load %arg3[%c240, %c0_8] : memref<328x32xf32, #tpu.memory_space<vmem>>, vector<8x32xf32>
    %c248 = arith.constant 248 : index
    %c0_9 = arith.constant 0 : index
    %9 = vector.load %arg3[%c248, %c0_9] : memref<328x32xf32, #tpu.memory_space<vmem>>, vector<1x32xf32>
    %c256 = arith.constant 256 : index
    %c0_10 = arith.constant 0 : index
    %10 = vector.load %arg3[%c256, %c0_10] : memref<328x32xf32, #tpu.memory_space<vmem>>, vector<32x8xf32>
    %c288 = arith.constant 288 : index
    %c0_11 = arith.constant 0 : index
    %11 = vector.load %arg3[%c288, %c0_11] : memref<328x32xf32, #tpu.memory_space<vmem>>, vector<1x8xf32>
    %c296 = arith.constant 296 : index
    %c0_12 = arith.constant 0 : index
    %12 = vector.load %arg3[%c296, %c0_12] : memref<328x32xf32, #tpu.memory_space<vmem>>, vector<1x8xf32>
    %c304 = arith.constant 304 : index
    %c0_13 = arith.constant 0 : index
    %13 = vector.load %arg3[%c304, %c0_13] : memref<328x32xf32, #tpu.memory_space<vmem>>, vector<1x8xf32>
    %c312 = arith.constant 312 : index
    %c0_14 = arith.constant 0 : index
    %14 = vector.load %arg3[%c312, %c0_14] : memref<328x32xf32, #tpu.memory_space<vmem>>, vector<1x8xf32>
    %c320 = arith.constant 320 : index
    %c0_15 = arith.constant 0 : index
    %15 = vector.load %arg3[%c320, %c0_15] : memref<328x32xf32, #tpu.memory_space<vmem>>, vector<1x8xf32>
    %c0_16 = arith.constant 0 : index
    %c0_17 = arith.constant 0 : index
    %c0_18 = arith.constant 0 : index
    %16 = vector.load %arg1[%c0_16, %c0_17, %c0_18] : memref<1x12x256xf32, #tpu.memory_space<vmem>>, vector<1x12x256xf32>
    %17 = vector.shape_cast %16 : vector<1x12x256xf32> to vector<12x256xf32>
    %cst = arith.constant dense<0.000000e+00> : vector<12x256xf32>
    %18 = tpu.matmul %0, %17, %cst {dimension_numbers = #tpu.dot_dimension_numbers<[1], [0], [0], [1], [0, 0, 1, 1], [], []>} : vector<12x12xf32>, vector<12x256xf32>, vector<12x256xf32> -> vector<12x256xf32>
    %19 = vector.broadcast %1 : vector<12x1xf32> to vector<12x256xf32>
    %20 = arith.addf %18, %19 : vector<12x256xf32>
    %21 = vector.extract_strided_slice %20 {offsets = [0, 0], sizes = [4, 256], strides = [1, 1]} : vector<12x256xf32> to vector<4x256xf32>
    %22 = vector.extract_strided_slice %20 {offsets = [4, 0], sizes = [8, 256], strides = [1, 1]} : vector<12x256xf32> to vector<8x256xf32>
    %23 = tpu.iota {dimensions = array<i32: 1>} : vector<1x256xi32>
    %c4_i32 = arith.constant 4 : i32
    %24 = vector.broadcast %c4_i32 : i32 to vector<1x256xi32>
    %25 = arith.shrsi %23, %24 : vector<1x256xi32>
    %c15_i32 = arith.constant 15 : i32
    %26 = vector.broadcast %c15_i32 : i32 to vector<1x256xi32>
    %27 = arith.andi %23, %26 : vector<1x256xi32>
    %c0_i32 = arith.constant 0 : i32
    %28 = vector.broadcast %c0_i32 : i32 to vector<1x256xi32>
    %29 = arith.cmpi sgt, %27, %28 : vector<1x256xi32>
    %30 = arith.extui %29 : vector<1x256xi1> to vector<1x256xi32>
    %31 = arith.sitofp %30 : vector<1x256xi32> to vector<1x256xf32>
    %c15_i32_19 = arith.constant 15 : i32
    %32 = vector.broadcast %c15_i32_19 : i32 to vector<1x256xi32>
    %33 = arith.cmpi slt, %27, %32 : vector<1x256xi32>
    %34 = arith.extui %33 : vector<1x256xi1> to vector<1x256xi32>
    %35 = arith.sitofp %34 : vector<1x256xi32> to vector<1x256xf32>
    %c0_i32_20 = arith.constant 0 : i32
    %36 = vector.broadcast %c0_i32_20 : i32 to vector<1x256xi32>
    %37 = arith.cmpi sgt, %25, %36 : vector<1x256xi32>
    %38 = arith.extui %37 : vector<1x256xi1> to vector<1x256xi32>
    %39 = arith.sitofp %38 : vector<1x256xi32> to vector<1x256xf32>
    %c15_i32_21 = arith.constant 15 : i32
    %40 = vector.broadcast %c15_i32_21 : i32 to vector<1x256xi32>
    %41 = arith.cmpi slt, %25, %40 : vector<1x256xi32>
    %42 = arith.extui %41 : vector<1x256xi1> to vector<1x256xi32>
    %43 = arith.sitofp %42 : vector<1x256xi32> to vector<1x256xf32>
    %cst_22 = arith.constant 0.000000e+00 : f32
    %44 = vector.broadcast %cst_22 : f32 to vector<4x256xf32>
    %c64 = arith.constant 64 : index
    %c0_23 = arith.constant 0 : index
    %45 = vector.load %arg3[%c64, %c0_23] : memref<328x32xf32, #tpu.memory_space<vmem>>, vector<4x4xf32>
    %c17_i32 = arith.constant 17 : i32
    %46 = tpu.dynamic_rotate %21 by %c17_i32 dim 1 : vector<4x256xf32>, i32 -> vector<4x256xf32>
    %47 = vector.broadcast %39 : vector<1x256xf32> to vector<4x256xf32>
    %48 = arith.mulf %46, %47 : vector<4x256xf32>
    %49 = vector.broadcast %31 : vector<1x256xf32> to vector<4x256xf32>
    %50 = arith.mulf %48, %49 : vector<4x256xf32>
    %cst_24 = arith.constant dense<0.000000e+00> : vector<4x256xf32>
    %51 = tpu.matmul %45, %50, %cst_24 {dimension_numbers = #tpu.dot_dimension_numbers<[1], [0], [0], [1], [0, 0, 1, 1], [], []>} : vector<4x4xf32>, vector<4x256xf32>, vector<4x256xf32> -> vector<4x256xf32>
    %52 = arith.addf %44, %51 : vector<4x256xf32>
    %c72 = arith.constant 72 : index
    %c0_25 = arith.constant 0 : index
    %53 = vector.load %arg3[%c72, %c0_25] : memref<328x32xf32, #tpu.memory_space<vmem>>, vector<4x4xf32>
    %c16_i32 = arith.constant 16 : i32
    %54 = tpu.dynamic_rotate %21 by %c16_i32 dim 1 : vector<4x256xf32>, i32 -> vector<4x256xf32>
    %55 = vector.broadcast %39 : vector<1x256xf32> to vector<4x256xf32>
    %56 = arith.mulf %54, %55 : vector<4x256xf32>
    %cst_26 = arith.constant dense<0.000000e+00> : vector<4x256xf32>
    %57 = tpu.matmul %53, %56, %cst_26 {dimension_numbers = #tpu.dot_dimension_numbers<[1], [0], [0], [1], [0, 0, 1, 1], [], []>} : vector<4x4xf32>, vector<4x256xf32>, vector<4x256xf32> -> vector<4x256xf32>
    %58 = arith.addf %52, %57 : vector<4x256xf32>
    %c80 = arith.constant 80 : index
    %c0_27 = arith.constant 0 : index
    %59 = vector.load %arg3[%c80, %c0_27] : memref<328x32xf32, #tpu.memory_space<vmem>>, vector<4x4xf32>
    %c15_i32_28 = arith.constant 15 : i32
    %60 = tpu.dynamic_rotate %21 by %c15_i32_28 dim 1 : vector<4x256xf32>, i32 -> vector<4x256xf32>
    %61 = vector.broadcast %39 : vector<1x256xf32> to vector<4x256xf32>
    %62 = arith.mulf %60, %61 : vector<4x256xf32>
    %63 = vector.broadcast %35 : vector<1x256xf32> to vector<4x256xf32>
    %64 = arith.mulf %62, %63 : vector<4x256xf32>
    %cst_29 = arith.constant dense<0.000000e+00> : vector<4x256xf32>
    %65 = tpu.matmul %59, %64, %cst_29 {dimension_numbers = #tpu.dot_dimension_numbers<[1], [0], [0], [1], [0, 0, 1, 1], [], []>} : vector<4x4xf32>, vector<4x256xf32>, vector<4x256xf32> -> vector<4x256xf32>
    %66 = arith.addf %58, %65 : vector<4x256xf32>
    %c88 = arith.constant 88 : index
    %c0_30 = arith.constant 0 : index
    %67 = vector.load %arg3[%c88, %c0_30] : memref<328x32xf32, #tpu.memory_space<vmem>>, vector<4x4xf32>
    %c1_i32 = arith.constant 1 : i32
    %68 = tpu.dynamic_rotate %21 by %c1_i32 dim 1 : vector<4x256xf32>, i32 -> vector<4x256xf32>
    %69 = vector.broadcast %31 : vector<1x256xf32> to vector<4x256xf32>
    %70 = arith.mulf %68, %69 : vector<4x256xf32>
    %cst_31 = arith.constant dense<0.000000e+00> : vector<4x256xf32>
    %71 = tpu.matmul %67, %70, %cst_31 {dimension_numbers = #tpu.dot_dimension_numbers<[1], [0], [0], [1], [0, 0, 1, 1], [], []>} : vector<4x4xf32>, vector<4x256xf32>, vector<4x256xf32> -> vector<4x256xf32>
    %72 = arith.addf %66, %71 : vector<4x256xf32>
    %c96 = arith.constant 96 : index
    %c0_32 = arith.constant 0 : index
    %73 = vector.load %arg3[%c96, %c0_32] : memref<328x32xf32, #tpu.memory_space<vmem>>, vector<4x4xf32>
    %cst_33 = arith.constant dense<0.000000e+00> : vector<4x256xf32>
    %74 = tpu.matmul %73, %21, %cst_33 {dimension_numbers = #tpu.dot_dimension_numbers<[1], [0], [0], [1], [0, 0, 1, 1], [], []>} : vector<4x4xf32>, vector<4x256xf32>, vector<4x256xf32> -> vector<4x256xf32>
    %75 = arith.addf %72, %74 : vector<4x256xf32>
    %c104 = arith.constant 104 : index
    %c0_34 = arith.constant 0 : index
    %76 = vector.load %arg3[%c104, %c0_34] : memref<328x32xf32, #tpu.memory_space<vmem>>, vector<4x4xf32>
    %c255_i32 = arith.constant 255 : i32
    %77 = tpu.dynamic_rotate %21 by %c255_i32 dim 1 : vector<4x256xf32>, i32 -> vector<4x256xf32>
    %78 = vector.broadcast %35 : vector<1x256xf32> to vector<4x256xf32>
    %79 = arith.mulf %77, %78 : vector<4x256xf32>
    %cst_35 = arith.constant dense<0.000000e+00> : vector<4x256xf32>
    %80 = tpu.matmul %76, %79, %cst_35 {dimension_numbers = #tpu.dot_dimension_numbers<[1], [0], [0], [1], [0, 0, 1, 1], [], []>} : vector<4x4xf32>, vector<4x256xf32>, vector<4x256xf32> -> vector<4x256xf32>
    %81 = arith.addf %75, %80 : vector<4x256xf32>
    %c112 = arith.constant 112 : index
    %c0_36 = arith.constant 0 : index
    %82 = vector.load %arg3[%c112, %c0_36] : memref<328x32xf32, #tpu.memory_space<vmem>>, vector<4x4xf32>
    %c241_i32 = arith.constant 241 : i32
    %83 = tpu.dynamic_rotate %21 by %c241_i32 dim 1 : vector<4x256xf32>, i32 -> vector<4x256xf32>
    %84 = vector.broadcast %43 : vector<1x256xf32> to vector<4x256xf32>
    %85 = arith.mulf %83, %84 : vector<4x256xf32>
    %86 = vector.broadcast %31 : vector<1x256xf32> to vector<4x256xf32>
    %87 = arith.mulf %85, %86 : vector<4x256xf32>
    %cst_37 = arith.constant dense<0.000000e+00> : vector<4x256xf32>
    %88 = tpu.matmul %82, %87, %cst_37 {dimension_numbers = #tpu.dot_dimension_numbers<[1], [0], [0], [1], [0, 0, 1, 1], [], []>} : vector<4x4xf32>, vector<4x256xf32>, vector<4x256xf32> -> vector<4x256xf32>
    %89 = arith.addf %81, %88 : vector<4x256xf32>
    %c120 = arith.constant 120 : index
    %c0_38 = arith.constant 0 : index
    %90 = vector.load %arg3[%c120, %c0_38] : memref<328x32xf32, #tpu.memory_space<vmem>>, vector<4x4xf32>
    %c240_i32 = arith.constant 240 : i32
    %91 = tpu.dynamic_rotate %21 by %c240_i32 dim 1 : vector<4x256xf32>, i32 -> vector<4x256xf32>
    %92 = vector.broadcast %43 : vector<1x256xf32> to vector<4x256xf32>
    %93 = arith.mulf %91, %92 : vector<4x256xf32>
    %cst_39 = arith.constant dense<0.000000e+00> : vector<4x256xf32>
    %94 = tpu.matmul %90, %93, %cst_39 {dimension_numbers = #tpu.dot_dimension_numbers<[1], [0], [0], [1], [0, 0, 1, 1], [], []>} : vector<4x4xf32>, vector<4x256xf32>, vector<4x256xf32> -> vector<4x256xf32>
    %95 = arith.addf %89, %94 : vector<4x256xf32>
    %c128 = arith.constant 128 : index
    %c0_40 = arith.constant 0 : index
    %96 = vector.load %arg3[%c128, %c0_40] : memref<328x32xf32, #tpu.memory_space<vmem>>, vector<4x4xf32>
    %c239_i32 = arith.constant 239 : i32
    %97 = tpu.dynamic_rotate %21 by %c239_i32 dim 1 : vector<4x256xf32>, i32 -> vector<4x256xf32>
    %98 = vector.broadcast %43 : vector<1x256xf32> to vector<4x256xf32>
    %99 = arith.mulf %97, %98 : vector<4x256xf32>
    %100 = vector.broadcast %35 : vector<1x256xf32> to vector<4x256xf32>
    %101 = arith.mulf %99, %100 : vector<4x256xf32>
    %cst_41 = arith.constant dense<0.000000e+00> : vector<4x256xf32>
    %102 = tpu.matmul %96, %101, %cst_41 {dimension_numbers = #tpu.dot_dimension_numbers<[1], [0], [0], [1], [0, 0, 1, 1], [], []>} : vector<4x4xf32>, vector<4x256xf32>, vector<4x256xf32> -> vector<4x256xf32>
    %103 = arith.addf %95, %102 : vector<4x256xf32>
    %cst_42 = arith.constant 0.000000e+00 : f32
    %104 = vector.broadcast %cst_42 : f32 to vector<4x256xf32>
    %105 = arith.maximumf %103, %104 : vector<4x256xf32>
    %cst_43 = arith.constant 0.000000e+00 : f32
    %106 = vector.broadcast %cst_43 : f32 to vector<4x256xf32>
    %c136 = arith.constant 136 : index
    %c0_44 = arith.constant 0 : index
    %107 = vector.load %arg3[%c136, %c0_44] : memref<328x32xf32, #tpu.memory_space<vmem>>, vector<4x4xf32>
    %c17_i32_45 = arith.constant 17 : i32
    %108 = tpu.dynamic_rotate %105 by %c17_i32_45 dim 1 : vector<4x256xf32>, i32 -> vector<4x256xf32>
    %109 = vector.broadcast %39 : vector<1x256xf32> to vector<4x256xf32>
    %110 = arith.mulf %108, %109 : vector<4x256xf32>
    %111 = vector.broadcast %31 : vector<1x256xf32> to vector<4x256xf32>
    %112 = arith.mulf %110, %111 : vector<4x256xf32>
    %cst_46 = arith.constant dense<0.000000e+00> : vector<4x256xf32>
    %113 = tpu.matmul %107, %112, %cst_46 {dimension_numbers = #tpu.dot_dimension_numbers<[1], [0], [0], [1], [0, 0, 1, 1], [], []>} : vector<4x4xf32>, vector<4x256xf32>, vector<4x256xf32> -> vector<4x256xf32>
    %114 = arith.addf %106, %113 : vector<4x256xf32>
    %c144 = arith.constant 144 : index
    %c0_47 = arith.constant 0 : index
    %115 = vector.load %arg3[%c144, %c0_47] : memref<328x32xf32, #tpu.memory_space<vmem>>, vector<4x4xf32>
    %c16_i32_48 = arith.constant 16 : i32
    %116 = tpu.dynamic_rotate %105 by %c16_i32_48 dim 1 : vector<4x256xf32>, i32 -> vector<4x256xf32>
    %117 = vector.broadcast %39 : vector<1x256xf32> to vector<4x256xf32>
    %118 = arith.mulf %116, %117 : vector<4x256xf32>
    %cst_49 = arith.constant dense<0.000000e+00> : vector<4x256xf32>
    %119 = tpu.matmul %115, %118, %cst_49 {dimension_numbers = #tpu.dot_dimension_numbers<[1], [0], [0], [1], [0, 0, 1, 1], [], []>} : vector<4x4xf32>, vector<4x256xf32>, vector<4x256xf32> -> vector<4x256xf32>
    %120 = arith.addf %114, %119 : vector<4x256xf32>
    %c152 = arith.constant 152 : index
    %c0_50 = arith.constant 0 : index
    %121 = vector.load %arg3[%c152, %c0_50] : memref<328x32xf32, #tpu.memory_space<vmem>>, vector<4x4xf32>
    %c15_i32_51 = arith.constant 15 : i32
    %122 = tpu.dynamic_rotate %105 by %c15_i32_51 dim 1 : vector<4x256xf32>, i32 -> vector<4x256xf32>
    %123 = vector.broadcast %39 : vector<1x256xf32> to vector<4x256xf32>
    %124 = arith.mulf %122, %123 : vector<4x256xf32>
    %125 = vector.broadcast %35 : vector<1x256xf32> to vector<4x256xf32>
    %126 = arith.mulf %124, %125 : vector<4x256xf32>
    %cst_52 = arith.constant dense<0.000000e+00> : vector<4x256xf32>
    %127 = tpu.matmul %121, %126, %cst_52 {dimension_numbers = #tpu.dot_dimension_numbers<[1], [0], [0], [1], [0, 0, 1, 1], [], []>} : vector<4x4xf32>, vector<4x256xf32>, vector<4x256xf32> -> vector<4x256xf32>
    %128 = arith.addf %120, %127 : vector<4x256xf32>
    %c160 = arith.constant 160 : index
    %c0_53 = arith.constant 0 : index
    %129 = vector.load %arg3[%c160, %c0_53] : memref<328x32xf32, #tpu.memory_space<vmem>>, vector<4x4xf32>
    %c1_i32_54 = arith.constant 1 : i32
    %130 = tpu.dynamic_rotate %105 by %c1_i32_54 dim 1 : vector<4x256xf32>, i32 -> vector<4x256xf32>
    %131 = vector.broadcast %31 : vector<1x256xf32> to vector<4x256xf32>
    %132 = arith.mulf %130, %131 : vector<4x256xf32>
    %cst_55 = arith.constant dense<0.000000e+00> : vector<4x256xf32>
    %133 = tpu.matmul %129, %132, %cst_55 {dimension_numbers = #tpu.dot_dimension_numbers<[1], [0], [0], [1], [0, 0, 1, 1], [], []>} : vector<4x4xf32>, vector<4x256xf32>, vector<4x256xf32> -> vector<4x256xf32>
    %134 = arith.addf %128, %133 : vector<4x256xf32>
    %c168 = arith.constant 168 : index
    %c0_56 = arith.constant 0 : index
    %135 = vector.load %arg3[%c168, %c0_56] : memref<328x32xf32, #tpu.memory_space<vmem>>, vector<4x4xf32>
    %cst_57 = arith.constant dense<0.000000e+00> : vector<4x256xf32>
    %136 = tpu.matmul %135, %105, %cst_57 {dimension_numbers = #tpu.dot_dimension_numbers<[1], [0], [0], [1], [0, 0, 1, 1], [], []>} : vector<4x4xf32>, vector<4x256xf32>, vector<4x256xf32> -> vector<4x256xf32>
    %137 = arith.addf %134, %136 : vector<4x256xf32>
    %c176 = arith.constant 176 : index
    %c0_58 = arith.constant 0 : index
    %138 = vector.load %arg3[%c176, %c0_58] : memref<328x32xf32, #tpu.memory_space<vmem>>, vector<4x4xf32>
    %c255_i32_59 = arith.constant 255 : i32
    %139 = tpu.dynamic_rotate %105 by %c255_i32_59 dim 1 : vector<4x256xf32>, i32 -> vector<4x256xf32>
    %140 = vector.broadcast %35 : vector<1x256xf32> to vector<4x256xf32>
    %141 = arith.mulf %139, %140 : vector<4x256xf32>
    %cst_60 = arith.constant dense<0.000000e+00> : vector<4x256xf32>
    %142 = tpu.matmul %138, %141, %cst_60 {dimension_numbers = #tpu.dot_dimension_numbers<[1], [0], [0], [1], [0, 0, 1, 1], [], []>} : vector<4x4xf32>, vector<4x256xf32>, vector<4x256xf32> -> vector<4x256xf32>
    %143 = arith.addf %137, %142 : vector<4x256xf32>
    %c184 = arith.constant 184 : index
    %c0_61 = arith.constant 0 : index
    %144 = vector.load %arg3[%c184, %c0_61] : memref<328x32xf32, #tpu.memory_space<vmem>>, vector<4x4xf32>
    %c241_i32_62 = arith.constant 241 : i32
    %145 = tpu.dynamic_rotate %105 by %c241_i32_62 dim 1 : vector<4x256xf32>, i32 -> vector<4x256xf32>
    %146 = vector.broadcast %43 : vector<1x256xf32> to vector<4x256xf32>
    %147 = arith.mulf %145, %146 : vector<4x256xf32>
    %148 = vector.broadcast %31 : vector<1x256xf32> to vector<4x256xf32>
    %149 = arith.mulf %147, %148 : vector<4x256xf32>
    %cst_63 = arith.constant dense<0.000000e+00> : vector<4x256xf32>
    %150 = tpu.matmul %144, %149, %cst_63 {dimension_numbers = #tpu.dot_dimension_numbers<[1], [0], [0], [1], [0, 0, 1, 1], [], []>} : vector<4x4xf32>, vector<4x256xf32>, vector<4x256xf32> -> vector<4x256xf32>
    %151 = arith.addf %143, %150 : vector<4x256xf32>
    %c192 = arith.constant 192 : index
    %c0_64 = arith.constant 0 : index
    %152 = vector.load %arg3[%c192, %c0_64] : memref<328x32xf32, #tpu.memory_space<vmem>>, vector<4x4xf32>
    %c240_i32_65 = arith.constant 240 : i32
    %153 = tpu.dynamic_rotate %105 by %c240_i32_65 dim 1 : vector<4x256xf32>, i32 -> vector<4x256xf32>
    %154 = vector.broadcast %43 : vector<1x256xf32> to vector<4x256xf32>
    %155 = arith.mulf %153, %154 : vector<4x256xf32>
    %cst_66 = arith.constant dense<0.000000e+00> : vector<4x256xf32>
    %156 = tpu.matmul %152, %155, %cst_66 {dimension_numbers = #tpu.dot_dimension_numbers<[1], [0], [0], [1], [0, 0, 1, 1], [], []>} : vector<4x4xf32>, vector<4x256xf32>, vector<4x256xf32> -> vector<4x256xf32>
    %157 = arith.addf %151, %156 : vector<4x256xf32>
    %c200 = arith.constant 200 : index
    %c0_67 = arith.constant 0 : index
    %158 = vector.load %arg3[%c200, %c0_67] : memref<328x32xf32, #tpu.memory_space<vmem>>, vector<4x4xf32>
    %c239_i32_68 = arith.constant 239 : i32
    %159 = tpu.dynamic_rotate %105 by %c239_i32_68 dim 1 : vector<4x256xf32>, i32 -> vector<4x256xf32>
    %160 = vector.broadcast %43 : vector<1x256xf32> to vector<4x256xf32>
    %161 = arith.mulf %159, %160 : vector<4x256xf32>
    %162 = vector.broadcast %35 : vector<1x256xf32> to vector<4x256xf32>
    %163 = arith.mulf %161, %162 : vector<4x256xf32>
    %cst_69 = arith.constant dense<0.000000e+00> : vector<4x256xf32>
    %164 = tpu.matmul %158, %163, %cst_69 {dimension_numbers = #tpu.dot_dimension_numbers<[1], [0], [0], [1], [0, 0, 1, 1], [], []>} : vector<4x4xf32>, vector<4x256xf32>, vector<4x256xf32> -> vector<4x256xf32>
    %165 = arith.addf %157, %164 : vector<4x256xf32>
    %166 = arith.addf %165, %21 : vector<4x256xf32>
    %167 = tpu.iota {dimensions = array<i32: 0>} : vector<256x1xi32>
    %c4_i32_70 = arith.constant 4 : i32
    %168 = vector.broadcast %c4_i32_70 : i32 to vector<256x1xi32>
    %169 = arith.shrsi %167, %168 : vector<256x1xi32>
    %c15_i32_71 = arith.constant 15 : i32
    %170 = vector.broadcast %c15_i32_71 : i32 to vector<256x1xi32>
    %171 = arith.andi %167, %170 : vector<256x1xi32>
    %c2_i32 = arith.constant 2 : i32
    %172 = vector.broadcast %c2_i32 : i32 to vector<256x1xi32>
    %173 = arith.shrsi %169, %172 : vector<256x1xi32>
    %c3_i32 = arith.constant 3 : i32
    %174 = vector.broadcast %c3_i32 : i32 to vector<256x1xi32>
    %175 = arith.andi %169, %174 : vector<256x1xi32>
    %c2_i32_72 = arith.constant 2 : i32
    %176 = vector.broadcast %c2_i32_72 : i32 to vector<256x1xi32>
    %177 = arith.shrsi %171, %176 : vector<256x1xi32>
    %c3_i32_73 = arith.constant 3 : i32
    %178 = vector.broadcast %c3_i32_73 : i32 to vector<256x1xi32>
    %179 = arith.andi %171, %178 : vector<256x1xi32>
    %c4_i32_74 = arith.constant 4 : i32
    %180 = vector.broadcast %c4_i32_74 : i32 to vector<256x1xi32>
    %181 = arith.muli %173, %180 : vector<256x1xi32>
    %182 = arith.addi %181, %177 : vector<256x1xi32>
    %c0_i32_75 = arith.constant 0 : i32
    %183 = vector.broadcast %c0_i32_75 : i32 to vector<256x1xi32>
    %184 = arith.addi %182, %183 : vector<256x1xi32>
    %c15_i32_76 = arith.constant 15 : i32
    %185 = vector.broadcast %c15_i32_76 : i32 to vector<256x1xi32>
    %186 = arith.andi %184, %185 : vector<256x1xi32>
    %c4_i32_77 = arith.constant 4 : i32
    %187 = vector.broadcast %c4_i32_77 : i32 to vector<256x1xi32>
    %188 = arith.muli %175, %187 : vector<256x1xi32>
    %189 = arith.addi %188, %179 : vector<256x1xi32>
    %c0_i32_78 = arith.constant 0 : i32
    %190 = vector.broadcast %c0_i32_78 : i32 to vector<256x1xi32>
    %191 = arith.addi %189, %190 : vector<256x1xi32>
    %c15_i32_79 = arith.constant 15 : i32
    %192 = vector.broadcast %c15_i32_79 : i32 to vector<256x1xi32>
    %193 = arith.andi %191, %192 : vector<256x1xi32>
    %c16_i32_80 = arith.constant 16 : i32
    %194 = vector.broadcast %c16_i32_80 : i32 to vector<256x1xi32>
    %195 = arith.muli %186, %194 : vector<256x1xi32>
    %196 = arith.addi %195, %193 : vector<256x1xi32>
    %197 = tpu.iota {dimensions = array<i32: 1>} : vector<1x256xi32>
    %198 = vector.broadcast %196 : vector<256x1xi32> to vector<256x256xi32>
    %199 = vector.broadcast %197 : vector<1x256xi32> to vector<256x256xi32>
    %200 = arith.cmpi eq, %198, %199 : vector<256x256xi32>
    %201 = arith.extui %200 : vector<256x256xi1> to vector<256x256xi32>
    %202 = arith.sitofp %201 : vector<256x256xi32> to vector<256x256xf32>
    %cst_81 = arith.constant dense<0.000000e+00> : vector<256x8xf32>
    %203 = tpu.matmul %202, %22, %cst_81 {dimension_numbers = #tpu.dot_dimension_numbers<[1], [1], [0], [0], [0, 0, 1, 0], [], []>} : vector<256x256xf32>, vector<8x256xf32>, vector<256x8xf32> -> vector<256x8xf32>
    %cst_82 = arith.constant dense<0.000000e+00> : vector<256xf32>
    %204 = vector.multi_reduction <add>, %203, %cst_82 [1] : vector<256x8xf32> to vector<256xf32>
    %205 = vector.shape_cast %204 : vector<256xf32> to vector<256x1xf32>
    %cst_83 = arith.constant 8.000000e+00 : f32
    %206 = vector.broadcast %cst_83 : f32 to vector<256x1xf32>
    %207 = arith.divf %205, %206 : vector<256x1xf32>
    %208 = vector.broadcast %207 : vector<256x1xf32> to vector<256x8xf32>
    %209 = arith.subf %203, %208 : vector<256x8xf32>
    %210 = vector.broadcast %207 : vector<256x1xf32> to vector<256x8xf32>
    %211 = arith.subf %203, %210 : vector<256x8xf32>
    %212 = arith.mulf %209, %211 : vector<256x8xf32>
    %cst_84 = arith.constant dense<0.000000e+00> : vector<256xf32>
    %213 = vector.multi_reduction <add>, %212, %cst_84 [1] : vector<256x8xf32> to vector<256xf32>
    %214 = vector.shape_cast %213 : vector<256xf32> to vector<256x1xf32>
    %cst_85 = arith.constant 8.000000e+00 : f32
    %215 = vector.broadcast %cst_85 : f32 to vector<256x1xf32>
    %216 = arith.divf %214, %215 : vector<256x1xf32>
    %217 = vector.broadcast %207 : vector<256x1xf32> to vector<256x8xf32>
    %218 = arith.subf %203, %217 : vector<256x8xf32>
    %cst_86 = arith.constant 9.99999974E-6 : f32
    %219 = vector.broadcast %cst_86 : f32 to vector<256x1xf32>
    %220 = arith.addf %216, %219 : vector<256x1xf32>
    %221 = math.rsqrt %220 : vector<256x1xf32>
    %222 = vector.broadcast %221 : vector<256x1xf32> to vector<256x8xf32>
    %223 = arith.mulf %218, %222 : vector<256x8xf32>
    %224 = vector.broadcast %12 : vector<1x8xf32> to vector<256x8xf32>
    %225 = arith.mulf %223, %224 : vector<256x8xf32>
    %226 = vector.broadcast %13 : vector<1x8xf32> to vector<256x8xf32>
    %227 = arith.addf %225, %226 : vector<256x8xf32>
    %cst_87 = arith.constant dense<0.000000e+00> : vector<256x24xf32>
    %228 = tpu.matmul %227, %4, %cst_87 {dimension_numbers = #tpu.dot_dimension_numbers<[1], [0], [0], [1], [0, 0, 1, 1], [], []>} : vector<256x8xf32>, vector<8x24xf32>, vector<256x24xf32> -> vector<256x24xf32>
    %229 = vector.broadcast %5 : vector<1x24xf32> to vector<256x24xf32>
    %230 = arith.addf %228, %229 : vector<256x24xf32>
    %231 = vector.extract_strided_slice %230 {offsets = [0, 0], sizes = [256, 4], strides = [1, 1]} : vector<256x24xf32> to vector<256x4xf32>
    %232 = vector.shape_cast %231 : vector<256x4xf32> to vector<16x16x4xf32>
    %233 = vector.extract_strided_slice %230 {offsets = [0, 8], sizes = [256, 4], strides = [1, 1]} : vector<256x24xf32> to vector<256x4xf32>
    %234 = vector.shape_cast %233 : vector<256x4xf32> to vector<16x16x4xf32>
    %235 = vector.extract_strided_slice %230 {offsets = [0, 16], sizes = [256, 4], strides = [1, 1]} : vector<256x24xf32> to vector<256x4xf32>
    %236 = vector.shape_cast %235 : vector<256x4xf32> to vector<16x16x4xf32>
    %cst_88 = arith.constant dense<0.000000e+00> : vector<16x16x16xf32>
    %237 = tpu.matmul %232, %234, %cst_88 {dimension_numbers = #tpu.dot_dimension_numbers<[2], [2], [1], [1], [0, 0, 0, 1, 1, 1], [0], [0]>} : vector<16x16x4xf32>, vector<16x16x4xf32>, vector<16x16x16xf32> -> vector<16x16x16xf32>
    %cst_89 = arith.constant 5.000000e-01 : f32
    %238 = vector.broadcast %cst_89 : f32 to vector<16x16x16xf32>
    %239 = arith.mulf %237, %238 : vector<16x16x16xf32>
    %c0_90 = arith.constant 0 : index
    %c0_91 = arith.constant 0 : index
    %c0_92 = arith.constant 0 : index
    %c0_93 = arith.constant 0 : index
    %240 = vector.load %arg2[%c0_90, %c0_91, %c0_92, %c0_93] : memref<2x16x16x16xf32, #tpu.memory_space<vmem>>, vector<1x16x16x16xf32>
    %241 = vector.shape_cast %240 : vector<1x16x16x16xf32> to vector<16x16x16xf32>
    %242 = arith.addf %239, %241 : vector<16x16x16xf32>
    %cst_94 = arith.constant dense<0xFF800000> : vector<16x16xf32>
    %243 = vector.multi_reduction <maximumf>, %242, %cst_94 [2] : vector<16x16x16xf32> to vector<16x16xf32>
    %244 = vector.shape_cast %243 : vector<16x16xf32> to vector<16x16x1xf32>
    %245 = vector.broadcast %244 : vector<16x16x1xf32> to vector<16x16x16xf32>
    %246 = arith.subf %242, %245 : vector<16x16x16xf32>
    %247 = math.exp %246 : vector<16x16x16xf32>
    %cst_95 = arith.constant dense<0.000000e+00> : vector<16x16xf32>
    %248 = vector.multi_reduction <add>, %247, %cst_95 [2] : vector<16x16x16xf32> to vector<16x16xf32>
    %249 = vector.shape_cast %248 : vector<16x16xf32> to vector<16x16x1xf32>
    %250 = tpu.reciprocal %249 {approx = true} : vector<16x16x1xf32> -> vector<16x16x1xf32>
    %251 = vector.broadcast %250 : vector<16x16x1xf32> to vector<16x16x16xf32>
    %252 = arith.mulf %247, %251 : vector<16x16x16xf32>
    %cst_96 = arith.constant dense<0.000000e+00> : vector<16x16x4xf32>
    %253 = tpu.matmul %252, %236, %cst_96 {dimension_numbers = #tpu.dot_dimension_numbers<[2], [1], [1], [2], [0, 0, 0, 1, 1, 2], [0], [0]>} : vector<16x16x16xf32>, vector<16x16x4xf32>, vector<16x16x4xf32> -> vector<16x16x4xf32>
    %254 = vector.shape_cast %253 : vector<16x16x4xf32> to vector<256x4xf32>
    %255 = vector.extract_strided_slice %230 {offsets = [0, 4], sizes = [256, 4], strides = [1, 1]} : vector<256x24xf32> to vector<256x4xf32>
    %256 = vector.shape_cast %255 : vector<256x4xf32> to vector<16x16x4xf32>
    %257 = vector.extract_strided_slice %230 {offsets = [0, 12], sizes = [256, 4], strides = [1, 1]} : vector<256x24xf32> to vector<256x4xf32>
    %258 = vector.shape_cast %257 : vector<256x4xf32> to vector<16x16x4xf32>
    %259 = vector.extract_strided_slice %230 {offsets = [0, 20], sizes = [256, 4], strides = [1, 1]} : vector<256x24xf32> to vector<256x4xf32>
    %260 = vector.shape_cast %259 : vector<256x4xf32> to vector<16x16x4xf32>
    %cst_97 = arith.constant dense<0.000000e+00> : vector<16x16x16xf32>
    %261 = tpu.matmul %256, %258, %cst_97 {dimension_numbers = #tpu.dot_dimension_numbers<[2], [2], [1], [1], [0, 0, 0, 1, 1, 1], [0], [0]>} : vector<16x16x4xf32>, vector<16x16x4xf32>, vector<16x16x16xf32> -> vector<16x16x16xf32>
    %cst_98 = arith.constant 5.000000e-01 : f32
    %262 = vector.broadcast %cst_98 : f32 to vector<16x16x16xf32>
    %263 = arith.mulf %261, %262 : vector<16x16x16xf32>
    %c1 = arith.constant 1 : index
    %c0_99 = arith.constant 0 : index
    %c0_100 = arith.constant 0 : index
    %c0_101 = arith.constant 0 : index
    %264 = vector.load %arg2[%c1, %c0_99, %c0_100, %c0_101] : memref<2x16x16x16xf32, #tpu.memory_space<vmem>>, vector<1x16x16x16xf32>
    %265 = vector.shape_cast %264 : vector<1x16x16x16xf32> to vector<16x16x16xf32>
    %266 = arith.addf %263, %265 : vector<16x16x16xf32>
    %cst_102 = arith.constant dense<0xFF800000> : vector<16x16xf32>
    %267 = vector.multi_reduction <maximumf>, %266, %cst_102 [2] : vector<16x16x16xf32> to vector<16x16xf32>
    %268 = vector.shape_cast %267 : vector<16x16xf32> to vector<16x16x1xf32>
    %269 = vector.broadcast %268 : vector<16x16x1xf32> to vector<16x16x16xf32>
    %270 = arith.subf %266, %269 : vector<16x16x16xf32>
    %271 = math.exp %270 : vector<16x16x16xf32>
    %cst_103 = arith.constant dense<0.000000e+00> : vector<16x16xf32>
    %272 = vector.multi_reduction <add>, %271, %cst_103 [2] : vector<16x16x16xf32> to vector<16x16xf32>
    %273 = vector.shape_cast %272 : vector<16x16xf32> to vector<16x16x1xf32>
    %274 = tpu.reciprocal %273 {approx = true} : vector<16x16x1xf32> -> vector<16x16x1xf32>
    %275 = vector.broadcast %274 : vector<16x16x1xf32> to vector<16x16x16xf32>
    %276 = arith.mulf %271, %275 : vector<16x16x16xf32>
    %cst_104 = arith.constant dense<0.000000e+00> : vector<16x16x4xf32>
    %277 = tpu.matmul %276, %260, %cst_104 {dimension_numbers = #tpu.dot_dimension_numbers<[2], [1], [1], [2], [0, 0, 0, 1, 1, 2], [0], [0]>} : vector<16x16x16xf32>, vector<16x16x4xf32>, vector<16x16x4xf32> -> vector<16x16x4xf32>
    %278 = vector.shape_cast %277 : vector<16x16x4xf32> to vector<256x4xf32>
    %279 = tpu.concatenate %254, %278 in 1 : vector<256x4xf32>, vector<256x4xf32> -> vector<256x8xf32>
    %cst_105 = arith.constant dense<0.000000e+00> : vector<256x8xf32>
    %280 = tpu.matmul %279, %6, %cst_105 {dimension_numbers = #tpu.dot_dimension_numbers<[1], [0], [0], [1], [0, 0, 1, 1], [], []>} : vector<256x8xf32>, vector<8x8xf32>, vector<256x8xf32> -> vector<256x8xf32>
    %281 = arith.addf %203, %280 : vector<256x8xf32>
    %282 = vector.broadcast %7 : vector<1x8xf32> to vector<256x8xf32>
    %283 = arith.addf %281, %282 : vector<256x8xf32>
    %cst_106 = arith.constant dense<0.000000e+00> : vector<256xf32>
    %284 = vector.multi_reduction <add>, %283, %cst_106 [1] : vector<256x8xf32> to vector<256xf32>
    %285 = vector.shape_cast %284 : vector<256xf32> to vector<256x1xf32>
    %cst_107 = arith.constant 8.000000e+00 : f32
    %286 = vector.broadcast %cst_107 : f32 to vector<256x1xf32>
    %287 = arith.divf %285, %286 : vector<256x1xf32>
    %288 = vector.broadcast %287 : vector<256x1xf32> to vector<256x8xf32>
    %289 = arith.subf %283, %288 : vector<256x8xf32>
    %290 = vector.broadcast %287 : vector<256x1xf32> to vector<256x8xf32>
    %291 = arith.subf %283, %290 : vector<256x8xf32>
    %292 = arith.mulf %289, %291 : vector<256x8xf32>
    %cst_108 = arith.constant dense<0.000000e+00> : vector<256xf32>
    %293 = vector.multi_reduction <add>, %292, %cst_108 [1] : vector<256x8xf32> to vector<256xf32>
    %294 = vector.shape_cast %293 : vector<256xf32> to vector<256x1xf32>
    %cst_109 = arith.constant 8.000000e+00 : f32
    %295 = vector.broadcast %cst_109 : f32 to vector<256x1xf32>
    %296 = arith.divf %294, %295 : vector<256x1xf32>
    %297 = vector.broadcast %287 : vector<256x1xf32> to vector<256x8xf32>
    %298 = arith.subf %283, %297 : vector<256x8xf32>
    %cst_110 = arith.constant 9.99999974E-6 : f32
    %299 = vector.broadcast %cst_110 : f32 to vector<256x1xf32>
    %300 = arith.addf %296, %299 : vector<256x1xf32>
    %301 = math.rsqrt %300 : vector<256x1xf32>
    %302 = vector.broadcast %301 : vector<256x1xf32> to vector<256x8xf32>
    %303 = arith.mulf %298, %302 : vector<256x8xf32>
    %304 = vector.broadcast %14 : vector<1x8xf32> to vector<256x8xf32>
    %305 = arith.mulf %303, %304 : vector<256x8xf32>
    %306 = vector.broadcast %15 : vector<1x8xf32> to vector<256x8xf32>
    %307 = arith.addf %305, %306 : vector<256x8xf32>
    %cst_111 = arith.constant dense<0.000000e+00> : vector<256x32xf32>
    %308 = tpu.matmul %307, %8, %cst_111 {dimension_numbers = #tpu.dot_dimension_numbers<[1], [0], [0], [1], [0, 0, 1, 1], [], []>} : vector<256x8xf32>, vector<8x32xf32>, vector<256x32xf32> -> vector<256x32xf32>
    %309 = vector.broadcast %9 : vector<1x32xf32> to vector<256x32xf32>
    %310 = arith.addf %308, %309 : vector<256x32xf32>
    %cst_112 = arith.constant 5.000000e-01 : f32
    %311 = vector.broadcast %cst_112 : f32 to vector<256x32xf32>
    %312 = arith.mulf %311, %310 : vector<256x32xf32>
    %cst_113 = arith.constant 0.707106769 : f32
    %313 = vector.broadcast %cst_113 : f32 to vector<256x32xf32>
    %314 = arith.mulf %310, %313 : vector<256x32xf32>
    %315 = math.erf %314 : vector<256x32xf32>
    %cst_114 = arith.constant 1.000000e+00 : f32
    %316 = vector.broadcast %cst_114 : f32 to vector<256x32xf32>
    %317 = arith.addf %316, %315 : vector<256x32xf32>
    %318 = arith.mulf %312, %317 : vector<256x32xf32>
    %cst_115 = arith.constant dense<0.000000e+00> : vector<256x8xf32>
    %319 = tpu.matmul %318, %10, %cst_115 {dimension_numbers = #tpu.dot_dimension_numbers<[1], [0], [0], [1], [0, 0, 1, 1], [], []>} : vector<256x32xf32>, vector<32x8xf32>, vector<256x8xf32> -> vector<256x8xf32>
    %320 = arith.addf %283, %319 : vector<256x8xf32>
    %321 = vector.broadcast %11 : vector<1x8xf32> to vector<256x8xf32>
    %322 = arith.addf %320, %321 : vector<256x8xf32>
    %323 = vector.extract_strided_slice %2 {offsets = [0, 4], sizes = [12, 8], strides = [1, 1]} : vector<12x12xf32> to vector<12x8xf32>
    %cst_116 = arith.constant dense<0.000000e+00> : vector<12x256xf32>
    %324 = tpu.matmul %323, %322, %cst_116 {dimension_numbers = #tpu.dot_dimension_numbers<[1], [1], [0], [0], [0, 0, 1, 0], [], []>} : vector<12x8xf32>, vector<256x8xf32>, vector<12x256xf32> -> vector<12x256xf32>
    %cst_117 = arith.constant dense<0.000000e+00> : vector<12x256xf32>
    %325 = tpu.matmul %324, %202, %cst_117 {dimension_numbers = #tpu.dot_dimension_numbers<[1], [0], [0], [1], [0, 0, 1, 1], [], []>} : vector<12x256xf32>, vector<256x256xf32>, vector<12x256xf32> -> vector<12x256xf32>
    %326 = vector.extract_strided_slice %2 {offsets = [0, 0], sizes = [12, 4], strides = [1, 1]} : vector<12x12xf32> to vector<12x4xf32>
    %cst_118 = arith.constant dense<0.000000e+00> : vector<12x256xf32>
    %327 = tpu.matmul %326, %166, %cst_118 {dimension_numbers = #tpu.dot_dimension_numbers<[1], [0], [0], [1], [0, 0, 1, 1], [], []>} : vector<12x4xf32>, vector<4x256xf32>, vector<12x256xf32> -> vector<12x256xf32>
    %328 = arith.addf %17, %327 : vector<12x256xf32>
    %329 = arith.addf %328, %325 : vector<12x256xf32>
    %330 = vector.broadcast %3 : vector<12x1xf32> to vector<12x256xf32>
    %331 = arith.addf %329, %330 : vector<12x256xf32>
    %c0_119 = arith.constant 0 : index
    %c0_120 = arith.constant 0 : index
    %c0_121 = arith.constant 0 : index
    %332 = vector.load %arg4[%c0_119, %c0_120, %c0_121] : memref<1x12x256xf32, #tpu.memory_space<vmem>>, vector<1x12x256xf32>
    %333 = vector.shape_cast %332 : vector<1x12x256xf32> to vector<12x256xf32>
    %334 = vector.shape_cast %331 : vector<12x256xf32> to vector<1x12x256xf32>
    tpu.vector_store %arg4[%c0_119, %c0_120, %c0_121], %334 {strides = array<i32>} : memref<1x12x256xf32, #tpu.memory_space<vmem>>, vector<1x12x256xf32>,
    return
  }
  func.func @transform_0(%arg0: i32) -> (i32, i32, i32) {
    %c0_i32 = arith.constant 0 : i32
    %c0_i32_0 = arith.constant 0 : i32
    %c0_i32_1 = arith.constant 0 : i32
    return %arg0, %c0_i32, %c0_i32_0 : i32, i32, i32
  }
  func.func @transform_1(%arg0: i32) -> (i32, i32, i32, i32) {
    %c0_i32 = arith.constant 0 : i32
    %c0_i32_0 = arith.constant 0 : i32
    %c0_i32_1 = arith.constant 0 : i32
    %c0_i32_2 = arith.constant 0 : i32
    %c0_i32_3 = arith.constant 0 : i32
    return %c0_i32, %c0_i32_0, %c0_i32_1, %c0_i32_2 : i32, i32, i32, i32
  }
  func.func @transform_2(%arg0: i32) -> (i32, i32) {
    %c0_i32 = arith.constant 0 : i32
    %c0_i32_0 = arith.constant 0 : i32
    %c0_i32_1 = arith.constant 0 : i32
    return %c0_i32, %c0_i32_0 : i32, i32
  }
  func.func @transform_3(%arg0: i32) -> (i32, i32, i32) {
    %c0_i32 = arith.constant 0 : i32
    %c0_i32_0 = arith.constant 0 : i32
    %c0_i32_1 = arith.constant 0 : i32
    return %arg0, %c0_i32, %c0_i32_0 : i32, i32, i32
  }
}

</mosaic_0001>

<bundles_post_ra>
// kernel: _lambda_.1
= control target key start
LH: loop header
LB: loop body
LE: loop exit
PB: predicated region body
PF: predicated region fallthrough
CT: control target
= control target key end

     0   :  { %8 = vsyncpa [#allocation3], 0  ;;  %s11468_s12 = smov 0   ;;  %s17119_s0 = inlined_call_operand.vmem [shape: f32[2,12,256], index: 0, kind: input, shape index: {}]   ;;  %s17120_s1 = inlined_call_operand.hbm [shape: f32[2,16,16,16], index: 1, kind: input, shape index: {}]   ;;  %s17121_s2 = inlined_call_operand.vmem [shape: f32[328,32], index: 2, kind: input, shape index: {}]   ;;  %s17122_s3 = inlined_call_operand.vmem [shape: f32[2,12,256], index: 3, kind: output, shape index: {}]  }
   0x1 LB: > { %s124_s15 = sshll.u32 %s17120_s1, 4  ;;  %s10022_s16 = sadd.s32 4294967295, %s11426_s12   ;;  %s11426_s12 = sphi %s11468_s12, %s14_s12   ;;  %s125_s15 = int_to_ptr.hbm [resolvable:$true] %s124_s15 }
   0x2   : > { %p10024_p0 = scmp.ge.s32.totalorder %s11426_s12, 1  ;;  %p113_p1 = scmp.lt.s32.totalorder %s11426_s12, 3 }
   0x3   : > { %p10717_p2 = scmp.eq.s32.totalorder %s10022_s16, 0  ;;  %s11428_s17 = smov [#allocation2]  }
   0x4   : > { %p114_p3 = pnand %p10024_p0, %p113_p1  ;;  %s126_s18 = sshll.u32 %s11428_s17, 4  ;;  %s127_s18 = int_to_ptr.vmem [resolvable:$true] %s126_s18 }
   0x5   : > { %s11429_s19 = smov 128   ;;  %s11430_s20 = smov 8  }
   0x6   : > { %p10713_p4 = pneg %p114_p3  ;;  %153 = sbr.rel (%p114_p3) target bundleno = 4335 (0x10ef), region = 32 }
   0x8   : > { %p10714_p5 = pnand %p10717_p2, %p10713_p4 }
   0xa   : > { %10716 = dma.hbm_to_vmem [thread:$0]  (!%p10714_p5), %s125_s15, 8192, %s127_s18, [#allocation3], %s11429_s19, %s11429_s19, %s11430_s20  }
   0xb   : > { %11421 = dma.done.wait (%p10717_p2), [#allocation3], 8192  }
   0xc   : > { %11423 = vsyncadd (%p10717_p2), [#allocation3], 4294959104  ;;  %p178_p6 = scmp.lt.s32.totalorder %s10022_s16, 1  ;;  %v11431_v0 = vmov 0   ;;  %vm232_vm0 = vcmask 1043456   ;;  %v188_v5 = vld [vmem:[%s17121_s2] sm:$0xff]  ;;  %v285_v13 = vlaneseq }
   0xd   : > { %10747 = vset.pattern.permute.xlu0 %v11431_v0  ;;  %10748 = vset.pattern.permute.xlu1 %v11431_v0  ;;  %vm225_vm1 = vcmask 97280   ;;  %v190_v6 = vld [vmem:[%s17121_s2 + $0x10] sm:$0xff]  ;;  %s11432_s29 = smov 15   ;;  %s11433_s30 = smov 17   ;;  %v189_v12 = vld [vmem:[%s17121_s2 + $0x8] sm:$0xf] }
   0xe   : > { %s17799_s16 = smov (!%p178_p6, %s10022_s16), 1  ;;  %217 = vperm.xlu0 %10747, %v190_v6   ;;  %s11434_s4 = smov 16   ;;  %v11545_v14 = vand.u32 127, %v285_v13  ;;  %v11440_v22 = vmov 0.0   ;;  %v316_v35 = vld [vmem:[%s17121_s2 + $0x40] sm:$0xf] }
   0xf   : > { %s10707_s21 = sshll.u32 %s17799_s16, 5  ;;  %s11435_s5 = smov 1   ;;  %vm338_vm7 = vcmask 31744   ;;  %v328_v51 = vld [vmem:[%s17121_s2 + $0x48] sm:$0xf] }
  0x10   : > { %s11487_s24 = scalar_lea.vmem %s17119_s0, %s10707_s21  ;;  %s11436_s6 = smov 113   ;;  %17343 = vst [vmem:[#allocation7_spill] sm:$0xff] %v11545_v14  ;;  %v11548_v15 = vadd.s32 128, %v11545_v14  ;;  %v288_v17 = vshra.s32 %v11545_v14, 4  ;;  %v290_v19 = vand.u32 15, %v11545_v14  ;;  %vm321_vm4 = vcmp.lt.s32.totalorder %v11545_v14, 17 }
  0x11   : > { %v213_v1 = vld [vmem:[%s11487_s24 + $0x10] sm:$0xf]  ;;  %v214_v2 = vld [vmem:[%s11487_s24 + $0x18] sm:$0xf]  ;;  %v211_v3 = vld [vmem:[%s11487_s24] sm:$0xff]  ;;  %s11437_s7 = smov 127  }
  0x12   : > { %10033 = vmatpush.msk.msra.mxu0 %vm232_vm0, %v213_v1  ;;  %10036 = vmatpush.msk.msra.mxu1 %vm232_vm0, %v214_v2  ;;  %v212_v4 = vld [vmem:[%s11487_s24 + $0x8] sm:$0xff]  ;;  %s11438_s8 = smov 111   ;;  %s11439_s9 = smov 112   ;;  %17344 = vst [vmem:[#allocation8_spill] sm:$0xff] %v11548_v15  ;;  %v289_v18 = vshra.s32 %v11548_v15, 4  ;;  %v291_v20 = vand.u32 15, %v11548_v15 }
  0x13   : > { %vm304_vm2 = vcmp.gt.s32.totalorder %v288_v17, 0  ;;  %vm292_vm5 = vcmp.gt.s32.totalorder %v290_v19, 0  ;;  %vm442_vm8 = vcmp.lt.s32.totalorder %v11545_v14, 15  ;;  %vm298_vm9 = vcmp.lt.s32.totalorder %v290_v19, 15  ;;  %v437_v52 = vld [vmem:[%s17121_s2 + $0x50] sm:$0xf] }
  0x14   : > { %254 = vmatpush.msra.mxu0 %v211_v3  ;;  %277 = vmatpush.msra.mxu1 %v212_v4  ;;  %vm305_vm3 = vcmp.gt.s32.totalorder %v289_v18, 0  ;;  %vm293_vm6 = vcmp.gt.s32.totalorder %v291_v20, 0  ;;  %v11560_v23 = vsel %vm304_vm2, 1.0, %v11440_v22  ;;  %v11570_v29 = vsel %vm292_vm5, 1.0, %v11440_v22  ;;  %v500_v59 = vld [vmem:[%s17121_s2 + $0x58] sm:$0xf] }
  0x15   : > { %10034 = vmatmul.msk.f32.vlgmr.msra.gmra.mxu0 %vm225_vm1, %v188_v5  ;;  %10037 = vmatmul.msk.f32.vlgmr.msra.gmra.mxu1 %vm225_vm1, %v188_v5  ;;  %v11563_v24 = vsel %vm305_vm3, 1.0, %v11440_v22  ;;  %v11573_v30 = vsel %vm293_vm6, 1.0, %v11440_v22  ;;  %vm299_vm10 = vcmp.lt.s32.totalorder %v291_v20, 15  ;;  %vm333_vm11 = vcmp.lt.s32.totalorder %v11545_v14, 16  ;;  %v561_v60 = vld [vmem:[%s17121_s2 + $0x60] sm:$0xf] }
  0x16   : > { %v11593_v40 = vsel %vm298_vm9, 1.0, %v11440_v22  ;;  %v11596_v41 = vsel %vm299_vm10, 1.0, %v11440_v22  ;;  %vm505_vm12 = vcmp.lt.s32.totalorder %v11545_v14, 1  ;;  %vm310_vm13 = vcmp.lt.s32.totalorder %v288_v17, 15  ;;  %v613_v17 = vld [vmem:[%s17121_s2 + $0x68] sm:$0xf] }
  0x17   : > { %vm311_vm14 = vcmp.lt.s32.totalorder %v289_v18, 15  ;;  %vm679_vm15 = vcmp.lt.s32.totalorder %v11545_v14, 113  ;;  %v11648_v62 = vsel %vm310_vm13, 1.0, %v11440_v22  ;;  %v674_v18 = vld [vmem:[%s17121_s2 + $0x70] sm:$0xf]  ;;  %vm803_vm2 = vcmp.lt.s32.totalorder %v11545_v14, 111 }
  0x18   : > { %v11651_v63 = vsel %vm311_vm14, 1.0, %v11440_v22  ;;  %vm742_vm3 = vcmp.lt.s32.totalorder %v11545_v14, 112  ;;  %s11445_s19 = smov 124   ;;  %s11447_s11 = smov 4  }
  0x1d   : > { %10038 = vmatmul.msk.f32.gmra.mxu1 %vm225_vm1, %v189_v12  ;;  %10035 = vmatmul.msk.f32.gmra.mxu0 %vm225_vm1, %v189_v12  ;;  %vm618_vm1 = vcmp.lt.s32.totalorder %v11545_v14, 127 }
  0x80   : > { %v218_v7 = vpop.permute.xlu0 %217 }
  0x92   : > { %v256_v8 = vpop.f32.mrf.mxu0  ;;  %v279_v9 = vpop.f32.mrf.mxu1 }
  0x93   : > { %v11503_v10 = vadd.f32 %v256_v8, %v218_v7  ;;  %v11505_v11 = vadd.f32 %v279_v9, %v218_v7 }
  0x95   : > { %17341 = vst [vmem:[#allocation5_spill] sm:$0xff] %v11503_v10  ;;  %440 = vrot.lane.b32.xlu2 %v11505_v11, %s11432_s29  ;;  %319 = vrot.lane.b32.xlu1 %v11505_v11, %s11433_s30 }
  0x96   : > { %17342 = vst [vmem:[#allocation6_spill] sm:$0xff] %v11505_v11  ;;  %317 = vrot.lane.b32.xlu0 %v11503_v10, %s11433_s30 }
  0x9d   : > { %329 = vrot.lane.b32.xlu2 %v11503_v10, %s11434_s4  ;;  %438 = vrot.lane.b32.xlu1 %v11503_v10, %s11432_s29 }
  0x9e   : > { %331 = vrot.lane.b32.xlu0 %v11505_v11, %s11434_s4 }
  0xa5   : > { %503 = vrot.lane.b32.xlu2 %v11505_v11, %s11435_s5  ;;  %501 = vrot.lane.b32.xlu1 %v11503_v10, %s11435_s5 }
  0xa6   : > { %675 = vrot.lane.b32.xlu0 %v11503_v10, %s11436_s6 }
  0xad   : > { %614 = vrot.lane.b32.xlu2 %v11503_v10, %s11437_s7  ;;  %677 = vrot.lane.b32.xlu1 %v11505_v11, %s11436_s6 }
  0xae   : > { %616 = vrot.lane.b32.xlu0 %v11505_v11, %s11437_s7 }
  0xb5   : > { %801 = vrot.lane.b32.xlu2 %v11505_v11, %s11438_s8  ;;  %799 = vrot.lane.b32.xlu1 %v11503_v10, %s11438_s8 }
  0xb6   : > { %738 = vrot.lane.b32.xlu0 %v11503_v10, %s11439_s9 }
  0xbd   : > { %740 = vrot.lane.b32.xlu1 %v11505_v11, %s11439_s9 }
  0xef   : > { %v441_v16 = vpop.permute.xlu2 %440 }
  0xf7   : > { %v330_v26 = vpop.permute.xlu2 %329 }
  0xff   : > { %v504_v48 = vpop.permute.xlu2 %503 }
 0x107   : > { %v320_v21 = vpop.permute.xlu1 %319  ;;  %v615_v61 = vpop.permute.xlu2 %614 }
 0x108   : > { %v318_v25 = vpop.permute.xlu0 %317 }
 0x109   : > { %v322_v27 = vsel %vm321_vm4, %v318_v25, %v320_v21  ;;  %v323_v28 = vsel %vm321_vm4, %v320_v21, %v318_v25 }
 0x10a   : > { %v324_v31 = vmul.f32 %v11560_v23, %v323_v28  ;;  %v325_v32 = vmul.f32 %v11563_v24, %v322_v27 }
 0x10c   : > { %v326_v33 = vmul.f32 %v11570_v29, %v324_v31  ;;  %v327_v34 = vmul.f32 %v11573_v30, %v325_v32  ;;  %v798_v31 = vld [vmem:[%s17121_s2 + $0x80] sm:$0xf] }
 0x10e   : > { %10051 = vmatpush.msk.msra.mxu2 %vm232_vm0, %v326_v33  ;;  %10053 = vmatpush.msk.msra.mxu3 %vm232_vm0, %v327_v34 }
 0x10f   : > { %10052 = vmatmul.msk.f32.vlgmr.msra.gmra.mxu2 %vm338_vm7, %v316_v35  ;;  %10054 = vmatmul.msk.f32.vlgmr.msra.gmra.mxu3 %vm338_vm7, %v316_v35  ;;  %v439_v36 = vpop.permute.xlu1 %438  ;;  %v802_v19 = vpop.permute.xlu2 %801 }
 0x110   : > { %v443_v37 = vsel %vm442_vm8, %v439_v36, %v441_v16  ;;  %v444_v38 = vsel %vm442_vm8, %v441_v16, %v439_v36  ;;  %v332_v39 = vpop.permute.xlu0 %331 }
 0x111   : > { %v445_v42 = vmul.f32 %v11560_v23, %v444_v38  ;;  %v446_v43 = vmul.f32 %v11563_v24, %v443_v37  ;;  %v334_v44 = vsel %vm333_vm11, %v330_v26, %v332_v39  ;;  %v335_v45 = vsel %vm333_vm11, %v332_v39, %v330_v26  ;;  %v737_v38 = vld [vmem:[%s17121_s2 + $0x78] sm:$0xf]  ;;  %v11715_v39 = vpop.f32.mrf.mxu1 }
 0x112   : > { %v336_v46 = vmul.f32 %v11560_v23, %v335_v45  ;;  %v337_v47 = vmul.f32 %v11563_v24, %v334_v44 }
 0x113   : > { %v447_v49 = vmul.f32 %v11593_v40, %v445_v42  ;;  %v448_v50 = vmul.f32 %v11596_v41, %v446_v43  ;;  %v11717_v42 = vpop.f32.mrf.mxu0 }
 0x114   : > { %10047 = vmatpush.msk.msrb.mxu0 %vm232_vm0, %v336_v46  ;;  %10049 = vmatpush.msk.msrb.mxu1 %vm232_vm0, %v337_v47 }
 0x115   : > { %10055 = vmatpush.msk.msrb.mxu2 %vm232_vm0, %v447_v49  ;;  %10057 = vmatpush.msk.msrb.mxu3 %vm232_vm0, %v448_v50 }
 0x116   : > { %10050 = vmatmul.msk.f32.vlgmr.msrb.gmra.mxu1 %vm338_vm7, %v328_v51  ;;  %10048 = vmatmul.msk.f32.vlgmr.msrb.gmra.mxu0 %vm338_vm7, %v328_v51 }
 0x117   : > { %10063 = vmatpush.msk.msra.mxu2 %vm232_vm0, %v11503_v10  ;;  %10058 = vmatmul.msk.f32.vlgmr.msrb.gmra.mxu3 %vm338_vm7, %v437_v52  ;;  %v502_v53 = vpop.permute.xlu1 %501 }
 0x118   : > { %10056 = vmatmul.msk.f32.vlgmr.msrb.gmra.mxu2 %vm338_vm7, %v437_v52  ;;  %10065 = vmatpush.msk.msra.mxu3 %vm232_vm0, %v11505_v11  ;;  %v506_v54 = vsel %vm505_vm12, %v502_v53, %v504_v48  ;;  %v507_v55 = vsel %vm505_vm12, %v504_v48, %v502_v53  ;;  %v676_v56 = vpop.permute.xlu0 %675 }
 0x119   : > { %v508_v57 = vmul.f32 %v11570_v29, %v507_v55  ;;  %v509_v58 = vmul.f32 %v11573_v30, %v506_v54 }
 0x11b   : > { %10059 = vmatpush.msk.msra.mxu0 %vm232_vm0, %v508_v57  ;;  %10061 = vmatpush.msk.msra.mxu1 %vm232_vm0, %v509_v58 }
 0x11e   : > { %10062 = vmatmul.msk.f32.vlgmr.msra.gmra.mxu1 %vm338_vm7, %v500_v59  ;;  %10060 = vmatmul.msk.f32.vlgmr.msra.gmra.mxu0 %vm338_vm7, %v500_v59 }
 0x11f   : > { %10066 = vmatmul.msk.f32.vlgmr.msra.gmra.mxu3 %vm338_vm7, %v561_v60  ;;  %v678_v0 = vpop.permute.xlu1 %677 }
 0x120   : > { %10064 = vmatmul.msk.f32.vlgmr.msra.gmra.mxu2 %vm338_vm7, %v561_v60  ;;  %v680_v1 = vsel %vm679_vm15, %v676_v56, %v678_v0  ;;  %v681_v2 = vsel %vm679_vm15, %v678_v0, %v676_v56  ;;  %v617_v3 = vpop.permute.xlu0 %616 }
 0x121   : > { %v682_v4 = vmul.f32 %v11648_v62, %v680_v1  ;;  %v683_v5 = vmul.f32 %v11651_v63, %v681_v2  ;;  %v619_v6 = vsel %vm618_vm1, %v615_v61, %v617_v3  ;;  %v620_v7 = vsel %vm618_vm1, %v617_v3, %v615_v61 }
 0x122   : > { %v621_v8 = vmul.f32 %v11593_v40, %v619_v6  ;;  %v622_v9 = vmul.f32 %v11596_v41, %v620_v7 }
 0x123   : > { %v684_v12 = vmul.f32 %v11570_v29, %v682_v4  ;;  %v685_v16 = vmul.f32 %v11573_v30, %v683_v5 }
 0x124   : > { %10067 = vmatpush.msk.msrb.mxu0 %vm232_vm0, %v621_v8  ;;  %10069 = vmatpush.msk.msrb.mxu1 %vm232_vm0, %v622_v9 }
 0x125   : > { %10071 = vmatpush.msk.msrb.mxu2 %vm232_vm0, %v684_v12  ;;  %10073 = vmatpush.msk.msrb.mxu3 %vm232_vm0, %v685_v16 }
 0x126   : > { %10070 = vmatmul.msk.f32.vlgmr.msrb.gmra.mxu1 %vm338_vm7, %v613_v17  ;;  %10068 = vmatmul.msk.f32.vlgmr.msrb.gmra.mxu0 %vm338_vm7, %v613_v17 }
 0x127   : > { %10074 = vmatmul.msk.f32.vlgmr.msrb.gmra.mxu3 %vm338_vm7, %v674_v18  ;;  %v800_v20 = vpop.permute.xlu1 %799 }
 0x128   : > { %10072 = vmatmul.msk.f32.vlgmr.msrb.gmra.mxu2 %vm338_vm7, %v674_v18  ;;  %v804_v21 = vsel %vm803_vm2, %v800_v20, %v802_v19  ;;  %v805_v22 = vsel %vm803_vm2, %v802_v19, %v800_v20  ;;  %v739_v32 = vpop.permute.xlu0 %738 }
 0x129   : > { %v806_v25 = vmul.f32 %v11648_v62, %v804_v21  ;;  %v807_v26 = vmul.f32 %v11651_v63, %v805_v22  ;;  %v191_v22 = vld [vmem:[%s17121_s2 + $0x18] sm:$0xf] }
 0x12b   : > { %v808_v27 = vmul.f32 %v11593_v40, %v806_v25  ;;  %v809_v28 = vmul.f32 %v11596_v41, %v807_v26 }
 0x12d   : > { %10079 = vmatpush.msk.msra.mxu2 %vm232_vm0, %v808_v27  ;;  %10081 = vmatpush.msk.msra.mxu3 %vm232_vm0, %v809_v28 }
 0x12f   : > { %v741_v33 = vpop.permute.xlu1 %740  ;;  %10082 = vmatmul.msk.f32.vlgmr.msra.gmra.mxu3 %vm338_vm7, %v798_v31 }
 0x130   : > { %10080 = vmatmul.msk.f32.vlgmr.msra.gmra.mxu2 %vm338_vm7, %v798_v31  ;;  %v743_v34 = vsel %vm742_vm3, %v739_v32, %v741_v33  ;;  %v744_v35 = vsel %vm742_vm3, %v741_v33, %v739_v32 }
 0x131   : > { %v745_v36 = vmul.f32 %v11648_v62, %v743_v34  ;;  %v746_v37 = vmul.f32 %v11651_v63, %v744_v35 }
 0x133   : > { %10075 = vmatpush.msk.msra.mxu0 %vm232_vm0, %v745_v36  ;;  %10077 = vmatpush.msk.msra.mxu1 %vm232_vm0, %v746_v37 }
 0x134   : > { %10076 = vmatmul.msk.f32.vlgmr.msra.gmra.mxu0 %vm338_vm7, %v737_v38  ;;  %10078 = vmatmul.msk.f32.vlgmr.msra.gmra.mxu1 %vm338_vm7, %v737_v38 }
 0x192   : > { %v414_v43 = vpop.f32.mrf.mxu2  ;;  %v434_v44 = vpop.f32.mrf.mxu3 }
 0x193   : > { %v385_v45 = vpop.f32.mrf.mxu1  ;;  %v365_v46 = vpop.f32.mrf.mxu0 }
 0x194   : > { %v415_v49 = vadd.f32 %v414_v43, %v365_v46  ;;  %v435_v52 = vadd.f32 %v434_v44, %v385_v45  ;;  %v863_v43 = vld [vmem:[%s17121_s2 + $0x88] sm:$0xf]  ;;  %v11772_v44 = vshrl.u32 %v285_v13, 7 }
 0x196   : > { %v1434_v13 = vshra.s32 %v11772_v44, 4 }
 0x19a   : > { %v495_v48 = vpop.f32.mrf.mxu3 }
 0x19b   : > { %v475_v47 = vpop.f32.mrf.mxu2  ;;  %v556_v50 = vpop.f32.mrf.mxu1  ;;  %v499_v56 = vadd.f32 %v495_v48, %v435_v52 }
 0x19c   : > { %v536_v51 = vpop.f32.mrf.mxu0  ;;  %v498_v53 = vadd.f32 %v475_v47, %v415_v49 }
 0x19d   : > { %v560_v58 = vadd.f32 %v556_v50, %v499_v56  ;;  %v1403_v56 = vadd.s32 8, %v11772_v44 }
 0x19e   : > { %v559_v57 = vadd.f32 %v536_v51, %v498_v53  ;;  %v1043_v53 = vld [vmem:[%s17121_s2 + $0xa0] sm:$0xf] }
 0x1a2   : > { %v608_v55 = vpop.f32.mrf.mxu3 }
 0x1a3   : > { %v588_v54 = vpop.f32.mrf.mxu2  ;;  %v669_v59 = vpop.f32.mrf.mxu1  ;;  %v612_v0 = vadd.f32 %v608_v55, %v560_v58  ;;  %v1498_v55 = vshra.s32 %v1434_v13, 2  ;;  %v1530_v58 = vand.u32 3, %v1434_v13  ;;  %v1277_v13 = vld [vmem:[%s17121_s2 + $0xc0] sm:$0xf] }
 0x1a4   : > { %v649_v60 = vpop.f32.mrf.mxu0  ;;  %v611_v61 = vadd.f32 %v588_v54, %v559_v57  ;;  %v1466_v54 = vand.u32 15, %v11772_v44 }
 0x1a5   : > { %v673_v3 = vadd.f32 %v669_v59, %v612_v0  ;;  %v1626_v0 = vmul.u32 4, %v1498_v55 }
 0x1a6   : > { %v672_v4 = vadd.f32 %v649_v60, %v611_v61  ;;  %v1562_v61 = vshra.s32 %v1466_v54, 2 }
 0x1aa   : > { %v732_v2 = vpop.f32.mrf.mxu3 }
 0x1ab   : > { %v712_v1 = vpop.f32.mrf.mxu2  ;;  %v736_v6 = vadd.f32 %v732_v2, %v673_v3 }
 0x1ac   : > { %v735_v5 = vadd.f32 %v712_v1, %v672_v4  ;;  %v1435_v1 = vshra.s32 %v1403_v56, 4 }
 0x1b1   : > { %v773_v7 = vpop.f32.mrf.mxu0  ;;  %v793_v8 = vpop.f32.mrf.mxu1 }
 0x1b2   : > { %v796_v9 = vadd.f32 %v773_v7, %v735_v5  ;;  %v797_v12 = vadd.f32 %v793_v8, %v736_v6  ;;  %v856_v17 = vpop.f32.mrf.mxu3  ;;  %v2076_v8 = vrot.slane %v11503_v10, 4 }
 0x1b3   : > { %v836_v16 = vpop.f32.mrf.mxu2 }
 0x1b4   : > { %v859_v18 = vadd.f32 %v836_v16, %v796_v9  ;;  %v860_v19 = vadd.f32 %v856_v17, %v797_v12  ;;  %v2079_v9 = vrot.slane %v11505_v11, 4  ;;  %v1594_v17 = vand.u32 3, %v1466_v54 }
 0x1b6   : > { %v11719_v20 = vmax.f32 %v859_v18, 0.0  ;;  %v11721_v21 = vmax.f32 %v860_v19, 0.0  ;;  %v1722_v18 = vmul.u32 4, %v1530_v58 }
 0x1b8   : > { %866 = vrot.lane.b32.xlu0 %v11721_v21, %s11433_s30  ;;  %1044 = vrot.lane.b32.xlu1 %v11719_v20, %s11435_s5 }
 0x1b9   : > { %864 = vrot.lane.b32.xlu2 %v11719_v20, %s11433_s30 }
 0x1c0   : > { %1156 = vrot.lane.b32.xlu0 %v11719_v20, %s11437_s7  ;;  %1158 = vrot.lane.b32.xlu1 %v11721_v21, %s11437_s7  ;;  %s11444_s7 = smov 116  }
 0x1c1   : > { %1046 = vrot.lane.b32.xlu2 %v11721_v21, %s11435_s5  ;;  %s187_s5 = scalar_lea.vmem %s17122_s3, %s10707_s21 }
 0x1c8   : > { %1280 = vrot.lane.b32.xlu0 %v11721_v21, %s11439_s9  ;;  %222 = vperm.xlu1 %10748, %v191_v22  }
 0x1c9   : > { %1278 = vrot.lane.b32.xlu2 %v11719_v20, %s11439_s9 }
 0x1d0   : > { %877 = vrot.lane.b32.xlu0 %v11721_v21, %s11434_s4  ;;  %982 = vrot.lane.b32.xlu1 %v11719_v20, %s11432_s29 }
 0x1d1   : > { %875 = vrot.lane.b32.xlu2 %v11719_v20, %s11434_s4 }
 0x1d8   : > { %984 = vrot.lane.b32.xlu0 %v11721_v21, %s11432_s29 }
 0x1d9   : > { %1216 = vrot.lane.b32.xlu2 %v11719_v20, %s11436_s6 }
 0x1e0   : > { %1218 = vrot.lane.b32.xlu0 %v11721_v21, %s11436_s6  ;;  %s11443_s6 = smov 120  }
 0x1e1   : > { %1338 = vrot.lane.b32.xlu2 %v11719_v20, %s11438_s8 }
 0x213   : > { %v865_v25 = vpop.permute.xlu2 %864 }
 0x21b   : > { %v1047_v32 = vpop.permute.xlu2 %1046 }
 0x223   : > { %v1279_v57 = vpop.permute.xlu2 %1278 }
 0x22a   : > { %v867_v26 = vpop.permute.xlu0 %866  ;;  %v1045_v27 = vpop.permute.xlu1 %1044 }
 0x22b   : > { %v868_v28 = vsel %vm321_vm4, %v865_v25, %v867_v26  ;;  %v869_v31 = vsel %vm321_vm4, %v867_v26, %v865_v25  ;;  %v1048_v35 = vsel %vm505_vm12, %v1045_v27, %v1047_v32  ;;  %v1049_v36 = vsel %vm505_vm12, %v1047_v32, %v1045_v27 }
 0x22c   : > { %v870_v33 = vmul.f32 %v11560_v23, %v869_v31  ;;  %v871_v34 = vmul.f32 %v11563_v24, %v868_v28  ;;  %v1050_v45 = vmul.f32 %v11570_v29, %v1049_v36  ;;  %v1051_v46 = vmul.f32 %v11573_v30, %v1048_v35  ;;  %v876_v31 = vpop.permute.xlu2 %875 }
 0x22d   : > { %v1467_v25 = vand.u32 15, %v1403_v56  ;;  %v1499_v26 = vshra.s32 %v1435_v1, 2  ;;  %v1404_v27 = vadd.s32 16, %v11772_v44  ;;  %v1754_v28 = vadd.s32 %v1722_v18, %v1594_v17 }
 0x22e   : > { %v872_v37 = vmul.f32 %v11570_v29, %v870_v33  ;;  %v873_v38 = vmul.f32 %v11573_v30, %v871_v34  ;;  %v1531_v34 = vand.u32 3, %v1435_v1 }
 0x22f   : > { %v1468_v54 = vand.u32 15, %v1404_v27 }
 0x230   : > { %10087 = vmatpush.msk.msrb.mxu2 %vm232_vm0, %v872_v37  ;;  %10089 = vmatpush.msk.msrb.mxu3 %vm232_vm0, %v873_v38  ;;  %v1563_v37 = vshra.s32 %v1467_v25, 2  ;;  %v1627_v38 = vmul.u32 4, %v1499_v26 }
 0x231   : > { %10088 = vmatmul.msk.f32.vlgmr.msrb.gmra.mxu2 %vm338_vm7, %v863_v43  ;;  %10090 = vmatmul.msk.f32.vlgmr.msrb.gmra.mxu3 %vm338_vm7, %v863_v43 }
 0x232   : > { %10095 = vmatpush.msk.msra.mxu2 %vm232_vm0, %v1050_v45  ;;  %10097 = vmatpush.msk.msra.mxu3 %vm232_vm0, %v1051_v46  ;;  %v1157_v47 = vpop.permute.xlu0 %1156  ;;  %v1159_v48 = vpop.permute.xlu1 %1158  ;;  %v874_v46 = vld [vmem:[%s17121_s2 + $0x90] sm:$0xf] }
 0x233   : > { %v1160_v49 = vsel %vm618_vm1, %v1157_v47, %v1159_v48  ;;  %v1161_v50 = vsel %vm618_vm1, %v1159_v48, %v1157_v47  ;;  %v1436_v47 = vshra.s32 %v1404_v27, 4  ;;  %v1786_v48 = vand.u32 15, %v1754_v28 }
 0x234   : > { %v1162_v51 = vmul.f32 %v11593_v40, %v1160_v49  ;;  %v1163_v52 = vmul.f32 %v11596_v41, %v1161_v50  ;;  %v1595_v50 = vand.u32 3, %v1467_v25  ;;  %v17161_v28 = vmov 1.0  }
 0x235   : > { %v1500_v55 = vshra.s32 %v1436_v47, 2 }
 0x236   : > { %10103 = vmatpush.msk.msrb.mxu2 %vm232_vm0, %v1162_v51  ;;  %10105 = vmatpush.msk.msrb.mxu3 %vm232_vm0, %v1163_v52  ;;  %v1723_v51 = vmul.u32 4, %v1531_v34  ;;  %v1405_v52 = vadd.s32 24, %v11772_v44 }
 0x239   : > { %10096 = vmatmul.msk.f32.vlgmr.msra.gmra.mxu2 %vm338_vm7, %v1043_v53  ;;  %10098 = vmatmul.msk.f32.vlgmr.msra.gmra.mxu3 %vm338_vm7, %v1043_v53  ;;  %v1659_v53 = vadd.s32 %v1627_v38, %v1563_v37 }
 0x23a   : > { %v1281_v59 = vpop.permute.xlu0 %1280  ;;  %v223_v60 = vpop.permute.xlu1 %222 }
 0x23b   : > { %v1282_v2 = vsel %vm742_vm3, %v1279_v57, %v1281_v59  ;;  %v1283_v3 = vsel %vm742_vm3, %v1281_v59, %v1279_v57  ;;  %v260_v4 = vadd.f32 %v11717_v42, %v223_v60  ;;  %v283_v5 = vadd.f32 %v11715_v39, %v223_v60  ;;  %v1155_v39 = vld [vmem:[%s17121_s2 + $0xb0] sm:$0xf] }
 0x23c   : > { %v1284_v6 = vmul.f32 %v11648_v62, %v1282_v2  ;;  %v1285_v7 = vmul.f32 %v11651_v63, %v1283_v3  ;;  %v1658_v42 = vadd.s32 %v1626_v0, %v1562_v61  ;;  %v1755_v59 = vadd.s32 %v1723_v51, %v1595_v50 }
 0x23d   : > { %v2077_v12 = vrot.slane %v260_v4, 4  ;;  %v2080_v16 = vrot.slane %v283_v5, 4  ;;  %v1437_v60 = vshra.s32 %v1405_v52, 4  ;;  %v1691_v1 = vand.u32 15, %v1659_v53 }
 0x23e   : > { %10111 = vmatpush.msk.msra.mxu2 %vm232_vm0, %v1284_v6  ;;  %10113 = vmatpush.msk.msra.mxu3 %vm232_vm0, %v1285_v7  ;;  %v1690_v33 = vand.u32 15, %v1658_v42  ;;  %v1532_v2 = vand.u32 3, %v1436_v47  ;;  %v1564_v5 = vshra.s32 %v1468_v54, 2  ;;  %v1628_v6 = vmul.u32 4, %v1500_v55 }
 0x23f   : > { %v2078_v19 = vsel %vm232_vm0, %v2076_v8, %v2077_v12  ;;  %v2081_v22 = vsel %vm232_vm0, %v2079_v9, %v2080_v16  ;;  %v981_v9 = vld [vmem:[%s17121_s2 + $0x98] sm:$0xf]  ;;  %v1469_v12 = vand.u32 15, %v1405_v52  ;;  %v1501_v16 = vshra.s32 %v1437_v60, 2 }
 0x240   : > { %v1818_v49 = vmul.u32 16, %v1690_v33  ;;  %v1787_v17 = vand.u32 15, %v1755_v59  ;;  %v1819_v18 = vmul.u32 16, %v1691_v1  ;;  %v1724_v42 = vmul.u32 4, %v1532_v2  ;;  %v1215_v59 = vld [vmem:[%s17121_s2 + $0xb8] sm:$0xf] }
 0x241   : > { %10104 = vmatmul.msk.f32.vlgmr.msrb.gmra.mxu2 %vm338_vm7, %v1155_v39  ;;  %10106 = vmatmul.msk.f32.vlgmr.msrb.gmra.mxu3 %vm338_vm7, %v1155_v39  ;;  %v1660_v39 = vadd.s32 %v1628_v6, %v1564_v5  ;;  %v1533_v25 = vand.u32 3, %v1437_v60  ;;  %v1565_v26 = vshra.s32 %v1469_v12, 2  ;;  %v1629_v27 = vmul.u32 4, %v1501_v16 }
 0x242   : > { %2099 = vmatpush.xpose.msrb.mxu2 %v2078_v19  ;;  %2212 = vmatpush.xpose.msrb.mxu3 %v2081_v22  ;;  %v878_v32 = vpop.permute.xlu0 %877  ;;  %v983_v56 = vpop.permute.xlu1 %982  ;;  %v11837_v58 = vadd.s32 %v1818_v49, %v1786_v48  ;;  %v1597_v38 = vand.u32 3, %v1469_v12  ;;  %v1407_v50 = vadd.s32 40, %v11772_v44 }
 0x243   : > { %v879_v35 = vsel %vm333_vm11, %v876_v31, %v878_v32  ;;  %v880_v36 = vsel %vm333_vm11, %v878_v32, %v876_v31  ;;  %v1217_v19 = vpop.permute.xlu2 %1216  ;;  %v11875_v32 = vadd.s32 %v1819_v18, %v1787_v17  ;;  %v1661_v47 = vadd.s32 %v1629_v27, %v1565_v26 }
 0x244   : > { %v881_v43 = vmul.f32 %v11560_v23, %v880_v36  ;;  %v882_v45 = vmul.f32 %v11563_v24, %v879_v35  ;;  %17345 = vst [vmem:[#allocation9_spill] sm:$0xff] %v11837_v58  ;;  %vm17134_vm4 = vcmp.eq.s32.totalorder %v11837_v58, %v11545_v14  ;;  %vm17123_vm5 = vcmp.eq.s32.totalorder %v11837_v58, %v11548_v15 }
 0x245   : > { %17346 = vst [vmem:[#allocation10_spill] sm:$0xff] %v11875_v32  ;;  %v1692_v36 = vand.u32 15, %v1660_v39  ;;  %v1725_v48 = vmul.u32 4, %v1533_v25  ;;  %vm17135_vm6 = vcmp.eq.s32.totalorder %v11875_v32, %v11545_v14  ;;  %v1693_v51 = vand.u32 15, %v1661_v47 }
 0x246   : > { %10083 = vmatpush.msk.msrb.mxu0 %vm232_vm0, %v881_v43  ;;  %10085 = vmatpush.msk.msrb.mxu1 %vm232_vm0, %v882_v45 }
 0x247   : > { %10084 = vmatmul.msk.f32.vlgmr.msrb.gmra.mxu0 %vm338_vm7, %v874_v46  ;;  %10086 = vmatmul.msk.f32.vlgmr.msrb.gmra.mxu1 %vm338_vm7, %v874_v46  ;;  %v1103_v46 = vld [vmem:[%s17121_s2 + $0xa8] sm:$0xf]  ;;  %v1757_v52 = vadd.s32 %v1725_v48, %v1597_v38  ;;  %v1410_v48 = vadd.s32 64, %v11772_v44 }
 0x249   : > { %10112 = vmatmul.msk.f32.vlgmr.msra.gmra.mxu2 %vm338_vm7, %v1277_v13  ;;  %10114 = vmatmul.msk.f32.vlgmr.msra.gmra.mxu3 %vm338_vm7, %v1277_v13  ;;  %v1789_v60 = vand.u32 15, %v1757_v52  ;;  %v1442_v52 = vshra.s32 %v1410_v48, 4 }
 0x24a   : > { %v985_v57 = vpop.permute.xlu0 %984 }
 0x24b   : > { %v986_v61 = vsel %vm442_vm8, %v983_v56, %v985_v57  ;;  %v987_v0 = vsel %vm442_vm8, %v985_v57, %v983_v56  ;;  %vm17124_vm8 = vcmp.eq.s32.totalorder %v11875_v32, %v11548_v15  ;;  %v1439_v57 = vshra.s32 %v1407_v50, 4 }
 0x24c   : > { %v988_v3 = vmul.f32 %v11560_v23, %v987_v0  ;;  %v989_v4 = vmul.f32 %v11563_v24, %v986_v61  ;;  %v1406_v23 = vadd.s32 32, %v11772_v44  ;;  %v1596_v24 = vand.u32 3, %v1468_v54 }
 0x24d   : > { %v1821_v61 = vmul.u32 16, %v1693_v51  ;;  %v1503_v5 = vshra.s32 %v1439_v57, 2  ;;  %v1535_v12 = vand.u32 3, %v1439_v57 }
 0x24e   : > { %v990_v7 = vmul.f32 %v11593_v40, %v988_v3  ;;  %v991_v8 = vmul.f32 %v11596_v41, %v989_v4  ;;  %v1438_v33 = vshra.s32 %v1406_v23, 4  ;;  %v1756_v37 = vadd.s32 %v1724_v42, %v1596_v24 }
 0x24f   : > { %v1470_v13 = vand.u32 15, %v1406_v23  ;;  %v1408_v3 = vadd.s32 48, %v11772_v44  ;;  %v1471_v4 = vand.u32 15, %v1407_v50  ;;  %v11913_v6 = vadd.s32 %v1821_v61, %v1789_v60 }
 0x250   : > { %10091 = vmatpush.msk.msra.mxu0 %vm232_vm0, %v990_v7  ;;  %10093 = vmatpush.msk.msra.mxu1 %vm232_vm0, %v991_v8  ;;  %v1502_v49 = vshra.s32 %v1438_v33, 2  ;;  %v1534_v53 = vand.u32 3, %v1438_v33  ;;  %v1631_v17 = vmul.u32 4, %v1503_v5  ;;  %v1409_v42 = vadd.s32 56, %v11772_v44 }
 0x251   : > { %10092 = vmatmul.msk.f32.vlgmr.msra.gmra.mxu0 %vm338_vm7, %v981_v9  ;;  %10094 = vmatmul.msk.f32.vlgmr.msra.gmra.mxu1 %vm338_vm7, %v981_v9  ;;  %v1566_v54 = vshra.s32 %v1470_v13, 2  ;;  %v1598_v0 = vand.u32 3, %v1470_v13  ;;  %17348 = vst [vmem:[#allocation12_spill] sm:$0xff] %v11913_v6  ;;  %v1440_v9 = vshra.s32 %v1408_v3, 4  ;;  %v1567_v16 = vshra.s32 %v1471_v4, 2 }
 0x252   : > { %10099 = vmatpush.msk.msrb.mxu0 %vm232_vm0, %v11719_v20  ;;  %10101 = vmatpush.msk.msrb.mxu1 %vm232_vm0, %v11721_v21  ;;  %v1219_v22 = vpop.permute.xlu0 %1218  ;;  %v1630_v55 = vmul.u32 4, %v1502_v49  ;;  %v1726_v1 = vmul.u32 4, %v1534_v53  ;;  %vm17140_vm11 = vcmp.eq.s32.totalorder %v11913_v6, %v11545_v14  ;;  %v1472_v24 = vand.u32 15, %v1408_v3 }
 0x253   : > { %10183 = vmatmul.msk.f32.vlgmr.msrb.gmra.mxu2 %vm17134_vm4, %v17161_v28  ;;  %10215 = vmatmul.msk.f32.vlgmr.msrb.gmra.mxu3 %vm17123_vm5, %v17161_v28  ;;  %v1220_v20 = vsel %vm679_vm15, %v1217_v19, %v1219_v22  ;;  %v1221_v31 = vsel %vm679_vm15, %v1219_v22, %v1217_v19  ;;  %v1504_v39 = vshra.s32 %v1440_v9, 2  ;;  %vm17126_vm12 = vcmp.eq.s32.totalorder %v11913_v6, %v11548_v15 }
 0x254   : > { %v1222_v34 = vmul.f32 %v11648_v62, %v1220_v20  ;;  %v1223_v35 = vmul.f32 %v11651_v63, %v1221_v31  ;;  %v1662_v2 = vadd.s32 %v1630_v55, %v1566_v54  ;;  %v1758_v7 = vadd.s32 %v1726_v1, %v1598_v0 }
 0x255   : > { %v1599_v19 = vand.u32 3, %v1471_v4  ;;  %v1663_v22 = vadd.s32 %v1631_v17, %v1567_v16  ;;  %v1727_v25 = vmul.u32 4, %v1535_v12  ;;  %v1536_v26 = vand.u32 3, %v1440_v9 }
 0x256   : > { %v1224_v43 = vmul.f32 %v11570_v29, %v1222_v34  ;;  %v1225_v45 = vmul.f32 %v11573_v30, %v1223_v35  ;;  %v1788_v29 = vand.u32 15, %v1756_v37  ;;  %v1820_v30 = vmul.u32 16, %v1692_v36 }
 0x257   : > { %v1694_v8 = vand.u32 15, %v1662_v2  ;;  %v1790_v18 = vand.u32 15, %v1758_v7  ;;  %v1568_v20 = vshra.s32 %v1472_v24, 2  ;;  %v1632_v31 = vmul.u32 4, %v1504_v39 }
 0x258   : > { %10107 = vmatpush.msk.msra.mxu0 %vm232_vm0, %v1224_v43  ;;  %10109 = vmatpush.msk.msra.mxu1 %vm232_vm0, %v1225_v45  ;;  %v11901_v56 = vadd.s32 %v1820_v30, %v1788_v29  ;;  %v1441_v33 = vshra.s32 %v1409_v42, 4  ;;  %v1695_v34 = vand.u32 15, %v1663_v22  ;;  %v1759_v35 = vadd.s32 %v1727_v25, %v1599_v19 }
 0x259   : > { %10100 = vmatmul.msk.f32.vlgmr.msrb.gmra.mxu0 %vm338_vm7, %v1103_v46  ;;  %10102 = vmatmul.msk.f32.vlgmr.msrb.gmra.mxu1 %vm338_vm7, %v1103_v46  ;;  %v1822_v23 = vmul.u32 16, %v1694_v8  ;;  %v1600_v36 = vand.u32 3, %v1472_v24  ;;  %v1728_v37 = vmul.u32 4, %v1536_v26  ;;  %v1664_v38 = vadd.s32 %v1632_v31, %v1568_v20 }
 0x25a   : > { %17347 = vst [vmem:[#allocation11_spill] sm:$0xff] %v11901_v56  ;;  %vm17139_vm9 = vcmp.eq.s32.totalorder %v11901_v56, %v11545_v14  ;;  %vm17125_vm10 = vcmp.eq.s32.totalorder %v11901_v56, %v11548_v15  ;;  %v1473_v43 = vand.u32 15, %v1409_v42  ;;  %v1505_v45 = vshra.s32 %v1441_v33, 2 }
 0x25b   : > { %10184 = vmatmul.msk.f32.gmra.mxu2 %vm17135_vm6, %v17161_v28  ;;  %10216 = vmatmul.msk.f32.gmra.mxu3 %vm17124_vm8, %v17161_v28  ;;  %v11936_v27 = vadd.s32 %v1822_v23, %v1790_v18  ;;  %v1791_v46 = vand.u32 15, %v1759_v35  ;;  %v1823_v47 = vmul.u32 16, %v1695_v34  ;;  %v1760_v13 = vadd.s32 %v1728_v37, %v1600_v36 }
 0x25c   : > { %v1696_v49 = vand.u32 15, %v1664_v38  ;;  %v1537_v29 = vand.u32 3, %v1441_v33  ;;  %v1569_v30 = vshra.s32 %v1473_v43, 2  ;;  %v1633_v50 = vmul.u32 4, %v1505_v45 }
 0x25d   : > { %17349 = vst [vmem:[#allocation13_spill] sm:$0xff] %v11936_v27  ;;  %vm17143_vm13 = vcmp.eq.s32.totalorder %v11936_v27, %v11545_v14  ;;  %vm17127_vm14 = vcmp.eq.s32.totalorder %v11936_v27, %v11548_v15  ;;  %v11951_v51 = vadd.s32 %v1823_v47, %v1791_v46  ;;  %v1792_v53 = vand.u32 15, %v1760_v13 }
 0x25e   : > { %v1411_v54 = vadd.s32 72, %v11772_v44  ;;  %v1824_v55 = vmul.u32 16, %v1696_v49  ;;  %v1601_v57 = vand.u32 3, %v1473_v43  ;;  %v1729_v60 = vmul.u32 4, %v1537_v29 }
 0x25f   : > { %17350 = vst [vmem:[#allocation14_spill] sm:$0xff] %v11951_v51  ;;  %vm17144_vm15 = vcmp.eq.s32.totalorder %v11951_v51, %v11545_v14  ;;  %vm17128_vm1 = vcmp.eq.s32.totalorder %v11951_v51, %v11548_v15  ;;  %v1474_v61 = vand.u32 15, %v1410_v48  ;;  %v1506_v0 = vshra.s32 %v1442_v52, 2 }
 0x260   : > { %v1443_v1 = vshra.s32 %v1411_v54, 4  ;;  %v11966_v2 = vadd.s32 %v1824_v55, %v1792_v53  ;;  %v1761_v4 = vadd.s32 %v1729_v60, %v1601_v57  ;;  %v1538_v5 = vand.u32 3, %v1442_v52 }
 0x261   : > { %10108 = vmatmul.msk.f32.vlgmr.msra.gmra.mxu0 %vm338_vm7, %v1215_v59  ;;  %10110 = vmatmul.msk.f32.vlgmr.msra.gmra.mxu1 %vm338_vm7, %v1215_v59  ;;  %v1665_v59 = vadd.s32 %v1633_v50, %v1569_v30  ;;  %v1570_v7 = vshra.s32 %v1474_v61, 2  ;;  %v1634_v8 = vmul.u32 4, %v1506_v0  ;;  %v1475_v9 = vand.u32 15, %v1411_v54 }
 0x262   : > { %17351 = vst [vmem:[#allocation15_spill] sm:$0xff] %v11966_v2  ;;  %v1507_v12 = vshra.s32 %v1443_v1, 2  ;;  %vm17147_vm3 = vcmp.eq.s32.totalorder %v11966_v2, %v11545_v14  ;;  %v1793_v16 = vand.u32 15, %v1761_v4  ;;  %v1412_v18 = vadd.s32 80, %v11772_v44 }
 0x263   : > { %10185 = vmatmul.msk.f32.gmra.mxu2 %vm17139_vm9, %v17161_v28  ;;  %10217 = vmatmul.msk.f32.gmra.mxu3 %vm17125_vm10, %v17161_v28  ;;  %v1697_v3 = vand.u32 15, %v1665_v59  ;;  %vm17129_vm5 = vcmp.eq.s32.totalorder %v11966_v2, %v11548_v15  ;;  %v1602_v23 = vand.u32 3, %v1474_v61  ;;  %v1666_v24 = vadd.s32 %v1634_v8, %v1570_v7 }
 0x264   : > { %v1730_v39 = vmul.u32 4, %v1538_v5  ;;  %v1539_v42 = vand.u32 3, %v1443_v1  ;;  %v1571_v19 = vshra.s32 %v1475_v9, 2  ;;  %v1635_v22 = vmul.u32 4, %v1507_v12 }
 0x265   : > { %v1825_v17 = vmul.u32 16, %v1697_v3  ;;  %v1444_v26 = vshra.s32 %v1412_v18, 4  ;;  %v1698_v20 = vand.u32 15, %v1666_v24  ;;  %v1603_v33 = vand.u32 3, %v1475_v9 }
 0x266   : > { %v1762_v31 = vadd.s32 %v1730_v39, %v1602_v23  ;;  %v1667_v34 = vadd.s32 %v1635_v22, %v1571_v19  ;;  %v1731_v35 = vmul.u32 4, %v1539_v42  ;;  %v1476_v36 = vand.u32 15, %v1412_v18 }
 0x267   : > { %v11981_v25 = vadd.s32 %v1825_v17, %v1793_v16  ;;  %v1508_v37 = vshra.s32 %v1444_v26, 2  ;;  %v1826_v43 = vmul.u32 16, %v1698_v20  ;;  %v1413_v45 = vadd.s32 88, %v11772_v44 }
 0x268   : > { %v1794_v38 = vand.u32 15, %v1762_v31  ;;  %v1699_v46 = vand.u32 15, %v1667_v34  ;;  %v1763_v47 = vadd.s32 %v1731_v35, %v1603_v33  ;;  %v1540_v48 = vand.u32 3, %v1444_v26 }
 0x269   : > { %17352 = vst [vmem:[#allocation16_spill] sm:$0xff] %v11981_v25  ;;  %vm17154_vm8 = vcmp.eq.s32.totalorder %v11981_v25, %v11545_v14  ;;  %vm17130_vm10 = vcmp.eq.s32.totalorder %v11981_v25, %v11548_v15  ;;  %v1572_v13 = vshra.s32 %v1476_v36, 2  ;;  %v1636_v49 = vmul.u32 4, %v1508_v37 }
 0x26a   : > { %v11996_v29 = vadd.s32 %v1826_v43, %v1794_v38  ;;  %v1445_v30 = vshra.s32 %v1413_v45, 4  ;;  %v1795_v50 = vand.u32 15, %v1763_v47  ;;  %v1827_v52 = vmul.u32 16, %v1699_v46 }
 0x26b   : > { %10186 = vmatmul.msk.f32.gmra.mxu2 %vm17140_vm11, %v17161_v28  ;;  %10218 = vmatmul.msk.f32.gmra.mxu3 %vm17126_vm12, %v17161_v28  ;;  %v1604_v53 = vand.u32 3, %v1476_v36  ;;  %v1732_v54 = vmul.u32 4, %v1540_v48  ;;  %v1668_v55 = vadd.s32 %v1636_v49, %v1572_v13  ;;  %v1414_v57 = vadd.s32 96, %v11772_v44 }
 0x26c   : > { %17353 = vst [vmem:[#allocation17_spill] sm:$0xff] %v11996_v29  ;;  %vm17266_vm12 = vcmp.eq.s32.totalorder %v11996_v29, %v11545_v14  ;;  %v1477_v59 = vand.u32 15, %v1413_v45  ;;  %v1509_v60 = vshra.s32 %v1445_v30, 2  ;;  %v12003_v61 = vadd.s32 %v1827_v52, %v1795_v50 }
 0x26d   : > { %v1764_v0 = vadd.s32 %v1732_v54, %v1604_v53  ;;  %v1700_v1 = vand.u32 15, %v1668_v55  ;;  %v1446_v3 = vshra.s32 %v1414_v57, 4  ;;  %v1541_v4 = vand.u32 3, %v1445_v30 }
 0x26e   : > { %17354 = vst [vmem:[#allocation18_spill] sm:$0xff] %v12003_v61  ;;  %v1573_v5 = vshra.s32 %v1477_v59, 2  ;;  %v1637_v7 = vmul.u32 4, %v1509_v60  ;;  %v1478_v12 = vand.u32 15, %v1414_v57  ;;  %v1415_v17 = vadd.s32 104, %v11772_v44 }
 0x26f   : > { %v1796_v8 = vand.u32 15, %v1764_v0  ;;  %v1828_v9 = vmul.u32 16, %v1700_v1  ;;  %v1510_v16 = vshra.s32 %v1446_v3, 2  ;;  %v1605_v18 = vand.u32 3, %v1477_v59 }
 0x270   : > { %v1669_v23 = vadd.s32 %v1637_v7, %v1573_v5  ;;  %v1733_v24 = vmul.u32 4, %v1541_v4  ;;  %v1542_v39 = vand.u32 3, %v1446_v3  ;;  %v1574_v19 = vshra.s32 %v1478_v12, 2 }
 0x271   : > { %v12026_v42 = vadd.s32 %v1828_v9, %v1796_v8  ;;  %v1638_v22 = vmul.u32 4, %v1510_v16  ;;  %v1447_v26 = vshra.s32 %v1415_v17, 4  ;;  %v1606_v33 = vand.u32 3, %v1478_v12 }
 0x272   : > { %v1701_v20 = vand.u32 15, %v1669_v23  ;;  %v1765_v31 = vadd.s32 %v1733_v24, %v1605_v18  ;;  %v1734_v34 = vmul.u32 4, %v1542_v39  ;;  %v1479_v36 = vand.u32 15, %v1415_v17 }
 0x273   : > { %10187 = vmatmul.msk.f32.gmra.mxu2 %vm17143_vm13, %v17161_v28  ;;  %10219 = vmatmul.msk.f32.gmra.mxu3 %vm17127_vm14, %v17161_v28  ;;  %vm17131_vm14 = vcmp.eq.s32.totalorder %v11996_v29, %v11548_v15  ;;  %17355 = vst [vmem:[#allocation19_spill] sm:$0xff] %v12026_v42  ;;  %v1670_v35 = vadd.s32 %v1638_v22, %v1574_v19  ;;  %v1511_v37 = vshra.s32 %v1447_v26, 2  ;;  %v1416_v45 = vadd.s32 112, %v11772_v44 }
 0x274   : > { %v1797_v38 = vand.u32 15, %v1765_v31  ;;  %v1829_v43 = vmul.u32 16, %v1701_v20  ;;  %v1766_v46 = vadd.s32 %v1734_v34, %v1606_v33  ;;  %v1543_v48 = vand.u32 3, %v1447_v26 }
 0x275   : > { %v1702_v47 = vand.u32 15, %v1670_v35  ;;  %v1575_v13 = vshra.s32 %v1479_v36, 2  ;;  %v1639_v49 = vmul.u32 4, %v1511_v37  ;;  %v1448_v50 = vshra.s32 %v1416_v45, 4 }
 0x276   : > { %v12041_v30 = vadd.s32 %v1829_v43, %v1797_v38  ;;  %v1798_v52 = vand.u32 15, %v1766_v46  ;;  %v1417_v53 = vadd.s32 120, %v11772_v44  ;;  %v1607_v55 = vand.u32 3, %v1479_v36 }
 0x277   : > { %v1830_v54 = vmul.u32 16, %v1702_v47  ;;  %v1671_v57 = vadd.s32 %v1639_v49, %v1575_v13  ;;  %v1735_v59 = vmul.u32 4, %v1543_v48  ;;  %v1480_v60 = vand.u32 15, %v1416_v45 }
 0x278   : > { %17356 = vst [vmem:[#allocation20_spill] sm:$0xff] %v12041_v30  ;;  %v1512_v0 = vshra.s32 %v1448_v50, 2  ;;  %v1449_v1 = vshra.s32 %v1417_v53, 4  ;;  %v1544_v7 = vand.u32 3, %v1448_v50  ;;  %v1481_v12 = vand.u32 15, %v1417_v53 }
 0x279   : > { %v12056_v3 = vadd.s32 %v1830_v54, %v1798_v52  ;;  %v1703_v4 = vand.u32 15, %v1671_v57  ;;  %v1767_v5 = vadd.s32 %v1735_v59, %v1607_v55  ;;  %v1576_v8 = vshra.s32 %v1480_v60, 2 }
 0x27a   : > { %v1640_v9 = vmul.u32 4, %v1512_v0  ;;  %v1513_v16 = vshra.s32 %v1449_v1, 2  ;;  %v1608_v23 = vand.u32 3, %v1480_v60  ;;  %v1736_v39 = vmul.u32 4, %v1544_v7 }
 0x27b   : > { %10188 = vmatmul.msk.f32.gmra.mxu2 %vm17144_vm15, %v17161_v28  ;;  %10220 = vmatmul.msk.f32.gmra.mxu3 %vm17128_vm1, %v17161_v28  ;;  %vm17329_vm1 = vcmp.eq.s32.totalorder %v12003_v61, %v11545_v14  ;;  %17357 = vst [vmem:[#allocation21_spill] sm:$0xff] %v12056_v3  ;;  %vm1906_vm4 = vcmp.eq.s32.totalorder %v12056_v3, %v11545_v14  ;;  %v1799_v17 = vand.u32 15, %v1767_v5  ;;  %v1831_v18 = vmul.u32 16, %v1703_v4 }
 0x27c   : > { %vm17137_vm6 = vcmp.eq.s32.totalorder %v12056_v3, %v11548_v15  ;;  %v1672_v24 = vadd.s32 %v1640_v9, %v1576_v8  ;;  %v1418_v19 = vadd.s32 128, %v11772_v44  ;;  %v1545_v22 = vand.u32 3, %v1449_v1 }
 0x27d   : > { %v1577_v26 = vshra.s32 %v1481_v12, 2  ;;  %v1641_v20 = vmul.u32 4, %v1513_v16  ;;  %v12071_v31 = vadd.s32 %v1831_v18, %v1799_v17  ;;  %v1768_v36 = vadd.s32 %v1736_v39, %v1608_v23 }
 0x27e   : > { %v1704_v35 = vand.u32 15, %v1672_v24  ;;  %v1450_v37 = vshra.s32 %v1418_v19, 4  ;;  %v1609_v38 = vand.u32 3, %v1481_v12  ;;  %v1737_v45 = vmul.u32 4, %v1545_v22 }
 0x27f   : > { %17358 = vst [vmem:[#allocation22_spill] sm:$0xff] %v12071_v31  ;;  %v1673_v43 = vadd.s32 %v1641_v20, %v1577_v26  ;;  %v1419_v46 = vadd.s32 136, %v11772_v44  ;;  %v1800_v47 = vand.u32 15, %v1768_v36  ;;  %v1482_v13 = vand.u32 15, %v1418_v19 }
 0x280   : > { %v1832_v48 = vmul.u32 16, %v1704_v35  ;;  %v1514_v49 = vshra.s32 %v1450_v37, 2  ;;  %v1769_v52 = vadd.s32 %v1737_v45, %v1609_v38  ;;  %v1546_v54 = vand.u32 3, %v1450_v37 }
 0x281   : > { %v1705_v50 = vand.u32 15, %v1673_v43  ;;  %v1451_v53 = vshra.s32 %v1419_v46, 4  ;;  %v1578_v60 = vshra.s32 %v1482_v13, 2  ;;  %v1420_v1 = vadd.s32 144, %v11772_v44 }
 0x282   : > { %v12094_v59 = vadd.s32 %v1832_v48, %v1800_v47  ;;  %v1642_v0 = vmul.u32 4, %v1514_v49  ;;  %v1801_v4 = vand.u32 15, %v1769_v52  ;;  %v1483_v7 = vand.u32 15, %v1419_v46 }
 0x283   : > { %10189 = vmatmul.msk.f32.gmra.mxu2 %vm17147_vm3, %v17161_v28  ;;  %10221 = vmatmul.msk.f32.gmra.mxu3 %vm17129_vm5, %v17161_v28  ;;  %vm17132_vm5 = vcmp.eq.s32.totalorder %v12003_v61, %v11548_v15  ;;  %v1833_v5 = vmul.u32 16, %v1705_v50  ;;  %v1515_v8 = vshra.s32 %v1451_v53, 2  ;;  %v1610_v9 = vand.u32 3, %v1482_v13 }
 0x284   : > { %17359 = vst [vmem:[#allocation23_spill] sm:$0xff] %v12094_v59  ;;  %v1738_v12 = vmul.u32 4, %v1546_v54  ;;  %vm17141_vm9 = vcmp.eq.s32.totalorder %v12094_v59, %v11548_v15  ;;  %v1674_v16 = vadd.s32 %v1642_v0, %v1578_v60  ;;  %v1452_v17 = vshra.s32 %v1420_v1, 4 }
 0x285   : > { %v12101_v18 = vadd.s32 %v1833_v5, %v1801_v4  ;;  %v1579_v23 = vshra.s32 %v1483_v7, 2  ;;  %v1643_v24 = vmul.u32 4, %v1515_v8  ;;  %v1547_v19 = vand.u32 3, %v1451_v53 }
 0x286   : > { %v1770_v39 = vadd.s32 %v1738_v12, %v1610_v9  ;;  %v1706_v22 = vand.u32 15, %v1674_v16  ;;  %v1484_v26 = vand.u32 15, %v1420_v1  ;;  %v1516_v20 = vshra.s32 %v1452_v17, 2 }
 0x287   : > { %17360 = vst [vmem:[#allocation24_spill] sm:$0xff] %v12101_v18  ;;  %v1421_v37 = vadd.s32 152, %v11772_v44  ;;  %vm1912_vm11 = vcmp.eq.s32.totalorder %v12101_v18, %v11545_v14  ;;  %v1675_v45 = vadd.s32 %v1643_v24, %v1579_v23  ;;  %v1611_v47 = vand.u32 3, %v1483_v7 }
 0x288   : > { %v1802_v46 = vand.u32 15, %v1770_v39  ;;  %v1739_v48 = vmul.u32 4, %v1547_v19  ;;  %v1834_v13 = vmul.u32 16, %v1706_v22  ;;  %v1548_v49 = vand.u32 3, %v1452_v17 }
 0x289   : > { %v1580_v50 = vshra.s32 %v1484_v26, 2  ;;  %v1644_v52 = vmul.u32 4, %v1516_v20  ;;  %v1453_v53 = vshra.s32 %v1421_v37, 4  ;;  %v1707_v54 = vand.u32 15, %v1675_v45 }
 0x28a   : > { %v1771_v60 = vadd.s32 %v1739_v48, %v1611_v47  ;;  %v12128_v0 = vadd.s32 %v1834_v13, %v1802_v46  ;;  %v1612_v1 = vand.u32 3, %v1484_v26  ;;  %v1740_v5 = vmul.u32 4, %v1548_v49 }
 0x28b   : > { %10190 = vmatmul.msk.f32.gmra.mxu2 %vm17154_vm8, %v17161_v28  ;;  %10222 = vmatmul.msk.f32.gmra.mxu3 %vm17130_vm10, %v17161_v28  ;;  %vm17330_vm10 = vcmp.eq.s32.totalorder %v12026_v42, %v11545_v14  ;;  %v1676_v4 = vadd.s32 %v1644_v52, %v1580_v50  ;;  %v1485_v16 = vand.u32 15, %v1421_v37  ;;  %v1517_v17 = vshra.s32 %v1453_v53, 2 }
 0x28c   : > { %17361 = vst [vmem:[#allocation25_spill] sm:$0xff] %v12128_v0  ;;  %v1835_v39 = vmul.u32 16, %v1707_v54  ;;  %v1803_v20 = vand.u32 15, %v1771_v60  ;;  %v1422_v26 = vadd.s32 160, %v11772_v44  ;;  %vm17146_vm13 = vcmp.eq.s32.totalorder %v12128_v0, %v11548_v15 }
 0x28d   : > { %v1645_v45 = vmul.u32 4, %v1517_v17  ;;  %v1549_v46 = vand.u32 3, %v1453_v53  ;;  %vm2310_vm15 = vcmask 64512   ;;  %v1613_v52 = vand.u32 3, %v1485_v16 }
 0x28e   : > { %v12151_v47 = vadd.s32 %v1835_v39, %v1803_v20  ;;  %v1454_v48 = vshra.s32 %v1422_v26, 4  ;;  %v1423_v17 = vadd.s32 168, %v11772_v44 }
 0x28f   : > { %v1741_v53 = vmul.u32 4, %v1549_v46 }
 0x290   : > { %17362 = vst [vmem:[#allocation26_spill] sm:$0xff] %v12151_v47  ;;  %v1550_v20 = vand.u32 3, %v1454_v48 }
 0x293   : > { %10191 = vmatmul.msk.f32.gmra.mxu2 %vm17266_vm12, %v17161_v28  ;;  %10223 = vmatmul.msk.f32.gmra.mxu3 %vm17131_vm14, %v17161_v28  ;;  %vm17133_vm14 = vcmp.eq.s32.totalorder %v12026_v42, %v11548_v15 }
 0x29b   : > { %10192 = vmatmul.msk.f32.gmra.mxu2 %vm17329_vm1, %v17161_v28  ;;  %10224 = vmatmul.msk.f32.gmra.mxu3 %vm17132_vm5, %v17161_v28  ;;  %vm1904_vm5 = vcmp.eq.s32.totalorder %v12041_v30, %v11545_v14 }
 0x2a3   : > { %10193 = vmatmul.msk.f32.gmra.mxu2 %vm17330_vm10, %v17161_v28  ;;  %10225 = vmatmul.msk.f32.gmra.mxu3 %vm17133_vm14, %v17161_v28  ;;  %vm17136_vm14 = vcmp.eq.s32.totalorder %v12041_v30, %v11548_v15 }
 0x2ab   : > { %10194 = vmatmul.msk.f32.gmra.mxu2 %vm1904_vm5, %v17161_v28  ;;  %10226 = vmatmul.msk.f32.gmra.mxu3 %vm17136_vm14, %v17161_v28  ;;  %vm1908_vm14 = vcmp.eq.s32.totalorder %v12071_v31, %v11545_v14 }
 0x2b3   : > { %10195 = vmatmul.msk.f32.gmra.mxu2 %vm1906_vm4, %v17161_v28  ;;  %10227 = vmatmul.msk.f32.gmra.mxu3 %vm17137_vm6, %v17161_v28  ;;  %vm17138_vm6 = vcmp.eq.s32.totalorder %v12071_v31, %v11548_v15 }
 0x2b4   : > { %v12073_v33 = vpop.f32.mrf.mxu2  ;;  %v12075_v34 = vpop.f32.mrf.mxu3 }
 0x2bb   : > { %10196 = vmatmul.msk.f32.gmra.mxu2 %vm1908_vm14, %v17161_v28  ;;  %10228 = vmatmul.msk.f32.gmra.mxu3 %vm17138_vm6, %v17161_v28  ;;  %vm1910_vm6 = vcmp.eq.s32.totalorder %v12094_v59, %v11545_v14 }
 0x2bc   : > { %v12090_v55 = vpop.f32.mrf.mxu2  ;;  %v12092_v57 = vpop.f32.mrf.mxu3 }
 0x2c3   : > { %10197 = vmatmul.msk.f32.gmra.mxu2 %vm1910_vm6, %v17161_v28  ;;  %10229 = vmatmul.msk.f32.gmra.mxu3 %vm17141_vm9, %v17161_v28  ;;  %vm17142_vm9 = vcmp.eq.s32.totalorder %v12101_v18, %v11548_v15 }
 0x2c4   : > { %v12111_v35 = vpop.f32.mrf.mxu2  ;;  %v12113_v36 = vpop.f32.mrf.mxu3 }
 0x2c5   : > { %v909_v38 = vpop.f32.mrf.mxu0  ;;  %v929_v43 = vpop.f32.mrf.mxu1 }
 0x2c6   : > { %v959_v7 = vadd.f32 %v12073_v33, %v909_v38  ;;  %v979_v8 = vadd.f32 %v12075_v34, %v929_v43  ;;  %v1708_v33 = vand.u32 15, %v1676_v4  ;;  %v1772_v34 = vadd.s32 %v1740_v5, %v1612_v1 }
 0x2c7   : > { %v1581_v43 = vshra.s32 %v1485_v16, 2  ;;  %v1486_v4 = vand.u32 15, %v1422_v26  ;;  %v1518_v5 = vshra.s32 %v1454_v48, 2 }
 0x2c8   : > { %v1804_v13 = vand.u32 15, %v1772_v34  ;;  %v1455_v34 = vshra.s32 %v1423_v17, 4 }
 0x2c9   : > { %v1677_v49 = vadd.s32 %v1645_v45, %v1581_v43  ;;  %v1582_v26 = vshra.s32 %v1486_v4, 2  ;;  %v1614_v43 = vand.u32 3, %v1486_v4  ;;  %v1742_v45 = vmul.u32 4, %v1550_v20 }
 0x2cb   : > { %10198 = vmatmul.msk.f32.gmra.mxu2 %vm1912_vm11, %v17161_v28  ;;  %10230 = vmatmul.msk.f32.gmra.mxu3 %vm17142_vm9, %v17161_v28  ;;  %vm17145_vm9 = vcmp.eq.s32.totalorder %v12128_v0, %v11545_v14  ;;  %v1774_v4 = vadd.s32 %v1742_v45, %v1614_v43 }
 0x2cc   : > { %v12132_v9 = vpop.f32.mrf.mxu2  ;;  %v12134_v12 = vpop.f32.mrf.mxu3 }
 0x2ce   : > { %v1018_v23 = vpop.f32.mrf.mxu0  ;;  %v1038_v24 = vpop.f32.mrf.mxu1 }
 0x2cf   : > { %v1041_v19 = vadd.f32 %v1018_v23, %v959_v7  ;;  %v1042_v22 = vadd.f32 %v1038_v24, %v979_v8  ;;  %v1709_v24 = vand.u32 15, %v1677_v49  ;;  %v1487_v49 = vand.u32 15, %v1423_v17 }
 0x2d0   : > { %v1551_v17 = vand.u32 3, %v1455_v34 }
 0x2d1   : > { %v1101_v38 = vadd.f32 %v12090_v55, %v1041_v19  ;;  %v1102_v37 = vadd.f32 %v12092_v57, %v1042_v22  ;;  %v1836_v55 = vmul.u32 16, %v1708_v33  ;;  %v1773_v22 = vadd.s32 %v1741_v53, %v1613_v52 }
 0x2d2   : > { %v1646_v33 = vmul.u32 4, %v1518_v5  ;;  %v1519_v52 = vshra.s32 %v1455_v34, 2  ;;  %v1424_v53 = vadd.s32 176, %v11772_v44 }
 0x2d3   : > { %10199 = vmatmul.msk.f32.gmra.mxu2 %vm17145_vm9, %v17161_v28  ;;  %10231 = vmatmul.msk.f32.gmra.mxu3 %vm17146_vm13, %v17161_v28  ;;  %vm17148_vm9 = vcmp.eq.s32.totalorder %v12151_v47, %v11545_v14  ;;  %vm17149_vm13 = vcmp.eq.s32.totalorder %v12151_v47, %v11548_v15  ;;  %v12162_v23 = vadd.s32 %v1836_v55, %v1804_v13 }
 0x2d4   : > { %v1678_v55 = vadd.s32 %v1646_v33, %v1582_v26  ;;  %v1615_v26 = vand.u32 3, %v1487_v49  ;;  %v1743_v33 = vmul.u32 4, %v1551_v17 }
 0x2d5   : > { %17364 = vst [vmem:[#allocation28_spill] sm:$0xff] %v12162_v23  ;;  %vm17150_vm3 = vcmp.eq.s32.totalorder %v12162_v23, %v11545_v14 }
 0x2d6   : > { %v2101_v57 = vpop.f32.mrf.mxu2  ;;  %v2214_v50 = vpop.f32.mrf.mxu3  ;;  %v1775_v43 = vadd.s32 %v1743_v33, %v1615_v26 }
 0x2d7   : > { %v12153_v54 = vadd.f32 %v2214_v50, %v2101_v57  ;;  %v1130_v60 = vpop.f32.mrf.mxu0  ;;  %v1150_v1 = vpop.f32.mrf.mxu1 }
 0x2d8   : > { %v1153_v7 = vadd.f32 %v1130_v60, %v1101_v38  ;;  %v1154_v8 = vadd.f32 %v1150_v1, %v1102_v37  ;;  %v1805_v38 = vand.u32 15, %v1773_v22  ;;  %v1837_v37 = vmul.u32 16, %v1709_v24 }
 0x2d9   : > { %17363 = vst [vmem:[#allocation27_spill] sm:$0xff] %v12153_v54  ;;  %v2311_v16 = vsel %vm2310_vm15, %v12153_v54, 0.0  ;;  %v1647_v24 = vmul.u32 4, %v1519_v52  ;;  %v1807_v52 = vand.u32 15, %v1775_v43 }
 0x2da   : > { %2312 = vadd.xlane.f32.xlu2 %v2311_v16  ;;  %v1213_v39 = vadd.f32 %v12111_v35, %v1153_v7  ;;  %v1214_v19 = vadd.f32 %v12113_v36, %v1154_v8  ;;  %v12183_v1 = vadd.s32 %v1837_v37, %v1805_v38  ;;  %v1710_v8 = vand.u32 15, %v1678_v55 }
 0x2db   : > { %10200 = vmatmul.msk.f32.gmra.mxu2 %vm17148_vm9, %v17161_v28  ;;  %10232 = vmatmul.msk.f32.gmra.mxu3 %vm17149_vm13, %v17161_v28  ;;  %vm17151_vm9 = vcmp.eq.s32.totalorder %v12162_v23, %v11548_v15  ;;  %v1583_v16 = vshra.s32 %v1487_v49, 2  ;;  %v1428_v23 = vadd.s32 208, %v11772_v44 }
 0x2dc   : > { %17366 = vst [vmem:[#allocation30_spill] sm:$0xff] %v12183_v1  ;;  %vm17152_vm13 = vcmp.eq.s32.totalorder %v12183_v1, %v11545_v14  ;;  %v1838_v20 = vmul.u32 16, %v1710_v8 }
 0x2de   : > { %v2104_v35 = vpop.f32.mrf.mxu2  ;;  %v2217_v36 = vpop.f32.mrf.mxu3 }
 0x2df   : > { %v12176_v46 = vadd.f32 %v2217_v36, %v2104_v35  ;;  %v1252_v48 = vpop.f32.mrf.mxu0  ;;  %v1272_v13 = vpop.f32.mrf.mxu1  ;;  %v1679_v35 = vadd.s32 %v1647_v24, %v1583_v16  ;;  %v1488_v36 = vand.u32 15, %v1424_v53 }
 0x2e0   : > { %v1275_v57 = vadd.f32 %v1252_v48, %v1213_v39  ;;  %v1276_v50 = vadd.f32 %v1272_v13, %v1214_v19  ;;  %v1456_v39 = vshra.s32 %v1424_v53, 4 }
 0x2e1   : > { %17365 = vst [vmem:[#allocation29_spill] sm:$0xff] %v12176_v46  ;;  %v2314_v60 = vsel %vm2310_vm15, %v12176_v46, 0.0  ;;  %v1711_v45 = vand.u32 15, %v1679_v35  ;;  %v1584_v13 = vshra.s32 %v1488_v36, 2 }
 0x2e2   : > { %2315 = vadd.xlane.f32.xlu0 %v2314_v60  ;;  %v12186_v5 = vadd.f32 %v12132_v9, %v1275_v57  ;;  %v12189_v7 = vadd.f32 %v12134_v12, %v1276_v50  ;;  %v1806_v12 = vand.u32 15, %v1774_v4  ;;  %v1520_v34 = vshra.s32 %v1456_v39, 2 }
 0x2e3   : > { %10201 = vmatmul.msk.f32.gmra.mxu2 %vm17150_vm3, %v17161_v28  ;;  %10233 = vmatmul.msk.f32.gmra.mxu3 %vm17151_vm9, %v17161_v28  ;;  %vm17153_vm3 = vcmp.eq.s32.totalorder %v12183_v1, %v11548_v15  ;;  %v1552_v48 = vand.u32 3, %v1456_v39  ;;  %v1839_v53 = vmul.u32 16, %v1711_v45  ;;  %v1616_v60 = vand.u32 3, %v1488_v36 }
 0x2e4   : > { %17367 = vst [vmem:[#allocation31_spill] sm:$0xff] %v12186_v5  ;;  %v12215_v37 = vadd.s32 %v1838_v20, %v1806_v12  ;;  %v1648_v55 = vmul.u32 4, %v1520_v34  ;;  %v1425_v36 = vadd.s32 184, %v11772_v44 }
 0x2e5   : > { %17368 = vst [vmem:[#allocation32_spill] sm:$0xff] %v12189_v7  ;;  %v1744_v8 = vmul.u32 4, %v1552_v48  ;;  %v12233_v16 = vadd.s32 %v1839_v53, %v1807_v52 }
 0x2e6   : > { %v2107_v9 = vpop.f32.mrf.mxu2  ;;  %v2220_v19 = vpop.f32.mrf.mxu3  ;;  %17370 = vst [vmem:[#allocation34_spill] sm:$0xff] %v12215_v37  ;;  %vm17156_vm9 = vcmp.eq.s32.totalorder %v12215_v37, %v11545_v14  ;;  %v1680_v4 = vadd.s32 %v1648_v55, %v1584_v13  ;;  %v1457_v45 = vshra.s32 %v1425_v36, 4  ;;  %v1489_v13 = vand.u32 15, %v1425_v36 }
 0x2e7   : > { %v12201_v22 = vadd.f32 %v2220_v19, %v2107_v9  ;;  %17372 = vst [vmem:[#allocation36_spill] sm:$0xff] %v12233_v16  ;;  %v1776_v39 = vadd.s32 %v1744_v8, %v1616_v60  ;;  %vm17157_vm8 = vcmp.eq.s32.totalorder %v12233_v16, %v11548_v15  ;;  %v1426_v8 = vadd.s32 192, %v11772_v44 }
 0x2e8   : > { %v1712_v24 = vand.u32 15, %v1680_v4  ;;  %v1521_v55 = vshra.s32 %v1457_v45, 2  ;;  %v1617_v53 = vand.u32 3, %v1489_v13 }
 0x2e9   : > { %17369 = vst [vmem:[#allocation33_spill] sm:$0xff] %v12201_v22  ;;  %v2317_v38 = vsel %vm2310_vm15, %v12201_v22, 0.0  ;;  %v1808_v20 = vand.u32 15, %v1776_v39 }
 0x2ea   : > { %2318 = vadd.xlane.f32.xlu1 %v2317_v38  ;;  %v1840_v26 = vmul.u32 16, %v1712_v24  ;;  %v1649_v52 = vmul.u32 4, %v1521_v55 }
 0x2eb   : > { %10202 = vmatmul.msk.f32.gmra.mxu2 %vm17152_vm13, %v17161_v28  ;;  %10234 = vmatmul.msk.f32.gmra.mxu3 %vm17153_vm3, %v17161_v28  ;;  %vm17155_vm13 = vcmp.eq.s32.totalorder %v12215_v37, %v11548_v15  ;;  %vm17159_vm3 = vcmp.eq.s32.totalorder %v12233_v16, %v11545_v14  ;;  %v1460_v16 = vshra.s32 %v1428_v23, 4 }
 0x2ec   : > { %v12251_v35 = vadd.s32 %v1840_v26, %v1808_v20  ;;  %v1458_v20 = vshra.s32 %v1426_v8, 4 }
 0x2ee   : > { %v2110_v49 = vpop.f32.mrf.mxu2  ;;  %v2223_v57 = vpop.f32.mrf.mxu3  ;;  %17374 = vst [vmem:[#allocation38_spill] sm:$0xff] %v12251_v35 }
 0x2ef   : > { %v12217_v50 = vadd.f32 %v2223_v57, %v2110_v49  ;;  %v1553_v49 = vand.u32 3, %v1457_v45  ;;  %v1585_v57 = vshra.s32 %v1489_v13, 2 }
 0x2f1   : > { %17371 = vst [vmem:[#allocation35_spill] sm:$0xff] %v12217_v50  ;;  %v2320_v17 = vsel %vm2310_vm15, %v12217_v50, 0.0  ;;  %v1681_v60 = vadd.s32 %v1649_v52, %v1585_v57  ;;  %v1745_v4 = vmul.u32 4, %v1553_v49 }
 0x2f2   : > { %2321 = vadd.xlane.f32.xlu2 %v2320_v17 }
 0x2f3   : > { %10203 = vmatmul.msk.f32.gmra.mxu2 %vm17156_vm9, %v17161_v28  ;;  %10235 = vmatmul.msk.f32.gmra.mxu3 %vm17155_vm13, %v17161_v28  ;;  %vm17190_vm13 = vcmp.eq.s32.totalorder %v12251_v35, %v11545_v14  ;;  %vm17158_vm9 = vcmp.eq.s32.totalorder %v12251_v35, %v11548_v15 }
 0x2f6   : > { %v2113_v9 = vpop.f32.mrf.mxu2  ;;  %v2226_v19 = vpop.f32.mrf.mxu3 }
 0x2f7   : > { %v12235_v12 = vadd.f32 %v2226_v19, %v2113_v9  ;;  %v1713_v9 = vand.u32 15, %v1681_v60  ;;  %v1777_v19 = vadd.s32 %v1745_v4, %v1617_v53 }
 0x2f9   : > { %17373 = vst [vmem:[#allocation37_spill] sm:$0xff] %v12235_v12  ;;  %v2323_v33 = vsel %vm2310_vm15, %v12235_v12, 0.0  ;;  %v1841_v36 = vmul.u32 16, %v1713_v9 }
 0x2fa   : > { %2324 = vadd.xlane.f32.xlu1 %v2323_v33  ;;  %v1809_v33 = vand.u32 15, %v1777_v19 }
 0x2fb   : > { %10204 = vmatmul.msk.f32.gmra.mxu2 %vm17159_vm3, %v17161_v28  ;;  %10236 = vmatmul.msk.f32.gmra.mxu3 %vm17157_vm8, %v17161_v28 }
 0x2fc   : > { %v12275_v45 = vadd.s32 %v1841_v36, %v1809_v33 }
 0x2fe   : > { %v2116_v34 = vpop.f32.mrf.mxu2  ;;  %v2229_v38 = vpop.f32.mrf.mxu3  ;;  %17377 = vst [vmem:[#allocation41_spill] sm:$0xff] %v12275_v45  ;;  %vm17196_vm8 = vcmp.eq.s32.totalorder %v12275_v45, %v11545_v14 }
 0x2ff   : > { %v12254_v43 = vadd.f32 %v2229_v38, %v2116_v34  ;;  %v1490_v34 = vand.u32 15, %v1426_v8  ;;  %v1522_v38 = vshra.s32 %v1458_v20, 2 }
 0x301   : > { %17375 = vst [vmem:[#allocation39_spill] sm:$0xff] %v12254_v43  ;;  %v2326_v48 = vsel %vm2310_vm15, %v12254_v43, 0.0  ;;  %v1586_v13 = vshra.s32 %v1490_v34, 2  ;;  %v1650_v55 = vmul.u32 4, %v1522_v38  ;;  %v1618_v49 = vand.u32 3, %v1490_v34 }
 0x302   : > { %2327 = vadd.xlane.f32.xlu2 %v2326_v48  ;;  %v1554_v48 = vand.u32 3, %v1458_v20 }
 0x303   : > { %10205 = vmatmul.msk.f32.gmra.mxu2 %vm17190_vm13, %v17161_v28  ;;  %10237 = vmatmul.msk.f32.gmra.mxu3 %vm17158_vm9, %v17161_v28  ;;  %vm17160_vm9 = vcmp.eq.s32.totalorder %v12275_v45, %v11548_v15  ;;  %v1682_v60 = vadd.s32 %v1650_v55, %v1586_v13  ;;  %v1492_v45 = vand.u32 15, %v1428_v23  ;;  %v17383_v23 = vmov 1.0  }
 0x304   : > { %v1746_v57 = vmul.u32 4, %v1554_v48 }
 0x306   : > { %v2119_v17 = vpop.f32.mrf.mxu2  ;;  %v2232_v24 = vpop.f32.mrf.mxu3  ;;  %v1778_v8 = vadd.s32 %v1746_v57, %v1618_v49 }
 0x307   : > { %v12271_v39 = vadd.f32 %v2232_v24, %v2119_v17  ;;  %v1714_v17 = vand.u32 15, %v1682_v60 }
 0x308   : > { %v1810_v9 = vand.u32 15, %v1778_v8 }
 0x309   : > { %17376 = vst [vmem:[#allocation40_spill] sm:$0xff] %v12271_v39  ;;  %v2329_v26 = vsel %vm2310_vm15, %v12271_v39, 0.0  ;;  %v1842_v19 = vmul.u32 16, %v1714_v17 }
 0x30a   : > { %2330 = vadd.xlane.f32.xlu1 %v2329_v26 }
 0x30b   : > { %10206 = vmatmul.msk.f32.gmra.mxu2 %vm17196_vm8, %v17161_v28  ;;  %10238 = vmatmul.msk.f32.gmra.mxu3 %vm17160_vm9, %v17161_v28  ;;  %v12293_v20 = vadd.s32 %v1842_v19, %v1810_v9 }
 0x30d   : > { %17379 = vst [vmem:[#allocation43_spill] sm:$0xff] %v12293_v20  ;;  %vm17197_vm3 = vcmp.eq.s32.totalorder %v12293_v20, %v11545_v14  ;;  %vm17189_vm9 = vcmp.eq.s32.totalorder %v12293_v20, %v11548_v15  ;;  %v1524_v20 = vshra.s32 %v1460_v16, 2 }
 0x30e   : > { %v2122_v52 = vpop.f32.mrf.mxu2  ;;  %v2235_v53 = vpop.f32.mrf.mxu3 }
 0x30f   : > { %v12289_v4 = vadd.f32 %v2235_v53, %v2122_v52  ;;  %v1427_v52 = vadd.s32 200, %v11772_v44  ;;  %v11442_v53 = vmov 8.0   ;;  %v1652_v6 = vmul.u32 4, %v1524_v20  ;;  %v12348_v20 = vpop.permute.xlu2 %1338 }
 0x310   : > { %10917 = vrcp.f32 %v11442_v53 }
 0x311   : > { %17378 = vst [vmem:[#allocation42_spill] sm:$0xff] %v12289_v4  ;;  %v2332_v24 = vsel %vm2310_vm15, %v12289_v4, 0.0  ;;  %v1459_v60 = vshra.s32 %v1427_v52, 4  ;;  %v1491_v8 = vand.u32 15, %v1427_v52 }
 0x312   : > { %2333 = vadd.xlane.f32.xlu1 %v2332_v24 }
 0x313   : > { %10207 = vmatmul.msk.f32.gmra.mxu2 %vm17197_vm3, %v17161_v28  ;;  %10239 = vmatmul.msk.f32.gmra.mxu3 %vm17189_vm9, %v17161_v28  ;;  %v1523_v17 = vshra.s32 %v1459_v60, 2  ;;  %v1555_v19 = vand.u32 3, %v1459_v60  ;;  %v1619_v28 = vand.u32 3, %v1491_v8  ;;  %v1556_v60 = vand.u32 3, %v1460_v16 }
 0x315   : > { %v1747_v47 = vmul.u32 4, %v1555_v19 }
 0x316   : > { %v2125_v26 = vpop.f32.mrf.mxu2  ;;  %v2238_v33 = vpop.f32.mrf.mxu3 }
 0x317   : > { %v12299_v36 = vadd.f32 %v2238_v33, %v2125_v26  ;;  %v1587_v26 = vshra.s32 %v1491_v8, 2  ;;  %v1651_v33 = vmul.u32 4, %v1523_v17  ;;  %v1779_v37 = vadd.s32 %v1747_v47, %v1619_v28 }
 0x318   : > { %v1588_v17 = vshra.s32 %v1492_v45, 2  ;;  %v1620_v28 = vand.u32 3, %v1492_v45 }
 0x319   : > { %17380 = vst [vmem:[#allocation44_spill] sm:$0xff] %v12299_v36  ;;  %v2335_v34 = vsel %vm2310_vm15, %v12299_v36, 0.0  ;;  %v1683_v0 = vadd.s32 %v1651_v33, %v1587_v26  ;;  %v1811_v35 = vand.u32 15, %v1779_v37 }
 0x31a   : > { %2336 = vadd.xlane.f32.xlu2 %v2335_v34  ;;  %v10918_v34 = vpop.eup %10917 }
 0x31b   : > { %v1715_v1 = vand.u32 15, %v1683_v0  ;;  %v2408_v53 = vmul.f32 8.0, %v10918_v34  ;;  %v1684_v0 = vadd.s32 %v1652_v6, %v1588_v17 }
 0x31d   : > { %v1843_v52 = vmul.u32 16, %v1715_v1  ;;  %v2409_v19 = vsub.f32 1.0, %v2408_v53  ;;  %v1716_v1 = vand.u32 15, %v1684_v0  ;;  %v1430_v0 = vadd.s32 224, %v11772_v44 }
 0x31e   : > { %v12311_v38 = vpop.f32.mrf.mxu2  ;;  %v12313_v48 = vpop.f32.mrf.mxu3 }
 0x31f   : > { %v12329_v56 = vadd.s32 %v1843_v52, %v1811_v35  ;;  %v2410_v37 = vmul.f32 %v10918_v34, %v2409_v19  ;;  %v1844_v35 = vmul.u32 16, %v1716_v1  ;;  %v1462_v1 = vshra.s32 %v1430_v0, 4 }
 0x321   : > { %17381 = vst [vmem:[#allocation45_spill] sm:$0xff] %v12329_v56  ;;  %vm17214_vm9 = vcmp.eq.s32.totalorder %v12329_v56, %v11545_v14  ;;  %vm17195_vm13 = vcmp.eq.s32.totalorder %v12329_v56, %v11548_v15  ;;  %v1558_v51 = vand.u32 3, %v1462_v1 }
 0x322   : > { %10208 = vmatmul.msk.f32.gmra.mxu2 %vm17214_vm9, %v17383_v23  ;;  %10240 = vmatmul.msk.f32.gmra.mxu3 %vm17195_vm13, %v17383_v23  ;;  %vm2412_vm13 = vweird.f32 %v10918_v34 }
 0x326   : > { %v12315_v13 = vpop.f32.mrf.mxu2  ;;  %v12317_v55 = vpop.f32.mrf.mxu3 }
 0x32e   : > { %v12319_v49 = vpop.f32.mrf.mxu2  ;;  %v12321_v57 = vpop.f32.mrf.mxu3 }
 0x336   : > { %v12324_v24 = vpop.f32.mrf.mxu2  ;;  %v12326_v9 = vpop.f32.mrf.mxu3 }
 0x33e   : > { %v2140_v58 = vpop.f32.mrf.mxu2  ;;  %v2253_v32 = vpop.f32.mrf.mxu3 }
 0x33f   : > { %v12331_v8 = vadd.f32 %v2253_v32, %v2140_v58  ;;  %v1748_v58 = vmul.u32 4, %v1556_v60  ;;  %v1429_v32 = vadd.s32 216, %v11772_v44  ;;  %v2411_v60 = vadd.f32 %v10918_v34, %v2410_v37 }
 0x341   : > { %17382 = vst [vmem:[#allocation46_spill] sm:$0xff] %v12331_v8  ;;  %v2350_v47 = vsel %vm2310_vm15, %v12331_v8, 0.0  ;;  %v1780_v6 = vadd.s32 %v1748_v58, %v1620_v28  ;;  %v1461_v16 = vshra.s32 %v1429_v32, 4  ;;  %v1493_v45 = vand.u32 15, %v1429_v32 }
 0x342   : > { %2351 = vadd.xlane.f32.xlu2 %v2350_v47  ;;  %v12369_v37 = vsel %vm2412_vm13, %v10918_v34, %v2411_v60 }
 0x343   : > { %v1812_v26 = vand.u32 15, %v1780_v6  ;;  %v1525_v33 = vshra.s32 %v1461_v16, 2  ;;  %v1557_v17 = vand.u32 3, %v1461_v16  ;;  %v1589_v56 = vshra.s32 %v1493_v45, 2  ;;  %17385 = vst [vmem:[#allocation48_spill] sm:$0xff] %v12369_v37 }
 0x344   : > { %v1621_v19 = vand.u32 3, %v1493_v45  ;;  %v1526_v45 = vshra.s32 %v1462_v1, 2 }
 0x345   : > { %v12354_v27 = vadd.s32 %v1844_v35, %v1812_v26  ;;  %v1653_v47 = vmul.u32 4, %v1525_v33  ;;  %v1749_v28 = vmul.u32 4, %v1557_v17  ;;  %v1494_v35 = vand.u32 15, %v1430_v0 }
 0x346   : > { %v12350_v53 = vpop.f32.mrf.mxu2  ;;  %v12352_v52 = vpop.f32.mrf.mxu3  ;;  %v1431_v0 = vadd.s32 232, %v11772_v44 }
 0x347   : > { %17384 = vst [vmem:[#allocation47_spill] sm:$0xff] %v12354_v27  ;;  %vm17206_vm8 = vcmp.eq.s32.totalorder %v12354_v27, %v11548_v15  ;;  %vm17222_vm3 = vcmp.eq.s32.totalorder %v12354_v27, %v11545_v14  ;;  %v1685_v58 = vadd.s32 %v1653_v47, %v1589_v56  ;;  %v1781_v32 = vadd.s32 %v1749_v28, %v1621_v19 }
 0x348   : > { %10241 = vmatmul.msk.f32.gmra.mxu3 %vm17206_vm8, %v17383_v23  ;;  %10209 = vmatmul.msk.f32.gmra.mxu2 %vm17222_vm3, %v17383_v23  ;;  %v1590_v2 = vshra.s32 %v1494_v35, 2  ;;  %v1654_v27 = vmul.u32 4, %v1526_v45  ;;  %v1622_v60 = vand.u32 3, %v1494_v35  ;;  %v1750_v28 = vmul.u32 4, %v1558_v51 }
 0x349   : > { %v1717_v6 = vand.u32 15, %v1685_v58  ;;  %v1813_v16 = vand.u32 15, %v1781_v32  ;;  %v1495_v35 = vand.u32 15, %v1431_v0 }
 0x34a   : > { %v1686_v19 = vadd.s32 %v1654_v27, %v1590_v2  ;;  %v1782_v51 = vadd.s32 %v1750_v28, %v1622_v60  ;;  %v1463_v2 = vshra.s32 %v1431_v0, 4 }
 0x34b   : > { %v1845_v56 = vmul.u32 16, %v1717_v6  ;;  %v1623_v0 = vand.u32 3, %v1495_v35 }
 0x34c   : > { %v1718_v27 = vand.u32 15, %v1686_v19  ;;  %v1814_v1 = vand.u32 15, %v1782_v51  ;;  %v1527_v45 = vshra.s32 %v1463_v2, 2  ;;  %v1559_v61 = vand.u32 3, %v1463_v2 }
 0x34d   : > { %v2313_v26 = vpop.xlane.xlu2 %2312  ;;  %v12376_v25 = vadd.s32 %v1845_v56, %v1813_v16  ;;  %v1591_v19 = vshra.s32 %v1495_v35, 2  ;;  %v1432_v2 = vadd.s32 240, %v11772_v44 }
 0x34e   : > { %v2414_v33 = vmul.f32 %v12369_v37, %v2313_v26  ;;  %v12372_v17 = vpop.f32.mrf.mxu2  ;;  %v12374_v47 = vpop.f32.mrf.mxu3  ;;  %v1846_v6 = vmul.u32 16, %v1718_v27  ;;  %v1655_v60 = vmul.u32 4, %v1527_v45  ;;  %v1751_v51 = vmul.u32 4, %v1559_v61 }
 0x34f   : > { %17386 = vst [vmem:[#allocation49_spill] sm:$0xff] %v12376_v25  ;;  %vm17224_vm13 = vcmp.eq.s32.totalorder %v12376_v25, %v11545_v14  ;;  %vm17213_vm8 = vcmp.eq.s32.totalorder %v12376_v25, %v11548_v15  ;;  %v1496_v35 = vand.u32 15, %v1432_v2 }
 0x350   : > { %v12379_v34 = vsub.f32 %v12153_v54, %v2414_v33  ;;  %10210 = vmatmul.msk.f32.gmra.mxu2 %vm17224_vm13, %v17383_v23  ;;  %10242 = vmatmul.msk.f32.gmra.mxu3 %vm17213_vm8, %v17383_v23  ;;  %v12398_v29 = vadd.s32 %v1846_v6, %v1814_v1  ;;  %v1687_v27 = vadd.s32 %v1655_v60, %v1591_v19 }
 0x351   : > { %v1783_v6 = vadd.s32 %v1751_v51, %v1623_v0  ;;  %v1624_v51 = vand.u32 3, %v1496_v35 }
 0x352   : > { %v2478_v58 = vmul.f32 %v12379_v34, %v12379_v34  ;;  %17387 = vst [vmem:[#allocation50_spill] sm:$0xff] %v12398_v29  ;;  %vm17228_vm8 = vcmp.eq.s32.totalorder %v12398_v29, %v11545_v14  ;;  %vm17221_vm9 = vcmp.eq.s32.totalorder %v12398_v29, %v11548_v15  ;;  %v1719_v1 = vand.u32 15, %v1687_v27 }
 0x353   : > { %v1592_v29 = vshra.s32 %v1496_v35, 2  ;;  %v12450_v35 = vadd.f32 %v12313_v48, %v12311_v38 }
 0x354   : > { %v2510_v32 = vsel %vm2310_vm15, %v2478_v58, 0.0 }
 0x355   : > { %2511 = vadd.xlane.f32.xlu0 %v2510_v32  ;;  %v2316_v16 = vpop.xlane.xlu0 %2315  ;;  %17390 = vst [vmem:[#allocation53_spill] sm:$0xff] %v12450_v35  ;;  %v2338_v38 = vsel %vm2310_vm15, %v12450_v35, 0.0 }
 0x356   : > { %v2415_v26 = vmul.f32 %v12369_v37, %v2316_v16  ;;  %v2149_v56 = vpop.f32.mrf.mxu2  ;;  %v2262_v33 = vpop.f32.mrf.mxu3  ;;  %v1464_v16 = vshra.s32 %v1432_v2, 4 }
 0x357   : > { %v12400_v25 = vadd.f32 %v2262_v33, %v2149_v56  ;;  %v1847_v56 = vmul.u32 16, %v1719_v1 }
 0x358   : > { %v12403_v28 = vsub.f32 %v12176_v46, %v2415_v26  ;;  %10211 = vmatmul.msk.f32.gmra.mxu2 %vm17228_vm8, %v17383_v23  ;;  %10243 = vmatmul.msk.f32.gmra.mxu3 %vm17221_vm9, %v17383_v23  ;;  %v1815_v26 = vand.u32 15, %v1783_v6  ;;  %v1528_v33 = vshra.s32 %v1464_v16, 2  ;;  %v1560_v42 = vand.u32 3, %v1464_v16 }
 0x359   : > { %17388 = vst [vmem:[#allocation51_spill] sm:$0xff] %v12400_v25  ;;  %v2359_v58 = vsel %vm2310_vm15, %v12400_v25, 0.0 }
 0x35a   : > { %2360 = vadd.xlane.f32.xlu2 %v2359_v58  ;;  %v2479_v32 = vmul.f32 %v12403_v28, %v12403_v28  ;;  %v12428_v30 = vadd.s32 %v1847_v56, %v1815_v26  ;;  %v1656_v0 = vmul.u32 4, %v1528_v33  ;;  %v1752_v2 = vmul.u32 4, %v1560_v42 }
 0x35b   : > { %v1433_v56 = vadd.s32 248, %v11772_v44 }
 0x35c   : > { %v2513_v61 = vsel %vm2310_vm15, %v2479_v32, 0.0  ;;  %17389 = vst [vmem:[#allocation52_spill] sm:$0xff] %v12428_v30  ;;  %vm17242_vm9 = vcmp.eq.s32.totalorder %v12428_v30, %v11545_v14  ;;  %vm17223_vm3 = vcmp.eq.s32.totalorder %v12428_v30, %v11548_v15  ;;  %v1688_v32 = vadd.s32 %v1656_v0, %v1592_v29 }
 0x35d   : > { %v2319_v45 = vpop.xlane.xlu1 %2318  ;;  %2514 = vadd.xlane.f32.xlu1 %v2513_v61  ;;  %v1784_v6 = vadd.s32 %v1752_v2, %v1624_v51  ;;  %v1497_v44 = vand.u32 15, %v1433_v56  ;;  %v12477_v2 = vadd.f32 %v12317_v55, %v12315_v13 }
 0x35e   : > { %v2416_v19 = vmul.f32 %v12369_v37, %v2319_v45  ;;  %v12424_v60 = vpop.f32.mrf.mxu2  ;;  %v12426_v58 = vpop.f32.mrf.mxu3  ;;  %v1720_v42 = vand.u32 15, %v1688_v32 }
 0x35f   : > { %v1816_v61 = vand.u32 15, %v1784_v6  ;;  %v1593_v0 = vshra.s32 %v1497_v44, 2  ;;  %17392 = vst [vmem:[#allocation55_spill] sm:$0xff] %v12477_v2  ;;  %v1625_v6 = vand.u32 3, %v1497_v44  ;;  %v12489_v44 = vadd.f32 %v12321_v57, %v12319_v49 }
 0x360   : > { %v12431_v27 = vsub.f32 %v12201_v22, %v2416_v19  ;;  %10212 = vmatmul.msk.f32.gmra.mxu2 %vm17242_vm9, %v17383_v23  ;;  %10244 = vmatmul.msk.f32.gmra.mxu3 %vm17223_vm3, %v17383_v23  ;;  %v1848_v29 = vmul.u32 16, %v1720_v42  ;;  %v1465_v19 = vshra.s32 %v1433_v56, 4  ;;  %v12511_v57 = vadd.f32 %v12326_v9, %v12324_v24 }
 0x361   : > { %17395 = vst [vmem:[#allocation58_spill] sm:$0xff] %v12489_v44  ;;  %v12524_v24 = vadd.f32 %v12374_v47, %v12372_v17 }
 0x362   : > { %v2480_v1 = vmul.f32 %v12431_v27, %v12431_v27  ;;  %v12457_v33 = vadd.s32 %v1848_v29, %v1816_v61  ;;  %v1529_v48 = vshra.s32 %v1465_v19, 2  ;;  %17396 = vst [vmem:[#allocation59_spill] sm:$0xff] %v12511_v57 }
 0x363   : > { %17397 = vst [vmem:[#allocation60_spill] sm:$0xff] %v12524_v24 }
 0x364   : > { %v2516_v16 = vsel %vm2310_vm15, %v2480_v1, 0.0  ;;  %17391 = vst [vmem:[#allocation54_spill] sm:$0xff] %v12457_v33  ;;  %vm17245_vm3 = vcmp.eq.s32.totalorder %v12457_v33, %v11545_v14  ;;  %vm17227_vm13 = vcmp.eq.s32.totalorder %v12457_v33, %v11548_v15  ;;  %v1657_v51 = vmul.u32 4, %v1529_v48 }
 0x365   : > { %2517 = vadd.xlane.f32.xlu1 %v2516_v16 }
 0x366   : > { %v12452_v45 = vpop.f32.mrf.mxu2  ;;  %v12454_v26 = vpop.f32.mrf.mxu3  ;;  %v1689_v61 = vadd.s32 %v1657_v51, %v1593_v0 }
 0x367   : > { %v12538_v17 = vadd.f32 %v12454_v26, %v12452_v45  ;;  %v12551_v45 = vadd.f32 %v12352_v52, %v12350_v53 }
 0x368   : > { %10213 = vmatmul.msk.f32.gmra.mxu2 %vm17245_vm3, %v17383_v23  ;;  %10245 = vmatmul.msk.f32.gmra.mxu3 %vm17227_vm13, %v17383_v23  ;;  %v1721_v30 = vand.u32 15, %v1689_v61 }
 0x369   : > { %1340 = vrot.lane.b32.xlu0 %v11721_v21, %s11438_s8  ;;  %v1561_v21 = vand.u32 3, %v1465_v19  ;;  %v2341_v19 = vsel %vm2310_vm15, %v12477_v2, 0.0  ;;  %17399 = vst [vmem:[#allocation62_spill] sm:$0xff] %v12538_v17 }
 0x36a   : > { %v1849_v48 = vmul.u32 16, %v1721_v30  ;;  %v2344_v30 = vsel %vm2310_vm15, %v12489_v44, 0.0  ;;  %17400 = vst [vmem:[#allocation63_spill] sm:$0xff] %v12551_v45 }
 0x36b   : > { %v1753_v42 = vmul.u32 4, %v1561_v21 }
 0x36d   : > { %2339 = vadd.xlane.f32.xlu1 %v2338_v38  ;;  %v1785_v29 = vadd.s32 %v1753_v42, %v1625_v6  ;;  %v2325_v13 = vpop.xlane.xlu1 %2324  ;;  %v2347_v42 = vsel %vm2310_vm15, %v12511_v57, 0.0 }
 0x36e   : > { %v2158_v32 = vpop.f32.mrf.mxu2  ;;  %v2271_v1 = vpop.f32.mrf.mxu3 }
 0x36f   : > { %v12479_v16 = vadd.f32 %v2271_v1, %v2158_v32  ;;  %v1817_v38 = vand.u32 15, %v1785_v29  ;;  %v2322_v29 = vpop.xlane.xlu2 %2321 }
 0x370   : > { %v2417_v9 = vmul.f32 %v12369_v37, %v2322_v29  ;;  %v2365_v29 = vsel %vm2310_vm15, %v12538_v17, 0.0 }
 0x371   : > { %17393 = vst [vmem:[#allocation56_spill] sm:$0xff] %v12479_v16  ;;  %v2368_v56 = vsel %vm2310_vm15, %v12479_v16, 0.0  ;;  %v12485_v55 = vadd.s32 %v1849_v48, %v1817_v38 }
 0x372   : > { %2369 = vadd.xlane.f32.xlu2 %v2368_v56 }
 0x373   : > { %17394 = vst [vmem:[#allocation57_spill] sm:$0xff] %v12485_v55  ;;  %vm17265_vm13 = vcmp.eq.s32.totalorder %v12485_v55, %v11545_v14  ;;  %vm17237_vm8 = vcmp.eq.s32.totalorder %v12485_v55, %v11548_v15 }
 0x374   : > { %10214 = vmatmul.msk.f32.gmra.mxu2 %vm17265_vm13, %v17383_v23  ;;  %10246 = vmatmul.msk.f32.gmra.mxu3 %vm17237_vm8, %v17383_v23  ;;  %v1337_v23 = vld [vmem:[%s17121_s2 + $0xc8] sm:$0xf] }
 0x375   : > { %2342 = vadd.xlane.f32.xlu1 %v2341_v19 }
 0x376   : > { %v12491_v21 = vpop.f32.mrf.mxu2  ;;  %v12493_v0 = vpop.f32.mrf.mxu3 }
 0x37d   : > { %v2331_v49 = vpop.xlane.xlu1 %2330  ;;  %2345 = vadd.xlane.f32.xlu1 %v2344_v30  ;;  %v12530_v30 = vsub.f32 %v12217_v50, %v2417_v9  ;;  %v2328_v9 = vpop.xlane.xlu2 %2327 }
 0x37e   : > { %v2420_v51 = vmul.f32 %v12369_v37, %v2331_v49  ;;  %v2164_v32 = vpop.f32.mrf.mxu2  ;;  %v2277_v1 = vpop.f32.mrf.mxu3  ;;  %v2356_v49 = vsel %vm2310_vm15, %v12524_v24, 0.0  ;;  %v2419_v26 = vmul.f32 %v12369_v37, %v2328_v9 }
 0x37f   : > { %v2481_v47 = vmul.f32 %v12530_v30, %v12530_v30 }
 0x380   : > { %v12515_v6 = vsub.f32 %v12271_v39, %v2420_v51 }
 0x382   : > { %v2484_v61 = vmul.f32 %v12515_v6, %v12515_v6 }
 0x384   : > { %v2528_v56 = vsel %vm2310_vm15, %v2484_v61, 0.0  ;;  %v2519_v61 = vsel %vm2310_vm15, %v2481_v47, 0.0 }
 0x385   : > { %2348 = vadd.xlane.f32.xlu1 %v2347_v42  ;;  %2529 = vadd.xlane.f32.xlu2 %v2528_v56  ;;  %v2418_v42 = vmul.f32 %v12369_v37, %v2325_v13 }
 0x386   : > { %v2167_v19 = vpop.f32.mrf.mxu2  ;;  %v2280_v38 = vpop.f32.mrf.mxu3 }
 0x387   : > { %v12527_v48 = vadd.f32 %v2280_v38, %v2167_v19  ;;  %v12547_v56 = vsub.f32 %v12235_v12, %v2418_v42  ;;  %v2353_v19 = vsel %vm2310_vm15, %v12551_v45, 0.0  ;;  %v2334_v38 = vpop.xlane.xlu1 %2333 }
 0x388   : > { %v2421_v52 = vmul.f32 %v12369_v37, %v2334_v38 }
 0x389   : > { %17398 = vst [vmem:[#allocation61_spill] sm:$0xff] %v12527_v48  ;;  %v2377_v51 = vsel %vm2310_vm15, %v12527_v48, 0.0  ;;  %v2482_v13 = vmul.f32 %v12547_v56, %v12547_v56 }
 0x38b   : > { %v2522_v53 = vsel %vm2310_vm15, %v2482_v13, 0.0 }
 0x38d   : > { %2357 = vadd.xlane.f32.xlu1 %v2356_v49  ;;  %2378 = vadd.xlane.f32.xlu2 %v2377_v51  ;;  %v12560_v49 = vadd.f32 %v12426_v58, %v12424_v60  ;;  %v12563_v51 = vsub.f32 %v12254_v43, %v2419_v26  ;;  %v2337_v58 = vpop.xlane.xlu2 %2336 }
 0x38e   : > { %v2422_v26 = vmul.f32 %v12369_v37, %v2337_v58  ;;  %v2170_v13 = vpop.f32.mrf.mxu2 }
 0x38f   : > { %17401 = vst [vmem:[#allocation64_spill] sm:$0xff] %v12560_v49  ;;  %v2362_v47 = vsel %vm2310_vm15, %v12560_v49, 0.0  ;;  %v2483_v42 = vmul.f32 %v12563_v51, %v12563_v51 }
 0x391   : > { %v2525_v60 = vsel %vm2310_vm15, %v2483_v42, 0.0 }
 0x393   : > { %2520 = vadd.xlane.f32.xlu0 %v2519_v61  ;;  %v12572_v61 = vsub.f32 %v12289_v4, %v2421_v52  ;;  %v12585_v52 = vadd.f32 %v12493_v0, %v12491_v21 }
 0x395   : > { %2366 = vadd.xlane.f32.xlu1 %v2365_v29  ;;  %v12575_v29 = vadd.f32 %v2277_v1, %v2164_v32  ;;  %v2485_v9 = vmul.f32 %v12572_v61, %v12572_v61  ;;  %17403 = vst [vmem:[#allocation66_spill] sm:$0xff] %v12585_v52  ;;  %v12588_v32 = vsub.f32 %v12299_v36, %v2422_v26  ;;  %v2371_v1 = vsel %vm2310_vm15, %v12585_v52, 0.0  ;;  %v12621_v36 = vld [vmem:[%s17121_s2 + $0x128] ss:$0 sm:$0xff] }
 0x396   : > { %v2173_v42 = vpop.f32.mrf.mxu2 }
 0x397   : > { %17402 = vst [vmem:[#allocation65_spill] sm:$0xff] %v12575_v29  ;;  %v2531_v38 = vsel %vm2310_vm15, %v2485_v9, 0.0 }
 0x39b   : > { %2354 = vadd.xlane.f32.xlu0 %v2353_v19  ;;  %v2283_v19 = vpop.f32.mrf.mxu3 }
 0x39c   : > { %v12594_v58 = vadd.f32 %v2283_v19, %v2170_v13 }
 0x39d   : > { %2523 = vadd.xlane.f32.xlu1 %v2522_v53  ;;  %v2374_v53 = vsel %vm2310_vm15, %v12575_v29, 0.0 }
 0x39e   : > { %17404 = vst [vmem:[#allocation67_spill] sm:$0xff] %v12594_v58  ;;  %v2380_v0 = vsel %vm2310_vm15, %v12594_v58, 0.0 }
 0x3a3   : > { %2363 = vadd.xlane.f32.xlu0 %v2362_v47  ;;  %v2486_v47 = vmul.f32 %v12588_v32, %v12588_v32 }
 0x3a5   : > { %2526 = vadd.xlane.f32.xlu1 %v2525_v60  ;;  %v2286_v60 = vpop.f32.mrf.mxu3  ;;  %v2534_v9 = vsel %vm2310_vm15, %v2486_v47, 0.0 }
 0x3a6   : > { %v12597_v21 = vadd.f32 %v2286_v60, %v2173_v42  ;;  %v2176_v42 = vpop.f32.mrf.mxu2 }
 0x3a8   : > { %17405 = vst [vmem:[#allocation68_spill] sm:$0xff] %v12597_v21  ;;  %v2383_v26 = vsel %vm2310_vm15, %v12597_v21, 0.0 }
 0x3ab   : > { %2532 = vadd.xlane.f32.xlu0 %v2531_v38 }
 0x3ad   : > { %2375 = vadd.xlane.f32.xlu1 %v2374_v53  ;;  %v2289_v15 = vpop.f32.mrf.mxu3 }
 0x3b3   : > { %2372 = vadd.xlane.f32.xlu0 %v2371_v1 }
 0x3b5   : > { %2535 = vadd.xlane.f32.xlu1 %v2534_v9 }
 0x3bb   : > { %2381 = vadd.xlane.f32.xlu0 %v2380_v0 }
 0x3bd   : > { %2384 = vadd.xlane.f32.xlu1 %v2383_v26 }
 0x3c8   : > { %v2512_v38 = vpop.xlane.xlu0 %2511 }
 0x3c9   : > { %v2606_v53 = vmul.f32 %v2512_v38, %v12369_v37 }
 0x3cb   : > { %v2638_v1 = vadd.f32 1e-05, %v2606_v53 }
 0x3cd   : > { %10919 = vrsqrt.f32 %v2638_v1  ;;  %vm2676_vm9 = vweird.f32 %v2638_v1 }
 0x3d0   : > { %v2515_v13 = vpop.xlane.xlu1 %2514 }
 0x3d1   : > { %v2607_v19 = vmul.f32 %v2515_v13, %v12369_v37 }
 0x3d3   : > { %v10920_v47 = vpop.eup %10919  ;;  %v2639_v9 = vadd.f32 1e-05, %v2607_v19 }
 0x3d4   : > { %v2671_v60 = vmul.f32 %v10920_v47, %v2638_v1  ;;  %vm2677_vm8 = vweird.f32 %v10920_v47 }
 0x3d5   : > { %10921 = vrsqrt.f32 %v2639_v9  ;;  %vm2678_vm3 = vmor %vm2676_vm9, %vm2677_vm8  ;;  %vm2686_vm8 = vweird.f32 %v2639_v9 }
 0x3d6   : > { %v2672_v33 = vmul.f32 %v10920_v47, %v2671_v60 }
 0x3d8   : > { %v2673_v55 = vmul.f32 0.5, %v2672_v33  ;;  %v2518_v3 = vpop.xlane.xlu1 %2517 }
 0x3d9   : > { %v2608_v0 = vmul.f32 %v2518_v3, %v12369_v37 }
 0x3da   : > { %v2674_v26 = vsub.f32 1.5, %v2673_v55  ;;  %v2179_v55 = vpop.f32.mrf.mxu2 }
 0x3db   : > { %v10922_v31 = vpop.eup %10921  ;;  %v2640_v38 = vadd.f32 1e-05, %v2608_v0  ;;  %v1341_v53 = vpop.permute.xlu0 %1340 }
 0x3dc   : > { %v2675_v59 = vmul.f32 %v10920_v47, %v2674_v26  ;;  %v2681_v18 = vmul.f32 %v10922_v31, %v2639_v9  ;;  %v1342_v13 = vsel %vm803_vm2, %v12348_v20, %v1341_v53  ;;  %v1343_v33 = vsel %vm803_vm2, %v1341_v53, %v12348_v20  ;;  %v2292_v26 = vpop.f32.mrf.mxu3 }
 0x3dd   : > { %10923 = vrsqrt.f32 %v2640_v38  ;;  %v1344_v3 = vmul.f32 %v11648_v62, %v1342_v13  ;;  %v1345_v0 = vmul.f32 %v11651_v63, %v1343_v33  ;;  %v196_v63 = vld [vmem:[%s17121_s2 + $0xd0] sm:$0xff]  ;;  %vm2687_vm2 = vweird.f32 %v10922_v31 }
 0x3de   : > { %v2679_v19 = vsel %vm2678_vm3, %v10920_v47, %v2675_v59  ;;  %v2682_v60 = vmul.f32 %v10922_v31, %v2681_v18  ;;  %vm2688_vm9 = vmor %vm2686_vm8, %vm2687_vm2  ;;  %vm2696_vm2 = vweird.f32 %v2640_v38 }
 0x3df   : > { %v1346_v1 = vmul.f32 %v11593_v40, %v1344_v3  ;;  %v2990_v20 = vmul.f32 %v2679_v19, %v12379_v34  ;;  %v1347_v59 = vmul.f32 %v11596_v41, %v1345_v0  ;;  %v12640_v3 = vld [vmem:[%s17121_s2 + $0x130] ss:$0 sm:$0xff]  ;;  %v2352_v19 = vpop.xlane.xlu2 %2351 }
 0x3e0   : > { %v2683_v62 = vmul.f32 0.5, %v2682_v60  ;;  %v2340_v18 = vpop.xlane.xlu1 %2339 }
 0x3e1   : > { %v2423_v40 = vmul.f32 %v12369_v37, %v2340_v18  ;;  %10115 = vmatpush.msk.msrb.mxu0 %vm232_vm0, %v1346_v1  ;;  %10117 = vmatpush.msk.msrb.mxu1 %vm232_vm0, %v1347_v59  ;;  %v3023_v41 = vmul.f32 %v12621_v36, %v2990_v20 }
 0x3e2   : > { %v2684_v47 = vsub.f32 1.5, %v2683_v62  ;;  %10116 = vmatmul.msk.f32.vlgmr.msrb.gmra.mxu0 %vm338_vm7, %v1337_v23  ;;  %10118 = vmatmul.msk.f32.vlgmr.msrb.gmra.mxu1 %vm338_vm7, %v1337_v23  ;;  %v2182_v62 = vpop.f32.mrf.mxu2 }
 0x3e3   : > { %v10924_v53 = vpop.eup %10923  ;;  %v12633_v34 = vsub.f32 %v12450_v35, %v2423_v40  ;;  %3200 = vmatpush.msra.mxu0 %v196_v63  ;;  %v3056_v9 = vadd.f32 %v12640_v3, %v3023_v41  ;;  %v12647_v40 = vadd.f32 %v2289_v15, %v2176_v42 }
 0x3e4   : > { %v2685_v13 = vmul.f32 %v10922_v31, %v2684_v47  ;;  %v2691_v33 = vmul.f32 %v10924_v53, %v2640_v38  ;;  %v2295_v63 = vpop.f32.mrf.mxu3  ;;  %vm2697_vm3 = vweird.f32 %v10924_v53  ;;  %v12662_v38 = vadd.f32 %v2292_v26, %v2179_v55 }
 0x3e5   : > { %v2487_v60 = vmul.f32 %v12633_v34, %v12633_v34  ;;  %17406 = vst [vmem:[#allocation69_spill] sm:$0xff] %v12647_v40  ;;  %vm2698_vm8 = vmor %vm2696_vm2, %vm2697_vm3  ;;  %v2386_v15 = vsel %vm2310_vm15, %v12647_v40, 0.0 }
 0x3e6   : > { %v2692_v0 = vmul.f32 %v10924_v53, %v2691_v33  ;;  %v2689_v1 = vsel %vm2688_vm9, %v10922_v31, %v2685_v13  ;;  %17407 = vst [vmem:[#allocation70_spill] sm:$0xff] %v12662_v38 }
 0x3e7   : > { %v2537_v23 = vsel %vm2310_vm15, %v2487_v60, 0.0  ;;  %v2991_v18 = vmul.f32 %v2689_v1, %v12403_v28  ;;  %v2361_v60 = vpop.xlane.xlu2 %2360 }
 0x3e8   : > { %v2693_v59 = vmul.f32 0.5, %v2692_v0  ;;  %v2343_v20 = vpop.xlane.xlu1 %2342  ;;  %2538 = vadd.xlane.f32.xlu2 %v2537_v23 }
 0x3e9   : > { %v2424_v47 = vmul.f32 %v12369_v37, %v2343_v20  ;;  %v3024_v33 = vmul.f32 %v12621_v36, %v2991_v18 }
 0x3ea   : > { %v2694_v14 = vsub.f32 1.5, %v2693_v59  ;;  %10247 = vmatmul.msk.f32.vlgmr.msra.gmra.mxu0 %vm2310_vm15, %v3056_v9  ;;  %v2185_v59 = vpop.f32.mrf.mxu2  ;;  %v2427_v9 = vmul.f32 %v12369_v37, %v2352_v19 }
 0x3eb   : > { %v12652_v31 = vsub.f32 %v12477_v2, %v2424_v47  ;;  %v3057_v1 = vadd.f32 %v12640_v3, %v3024_v33 }
 0x3ec   : > { %v2695_v13 = vmul.f32 %v10924_v53, %v2694_v14  ;;  %v2298_v20 = vpop.f32.mrf.mxu3  ;;  %v12676_v55 = vsub.f32 %v12331_v8, %v2427_v9 }
 0x3ed   : > { %v2488_v28 = vmul.f32 %v12652_v31, %v12652_v31 }
 0x3ee   : > { %v2699_v42 = vsel %vm2698_vm8, %v10924_v53, %v2695_v13 }
 0x3ef   : > { %v2540_v41 = vsel %vm2310_vm15, %v2488_v28, 0.0  ;;  %v2992_v14 = vmul.f32 %v2699_v42, %v12431_v27  ;;  %v2370_v47 = vpop.xlane.xlu2 %2369  ;;  %v2389_v27 = vsel %vm2310_vm15, %v12662_v38, 0.0  ;;  %v2430_v42 = vmul.f32 %v12369_v37, %v2361_v60 }
 0x3f0   : > { %v2346_v0 = vpop.xlane.xlu1 %2345  ;;  %2541 = vadd.xlane.f32.xlu0 %v2540_v41  ;;  %2387 = vadd.xlane.f32.xlu2 %v2386_v15  ;;  %v12681_v15 = vadd.f32 %v2295_v63, %v2182_v62 }
 0x3f1   : > { %v2425_v23 = vmul.f32 %v12369_v37, %v2346_v0  ;;  %v3025_v18 = vmul.f32 %v12621_v36, %v2992_v14  ;;  %v2491_v0 = vmul.f32 %v12676_v55, %v12676_v55  ;;  %v12695_v63 = vsub.f32 %v12400_v25, %v2430_v42 }
 0x3f2   : > { %10248 = vmatmul.msk.f32.gmra.mxu0 %vm2310_vm15, %v3057_v1  ;;  %17408 = vst [vmem:[#allocation71_spill] sm:$0xff] %v12681_v15  ;;  %v2188_v1 = vpop.f32.mrf.mxu2  ;;  %v2392_v62 = vsel %vm2310_vm15, %v12681_v15, 0.0 }
 0x3f3   : > { %v12668_v53 = vsub.f32 %v12489_v44, %v2425_v23  ;;  %v3058_v19 = vadd.f32 %v12640_v3, %v3025_v18  ;;  %v2549_v18 = vsel %vm2310_vm15, %v2491_v0, 0.0 }
 0x3f4   : > { %v2301_v14 = vpop.f32.mrf.mxu3 }
 0x3f5   : > { %v2489_v13 = vmul.f32 %v12668_v53, %v12668_v53 }
 0x3f7   : > { %v2543_v26 = vsel %vm2310_vm15, %v2489_v13, 0.0 }
 0x3f8   : > { %v2349_v33 = vpop.xlane.xlu1 %2348  ;;  %2544 = vadd.xlane.f32.xlu1 %v2543_v26  ;;  %2390 = vadd.xlane.f32.xlu0 %v2389_v27  ;;  %v2530_v23 = vpop.xlane.xlu2 %2529  ;;  %v12699_v27 = vadd.f32 %v2301_v14, %v2188_v1  ;;  %v12701_v26 = vadd.f32 %v2298_v20, %v2185_v59 }
 0x3f9   : > { %v2426_v28 = vmul.f32 %v12369_v37, %v2349_v33  ;;  %v2433_v33 = vmul.f32 %v12369_v37, %v2370_v47  ;;  %v2612_v25 = vmul.f32 %v2530_v23, %v12369_v37 }
 0x3fa   : > { %10249 = vmatmul.msk.f32.gmra.mxu0 %vm2310_vm15, %v3058_v19  ;;  %17409 = vst [vmem:[#allocation72_spill] sm:$0xff] %v12699_v27  ;;  %v2494_v19 = vmul.f32 %v12695_v63, %v12695_v63  ;;  %v2191_v42 = vpop.f32.mrf.mxu2  ;;  %v2395_v0 = vsel %vm2310_vm15, %v12701_v26, 0.0 }
 0x3fb   : > { %v12686_v41 = vsub.f32 %v12511_v57, %v2426_v28  ;;  %17410 = vst [vmem:[#allocation73_spill] sm:$0xff] %v12701_v26  ;;  %v2398_v28 = vsel %vm2310_vm15, %v12699_v27, 0.0 }
 0x3fc   : > { %v2558_v20 = vsel %vm2310_vm15, %v2494_v19, 0.0 }
 0x3fd   : > { %v2490_v9 = vmul.f32 %v12686_v41, %v12686_v41 }
 0x3ff   : > { %v2546_v60 = vsel %vm2310_vm15, %v2490_v9, 0.0 }
 0x400   : > { %v2358_v13 = vpop.xlane.xlu1 %2357  ;;  %2547 = vadd.xlane.f32.xlu2 %v2546_v60  ;;  %2550 = vadd.xlane.f32.xlu0 %v2549_v18  ;;  %v2304_v60 = vpop.f32.mrf.mxu3 }
 0x401   : > { %2393 = vadd.xlane.f32.xlu1 %v2392_v62  ;;  %v12711_v62 = vsub.f32 %v12479_v16, %v2433_v33  ;;  %v2379_v1 = vpop.xlane.xlu2 %2378  ;;  %v12715_v18 = vadd.f32 %v2304_v60, %v2191_v42  ;;  %v2429_v57 = vmul.f32 %v12369_v37, %v2358_v13 }
 0x402   : > { %v2436_v8 = vmul.f32 %v12369_v37, %v2379_v1 }
 0x403   : > { %17411 = vst [vmem:[#allocation74_spill] sm:$0xff] %v12715_v18  ;;  %v2497_v33 = vmul.f32 %v12711_v62, %v12711_v62  ;;  %v2401_v19 = vsel %vm2310_vm15, %v12715_v18, 0.0 }
 0x405   : > { %v2567_v13 = vsel %vm2310_vm15, %v2497_v33, 0.0 }
 0x406   : > { %v2521_v9 = vpop.xlane.xlu0 %2520 }
 0x407   : > { %v2609_v59 = vmul.f32 %v2521_v9, %v12369_v37  ;;  %v12724_v9 = vadd.f32 1e-05, %v2612_v25 }
 0x408   : > { %v2367_v47 = vpop.xlane.xlu1 %2366  ;;  %2559 = vadd.xlane.f32.xlu0 %v2558_v20  ;;  %2399 = vadd.xlane.f32.xlu2 %v2398_v28  ;;  %v12727_v28 = vsub.f32 %v12527_v48, %v2436_v8  ;;  %v2307_v48 = vpop.f32.mrf.mxu3 }
 0x409   : > { %v2641_v14 = vadd.f32 1e-05, %v2609_v59  ;;  %2396 = vadd.xlane.f32.xlu1 %v2395_v0  ;;  %v12730_v0 = vsub.f32 %v12524_v24, %v2429_v57  ;;  %v2432_v20 = vmul.f32 %v12369_v37, %v2367_v47  ;;  %vm2736_vm13 = vweird.f32 %v12724_v9 }
 0x40a   : > { %v2500_v57 = vmul.f32 %v12727_v28, %v12727_v28 }
 0x40b   : > { %10925 = vrsqrt.f32 %v2641_v14  ;;  %v12748_v24 = vsub.f32 %v12538_v17, %v2432_v20  ;;  %vm2706_vm3 = vweird.f32 %v2641_v14 }
 0x40c   : > { %10927 = vrsqrt.f32 %v12724_v9  ;;  %v2576_v47 = vsel %vm2310_vm15, %v2500_v57, 0.0 }
 0x40e   : > { %v2355_v42 = vpop.xlane.xlu0 %2354 }
 0x40f   : > { %v2428_v23 = vmul.f32 %v12369_v37, %v2355_v42 }
 0x410   : > { %v2524_v60 = vpop.xlane.xlu1 %2523  ;;  %2568 = vadd.xlane.f32.xlu0 %v2567_v13  ;;  %2402 = vadd.xlane.f32.xlu2 %v2401_v19  ;;  %v2493_v19 = vmul.f32 %v12730_v0, %v12730_v0 }
 0x411   : > { %v10926_v1 = vpop.eup %10925  ;;  %v12735_v59 = vsub.f32 %v12551_v45, %v2428_v23  ;;  %v2610_v25 = vmul.f32 %v2524_v60, %v12369_v37  ;;  %v2194_v23 = vpop.f32.mrf.mxu2 }
 0x412   : > { %v2701_v8 = vmul.f32 %v10926_v1, %v2641_v14  ;;  %v12752_v44 = vadd.f32 %v2307_v48, %v2194_v23  ;;  %v12754_v2 = vpop.eup %10927  ;;  %vm2707_vm9 = vweird.f32 %v10926_v1 }
 0x413   : > { %v2642_v42 = vadd.f32 1e-05, %v2610_v25  ;;  %v2492_v33 = vmul.f32 %v12735_v59, %v12735_v59  ;;  %v2555_v25 = vsel %vm2310_vm15, %v2493_v19, 0.0  ;;  %vm2708_vm2 = vmor %vm2706_vm3, %vm2707_vm9  ;;  %v2496_v19 = vmul.f32 %v12748_v24, %v12748_v24 }
 0x414   : > { %v2702_v13 = vmul.f32 %v10926_v1, %v2701_v8  ;;  %17412 = vst [vmem:[#allocation75_spill] sm:$0xff] %v12752_v44  ;;  %v2404_v48 = vsel %vm2310_vm15, %v12752_v44, 0.0 }
 0x415   : > { %10929 = vrsqrt.f32 %v2642_v42  ;;  %v2552_v60 = vsel %vm2310_vm15, %v2492_v33, 0.0  ;;  %vm2716_vm9 = vweird.f32 %v2642_v42 }
 0x416   : > { %v2703_v16 = vmul.f32 0.5, %v2702_v13  ;;  %v2364_v45 = vpop.xlane.xlu0 %2363  ;;  %2553 = vadd.xlane.f32.xlu1 %v2552_v60 }
 0x417   : > { %v2431_v33 = vmul.f32 %v12369_v37, %v2364_v45 }
 0x418   : > { %v2704_v8 = vsub.f32 1.5, %v2703_v16  ;;  %v2527_v35 = vpop.xlane.xlu1 %2526  ;;  %2577 = vadd.xlane.f32.xlu0 %v2576_v47  ;;  %2556 = vadd.xlane.f32.xlu2 %v2555_v25  ;;  %v2731_v16 = vmul.f32 %v12754_v2, %v12724_v9 }
 0x419   : > { %v2611_v13 = vmul.f32 %v2527_v35, %v12369_v37  ;;  %v12765_v45 = vsub.f32 %v12560_v49, %v2431_v33 }
 0x41a   : > { %v2705_v60 = vmul.f32 %v10926_v1, %v2704_v8  ;;  %v2732_v4 = vmul.f32 %v12754_v2, %v2731_v16 }
 0x41b   : > { %v10930_v20 = vpop.eup %10929  ;;  %v2643_v57 = vadd.f32 1e-05, %v2611_v13  ;;  %v2564_v13 = vsel %vm2310_vm15, %v2496_v19, 0.0 }
 0x41c   : > { %v2711_v23 = vmul.f32 %v10930_v20, %v2642_v42  ;;  %v2709_v47 = vsel %vm2708_vm2, %v10926_v1, %v2705_v60  ;;  %v2495_v60 = vmul.f32 %v12765_v45, %v12765_v45  ;;  %vm2717_vm8 = vweird.f32 %v10930_v20 }
 0x41d   : > { %10931 = vrsqrt.f32 %v2643_v57  ;;  %v2993_v35 = vmul.f32 %v2709_v47, %v12530_v30  ;;  %v2733_v16 = vmul.f32 0.5, %v2732_v4  ;;  %vm2718_vm3 = vmor %vm2716_vm9, %vm2717_vm8  ;;  %vm2737_vm8 = vweird.f32 %v12754_v2 }
 0x41e   : > { %v2712_v14 = vmul.f32 %v10930_v20, %v2711_v23  ;;  %v2533_v25 = vpop.xlane.xlu0 %2532  ;;  %2405 = vadd.xlane.f32.xlu1 %v2404_v48  ;;  %vm2726_vm9 = vweird.f32 %v2643_v57  ;;  %vm2738_vm12 = vmor %vm2736_vm13, %vm2737_vm8 }
 0x41f   : > { %v2613_v8 = vmul.f32 %v2533_v25, %v12369_v37  ;;  %v3026_v17 = vmul.f32 %v12621_v36, %v2993_v35  ;;  %v2734_v4 = vsub.f32 1.5, %v2733_v16 }
 0x420   : > { %v2713_v43 = vmul.f32 0.5, %v2712_v14  ;;  %v2376_v39 = vpop.xlane.xlu1 %2375  ;;  %2565 = vadd.xlane.f32.xlu2 %v2564_v13 }
 0x421   : > { %v12772_v1 = vadd.f32 1e-05, %v2613_v8  ;;  %v2435_v33 = vmul.f32 %v12369_v37, %v2376_v39  ;;  %v3059_v30 = vadd.f32 %v12640_v3, %v3026_v17  ;;  %v2561_v39 = vsel %vm2310_vm15, %v2495_v60, 0.0 }
 0x422   : > { %v2714_v48 = vsub.f32 1.5, %v2713_v43 }
 0x423   : > { %v10932_v23 = vpop.eup %10931  ;;  %10933 = vrsqrt.f32 %v12772_v1  ;;  %v12780_v19 = vsub.f32 %v12575_v29, %v2435_v33  ;;  %10250 = vmatmul.msk.f32.gmra.mxu0 %vm2310_vm15, %v3059_v30  ;;  %vm2746_vm13 = vweird.f32 %v12772_v1 }
 0x424   : > { %v2715_v47 = vmul.f32 %v10930_v20, %v2714_v48  ;;  %v2721_v35 = vmul.f32 %v10932_v23, %v2643_v57  ;;  %vm2727_vm2 = vweird.f32 %v10932_v23 }
 0x425   : > { %v2499_v17 = vmul.f32 %v12780_v19, %v12780_v19 }
 0x426   : > { %v2722_v43 = vmul.f32 %v10932_v23, %v2721_v35  ;;  %v2373_v14 = vpop.xlane.xlu0 %2372  ;;  %2562 = vadd.xlane.f32.xlu1 %v2561_v39  ;;  %v2719_v25 = vsel %vm2718_vm3, %v10930_v20, %v2715_v47  ;;  %vm2728_vm3 = vmor %vm2726_vm9, %vm2727_vm2 }
 0x427   : > { %v2434_v8 = vmul.f32 %v12369_v37, %v2373_v14  ;;  %v2573_v13 = vsel %vm2310_vm15, %v2499_v17, 0.0  ;;  %v2994_v33 = vmul.f32 %v2719_v25, %v12547_v56  ;;  %v2735_v17 = vmul.f32 %v12754_v2, %v2734_v4 }
 0x428   : > { %v2723_v30 = vmul.f32 0.5, %v2722_v43  ;;  %v2536_v42 = vpop.xlane.xlu1 %2535  ;;  %2574 = vadd.xlane.f32.xlu2 %v2573_v13 }
 0x429   : > { %v10934_v48 = vpop.eup %10933  ;;  %v12790_v60 = vsub.f32 %v12585_v52, %v2434_v8  ;;  %v2614_v29 = vmul.f32 %v2536_v42, %v12369_v37  ;;  %v3027_v35 = vmul.f32 %v12621_v36, %v2994_v33  ;;  %v2739_v42 = vsel %vm2738_vm12, %v12754_v2, %v2735_v17 }
 0x42a   : > { %v2724_v39 = vsub.f32 1.5, %v2723_v30  ;;  %v2741_v20 = vmul.f32 %v10934_v48, %v12772_v1  ;;  %vm2747_vm12 = vweird.f32 %v10934_v48 }
 0x42b   : > { %v2646_v47 = vadd.f32 1e-05, %v2614_v29  ;;  %v3060_v56 = vadd.f32 %v12640_v3, %v3027_v35  ;;  %v2498_v16 = vmul.f32 %v12790_v60, %v12790_v60  ;;  %vm2748_vm2 = vmor %vm2746_vm13, %vm2747_vm12 }
 0x42c   : > { %v2725_v43 = vmul.f32 %v10932_v23, %v2724_v39  ;;  %v2742_v14 = vmul.f32 %v10934_v48, %v2741_v20 }
 0x42d   : > { %10935 = vrsqrt.f32 %v2646_v47  ;;  %10251 = vmatmul.msk.f32.gmra.mxu0 %vm2310_vm15, %v3060_v56  ;;  %v2570_v25 = vsel %vm2310_vm15, %v2498_v16, 0.0  ;;  %v2996_v16 = vmul.f32 %v2739_v42, %v12515_v6  ;;  %vm2756_vm9 = vweird.f32 %v2646_v47 }
 0x42e   : > { %v2743_v8 = vmul.f32 0.5, %v2742_v14  ;;  %v2382_v29 = vpop.xlane.xlu0 %2381  ;;  %2571 = vadd.xlane.f32.xlu1 %v2570_v25  ;;  %v2729_v13 = vsel %vm2728_vm3, %v10932_v23, %v2725_v43 }
 0x42f   : > { %v2437_v33 = vmul.f32 %v12369_v37, %v2382_v29  ;;  %v2995_v57 = vmul.f32 %v2729_v13, %v12563_v51  ;;  %v3029_v29 = vmul.f32 %v12621_v36, %v2996_v16 }
 0x430   : > { %v2744_v4 = vsub.f32 1.5, %v2743_v8  ;;  %v2385_v30 = vpop.xlane.xlu1 %2384 }
 0x431   : > { %v12809_v35 = vsub.f32 %v12594_v58, %v2437_v33  ;;  %v2438_v9 = vmul.f32 %v12369_v37, %v2385_v30  ;;  %v3028_v39 = vmul.f32 %v12621_v36, %v2995_v57  ;;  %v3062_v57 = vadd.f32 %v12640_v3, %v3029_v29 }
 0x432   : > { %v2745_v43 = vmul.f32 %v10934_v48, %v2744_v4 }
 0x433   : > { %v10936_v20 = vpop.eup %10935  ;;  %v12814_v23 = vsub.f32 %v12597_v21, %v2438_v9  ;;  %v3061_v56 = vadd.f32 %v12640_v3, %v3028_v39  ;;  %v2501_v51 = vmul.f32 %v12809_v35, %v12809_v35 }
 0x434   : > { %v2751_v2 = vmul.f32 %v10936_v20, %v2646_v47  ;;  %v2749_v13 = vsel %vm2748_vm2, %v10934_v48, %v2745_v43  ;;  %vm2757_vm8 = vweird.f32 %v10936_v20 }
 0x435   : > { %10252 = vmatmul.msk.f32.gmra.mxu0 %vm2310_vm15, %v3061_v56  ;;  %v2579_v17 = vsel %vm2310_vm15, %v2501_v51, 0.0  ;;  %v2502_v14 = vmul.f32 %v12814_v23, %v12814_v23  ;;  %v2997_v4 = vmul.f32 %v2749_v13, %v12572_v61  ;;  %vm2758_vm3 = vmor %vm2756_vm9, %vm2757_vm8 }
 0x436   : > { %v2752_v25 = vmul.f32 %v10936_v20, %v2751_v2  ;;  %2580 = vadd.xlane.f32.xlu2 %v2579_v17 }
 0x437   : > { %v2582_v8 = vsel %vm2310_vm15, %v2502_v14, 0.0  ;;  %v3030_v1 = vmul.f32 %v12621_v36, %v2997_v4 }
 0x438   : > { %v2753_v6 = vmul.f32 0.5, %v2752_v25  ;;  %2583 = vadd.xlane.f32.xlu0 %v2582_v8 }
 0x439   : > { %v3063_v9 = vadd.f32 %v12640_v3, %v3030_v1 }
 0x43a   : > { %v2754_v33 = vsub.f32 1.5, %v2753_v6 }
 0x43c   : > { %v2755_v30 = vmul.f32 %v10936_v20, %v2754_v33 }
 0x43d   : > { %10253 = vmatmul.msk.f32.gmra.mxu0 %vm2310_vm15, %v3062_v57 }
 0x43e   : > { %v2759_v42 = vsel %vm2758_vm3, %v10936_v20, %v2755_v30 }
 0x43f   : > { %v2998_v39 = vmul.f32 %v2759_v42, %v12588_v32 }
 0x441   : > { %v3031_v48 = vmul.f32 %v12621_v36, %v2998_v39 }
 0x443   : > { %v3064_v56 = vadd.f32 %v12640_v3, %v3031_v48 }
 0x445   : > { %10254 = vmatmul.msk.f32.gmra.mxu0 %vm2310_vm15, %v3063_v9 }
 0x44d   : > { %10255 = vmatmul.msk.f32.gmra.mxu0 %vm2310_vm15, %v3064_v56 }
 0x45b   : > { %v2539_v61 = vpop.xlane.xlu2 %2538 }
 0x45c   : > { %v2615_v51 = vmul.f32 %v2539_v61, %v12369_v37 }
 0x45e   : > { %v2647_v47 = vadd.f32 1e-05, %v2615_v51 }
 0x460   : > { %10937 = vrsqrt.f32 %v2647_v47  ;;  %vm2766_vm13 = vweird.f32 %v2647_v47 }
 0x463   : > { %v2542_v16 = vpop.xlane.xlu0 %2541  ;;  %v2388_v43 = vpop.xlane.xlu2 %2387 }
 0x464   : > { %v2616_v20 = vmul.f32 %v2542_v16, %v12369_v37  ;;  %v2439_v2 = vmul.f32 %v12369_v37, %v2388_v43 }
 0x466   : > { %v10938_v32 = vpop.eup %10937  ;;  %v2648_v17 = vadd.f32 1e-05, %v2616_v20  ;;  %v12841_v14 = vsub.f32 %v12647_v40, %v2439_v2 }
 0x467   : > { %v2761_v25 = vmul.f32 %v10938_v32, %v2647_v47  ;;  %vm2767_vm12 = vweird.f32 %v10938_v32 }
 0x468   : > { %10939 = vrsqrt.f32 %v2648_v17  ;;  %v2503_v8 = vmul.f32 %v12841_v14, %v12841_v14  ;;  %vm2768_vm2 = vmor %vm2766_vm13, %vm2767_vm12  ;;  %vm2776_vm9 = vweird.f32 %v2648_v17 }
 0x469   : > { %v2762_v29 = vmul.f32 %v10938_v32, %v2761_v25 }
 0x46a   : > { %v2585_v6 = vsel %vm2310_vm15, %v2503_v8, 0.0 }
 0x46b   : > { %v2763_v13 = vmul.f32 0.5, %v2762_v29  ;;  %v2545_v33 = vpop.xlane.xlu1 %2544  ;;  %v2391_v57 = vpop.xlane.xlu0 %2390  ;;  %2586 = vadd.xlane.f32.xlu1 %v2585_v6 }
 0x46c   : > { %v2617_v4 = vmul.f32 %v2545_v33, %v12369_v37  ;;  %v2440_v30 = vmul.f32 %v12369_v37, %v2391_v57 }
 0x46d   : > { %v2764_v1 = vsub.f32 1.5, %v2763_v13 }
 0x46e   : > { %v10940_v42 = vpop.eup %10939  ;;  %v2649_v9 = vadd.f32 1e-05, %v2617_v4  ;;  %v12849_v39 = vsub.f32 %v12662_v38, %v2440_v30 }
 0x46f   : > { %v2765_v48 = vmul.f32 %v10938_v32, %v2764_v1  ;;  %v2771_v56 = vmul.f32 %v10940_v42, %v2648_v17  ;;  %vm2777_vm8 = vweird.f32 %v10940_v42 }
 0x470   : > { %10941 = vrsqrt.f32 %v2649_v9  ;;  %v2504_v61 = vmul.f32 %v12849_v39, %v12849_v39  ;;  %vm2778_vm3 = vmor %vm2776_vm9, %vm2777_vm8  ;;  %vm2786_vm13 = vweird.f32 %v2649_v9 }
 0x471   : > { %v2772_v51 = vmul.f32 %v10940_v42, %v2771_v56  ;;  %v2769_v16 = vsel %vm2768_vm2, %v10938_v32, %v2765_v48 }
 0x472   : > { %v2588_v43 = vsel %vm2310_vm15, %v2504_v61, 0.0  ;;  %v2999_v20 = vmul.f32 %v2769_v16, %v12633_v34 }
 0x473   : > { %v2773_v2 = vmul.f32 0.5, %v2772_v51  ;;  %v2548_v25 = vpop.xlane.xlu2 %2547  ;;  %v2551_v8 = vpop.xlane.xlu0 %2550  ;;  %2589 = vadd.xlane.f32.xlu1 %v2588_v43 }
 0x474   : > { %v2618_v29 = vmul.f32 %v2548_v25, %v12369_v37  ;;  %v2619_v47 = vmul.f32 %v2551_v8, %v12369_v37  ;;  %v2394_v6 = vpop.xlane.xlu1 %2393  ;;  %v3032_v13 = vmul.f32 %v12621_v36, %v2999_v20 }
 0x475   : > { %v2774_v33 = vsub.f32 1.5, %v2773_v2  ;;  %v2441_v57 = vmul.f32 %v12369_v37, %v2394_v6 }
 0x476   : > { %v10942_v32 = vpop.eup %10941  ;;  %v2650_v4 = vadd.f32 1e-05, %v2618_v29  ;;  %v12859_v30 = vadd.f32 1e-05, %v2619_v47  ;;  %v3065_v34 = vadd.f32 %v12640_v3, %v3032_v13 }
 0x477   : > { %v2775_v1 = vmul.f32 %v10940_v42, %v2774_v33  ;;  %v2781_v48 = vmul.f32 %v10942_v32, %v2649_v9  ;;  %v12863_v56 = vsub.f32 %v12681_v15, %v2441_v57  ;;  %vm2787_vm12 = vweird.f32 %v10942_v32 }
 0x478   : > { %10943 = vrsqrt.f32 %v2650_v4  ;;  %10256 = vmatmul.msk.f32.gmra.mxu0 %vm2310_vm15, %v3065_v34  ;;  %vm2788_vm2 = vmor %vm2786_vm13, %vm2787_vm12  ;;  %vm2796_vm9 = vweird.f32 %v2650_v4  ;;  %vm2806_vm13 = vweird.f32 %v12859_v30 }
 0x479   : > { %v2782_v61 = vmul.f32 %v10942_v32, %v2781_v48  ;;  %10945 = vrsqrt.f32 %v12859_v30  ;;  %v2505_v51 = vmul.f32 %v12863_v56, %v12863_v56  ;;  %v2779_v16 = vsel %vm2778_vm3, %v10940_v42, %v2775_v1 }
 0x47a   : > { %v3000_v43 = vmul.f32 %v2779_v16, %v12652_v31 }
 0x47b   : > { %v2783_v20 = vmul.f32 0.5, %v2782_v61  ;;  %v2591_v17 = vsel %vm2310_vm15, %v2505_v51, 0.0  ;;  %v2400_v2 = vpop.xlane.xlu2 %2399  ;;  %v2560_v61 = vpop.xlane.xlu0 %2559 }
 0x47c   : > { %2592 = vadd.xlane.f32.xlu0 %v2591_v17  ;;  %v2397_v25 = vpop.xlane.xlu1 %2396  ;;  %v2443_v8 = vmul.f32 %v12369_v37, %v2400_v2  ;;  %v3033_v29 = vmul.f32 %v12621_v36, %v3000_v43  ;;  %v12883_v51 = vpop.f32.mrf.mxu0 }
 0x47d   : > { %v2784_v47 = vsub.f32 1.5, %v2783_v20  ;;  %v2442_v6 = vmul.f32 %v12369_v37, %v2397_v25  ;;  %17413 = vst [vmem:[#allocation76_spill] sm:$0xff] %v12883_v51 }
 0x47e   : > { %v10944_v13 = vpop.eup %10943  ;;  %v12875_v33 = vsub.f32 %v12699_v27, %v2443_v8  ;;  %v3066_v31 = vadd.f32 %v12640_v3, %v3033_v29  ;;  %v2622_v8 = vmul.f32 %v2560_v61, %v12369_v37 }
 0x47f   : > { %v10946_v42 = vpop.eup %10945  ;;  %v2785_v57 = vmul.f32 %v10942_v32, %v2784_v47  ;;  %v2791_v34 = vmul.f32 %v10944_v13, %v2650_v4  ;;  %v12879_v1 = vsub.f32 %v12701_v26, %v2442_v6  ;;  %vm2797_vm8 = vweird.f32 %v10944_v13 }
 0x480   : > { %v2801_v48 = vmul.f32 %v10946_v42, %v12859_v30  ;;  %10257 = vmatmul.msk.f32.gmra.mxu0 %vm2310_vm15, %v3066_v31  ;;  %v2507_v43 = vmul.f32 %v12875_v33, %v12875_v33  ;;  %v12899_v61 = vadd.f32 1e-05, %v2622_v8  ;;  %vm2798_vm3 = vmor %vm2796_vm9, %vm2797_vm8  ;;  %vm2807_vm12 = vweird.f32 %v10946_v42 }
 0x481   : > { %v2792_v16 = vmul.f32 %v10944_v13, %v2791_v34  ;;  %v2506_v20 = vmul.f32 %v12879_v1, %v12879_v1  ;;  %v2789_v9 = vsel %vm2788_vm2, %v10942_v32, %v2785_v57  ;;  %vm2808_vm2 = vmor %vm2806_vm13, %vm2807_vm12 }
 0x482   : > { %v2802_v17 = vmul.f32 %v10946_v42, %v2801_v48  ;;  %v3001_v2 = vmul.f32 %v2789_v9, %v12668_v53  ;;  %v2597_v29 = vsel %vm2310_vm15, %v2507_v43, 0.0  ;;  %10947 = vrsqrt.f32 %v12899_v61 }
 0x483   : > { %v2793_v25 = vmul.f32 0.5, %v2792_v16  ;;  %v2594_v47 = vsel %vm2310_vm15, %v2506_v20, 0.0  ;;  %v2403_v6 = vpop.xlane.xlu2 %2402 }
 0x484   : > { %v2803_v31 = vmul.f32 0.5, %v2802_v17  ;;  %2598 = vadd.xlane.f32.xlu0 %v2597_v29  ;;  %2595 = vadd.xlane.f32.xlu2 %v2594_v47  ;;  %v2444_v34 = vmul.f32 %v12369_v37, %v2403_v6  ;;  %v3034_v26 = vmul.f32 %v12621_v36, %v3001_v2  ;;  %v3202_v4 = vpop.f32.mrf.mxu0 }
 0x485   : > { %v2794_v27 = vsub.f32 1.5, %v2793_v25 }
 0x486   : > { %v2804_v32 = vsub.f32 1.5, %v2803_v31  ;;  %v12896_v53 = vsub.f32 %v12715_v18, %v2444_v34  ;;  %v3067_v57 = vadd.f32 %v12640_v3, %v3034_v26 }
 0x487   : > { %v2795_v48 = vmul.f32 %v10944_v13, %v2794_v27 }
 0x488   : > { %v2805_v16 = vmul.f32 %v10946_v42, %v2804_v32  ;;  %10258 = vmatmul.msk.f32.gmra.mxu0 %vm2310_vm15, %v3067_v57  ;;  %v2508_v43 = vmul.f32 %v12896_v53, %v12896_v53  ;;  %v12913_v31 = vpop.eup %10947 }
 0x489   : > { %v2554_v20 = vpop.xlane.xlu1 %2553  ;;  %v2799_v9 = vsel %vm2798_vm3, %v10944_v13, %v2795_v48 }
 0x48a   : > { %v2620_v17 = vmul.f32 %v2554_v20, %v12369_v37  ;;  %v2600_v26 = vsel %vm2310_vm15, %v2508_v43, 0.0  ;;  %v3002_v27 = vmul.f32 %v2799_v9, %v12686_v41  ;;  %v2809_v25 = vsel %vm2808_vm2, %v10946_v42, %v2805_v16  ;;  %v12927_v9 = vld [vmem:[%s17121_s2 + $0xd8] ss:$0 sm:$0xff] }
 0x48b   : > { %v2557_v2 = vpop.xlane.xlu2 %2556  ;;  %2601 = vadd.xlane.f32.xlu1 %v2600_v26  ;;  %v3003_v47 = vmul.f32 %v2809_v25, %v12676_v55  ;;  %v2831_v43 = vmul.f32 %v12913_v31, %v12899_v61 }
 0x48c   : > { %v2652_v8 = vadd.f32 1e-05, %v2620_v17  ;;  %v2621_v29 = vmul.f32 %v2557_v2, %v12369_v37  ;;  %v3035_v13 = vmul.f32 %v12621_v36, %v3002_v27  ;;  %v3205_v55 = vpop.f32.mrf.mxu0 }
 0x48d   : > { %v3036_v32 = vmul.f32 %v12621_v36, %v3003_v47  ;;  %v2569_v47 = vpop.xlane.xlu0 %2568 }
 0x48e   : > { %10949 = vrsqrt.f32 %v2652_v8  ;;  %v2653_v30 = vadd.f32 1e-05, %v2621_v29  ;;  %v3068_v6 = vadd.f32 %v12640_v3, %v3035_v13  ;;  %v2832_v13 = vmul.f32 %v12913_v31, %v2831_v43 }
 0x48f   : > { %v3069_v2 = vadd.f32 %v12640_v3, %v3036_v32  ;;  %vm2816_vm9 = vweird.f32 %v2652_v8 }
 0x490   : > { %10951 = vrsqrt.f32 %v2653_v30  ;;  %10259 = vmatmul.msk.f32.gmra.mxu0 %vm2310_vm15, %v3068_v6  ;;  %vm2826_vm13 = vweird.f32 %v2653_v30 }
 0x491   : > { %v2406_v41 = vpop.xlane.xlu1 %2405 }
 0x492   : > { %v2445_v34 = vmul.f32 %v12369_v37, %v2406_v41 }
 0x493   : > { %v2566_v42 = vpop.xlane.xlu2 %2565 }
 0x494   : > { %v10950_v57 = vpop.eup %10949  ;;  %v12919_v48 = vsub.f32 %v12752_v44, %v2445_v34  ;;  %v2624_v16 = vmul.f32 %v2566_v42, %v12369_v37  ;;  %v12938_v42 = vadd.f32 %v12927_v9, %v3202_v4 }
 0x495   : > { %v2811_v20 = vmul.f32 %v10950_v57, %v2652_v8  ;;  %vm2817_vm8 = vweird.f32 %v10950_v57  ;;  %v12954_v8 = vadd.f32 %v12927_v9, %v3205_v55 }
 0x496   : > { %v2509_v17 = vmul.f32 %v12919_v48, %v12919_v48  ;;  %v10952_v26 = vpop.eup %10951  ;;  %v12932_v29 = vadd.f32 1e-05, %v2624_v16  ;;  %v2625_v16 = vmul.f32 %v2569_v47, %v12369_v37  ;;  %vm2818_vm3 = vmor %vm2816_vm9, %vm2817_vm8  ;;  %vm2837_vm8 = vweird.f32 %v12913_v31 }
 0x497   : > { %v2812_v27 = vmul.f32 %v10950_v57, %v2811_v20  ;;  %v2821_v25 = vmul.f32 %v10952_v26, %v2653_v30  ;;  %vm2827_vm12 = vweird.f32 %v10952_v26  ;;  %vm2836_vm9 = vweird.f32 %v12899_v61 }
 0x498   : > { %10260 = vmatmul.msk.f32.gmra.mxu0 %vm2310_vm15, %v3069_v2  ;;  %v2603_v41 = vsel %vm2310_vm15, %v2509_v17, 0.0  ;;  %10953 = vrsqrt.f32 %v12932_v29  ;;  %v2833_v17 = vmul.f32 0.5, %v2832_v13  ;;  %v3208_v2 = vpop.f32.mrf.mxu0  ;;  %v12948_v47 = vadd.f32 1e-05, %v2625_v16  ;;  %vm2828_vm2 = vmor %vm2826_vm13, %vm2827_vm12 }
 0x499   : > { %v2813_v6 = vmul.f32 0.5, %v2812_v27  ;;  %v2563_v34 = vpop.xlane.xlu1 %2562  ;;  %v2822_v44 = vmul.f32 %v10952_v26, %v2821_v25  ;;  %2604 = vadd.xlane.f32.xlu0 %v2603_v41 }
 0x49a   : > { %v2623_v20 = vmul.f32 %v2563_v34, %v12369_v37  ;;  %v2834_v41 = vsub.f32 1.5, %v2833_v17 }
 0x49b   : > { %v2814_v32 = vsub.f32 1.5, %v2813_v6  ;;  %v2823_v18 = vmul.f32 0.5, %v2822_v44 }
 0x49c   : > { %v12943_v43 = vadd.f32 1e-05, %v2623_v20  ;;  %3300 = vrot.lane.b32.xlu2 %v12938_v42, %s11443_s6  ;;  %v2835_v55 = vmul.f32 %v12913_v31, %v2834_v41  ;;  %v2575_v41 = vpop.xlane.xlu2 %2574 }
 0x49d   : > { %v2815_v4 = vmul.f32 %v10950_v57, %v2814_v32  ;;  %v2824_v27 = vsub.f32 1.5, %v2823_v18 }
 0x49e   : > { %10955 = vrsqrt.f32 %v12943_v43  ;;  %v12951_v20 = vpop.eup %10953  ;;  %vm2846_vm13 = vweird.f32 %v12943_v43 }
 0x49f   : > { %v2819_v25 = vsel %vm2818_vm3, %v10950_v57, %v2815_v4  ;;  %v2825_v6 = vmul.f32 %v10952_v26, %v2824_v27  ;;  %10957 = vrsqrt.f32 %v12948_v47  ;;  %vm2838_vm3 = vmor %vm2836_vm9, %vm2837_vm8  ;;  %vm2857_vm8 = vweird.f32 %v12951_v20 }
 0x4a0   : > { %v3004_v44 = vmul.f32 %v2819_v25, %v12735_v59  ;;  %v3211_v17 = vpop.f32.mrf.mxu0  ;;  %v2839_v25 = vsel %vm2838_vm3, %v12913_v31, %v2835_v55  ;;  %vm2856_vm9 = vweird.f32 %v12932_v29 }
 0x4a1   : > { %v2572_v34 = vpop.xlane.xlu1 %2571  ;;  %v2829_v18 = vsel %vm2828_vm2, %v10952_v26, %v2825_v6  ;;  %v2851_v26 = vmul.f32 %v12951_v20, %v12932_v29  ;;  %v3006_v61 = vmul.f32 %v2839_v25, %v12695_v63  ;;  %vm2858_vm3 = vmor %vm2856_vm9, %vm2857_vm8  ;;  %v13035_v29 = vpack.i.bf16 %v12938_v42, %v12954_v8 }
 0x4a2   : > { %v3037_v13 = vmul.f32 %v12621_v36, %v3004_v44  ;;  %v3005_v57 = vmul.f32 %v2829_v18, %v12730_v0  ;;  %v2626_v59 = vmul.f32 %v2572_v34, %v12369_v37  ;;  %v12980_v18 = vadd.f32 %v12927_v9, %v3211_v17 }
 0x4a3   : > { %v2852_v44 = vmul.f32 %v12951_v20, %v2851_v26  ;;  %v3039_v26 = vmul.f32 %v12621_v36, %v3006_v61 }
 0x4a4   : > { %v10956_v32 = vpop.eup %10955  ;;  %4903 = vrot.lane.b32.xlu2 %v12938_v42, %s11444_s7  ;;  %4901 = vrot.lane.b32.xlu1 %v12954_v8, %s11445_s19  ;;  %v3070_v30 = vadd.f32 %v12640_v3, %v3037_v13  ;;  %v12972_v4 = vadd.f32 1e-05, %v2626_v59  ;;  %v3038_v27 = vmul.f32 %v12621_v36, %v3005_v57  ;;  %17414 = vst [vmem:[#allocation77_spill] sm:$0xff] %v12980_v18 }
 0x4a5   : > { %v2841_v0 = vmul.f32 %v10956_v32, %v12943_v43  ;;  %v12977_v34 = vpop.eup %10957  ;;  %v2853_v59 = vmul.f32 0.5, %v2852_v44  ;;  %vm2847_vm12 = vweird.f32 %v10956_v32  ;;  %v13003_v44 = vadd.f32 %v12927_v9, %v3208_v2 }
 0x4a6   : > { %10261 = vmatmul.msk.f32.gmra.mxu0 %vm2310_vm15, %v3070_v30  ;;  %v2627_v30 = vmul.f32 %v2575_v41, %v12369_v37  ;;  %10959 = vrsqrt.f32 %v12972_v4  ;;  %v3071_v31 = vadd.f32 %v12640_v3, %v3038_v27  ;;  %v2861_v57 = vmul.f32 %v12977_v34, %v12948_v47  ;;  %vm2848_vm2 = vmor %vm2846_vm13, %vm2847_vm12 }
 0x4a7   : > { %v2842_v16 = vmul.f32 %v10956_v32, %v2841_v0  ;;  %v2854_v17 = vsub.f32 1.5, %v2853_v59  ;;  %17415 = vst [vmem:[#allocation78_spill] sm:$0xff] %v13003_v44  ;;  %v3072_v36 = vadd.f32 %v12640_v3, %v3039_v26  ;;  %v13026_v3 = vld [vmem:[%s17121_s2 + $0x128] ss:$0 sm:$0xff]  ;;  %vm2867_vm12 = vweird.f32 %v12977_v34 }
 0x4a8   : > { %v12996_v63 = vadd.f32 1e-05, %v2627_v30  ;;  %v2862_v0 = vmul.f32 %v12977_v34, %v2861_v57  ;;  %vm2866_vm13 = vweird.f32 %v12948_v47  ;;  %vm2876_vm9 = vweird.f32 %v12972_v4 }
 0x4a9   : > { %v2843_v6 = vmul.f32 0.5, %v2842_v16  ;;  %v2578_v16 = vpop.xlane.xlu0 %2577  ;;  %v2581_v59 = vpop.xlane.xlu2 %2580 }
 0x4aa   : > { %v2628_v41 = vmul.f32 %v2578_v16, %v12369_v37  ;;  %10961 = vrsqrt.f32 %v12996_v63 }
 0x4ab   : > { %v2844_v13 = vsub.f32 1.5, %v2843_v6  ;;  %v3214_v6 = vpop.f32.mrf.mxu0 }
 0x4ac   : > { %4905 = vrot.lane.b32.xlu2 %v12954_v8, %s11444_s7  ;;  %3339 = vrot.lane.b32.xlu1 %v12980_v18, %s11443_s6  ;;  %v13000_v25 = vpop.eup %10959 }
 0x4ad   : > { %v2845_v55 = vmul.f32 %v10956_v32, %v2844_v13  ;;  %4899 = vrot.lane.b32.xlu0 %v12938_v42, %s11445_s19  ;;  %v2855_v13 = vmul.f32 %v12951_v20, %v2854_v17  ;;  %v2871_v2 = vmul.f32 %v13000_v25, %v12972_v4  ;;  %vm2877_vm8 = vweird.f32 %v13000_v25 }
 0x4ae   : > { %10262 = vmatmul.msk.f32.gmra.mxu0 %vm2310_vm15, %v3071_v31 }
 0x4af   : > { %v2849_v27 = vsel %vm2848_vm2, %v10956_v32, %v2845_v55  ;;  %v2863_v32 = vmul.f32 0.5, %v2862_v0  ;;  %v2859_v31 = vsel %vm2858_vm3, %v12951_v20, %v2855_v13  ;;  %v2872_v57 = vmul.f32 %v13000_v25, %v2871_v2  ;;  %v13047_v20 = vld [vmem:[%s17121_s2 + $0x130] ss:$0 sm:$0xff]  ;;  %vm2868_vm2 = vmor %vm2866_vm13, %vm2867_vm12 }
 0x4b0   : > { %v3007_v43 = vmul.f32 %v2849_v27, %v12765_v45  ;;  %v13021_v45 = vadd.f32 1e-05, %v2628_v41  ;;  %v13031_v55 = vpop.eup %10961  ;;  %v3008_v26 = vmul.f32 %v2859_v31, %v12748_v24  ;;  %v2629_v0 = vmul.f32 %v2581_v59, %v12369_v37  ;;  %vm2878_vm3 = vmor %vm2876_vm9, %vm2877_vm8 }
 0x4b1   : > { %v2864_v30 = vsub.f32 1.5, %v2863_v32  ;;  %v2881_v24 = vmul.f32 %v13031_v55, %v12996_v63  ;;  %v2873_v27 = vmul.f32 0.5, %v2872_v57  ;;  %v13066_v31 = vadd.f32 %v12927_v9, %v3214_v6 }
 0x4b2   : > { %v3040_v61 = vmul.f32 %v13026_v3, %v3007_v43  ;;  %10963 = vrsqrt.f32 %v13021_v45  ;;  %v13058_v43 = vadd.f32 1e-05, %v2629_v0  ;;  %vm2887_vm12 = vweird.f32 %v13031_v55 }
 0x4b3   : > { %v2865_v17 = vmul.f32 %v12977_v34, %v2864_v30  ;;  %v3217_v41 = vpop.f32.mrf.mxu0  ;;  %v2882_v13 = vmul.f32 %v13031_v55, %v2881_v24  ;;  %v2874_v2 = vsub.f32 1.5, %v2873_v27  ;;  %vm2886_vm13 = vweird.f32 %v12996_v63 }
 0x4b4   : > { %3337 = vrot.lane.b32.xlu2 %v13003_v44, %s11443_s6  ;;  %4944 = vrot.lane.b32.xlu1 %v12980_v18, %s11444_s7  ;;  %v3073_v16 = vadd.f32 %v13047_v20, %v3040_v61  ;;  %v2584_v61 = vpop.xlane.xlu0 %2583  ;;  %10965 = vrsqrt.f32 %v13058_v43  ;;  %vm2896_vm9 = vweird.f32 %v13021_v45 }
 0x4b5   : > { %3302 = vrot.lane.b32.xlu0 %v12954_v8, %s11443_s6  ;;  %v2869_v32 = vsel %vm2868_vm2, %v12977_v34, %v2865_v17  ;;  %v2630_v47 = vmul.f32 %v2584_v61, %v12369_v37  ;;  %v2875_v6 = vmul.f32 %v13000_v25, %v2874_v2  ;;  %vm2888_vm2 = vmor %vm2886_vm13, %vm2887_vm12  ;;  %vm2906_vm13 = vweird.f32 %v13058_v43 }
 0x4b6   : > { %10263 = vmatmul.msk.f32.gmra.mxu0 %vm2310_vm15, %v3072_v36  ;;  %v3041_v36 = vmul.f32 %v13026_v3, %v3008_v26  ;;  %v3009_v57 = vmul.f32 %v2869_v32, %v12711_v62  ;;  %v2883_v26 = vmul.f32 0.5, %v2882_v13  ;;  %v13090_v32 = vadd.f32 %v12927_v9, %v3217_v41 }
 0x4b7   : > { %v13084_v0 = vadd.f32 1e-05, %v2630_v47  ;;  %v2879_v27 = vsel %vm2878_vm3, %v13000_v25, %v2875_v6 }
 0x4b8   : > { %v13063_v30 = vpop.eup %10963  ;;  %v3074_v34 = vadd.f32 %v13047_v20, %v3041_v36  ;;  %v2884_v24 = vsub.f32 1.5, %v2883_v26  ;;  %v3010_v4 = vmul.f32 %v2879_v27, %v12790_v60  ;;  %v13113_v26 = vpack.i.bf16 %v13066_v31, %v13090_v32 }
 0x4b9   : > { %v2891_v59 = vmul.f32 %v13063_v30, %v13021_v45  ;;  %10967 = vrsqrt.f32 %v13084_v0  ;;  %vm2897_vm8 = vweird.f32 %v13063_v30 }
 0x4ba   : > { %v10966_v36 = vpop.eup %10965  ;;  %v2885_v61 = vmul.f32 %v13031_v55, %v2884_v24  ;;  %v3043_v60 = vmul.f32 %v13026_v3, %v3010_v4  ;;  %17417 = vst [vmem:[#allocation80_spill] sm:$0xff] %v13113_v26  ;;  %vm2898_vm3 = vmor %vm2896_vm9, %vm2897_vm8  ;;  %vm2916_vm9 = vweird.f32 %v13084_v0 }
 0x4bb   : > { %v3220_v62 = vpop.f32.mrf.mxu0  ;;  %v2892_v17 = vmul.f32 %v13063_v30, %v2891_v59  ;;  %v2901_v41 = vmul.f32 %v10966_v36, %v13058_v43  ;;  %vm2907_vm12 = vweird.f32 %v10966_v36 }
 0x4bc   : > { %4942 = vrot.lane.b32.xlu2 %v13003_v44, %s11444_s7  ;;  %4940 = vrot.lane.b32.xlu1 %v12980_v18, %s11445_s19  ;;  %v13093_v13 = vadd.f32 %v12927_v9, %v3220_v62  ;;  %v2889_v47 = vsel %vm2888_vm2, %v13031_v55, %v2885_v61  ;;  %v3076_v63 = vadd.f32 %v13047_v20, %v3043_v60  ;;  %vm2908_vm2 = vmor %vm2906_vm13, %vm2907_vm12 }
 0x4bd   : > { %10750 = vrot.lane.b32.xlu0 %v13035_v29, %s11439_s9  ;;  %v2893_v25 = vmul.f32 0.5, %v2892_v17  ;;  %v3011_v6 = vmul.f32 %v2889_v47, %v12780_v19 }
 0x4be   : > { %10264 = vmatmul.msk.f32.gmra.mxu0 %vm2310_vm15, %v3073_v16  ;;  %v3042_v16 = vmul.f32 %v13026_v3, %v3009_v57  ;;  %17416 = vst [vmem:[#allocation79_spill] sm:$0xff] %v13093_v13 }
 0x4bf   : > { %v2894_v57 = vsub.f32 1.5, %v2893_v25  ;;  %v10968_v59 = vpop.eup %10967  ;;  %v3044_v19 = vmul.f32 %v13026_v3, %v3011_v6 }
 0x4c0   : > { %v3075_v2 = vadd.f32 %v13047_v20, %v3042_v16  ;;  %v2911_v16 = vmul.f32 %v10968_v59, %v13084_v0  ;;  %vm2917_vm8 = vweird.f32 %v10968_v59 }
 0x4c1   : > { %v2895_v62 = vmul.f32 %v13063_v30, %v2894_v57  ;;  %v3077_v45 = vadd.f32 %v13047_v20, %v3044_v19 }
 0x4c2   : > { %v2912_v4 = vmul.f32 %v10968_v59, %v2911_v16 }
 0x4c3   : > { %v3223_v17 = vpop.f32.mrf.mxu0  ;;  %v2899_v24 = vsel %vm2898_vm3, %v13063_v30, %v2895_v62  ;;  %vm2918_vm3 = vmor %vm2916_vm9, %vm2917_vm8 }
 0x4c4   : > { %4938 = vrot.lane.b32.xlu2 %v13003_v44, %s11445_s19  ;;  %3374 = vrot.lane.b32.xlu1 %v13066_v31, %s11443_s6  ;;  %v3012_v25 = vmul.f32 %v2899_v24, %v12727_v28 }
 0x4c5   : > { %4981 = vrot.lane.b32.xlu0 %v13066_v31, %s11444_s7 }
 0x4c6   : > { %10265 = vmatmul.msk.f32.gmra.mxu0 %vm2310_vm15, %v3074_v34  ;;  %v2902_v34 = vmul.f32 %v10966_v36, %v2901_v41  ;;  %v2913_v41 = vmul.f32 0.5, %v2912_v4  ;;  %v3045_v57 = vmul.f32 %v13026_v3, %v3012_v25 }
 0x4c8   : > { %v2903_v55 = vmul.f32 0.5, %v2902_v34  ;;  %v2914_v34 = vsub.f32 1.5, %v2913_v41  ;;  %v3078_v43 = vadd.f32 %v13047_v20, %v3045_v57 }
 0x4ca   : > { %v2904_v27 = vsub.f32 1.5, %v2903_v55  ;;  %v2915_v55 = vmul.f32 %v10968_v59, %v2914_v34 }
 0x4cb   : > { %v3226_v28 = vpop.f32.mrf.mxu0 }
 0x4cc   : > { %3411 = vrot.lane.b32.xlu2 %v13093_v13, %s11443_s6  ;;  %3376 = vrot.lane.b32.xlu1 %v13090_v32, %s11443_s6  ;;  %v2905_v61 = vmul.f32 %v10966_v36, %v2904_v27  ;;  %v2919_v19 = vsel %vm2918_vm3, %v10968_v59, %v2915_v55 }
 0x4cd   : > { %4977 = vrot.lane.b32.xlu0 %v13066_v31, %s11445_s19  ;;  %v3014_v25 = vmul.f32 %v2919_v19, %v12814_v23 }
 0x4ce   : > { %10266 = vmatmul.msk.f32.gmra.mxu0 %vm2310_vm15, %v3075_v2  ;;  %v13131_v2 = vadd.f32 %v12927_v9, %v3223_v17  ;;  %v2909_v47 = vsel %vm2908_vm2, %v10966_v36, %v2905_v61 }
 0x4cf   : > { %v3013_v62 = vmul.f32 %v2909_v47, %v12809_v35 }
 0x4d0   : > { %17418 = vst [vmem:[#allocation81_spill] sm:$0xff] %v13131_v2 }
 0x4d1   : > { %v3046_v16 = vmul.f32 %v13026_v3, %v3013_v62 }
 0x4d3   : > { %v3079_v0 = vadd.f32 %v13047_v20, %v3046_v16 }
 0x4d4   : > { %5020 = vrot.lane.b32.xlu2 %v13093_v13, %s11444_s7  ;;  %10755 = vrot.lane.b32.xlu1 %v13113_v26, %s11439_s9 }
 0x4d5   : > { %4983 = vrot.lane.b32.xlu0 %v13090_v32, %s11444_s7 }
 0x4d6   : > { %10267 = vmatmul.msk.f32.gmra.mxu0 %vm2310_vm15, %v3076_v63  ;;  %v13146_v63 = vadd.f32 %v12927_v9, %v3226_v28  ;;  %v3047_v28 = vmul.f32 %v13026_v3, %v3014_v25 }
 0x4d8   : > { %17419 = vst [vmem:[#allocation82_spill] sm:$0xff] %v13146_v63  ;;  %v10759_v4 = vpack.i.bf16 %v13146_v63, %v13003_v44 }
 0x4dc   : > { %5018 = vrot.lane.b32.xlu2 %v13131_v2, %s11445_s19  ;;  %4979 = vrot.lane.b32.xlu1 %v13090_v32, %s11445_s19 }
 0x4dd   : > { %5016 = vrot.lane.b32.xlu0 %v13093_v13, %s11445_s19 }
 0x4de   : > { %10268 = vmatmul.msk.f32.gmra.mxu0 %vm2310_vm15, %v3077_v45  ;;  %v2587_v30 = vpop.xlane.xlu1 %2586 }
 0x4df   : > { %v2631_v60 = vmul.f32 %v2587_v30, %v12369_v37 }
 0x4e1   : > { %v2663_v6 = vadd.f32 1e-05, %v2631_v60 }
 0x4e3   : > { %10969 = vrsqrt.f32 %v2663_v6  ;;  %vm2926_vm13 = vweird.f32 %v2663_v6 }
 0x4e4   : > { %3448 = vrot.lane.b32.xlu2 %v13146_v63, %s11443_s6  ;;  %5059 = vrot.lane.b32.xlu1 %v13146_v63, %s11444_s7 }
 0x4e5   : > { %3413 = vrot.lane.b32.xlu0 %v13131_v2, %s11443_s6 }
 0x4e6   : > { %10269 = vmatmul.msk.f32.gmra.mxu0 %vm2310_vm15, %v3078_v43  ;;  %v2590_v36 = vpop.xlane.xlu1 %2589  ;;  %v3080_v43 = vadd.f32 %v13047_v20, %v3047_v28 }
 0x4e7   : > { %v2632_v35 = vmul.f32 %v2590_v36, %v12369_v37 }
 0x4e9   : > { %v10970_v17 = vpop.eup %10969  ;;  %v2664_v24 = vadd.f32 1e-05, %v2632_v35 }
 0x4ea   : > { %v2921_v27 = vmul.f32 %v10970_v17, %v2663_v6  ;;  %vm2927_vm12 = vweird.f32 %v10970_v17 }
 0x4eb   : > { %10971 = vrsqrt.f32 %v2664_v24  ;;  %vm2928_vm2 = vmor %vm2926_vm13, %vm2927_vm12  ;;  %vm2936_vm9 = vweird.f32 %v2664_v24 }
 0x4ec   : > { %v2922_v45 = vmul.f32 %v10970_v17, %v2921_v27  ;;  %10760 = vrot.lane.b32.xlu2 %v10759_v4, %s11439_s9 }
 0x4ed   : > { %5022 = vrot.lane.b32.xlu0 %v13131_v2, %s11444_s7 }
 0x4ee   : > { %v2923_v61 = vmul.f32 0.5, %v2922_v45  ;;  %10270 = vmatmul.msk.f32.gmra.mxu0 %vm2310_vm15, %v3079_v0 }
 0x4ef   : > { %v2593_v59 = vpop.xlane.xlu0 %2592 }
 0x4f0   : > { %v2924_v41 = vsub.f32 1.5, %v2923_v61  ;;  %v2633_v30 = vmul.f32 %v2593_v59, %v12369_v37 }
 0x4f1   : > { %v10972_v60 = vpop.eup %10971 }
 0x4f2   : > { %v2925_v23 = vmul.f32 %v10970_v17, %v2924_v41  ;;  %v2931_v57 = vmul.f32 %v10972_v60, %v2664_v24  ;;  %v2665_v47 = vadd.f32 1e-05, %v2633_v30  ;;  %vm2937_vm8 = vweird.f32 %v10972_v60 }
 0x4f3   : > { %vm2938_vm3 = vmor %vm2936_vm9, %vm2937_vm8 }
 0x4f4   : > { %v2929_v34 = vsel %vm2928_vm2, %v10970_v17, %v2925_v23  ;;  %v2932_v62 = vmul.f32 %v10972_v60, %v2931_v57  ;;  %10973 = vrsqrt.f32 %v2665_v47  ;;  %vm2946_vm13 = vweird.f32 %v2665_v47 }
 0x4f5   : > { %v3015_v55 = vmul.f32 %v2929_v34, %v12841_v14  ;;  %v3229_v36 = vpop.f32.mrf.mxu0  ;;  %5055 = vrot.lane.b32.xlu0 %v13146_v63, %s11445_s19 }
 0x4f6   : > { %v2933_v35 = vmul.f32 0.5, %v2932_v62  ;;  %v13173_v16 = vadd.f32 %v12927_v9, %v3229_v36  ;;  %10271 = vmatmul.msk.f32.gmra.mxu0 %vm2310_vm15, %v3080_v43 }
 0x4f7   : > { %v2599_v6 = vpop.xlane.xlu0 %2598  ;;  %v2596_v19 = vpop.xlane.xlu2 %2595  ;;  %v3048_v14 = vmul.f32 %v13026_v3, %v3015_v55 }
 0x4f8   : > { %17420 = vst [vmem:[#allocation83_spill] sm:$0xff] %v13173_v16  ;;  %v2934_v17 = vsub.f32 1.5, %v2933_v35  ;;  %v2635_v27 = vmul.f32 %v2599_v6, %v12369_v37  ;;  %v2634_v4 = vmul.f32 %v2596_v19, %v12369_v37  ;;  %3450 = vrot.lane.b32.xlu1 %v13173_v16, %s11443_s6 }
 0x4f9   : > { %v3081_v30 = vadd.f32 %v13047_v20, %v3048_v14 }
 0x4fa   : > { %v10974_v25 = vpop.eup %10973  ;;  %v2935_v45 = vmul.f32 %v10972_v60, %v2934_v17  ;;  %v13183_v0 = vadd.f32 1e-05, %v2635_v27  ;;  %v2666_v61 = vadd.f32 1e-05, %v2634_v4 }
 0x4fb   : > { %v2941_v59 = vmul.f32 %v10974_v25, %v2665_v47  ;;  %vm2947_vm12 = vweird.f32 %v10974_v25 }
 0x4fc   : > { %v2939_v41 = vsel %vm2938_vm3, %v10972_v60, %v2935_v45  ;;  %10975 = vrsqrt.f32 %v13183_v0  ;;  %v10764_v60 = vpack.i.bf16 %v13173_v16, %v12980_v18  ;;  %vm2948_vm2 = vmor %vm2946_vm13, %vm2947_vm12  ;;  %vm2956_vm9 = vweird.f32 %v2666_v61 }
 0x4fd   : > { %v3016_v28 = vmul.f32 %v2939_v41, %v12849_v39  ;;  %v2942_v23 = vmul.f32 %v10974_v25, %v2941_v59  ;;  %10977 = vrsqrt.f32 %v2666_v61  ;;  %v3232_v57 = vpop.f32.mrf.mxu0  ;;  %5061 = vrot.lane.b32.xlu0 %v13173_v16, %s11444_s7  ;;  %vm2966_vm13 = vweird.f32 %v13183_v0 }
 0x4fe   : > { %v13189_v34 = vadd.f32 %v12927_v9, %v3232_v57  ;;  %10272 = vmatmul.msk.f32.gmra.mxu0 %vm2310_vm15, %v3081_v30  ;;  %v2602_v24 = vpop.xlane.xlu1 %2601 }
 0x4ff   : > { %v2943_v62 = vmul.f32 0.5, %v2942_v23  ;;  %v13196_v43 = vpop.permute.xlu2 %3300  ;;  %v2636_v39 = vmul.f32 %v2602_v24, %v12369_v37  ;;  %v3049_v55 = vmul.f32 %v13026_v3, %v3016_v28 }
 0x500   : > { %17421 = vst [vmem:[#allocation84_spill] sm:$0xff] %v13189_v34  ;;  %3485 = vrot.lane.b32.xlu2 %v13189_v34, %s11443_s6  ;;  %10765 = vrot.lane.b32.xlu1 %v10764_v60, %s11439_s9 }
 0x501   : > { %v2944_v36 = vsub.f32 1.5, %v2943_v62  ;;  %v13203_v35 = vadd.f32 1e-05, %v2636_v39  ;;  %v3082_v14 = vadd.f32 %v13047_v20, %v3049_v55 }
 0x502   : > { %v10976_v6 = vpop.eup %10975 }
 0x503   : > { %v10978_v19 = vpop.eup %10977  ;;  %v2945_v17 = vmul.f32 %v10974_v25, %v2944_v36  ;;  %v2961_v27 = vmul.f32 %v10976_v6, %v13183_v0  ;;  %10979 = vrsqrt.f32 %v13203_v35  ;;  %vm2967_vm3 = vweird.f32 %v10976_v6 }
 0x504   : > { %v2951_v4 = vmul.f32 %v10978_v19, %v2666_v61  ;;  %vm2957_vm8 = vweird.f32 %v10978_v19 }
 0x505   : > { %v2949_v45 = vsel %vm2948_vm2, %v10974_v25, %v2945_v17  ;;  %v2962_v59 = vmul.f32 %v10976_v6, %v2961_v27  ;;  %v3235_v41 = vpop.f32.mrf.mxu0  ;;  %vm2958_vm12 = vmor %vm2956_vm9, %vm2957_vm8  ;;  %vm2976_vm9 = vweird.f32 %v13203_v35 }
 0x506   : > { %v3017_v30 = vmul.f32 %v2949_v45, %v12863_v56  ;;  %v2952_v28 = vmul.f32 %v10978_v19, %v2951_v4  ;;  %v13210_v23 = vadd.f32 %v12927_v9, %v3235_v41  ;;  %10273 = vmatmul.msk.f32.gmra.mxu0 %vm2310_vm15, %v3082_v14  ;;  %vm2968_vm2 = vmor %vm2966_vm13, %vm2967_vm3 }
 0x507   : > { %v2963_v47 = vmul.f32 0.5, %v2962_v59  ;;  %v13213_v57 = vpop.permute.xlu2 %4903 }
 0x508   : > { %17422 = vst [vmem:[#allocation85_spill] sm:$0xff] %v13210_v23  ;;  %v2953_v24 = vmul.f32 0.5, %v2952_v28  ;;  %5098 = vrot.lane.b32.xlu2 %v13189_v34, %s11444_s7  ;;  %5057 = vrot.lane.b32.xlu1 %v13173_v16, %s11445_s19  ;;  %v3050_v25 = vmul.f32 %v13026_v3, %v3017_v30 }
 0x509   : > { %v10980_v60 = vpop.eup %10979  ;;  %v2964_v56 = vsub.f32 1.5, %v2963_v47  ;;  %5100 = vrot.lane.b32.xlu0 %v13210_v23, %s11444_s7 }
 0x50a   : > { %v2954_v62 = vsub.f32 1.5, %v2953_v24  ;;  %v2971_v39 = vmul.f32 %v10980_v60, %v13203_v35  ;;  %v3083_v17 = vadd.f32 %v13047_v20, %v3050_v25  ;;  %vm2977_vm8 = vweird.f32 %v10980_v60 }
 0x50b   : > { %v2965_v27 = vmul.f32 %v10976_v6, %v2964_v56  ;;  %vm2978_vm3 = vmor %vm2976_vm9, %vm2977_vm8  ;;  %vm3986_vm8 = vcmask 130048  }
 0x50c   : > { %v2955_v55 = vmul.f32 %v10978_v19, %v2954_v62  ;;  %v2972_v36 = vmul.f32 %v10980_v60, %v2971_v39  ;;  %v2605_v4 = vpop.xlane.xlu0 %2604 }
 0x50d   : > { %v2637_v59 = vmul.f32 %v2605_v4, %v12369_v37  ;;  %v3238_v30 = vpop.f32.mrf.mxu0 }
 0x50e   : > { %v2959_v14 = vsel %vm2958_vm12, %v10978_v19, %v2955_v55  ;;  %v2973_v45 = vmul.f32 0.5, %v2972_v36  ;;  %10274 = vmatmul.msk.f32.gmra.mxu0 %vm2310_vm15, %v3083_v17  ;;  %v2969_v19 = vsel %vm2968_vm2, %v10976_v6, %v2965_v27 }
 0x50f   : > { %v3018_v41 = vmul.f32 %v2959_v14, %v12879_v1  ;;  %v13228_v28 = vpop.permute.xlu2 %4905  ;;  %v2669_v61 = vadd.f32 1e-05, %v2637_v59  ;;  %v13238_v1 = vadd.f32 %v12927_v9, %v3238_v30  ;;  %v3019_v24 = vmul.f32 %v2969_v19, %v12875_v33 }
 0x510   : > { %3487 = vrot.lane.b32.xlu2 %v13210_v23, %s11443_s6  ;;  %5094 = vrot.lane.b32.xlu1 %v13189_v34, %s11445_s19  ;;  %v2974_v47 = vsub.f32 1.5, %v2973_v45 }
 0x511   : > { %5096 = vrot.lane.b32.xlu0 %v13210_v23, %s11445_s19  ;;  %v3051_v0 = vmul.f32 %v13026_v3, %v3018_v41  ;;  %10981 = vrsqrt.f32 %v2669_v61  ;;  %17423 = vst [vmem:[#allocation86_spill] sm:$0xff] %v13238_v1  ;;  %v10769_v6 = vpack.i.bf16 %v13238_v1, %v13093_v13  ;;  %v3052_v33 = vmul.f32 %v13026_v3, %v3019_v24 }
 0x512   : > { %v2975_v56 = vmul.f32 %v10980_v60, %v2974_v47  ;;  %vm2986_vm13 = vweird.f32 %v2669_v61 }
 0x513   : > { %v3084_v25 = vadd.f32 %v13047_v20, %v3051_v0  ;;  %v3085_v35 = vadd.f32 %v13047_v20, %v3052_v33 }
 0x514   : > { %v2979_v36 = vsel %vm2978_vm3, %v10980_v60, %v2975_v56 }
 0x515   : > { %v3241_v4 = vpop.f32.mrf.mxu0  ;;  %v3020_v14 = vmul.f32 %v2979_v36, %v12896_v53 }
 0x516   : > { %10275 = vmatmul.msk.f32.gmra.mxu0 %vm2310_vm15, %v3084_v25  ;;  %v13243_v62 = vpop.permute.xlu1 %4901  ;;  %v13257_v59 = vadd.f32 %v12927_v9, %v3241_v4 }
 0x517   : > { %17424 = vst [vmem:[#allocation87_spill] sm:$0xff] %v13243_v62  ;;  %v3338_v39 = vpop.permute.xlu2 %3337  ;;  %v10982_v55 = vpop.eup %10981  ;;  %v3053_v53 = vmul.f32 %v13026_v3, %v3020_v14  ;;  %v3935_v62 = vld [vmem:[#allocation2 + $0x68] sm:$0xff] }
 0x518   : > { %10770 = vrot.lane.b32.xlu2 %v10769_v6, %s11439_s9  ;;  %5137 = vrot.lane.b32.xlu1 %v13238_v1, %s11444_s7  ;;  %v2981_v17 = vmul.f32 %v10982_v55, %v2669_v61  ;;  %17425 = vst [vmem:[#allocation88_spill] sm:$0xff] %v13257_v59  ;;  %vm2987_vm12 = vweird.f32 %v10982_v55  ;;  %v10774_v33 = vpack.i.bf16 %v13257_v59, %v13131_v2 }
 0x519   : > { %3522 = vrot.lane.b32.xlu0 %v13238_v1, %s11443_s6  ;;  %vm2988_vm2 = vmor %vm2986_vm13, %vm2987_vm12  ;;  %v3086_v56 = vadd.f32 %v13047_v20, %v3053_v53 }
 0x51a   : > { %v2982_v27 = vmul.f32 %v10982_v55, %v2981_v17 }
 0x51c   : > { %v2983_v45 = vmul.f32 0.5, %v2982_v27 }
 0x51e   : > { %10276 = vmatmul.msk.f32.gmra.mxu0 %vm2310_vm15, %v3085_v35  ;;  %v3340_v41 = vpop.permute.xlu1 %3339  ;;  %v2984_v30 = vsub.f32 1.5, %v2983_v45 }
 0x51f   : > { %v13260_v60 = vpop.permute.xlu2 %4942  ;;  %v13262_v19 = vpop.permute.xlu0 %4899 }
 0x520   : > { %17426 = vst [vmem:[#allocation89_spill] sm:$0xff] %v13262_v19  ;;  %5139 = vrot.lane.b32.xlu2 %v13257_v59, %s11444_s7  ;;  %3524 = vrot.lane.b32.xlu1 %v13257_v59, %s11443_s6  ;;  %v2985_v47 = vmul.f32 %v10982_v55, %v2984_v30 }
 0x521   : > { %5133 = vrot.lane.b32.xlu0 %v13238_v1, %s11445_s19 }
 0x522   : > { %v2989_v0 = vsel %vm2988_vm2, %v10982_v55, %v2985_v47 }
 0x523   : > { %v3244_v24 = vpop.f32.mrf.mxu0  ;;  %v3021_v25 = vmul.f32 %v2989_v0, %v12919_v48 }
 0x524   : > { %v13279_v36 = vadd.f32 %v12927_v9, %v3244_v24 }
 0x525   : > { %v3054_v48 = vmul.f32 %v13026_v3, %v3021_v25 }
 0x526   : > { %10277 = vmatmul.msk.f32.gmra.mxu0 %vm2310_vm15, %v3086_v56  ;;  %v13274_v6 = vpop.permute.xlu1 %4944  ;;  %17427 = vst [vmem:[#allocation90_spill] sm:$0xff] %v13279_v36 }
 0x527   : > { %v13281_v61 = vpop.permute.xlu2 %4938  ;;  %v3303_v17 = vpop.permute.xlu0 %3302  ;;  %v3087_v27 = vadd.f32 %v13047_v20, %v3054_v48 }
 0x528   : > { %17428 = vst [vmem:[#allocation91_spill] sm:$0xff] %v13281_v61  ;;  %5135 = vrot.lane.b32.xlu2 %v13257_v59, %s11445_s19  ;;  %10775 = vrot.lane.b32.xlu1 %v10774_v33, %s11439_s9 }
 0x529   : > { %5176 = vrot.lane.b32.xlu0 %v13279_v36, %s11444_s7  ;;  %10279 = vmatpush.xpose.msk.msra.mxu1 %vm338_vm7, %v3303_v17 }
 0x52b   : > { %v3247_v55 = vpop.f32.mrf.mxu0 }
 0x52c   : > { %v13294_v4 = vadd.f32 %v12927_v9, %v3247_v55 }
 0x52d   : > { %10280 = vmatpush.xpose.msk.msra.mxu1 %vm338_vm7, %v13196_v43 }
 0x52e   : > { %17429 = vst [vmem:[#allocation92_spill] sm:$0xff] %v13294_v4  ;;  %10278 = vmatmul.msk.f32.gmra.mxu0 %vm2310_vm15, %v3087_v27  ;;  %v13298_v14 = vpop.permute.xlu1 %4940 }
 0x52f   : > { %17430 = vst [vmem:[#allocation93_spill] sm:$0xff] %v13298_v14  ;;  %v13300_v3 = vpop.permute.xlu2 %3411  ;;  %v10751_v35 = vpop.permute.xlu0 %10750 }
 0x530   : > { %10281 = vmatmul.msk.f32.vlgmr.msra.gmra.mxu1 %vm338_vm7, %v12938_v42  ;;  %3561 = vrot.lane.b32.xlu2 %v13294_v4, %s11443_s6  ;;  %v10752_v20 = vunpack.i.l.bf16 %v10751_v35  ;;  %v10753_v43 = vunpack.i.h.bf16 %v10751_v35 }
 0x531   : > { %10283 = vmatpush.xpose.msk.msrb.mxu1 %vm338_vm7, %v3340_v41  ;;  %3559 = vrot.lane.b32.xlu1 %v13279_v36, %s11443_s6 }
 0x532   : > { %4365 = vmatpush.msra.mxu2 %v10752_v20 }
 0x533   : > { %v3250_v45 = vpop.f32.mrf.mxu0 }
 0x534   : > { %v13310_v41 = vadd.f32 %v12927_v9, %v3250_v45  ;;  %4366 = vmatpush.msra.mxu2 %v10753_v43 }
 0x535   : > { %10284 = vmatpush.xpose.msk.msrb.mxu1 %vm338_vm7, %v3338_v39 }
 0x536   : > { %17431 = vst [vmem:[#allocation94_spill] sm:$0xff] %v13310_v41  ;;  %5215 = vrot.lane.b32.xlu0 %v13310_v41, %s11444_s7  ;;  %v3375_v42 = vpop.permute.xlu1 %3374 }
 0x537   : > { %v13314_v30 = vpop.permute.xlu2 %5020  ;;  %v13318_v53 = vpop.permute.xlu0 %4981 }
 0x538   : > { %17432 = vst [vmem:[#allocation95_spill] sm:$0xff] %v13314_v30  ;;  %10282 = vmatmul.msk.f32.gmra.mxu1 %vm338_vm7, %v12954_v8  ;;  %5211 = vrot.lane.b32.xlu2 %v13310_v41, %s11445_s19 }
 0x539   : > { %5172 = vrot.lane.b32.xlu1 %v13279_v36, %s11445_s19 }
 0x53b   : > { %v3253_v39 = vpop.f32.mrf.mxu0 }
 0x53c   : > { %v13325_v47 = vadd.f32 %v12927_v9, %v3253_v39 }
 0x53e   : > { %17433 = vst [vmem:[#allocation96_spill] sm:$0xff] %v13325_v47  ;;  %v3377_v0 = vpop.permute.xlu1 %3376  ;;  %v10784_v24 = vpack.i.bf16 %v13325_v47, %v13210_v23 }
 0x53f   : > { %v13329_v25 = vpop.permute.xlu2 %5018  ;;  %10287 = vmatpush.xpose.msk.msra.mxu1 %vm338_vm7, %v3377_v0  ;;  %v13332_v8 = vpop.permute.xlu0 %4977  ;;  %v10779_v0 = vpack.i.bf16 %v13310_v41, %v13189_v34 }
 0x540   : > { %17434 = vst [vmem:[#allocation97_spill] sm:$0xff] %v13329_v25  ;;  %10285 = vmatmul.msk.f32.vlgmr.msrb.gmra.mxu1 %vm338_vm7, %v13003_v44  ;;  %10785 = vrot.lane.b32.xlu0 %v10784_v24, %s11439_s9 }
 0x541   : > { %17435 = vst [vmem:[#allocation98_spill] sm:$0xff] %v13332_v8  ;;  %5178 = vrot.lane.b32.xlu1 %v13294_v4, %s11444_s7  ;;  %3598 = vrot.lane.b32.xlu2 %v13325_v47, %s11443_s6 }
 0x543   : > { %v3256_v56 = vpop.f32.mrf.mxu0  ;;  %10288 = vmatpush.xpose.msk.msra.mxu1 %vm338_vm7, %v3375_v42 }
 0x544   : > { %v13353_v20 = vadd.f32 %v12927_v9, %v3256_v56 }
 0x546   : > { %v10756_v33 = vpop.permute.xlu1 %10755  ;;  %17436 = vst [vmem:[#allocation99_spill] sm:$0xff] %v13353_v20 }
 0x547   : > { %v10757_v17 = vunpack.i.l.bf16 %v10756_v33  ;;  %v3449_v48 = vpop.permute.xlu2 %3448  ;;  %v13342_v55 = vpop.permute.xlu0 %4983  ;;  %v10758_v27 = vunpack.i.h.bf16 %v10756_v33 }
 0x548   : > { %10286 = vmatmul.msk.f32.gmra.mxu1 %vm338_vm7, %v12980_v18  ;;  %5213 = vrot.lane.b32.xlu0 %v13325_v47, %s11445_s19 }
 0x549   : > { %5174 = vrot.lane.b32.xlu1 %v13294_v4, %s11445_s19  ;;  %5217 = vrot.lane.b32.xlu2 %v13325_v47, %s11444_s7 }
 0x54a   : > { %4435 = vmatpush.msrb.mxu0 %v10757_v17 }
 0x54b   : > { %v3259_v35 = vpop.f32.mrf.mxu0 }
 0x54c   : > { %4436 = vmatpush.msrb.mxu0 %v10758_v27  ;;  %v13356_v43 = vadd.f32 %v12927_v9, %v3259_v35 }
 0x54e   : > { %17437 = vst [vmem:[#allocation100_spill] sm:$0xff] %v13356_v43  ;;  %v13370_v24 = vpop.permute.xlu1 %4979 }
 0x54f   : > { %v13358_v45 = vpop.permute.xlu0 %5016  ;;  %v10761_v42 = vpop.permute.xlu2 %10760  ;;  %17439 = vst [vmem:[#allocation102_spill] sm:$0xff] %v13370_v24 }
 0x550   : > { %17438 = vst [vmem:[#allocation101_spill] sm:$0xff] %v13358_v45  ;;  %10289 = vmatmul.msk.f32.vlgmr.msra.gmra.mxu1 %vm338_vm7, %v13066_v31  ;;  %3633 = vrot.lane.b32.xlu0 %v13353_v20, %s11443_s6  ;;  %v10763_v52 = vunpack.i.h.bf16 %v10761_v42 }
 0x551   : > { %3596 = vrot.lane.b32.xlu1 %v13310_v41, %s11443_s6  ;;  %3635 = vrot.lane.b32.xlu2 %v13356_v43, %s11443_s6 }
 0x553   : > { %v3262_v39 = vpop.f32.mrf.mxu0 }
 0x554   : > { %v13380_v31 = vadd.f32 %v12927_v9, %v3262_v39 }
 0x556   : > { %17440 = vst [vmem:[#allocation103_spill] sm:$0xff] %v13380_v31  ;;  %v13394_v35 = vpop.permute.xlu1 %5059 }
 0x557   : > { %v3414_v56 = vpop.permute.xlu0 %3413  ;;  %17442 = vst [vmem:[#allocation105_spill] sm:$0xff] %v13394_v35 }
 0x558   : > { %10290 = vmatmul.msk.f32.gmra.mxu1 %vm338_vm7, %v13090_v32  ;;  %5250 = vrot.lane.b32.xlu0 %v13353_v20, %s11445_s19  ;;  %v10789_v32 = vpack.i.bf16 %v13380_v31, %v13279_v36 }
 0x559   : > { %10780 = vrot.lane.b32.xlu1 %v10779_v0, %s11439_s9  ;;  %5256 = vrot.lane.b32.xlu2 %v13356_v43, %s11444_s7 }
 0x55a   : > { %10291 = vmatpush.xpose.msk.msrb.mxu1 %vm338_vm7, %v3414_v56  ;;  %v3486_v33 = vpop.permute.xlu2 %3485 }
 0x55b   : > { %v3265_v17 = vpop.f32.mrf.mxu0 }
 0x55c   : > { %v13401_v0 = vadd.f32 %v12927_v9, %v3265_v17 }
 0x55e   : > { %10292 = vmatpush.xpose.msk.msrb.mxu1 %vm338_vm7, %v13300_v3  ;;  %17444 = vst [vmem:[#allocation107_spill] sm:$0xff] %v13401_v0  ;;  %v10794_v40 = vpack.i.bf16 %v13401_v0, %v13294_v4 }
 0x55f   : > { %v13387_v27 = vpop.permute.xlu0 %5022 }
 0x560   : > { %17441 = vst [vmem:[#allocation104_spill] sm:$0xff] %v13387_v27  ;;  %10790 = vrot.lane.b32.xlu0 %v10789_v32, %s11439_s9 }
 0x561   : > { %10293 = vmatmul.msk.f32.vlgmr.msrb.gmra.mxu1 %vm338_vm7, %v13093_v13  ;;  %5254 = vrot.lane.b32.xlu1 %v13353_v20, %s11444_s7 }
 0x562   : > { %3670 = vrot.lane.b32.xlu2 %v13380_v31, %s11443_s6  ;;  %v13398_v39 = vpop.permute.xlu2 %5098 }
 0x563   : > { %17443 = vst [vmem:[#allocation106_spill] sm:$0xff] %v13398_v39  ;;  %v3268_v3 = vpop.f32.mrf.mxu0 }
 0x567   : > { %v13405_v56 = vpop.permute.xlu0 %5055 }
 0x568   : > { %5295 = vrot.lane.b32.xlu0 %v13401_v0, %s11444_s7  ;;  %17445 = vst [vmem:[#allocation108_spill] sm:$0xff] %v13405_v56  ;;  %v3927_v56 = vld [vmem:[#allocation2 + $0x28] sm:$0xff] }
 0x569   : > { %10294 = vmatmul.msk.f32.gmra.mxu1 %vm338_vm7, %v13131_v2  ;;  %5252 = vrot.lane.b32.xlu1 %v13356_v43, %s11445_s19 }
 0x56a   : > { %5293 = vrot.lane.b32.xlu2 %v13380_v31, %s11444_s7  ;;  %v3488_v32 = vpop.permute.xlu2 %3487  ;;  %v3451_v15 = vpop.permute.xlu1 %3450 }
 0x56b   : > { %v3271_v38 = vpop.f32.mrf.mxu0  ;;  %10295 = vmatpush.xpose.msk.msra.mxu1 %vm338_vm7, %v3451_v15 }
 0x56c   : > { %v13415_v17 = vadd.f32 %v12927_v9, %v3271_v38 }
 0x56f   : > { %10296 = vmatpush.xpose.msk.msra.mxu1 %vm338_vm7, %v3449_v48  ;;  %v13430_v15 = vpop.permute.xlu0 %5061 }
 0x570   : > { %3709 = vrot.lane.b32.xlu0 %v13415_v17, %s11443_s6  ;;  %17446 = vst [vmem:[#allocation109_spill] sm:$0xff] %v13430_v15 }
 0x571   : > { %5289 = vrot.lane.b32.xlu1 %v13380_v31, %s11445_s19 }
 0x572   : > { %10795 = vrot.lane.b32.xlu2 %v10794_v40, %s11439_s9  ;;  %v13426_v21 = vpop.permute.xlu2 %10770  ;;  %10297 = vmatmul.msk.f32.vlgmr.msra.gmra.mxu1 %vm338_vm7, %v13146_v63  ;;  %v10766_v38 = vpop.permute.xlu1 %10765  ;;  %v13436_v40 = vld [vmem:[%s17121_s2 + $0xd8] ss:$0 sm:$0xff] }
 0x573   : > { %10299 = vmatpush.xpose.msk.msrb.mxu1 %vm338_vm7, %v3488_v32  ;;  %v10768_v9 = vunpack.i.h.bf16 %v10766_v38  ;;  %v10767_v48 = vunpack.i.l.bf16 %v10766_v38  ;;  %v3274_v58 = vpop.f32.mrf.mxu0  ;;  %v10762_v32 = vunpack.i.l.bf16 %v10761_v42  ;;  %v10773_v25 = vunpack.i.h.bf16 %v13426_v21 }
 0x574   : > { %v13439_v49 = vadd.f32 %v13436_v40, %v3274_v58 }
 0x575   : > { %4400 = vmatpush.msra.mxu3 %v10767_v48  ;;  %4505 = vmatpush.msrb.mxu2 %v10768_v9  ;;  %v13458_v9 = vadd.f32 %v13436_v40, %v3268_v3 }
 0x576   : > { %17447 = vst [vmem:[#allocation110_spill] sm:$0xff] %v13439_v49 }
 0x577   : > { %10300 = vmatpush.xpose.msk.msrb.mxu1 %vm338_vm7, %v3486_v33  ;;  %4401 = vmatpush.msra.mxu3 %v10762_v32  ;;  %17451 = vst [vmem:[#allocation114_spill] sm:$0xff] %v13458_v9 }
 0x578   : > { %4506 = vmatpush.msrb.mxu2 %v10763_v52  ;;  %3744 = vrot.lane.b32.xlu0 %v13439_v49, %s11443_s6  ;;  %v10799_v52 = vpack.i.bf16 %v13439_v49, %v13353_v20 }
 0x579   : > { %3672 = vrot.lane.b32.xlu1 %v13401_v0, %s11443_s6 }
 0x57a   : > { %5291 = vrot.lane.b32.xlu2 %v13401_v0, %s11445_s19  ;;  %v13447_v42 = vpop.permute.xlu2 %5139  ;;  %10298 = vmatmul.msk.f32.gmra.mxu1 %vm338_vm7, %v13173_v16  ;;  %v13451_v33 = vpop.permute.xlu1 %5057 }
 0x57b   : > { %17448 = vst [vmem:[#allocation111_spill] sm:$0xff] %v13447_v42  ;;  %v13453_v58 = vpop.permute.xlu0 %5100  ;;  %v3277_v38 = vpop.f32.mrf.mxu0 }
 0x57c   : > { %17449 = vst [vmem:[#allocation112_spill] sm:$0xff] %v13451_v33  ;;  %v13474_v3 = vadd.f32 %v13436_v40, %v3277_v38 }
 0x57d   : > { %17450 = vst [vmem:[#allocation113_spill] sm:$0xff] %v13453_v58 }
 0x57e   : > { %17455 = vst [vmem:[#allocation118_spill] sm:$0xff] %v13474_v3  ;;  %v10804_v7 = vpack.i.bf16 %v13474_v3, %v13356_v43 }
 0x580   : > { %10800 = vrot.lane.b32.xlu0 %v10799_v52, %s11439_s9 }
 0x581   : > { %3707 = vrot.lane.b32.xlu1 %v13458_v9, %s11443_s6 }
 0x582   : > { %5367 = vrot.lane.b32.xlu2 %v13439_v49, %s11445_s19  ;;  %v13465_v48 = vpop.permute.xlu2 %5135  ;;  %10301 = vmatmul.msk.f32.vlgmr.msrb.gmra.mxu1 %vm338_vm7, %v13189_v34  ;;  %v13469_v32 = vpop.permute.xlu1 %5094 }
 0x583   : > { %17452 = vst [vmem:[#allocation115_spill] sm:$0xff] %v13465_v48  ;;  %v3280_v37 = vpop.f32.mrf.mxu0  ;;  %v13471_v12 = vpop.permute.xlu0 %5096 }
 0x584   : > { %17453 = vst [vmem:[#allocation116_spill] sm:$0xff] %v13469_v32  ;;  %v13487_v46 = vadd.f32 %v13436_v40, %v3280_v37 }
 0x585   : > { %17454 = vst [vmem:[#allocation117_spill] sm:$0xff] %v13471_v12 }
 0x588   : > { %5371 = vrot.lane.b32.xlu0 %v13439_v49, %s11444_s7 }
 0x589   : > { %5332 = vrot.lane.b32.xlu1 %v13458_v9, %s11444_s7 }
 0x58a   : > { %3746 = vrot.lane.b32.xlu2 %v13474_v3, %s11443_s6  ;;  %v3562_v52 = vpop.permute.xlu2 %3561  ;;  %10302 = vmatmul.msk.f32.gmra.mxu1 %vm338_vm7, %v13210_v23  ;;  %v13484_v50 = vpop.permute.xlu1 %5137 }
 0x58b   : > { %17456 = vst [vmem:[#allocation119_spill] sm:$0xff] %v13484_v50  ;;  %v3283_v22 = vpop.f32.mrf.mxu0  ;;  %v3523_v54 = vpop.permute.xlu0 %3522 }
 0x58c   : > { %v13490_v38 = vadd.f32 %v13436_v40, %v3283_v22 }
 0x58e   : > { %v13494_v11 = vpack.i.bf16 %v13487_v46, %v13490_v38 }
 0x590   : > { %17457 = vst [vmem:[#allocation120_spill] sm:$0xff] %v13494_v11  ;;  %10810 = vrot.lane.b32.xlu0 %v13494_v11, %s11439_s9 }
 0x591   : > { %5328 = vrot.lane.b32.xlu1 %v13458_v9, %s11445_s19 }
 0x592   : > { %10805 = vrot.lane.b32.xlu2 %v10804_v7, %s11439_s9  ;;  %v13503_v37 = vpop.permute.xlu2 %5211  ;;  %v3525_v22 = vpop.permute.xlu1 %3524 }
 0x593   : > { %17458 = vst [vmem:[#allocation121_spill] sm:$0xff] %v13503_v37  ;;  %v3286_v10 = vpop.f32.mrf.mxu0  ;;  %10303 = vmatpush.xpose.msk.msra.mxu1 %vm338_vm7, %v3525_v22  ;;  %v13512_v11 = vpop.permute.xlu0 %5133 }
 0x594   : > { %v13507_v51 = vadd.f32 %v13436_v40, %v3286_v10  ;;  %17459 = vst [vmem:[#allocation122_spill] sm:$0xff] %v13512_v11 }
 0x596   : > { %v10814_v5 = vpack.i.bf16 %v13507_v51, %v13458_v9 }
 0x597   : > { %10304 = vmatpush.xpose.msk.msra.mxu1 %vm338_vm7, %v3523_v54 }
 0x598   : > { %10815 = vrot.lane.b32.xlu0 %v10814_v5, %s11439_s9 }
 0x599   : > { %5334 = vrot.lane.b32.xlu1 %v13415_v17, %s11444_s7 }
 0x59a   : > { %5373 = vrot.lane.b32.xlu2 %v13474_v3, %s11444_s7  ;;  %10305 = vmatmul.msk.f32.vlgmr.msra.gmra.mxu1 %vm338_vm7, %v13238_v1  ;;  %v13522_v10 = vpop.permute.xlu1 %10775 }
 0x59b   : > { %10307 = vmatpush.xpose.msk.msrb.mxu1 %vm338_vm7, %v3562_v52  ;;  %v3599_v7 = vpop.permute.xlu2 %3598  ;;  %v10778_v54 = vunpack.i.h.bf16 %v13522_v10  ;;  %v3289_v22 = vpop.f32.mrf.mxu0 }
 0x59c   : > { %v13527_v5 = vadd.f32 %v13436_v40, %v3289_v22  ;;  %v13533_v52 = vpop.permute.xlu0 %5176 }
 0x59d   : > { %4575 = vmatpush.msra.mxu0 %v10778_v54  ;;  %17461 = vst [vmem:[#allocation124_spill] sm:$0xff] %v13533_v52 }
 0x59e   : > { %17460 = vst [vmem:[#allocation123_spill] sm:$0xff] %v13527_v5  ;;  %v10819_v52 = vpack.i.bf16 %v13527_v5, %v13415_v17 }
 0x59f   : > { %4576 = vmatpush.msra.mxu0 %v10773_v25  ;;  %v13542_v25 = vpop.f32.mrf.mxu1 }
 0x5a0   : > { %3820 = vrot.lane.b32.xlu0 %v13527_v5, %s11443_s6  ;;  %17463 = vst [vmem:[#allocation126_spill] sm:$0xff] %v13542_v25 }
 0x5a1   : > { %5369 = vrot.lane.b32.xlu1 %v13474_v3, %s11445_s19 }
 0x5a2   : > { %3781 = vrot.lane.b32.xlu2 %v13487_v46, %s11443_s6  ;;  %10306 = vmatmul.msk.f32.gmra.mxu1 %vm338_vm7, %v13257_v59 }
 0x5a3   : > { %v13539_v45 = vpop.permute.xlu2 %5217  ;;  %v3560_v54 = vpop.permute.xlu1 %3559 }
 0x5a4   : > { %17462 = vst [vmem:[#allocation125_spill] sm:$0xff] %v13539_v45  ;;  %v3292_v22 = vpop.f32.mrf.mxu0  ;;  %10308 = vmatpush.xpose.msk.msrb.mxu1 %vm338_vm7, %v3560_v54 }
 0x5a5   : > { %v13546_v48 = vadd.f32 %v13436_v40, %v3292_v22 }
 0x5a8   : > { %10311 = vmatpush.xpose.msk.msra.mxu1 %vm338_vm7, %v3599_v7  ;;  %3855 = vrot.lane.b32.xlu0 %v13546_v48, %s11443_s6  ;;  %v13554_v11 = vpop.permute.xlu0 %5215 }
 0x5a9   : > { %3783 = vrot.lane.b32.xlu1 %v13490_v38, %s11443_s6  ;;  %17464 = vst [vmem:[#allocation127_spill] sm:$0xff] %v13554_v11 }
 0x5aa   : > { %10820 = vrot.lane.b32.xlu2 %v10819_v52, %s11439_s9  ;;  %10309 = vmatmul.msk.f32.vlgmr.msrb.gmra.mxu1 %vm338_vm7, %v13279_v36 }
 0x5ab   : > { %v13559_v7 = vpop.permute.xlu1 %5172  ;;  %v3636_v22 = vpop.permute.xlu2 %3635 }
 0x5ac   : > { %17465 = vst [vmem:[#allocation128_spill] sm:$0xff] %v13559_v7  ;;  %v3295_v54 = vpop.f32.mrf.mxu0 }
 0x5ad   : > { %v13562_v25 = vadd.f32 %v13436_v40, %v3295_v54  ;;  %v3329_v24 = vpop.f32.mrf.mxu1 }
 0x5af   : > { %17466 = vst [vmem:[#allocation129_spill] sm:$0xff] %v13562_v25  ;;  %v13566_v8 = vpack.i.bf16 %v13546_v48, %v13562_v25 }
 0x5b1   : > { %17467 = vst [vmem:[#allocation130_spill] sm:$0xff] %v13566_v8  ;;  %3818 = vrot.lane.b32.xlu1 %v13507_v51, %s11443_s6  ;;  %10825 = vrot.lane.b32.xlu0 %v13566_v8, %s11439_s9  ;;  %s11446_s9 = smov 108  }
 0x5b2   : > { %3857 = vrot.lane.b32.xlu2 %v13562_v25, %s11443_s6  ;;  %v13574_v52 = vpop.permute.xlu0 %10785  ;;  %10310 = vmatmul.msk.f32.gmra.mxu1 %vm338_vm7, %v13294_v4 }
 0x5b3   : > { %v10787_v40 = vunpack.i.l.bf16 %v13574_v52  ;;  %v13579_v54 = vpop.permute.xlu1 %5178  ;;  %v13581_v7 = vpop.permute.xlu2 %5256 }
 0x5b4   : > { %17468 = vst [vmem:[#allocation131_spill] sm:$0xff] %v13579_v54 }
 0x5b5   : > { %v3332_v36 = vpop.f32.mrf.mxu1  ;;  %4540 = vmatpush.msrb.mxu3 %v10787_v40  ;;  %17469 = vst [vmem:[#allocation132_spill] sm:$0xff] %v13581_v7 }
 0x5ba   : > { %v13583_v12 = vpop.permute.xlu0 %5213 }
 0x5bb   : > { %17470 = vst [vmem:[#allocation133_spill] sm:$0xff] %v13583_v12  ;;  %v13585_v32 = vpop.permute.xlu1 %5174  ;;  %v3924_v12 = vld [vmem:[#allocation2 + $0x10] sm:$0xff] }
 0x5bc   : > { %17471 = vst [vmem:[#allocation134_spill] sm:$0xff] %v13585_v32  ;;  %v13587_v14 = vpop.permute.xlu2 %3670 }
 0x5bd   : > { %v3366_v8 = vpop.f32.mrf.mxu1 }
 0x5c2   : > { %v3634_v50 = vpop.permute.xlu0 %3633 }
 0x5c3   : > { %v3597_v61 = vpop.permute.xlu1 %3596 }
 0x5c4   : > { %10312 = vmatpush.xpose.msk.msra.mxu1 %vm338_vm7, %v3597_v61  ;;  %v13596_v54 = vpop.permute.xlu2 %5293  ;;  %v3890_v61 = vmul.f32 0.5, %v3329_v24 }
 0x5c5   : > { %v3369_v4 = vpop.f32.mrf.mxu1  ;;  %17473 = vst [vmem:[#allocation136_spill] sm:$0xff] %v13596_v54 }
 0x5c6   : > { %v3893_v24 = vmul.f32 0.5, %v3369_v4  ;;  %v3928_v4 = vld [vmem:[#allocation2 + $0x30] sm:$0xff] }
 0x5c7   : > { %10313 = vmatmul.msk.f32.vlgmr.msra.gmra.mxu1 %vm338_vm7, %v13310_v41  ;;  %v3892_v41 = vmul.f32 0.5, %v3366_v8 }
 0x5c8   : > { %10315 = vmatpush.xpose.msk.msrb.mxu1 %vm338_vm7, %v3636_v22  ;;  %v3891_v22 = vmul.f32 0.5, %v3332_v36 }
 0x5c9   : > { %v13615_v36 = vadd.f32 %v3924_v12, %v3892_v41 }
 0x5ca   : > { %v13594_v40 = vpop.permute.xlu0 %5250 }
 0x5cb   : > { %17472 = vst [vmem:[#allocation135_spill] sm:$0xff] %v13594_v40  ;;  %v13598_v32 = vpop.permute.xlu1 %10780  ;;  %v3922_v40 = vld [vmem:[#allocation2] sm:$0xff] }
 0x5cc   : > { %10316 = vmatpush.xpose.msk.msrb.mxu1 %vm338_vm7, %v3634_v50  ;;  %v10782_v7 = vunpack.i.l.bf16 %v13598_v32  ;;  %v3923_v50 = vld [vmem:[#allocation2 + $0x8] sm:$0xff]  ;;  %v13607_v54 = vpop.permute.xlu2 %10795  ;;  %v13611_v37 = vadd.f32 %v3922_v40, %v3890_v61  ;;  %v3993_v40 = vsel %vm3986_vm8, %v13615_v36, -inf }
 0x5cd   : > { %v3403_v42 = vpop.f32.mrf.mxu1  ;;  %v13609_v16 = vadd.f32 %v3923_v50, %v3891_v22  ;;  %v3925_v22 = vld [vmem:[#allocation2 + $0x18] sm:$0xff] }
 0x5ce   : > { %4541 = vmatpush.msrb.mxu3 %v10782_v7  ;;  %v13627_v41 = vadd.f32 %v3925_v22, %v3893_v24  ;;  %v3926_v22 = vld [vmem:[#allocation2 + $0x20] sm:$0xff] }
 0x5cf   : > { %10314 = vmatmul.msk.f32.gmra.mxu1 %vm338_vm7, %v13325_v47  ;;  %v3990_v8 = vsel %vm3986_vm8, %v13609_v16, -inf  ;;  %v3987_v47 = vsel %vm3986_vm8, %v13611_v37, -inf }
 0x5d2   : > { %v13603_v1 = vpop.permute.xlu0 %10790 }
 0x5d3   : > { %v13605_v59 = vpop.permute.xlu1 %5254 }
 0x5d4   : > { %17474 = vst [vmem:[#allocation137_spill] sm:$0xff] %v13605_v59  ;;  %v13629_v50 = vpop.permute.xlu2 %5291  ;;  %v3929_v59 = vld [vmem:[#allocation2 + $0x38] sm:$0xff] }
 0x5d5   : > { %v3406_v63 = vpop.f32.mrf.mxu1  ;;  %17477 = vst [vmem:[#allocation140_spill] sm:$0xff] %v13629_v50 }
 0x5d7   : > { %10317 = vmatmul.msk.f32.vlgmr.msrb.gmra.mxu1 %vm338_vm7, %v13353_v20 }
 0x5da   : > { %v13619_v7 = vpop.permute.xlu0 %5295 }
 0x5db   : > { %17475 = vst [vmem:[#allocation138_spill] sm:$0xff] %v13619_v7  ;;  %3991 = vmax.xlane.f32.xlu2 %v3990_v8  ;;  %3988 = vmax.xlane.f32.xlu1 %v3987_v47  ;;  %v13625_v61 = vpop.permute.xlu1 %5252  ;;  %v3894_v47 = vmul.f32 0.5, %v3403_v42  ;;  %v3996_v8 = vsel %vm3986_vm8, %v13627_v41, -inf }
 0x5dc   : > { %17476 = vst [vmem:[#allocation139_spill] sm:$0xff] %v13625_v61  ;;  %3994 = vmax.xlane.f32.xlu0 %v3993_v40 }
 0x5de   : > { %v3440_v12 = vpop.f32.mrf.mxu1 }
 0x5df   : > { %v3896_v20 = vmul.f32 0.5, %v3440_v12  ;;  %10318 = vmatmul.msk.f32.gmra.mxu1 %vm338_vm7, %v13356_v43  ;;  %v13641_v12 = vadd.f32 %v3926_v22, %v3894_v47  ;;  %v3930_v22 = vld [vmem:[#allocation2 + $0x40] sm:$0xff] }
 0x5e1   : > { %v13633_v7 = vadd.f32 %v3928_v4, %v3896_v20  ;;  %v13643_v20 = vpop.permute.xlu2 %5367  ;;  %v3895_v4 = vmul.f32 0.5, %v3406_v63 }
 0x5e2   : > { %v3710_v61 = vpop.permute.xlu0 %3709  ;;  %17479 = vst [vmem:[#allocation142_spill] sm:$0xff] %v13643_v20 }
 0x5e3   : > { %3997 = vmax.xlane.f32.xlu2 %v3996_v8  ;;  %v4005_v40 = vsel %vm3986_vm8, %v13633_v7, -inf  ;;  %v13639_v24 = vpop.permute.xlu1 %5289  ;;  %v3999_v8 = vsel %vm3986_vm8, %v13641_v12, -inf }
 0x5e4   : > { %17478 = vst [vmem:[#allocation141_spill] sm:$0xff] %v13639_v24  ;;  %4006 = vmax.xlane.f32.xlu1 %v4005_v40  ;;  %v13652_v40 = vadd.f32 %v3927_v56, %v3895_v4 }
 0x5e6   : > { %v3443_v50 = vpop.f32.mrf.mxu1  ;;  %v4002_v63 = vsel %vm3986_vm8, %v13652_v40, -inf }
 0x5e7   : > { %v3897_v43 = vmul.f32 0.5, %v3443_v50 }
 0x5e9   : > { %v13645_v42 = vadd.f32 %v3929_v59, %v3897_v43 }
 0x5ea   : > { %v3745_v47 = vpop.permute.xlu0 %3744 }
 0x5eb   : > { %4000 = vmax.xlane.f32.xlu2 %v3999_v8  ;;  %v4008_v33 = vsel %vm3986_vm8, %v13645_v42, -inf  ;;  %v3673_v24 = vpop.permute.xlu1 %3672  ;;  %v3747_v8 = vpop.permute.xlu2 %3746 }
 0x5ec   : > { %4009 = vmax.xlane.f32.xlu1 %v4008_v33  ;;  %10319 = vmatpush.xpose.msk.msra.mxu1 %vm338_vm7, %v3673_v24  ;;  %v3931_v24 = vld [vmem:[#allocation2 + $0x48] sm:$0xff] }
 0x5ef   : > { %v3477_v50 = vpop.f32.mrf.mxu1 }
 0x5f0   : > { %v3898_v59 = vmul.f32 0.5, %v3477_v50  ;;  %10320 = vmatpush.xpose.msk.msra.mxu1 %vm338_vm7, %v13587_v14 }
 0x5f2   : > { %v13659_v43 = vadd.f32 %v3930_v22, %v3898_v59  ;;  %v13667_v14 = vpop.permute.xlu0 %10800 }
 0x5f3   : > { %4003 = vmax.xlane.f32.xlu2 %v4002_v63  ;;  %10321 = vmatmul.msk.f32.vlgmr.msra.gmra.mxu1 %vm338_vm7, %v13380_v31  ;;  %v3708_v56 = vpop.permute.xlu1 %3707  ;;  %v13678_v63 = vpop.permute.xlu2 %10805 }
 0x5f4   : > { %10323 = vmatpush.xpose.msk.msrb.mxu1 %vm338_vm7, %v3710_v61  ;;  %v4011_v33 = vsel %vm3986_vm8, %v13659_v43, -inf }
 0x5f5   : > { %4012 = vmax.xlane.f32.xlu1 %v4011_v33 }
 0x5f7   : > { %v3480_v61 = vpop.f32.mrf.mxu1 }
 0x5f8   : > { %10324 = vmatpush.xpose.msk.msrb.mxu1 %vm338_vm7, %v3708_v56  ;;  %v3899_v4 = vmul.f32 0.5, %v3480_v61  ;;  %v3932_v56 = vld [vmem:[#allocation2 + $0x50] sm:$0xff] }
 0x5fa   : > { %v13670_v50 = vadd.f32 %v3931_v24, %v3899_v4  ;;  %v13680_v31 = vpop.permute.xlu0 %5371 }
 0x5fb   : > { %10322 = vmatmul.msk.f32.gmra.mxu1 %vm338_vm7, %v13401_v0  ;;  %v13674_v22 = vpop.permute.xlu1 %5332  ;;  %17481 = vst [vmem:[#allocation144_spill] sm:$0xff] %v13680_v31  ;;  %v13690_v4 = vpop.permute.xlu2 %5373 }
 0x5fc   : > { %10327 = vmatpush.xpose.msk.msra.mxu1 %vm338_vm7, %v3747_v8  ;;  %17480 = vst [vmem:[#allocation143_spill] sm:$0xff] %v13674_v22  ;;  %v4014_v59 = vsel %vm3986_vm8, %v13670_v50, -inf }
 0x5fd   : > { %4015 = vmax.xlane.f32.xlu0 %v4014_v59  ;;  %17483 = vst [vmem:[#allocation146_spill] sm:$0xff] %v13690_v4  ;;  %v3933_v59 = vld [vmem:[#allocation2 + $0x58] sm:$0xff] }
 0x5ff   : > { %v3514_v8 = vpop.f32.mrf.mxu1 }
 0x600   : > { %10328 = vmatpush.xpose.msk.msra.mxu1 %vm338_vm7, %v3745_v47  ;;  %v3900_v33 = vmul.f32 0.5, %v3514_v8 }
 0x602   : > { %v13682_v61 = vadd.f32 %v3932_v56, %v3900_v33  ;;  %v13694_v8 = vpop.permute.xlu0 %10810 }
 0x603   : > { %10325 = vmatmul.msk.f32.vlgmr.msrb.gmra.mxu1 %vm338_vm7, %v13458_v9  ;;  %v13686_v47 = vpop.permute.xlu1 %5328  ;;  %v3782_v9 = vpop.permute.xlu2 %3781 }
 0x604   : > { %17482 = vst [vmem:[#allocation145_spill] sm:$0xff] %v13686_v47  ;;  %v4017_v24 = vsel %vm3986_vm8, %v13682_v61, -inf }
 0x605   : > { %4018 = vmax.xlane.f32.xlu1 %v4017_v24 }
 0x607   : > { %v3517_v0 = vpop.f32.mrf.mxu1 }
 0x608   : > { %v3901_v22 = vmul.f32 0.5, %v3517_v0 }
 0x60a   : > { %v13692_v20 = vadd.f32 %v3933_v59, %v3901_v22  ;;  %v13706_v0 = vpop.permute.xlu0 %10815  ;;  %v3934_v59 = vld [vmem:[#allocation2 + $0x60] sm:$0xff] }
 0x60b   : > { %10326 = vmatmul.msk.f32.gmra.mxu1 %vm338_vm7, %v13415_v17  ;;  %v13698_v56 = vpop.permute.xlu1 %5334  ;;  %v13710_v4 = vpop.permute.xlu2 %10820 }
 0x60c   : > { %17484 = vst [vmem:[#allocation147_spill] sm:$0xff] %v13698_v56  ;;  %v4020_v33 = vsel %vm3986_vm8, %v13692_v20, -inf }
 0x60d   : > { %4021 = vmax.xlane.f32.xlu0 %v4020_v33 }
 0x613   : > { %10329 = vmatmul.msk.f32.vlgmr.msra.gmra.mxu1 %vm338_vm7, %v13439_v49  ;;  %v13704_v24 = vpop.permute.xlu1 %5369  ;;  %v3821_v49 = vpop.permute.xlu0 %3820 }
 0x614   : > { %17485 = vst [vmem:[#allocation148_spill] sm:$0xff] %v13704_v24 }
 0x617   : > { %v3551_v22 = vpop.f32.mrf.mxu1 }
 0x618   : > { %v3902_v47 = vmul.f32 0.5, %v3551_v22 }
 0x61a   : > { %v13708_v31 = vadd.f32 %v3934_v59, %v3902_v47  ;;  %v3858_v59 = vpop.permute.xlu2 %3857 }
 0x61b   : > { %10330 = vmatmul.msk.f32.gmra.mxu1 %vm338_vm7, %v13474_v3  ;;  %v3784_v56 = vpop.permute.xlu1 %3783  ;;  %v3856_v3 = vpop.permute.xlu0 %3855 }
 0x61c   : > { %10331 = vmatpush.xpose.msk.msrb.mxu1 %vm338_vm7, %v3784_v56  ;;  %v4023_v33 = vsel %vm3986_vm8, %v13708_v31, -inf }
 0x61d   : > { %4024 = vmax.xlane.f32.xlu2 %v4023_v33  ;;  %v3936_v33 = vld [vmem:[#allocation2 + $0x70] sm:$0xff] }
 0x61f   : > { %v3554_v24 = vpop.f32.mrf.mxu1 }
 0x620   : > { %v3903_v11 = vmul.f32 0.5, %v3554_v24  ;;  %10332 = vmatpush.xpose.msk.msrb.mxu1 %vm338_vm7, %v3782_v9 }
 0x622   : > { %v13719_v47 = vadd.f32 %v3935_v62, %v3903_v11 }
 0x623   : > { %10333 = vmatmul.msk.f32.vlgmr.msrb.gmra.mxu1 %vm338_vm7, %v13487_v46  ;;  %v3819_v22 = vpop.permute.xlu1 %3818 }
 0x624   : > { %10335 = vmatpush.xpose.msk.msra.mxu1 %vm338_vm7, %v3821_v49  ;;  %v4026_v56 = vsel %vm3986_vm8, %v13719_v47, -inf }
 0x625   : > { %4027 = vmax.xlane.f32.xlu0 %v4026_v56 }
 0x627   : > { %v3588_v24 = vpop.f32.mrf.mxu1 }
 0x628   : > { %10336 = vmatpush.xpose.msk.msra.mxu1 %vm338_vm7, %v3819_v22  ;;  %v3904_v9 = vmul.f32 0.5, %v3588_v24  ;;  %v3937_v22 = vld [vmem:[#allocation2 + $0x78] sm:$0xff] }
 0x62a   : > { %v13728_v11 = vadd.f32 %v3936_v33, %v3904_v9  ;;  %v10797_v33 = vunpack.i.l.bf16 %v13607_v54 }
 0x62b   : > { %10334 = vmatmul.msk.f32.gmra.mxu1 %vm338_vm7, %v13490_v38 }
 0x62c   : > { %10339 = vmatpush.xpose.msk.msrb.mxu1 %vm338_vm7, %v3858_v59  ;;  %v4029_v49 = vsel %vm3986_vm8, %v13728_v11, -inf  ;;  %v10777_v59 = vunpack.i.l.bf16 %v13522_v10  ;;  %v10792_v10 = vunpack.i.l.bf16 %v13603_v1 }
 0x62d   : > { %4030 = vmax.xlane.f32.xlu2 %v4029_v49  ;;  %v3938_v49 = vld [vmem:[#allocation2 + $0x80] sm:$0xff] }
 0x62f   : > { %v3591_v62 = vpop.f32.mrf.mxu1 }
 0x630   : > { %10340 = vmatpush.xpose.msk.msrb.mxu1 %vm338_vm7, %v3856_v3  ;;  %v3905_v56 = vmul.f32 0.5, %v3591_v62  ;;  %v10772_v3 = vunpack.i.l.bf16 %v13426_v21  ;;  %v13748_v62 = vpop.permute.xlu0 %10825 }
 0x632   : > { %v13735_v39 = vadd.f32 %v3937_v22, %v3905_v56 }
 0x633   : > { %10337 = vmatmul.msk.f32.vlgmr.msra.gmra.mxu1 %vm338_vm7, %v13507_v51 }
 0x634   : > { %4470 = vmatpush.msra.mxu1 %v10777_v59  ;;  %v4032_v24 = vsel %vm3986_vm8, %v13735_v39, -inf }
 0x635   : > { %4033 = vmax.xlane.f32.xlu0 %v4032_v24 }
 0x636   : > { %4471 = vmatpush.msra.mxu1 %v10772_v3  ;;  %v3939_v3 = vld [vmem:[#allocation2 + $0x88] sm:$0xff] }
 0x63b   : > { %10338 = vmatmul.msk.f32.gmra.mxu1 %vm338_vm7, %v13527_v5  ;;  %v3952_v5 = vld [vmem:[#allocation2 + $0xf0] sm:$0xff] }
 0x643   : > { %10341 = vmatmul.msk.f32.vlgmr.msrb.gmra.mxu1 %vm338_vm7, %v13546_v48 }
 0x644   : > { %4610 = vmatpush.msrb.mxu1 %v10797_v33  ;;  %v3625_v9 = vpop.f32.mrf.mxu1 }
 0x645   : > { %v3906_v21 = vmul.f32 0.5, %v3625_v9 }
 0x646   : > { %4611 = vmatpush.msrb.mxu1 %v10792_v10 }
 0x647   : > { %v13750_v22 = vadd.f32 %v3938_v49, %v3906_v21 }
 0x649   : > { %v4035_v56 = vsel %vm3986_vm8, %v13750_v22, -inf }
 0x64a   : > { %4036 = vmax.xlane.f32.xlu2 %v4035_v56 }
 0x64b   : > { %10342 = vmatmul.msk.f32.gmra.mxu1 %vm338_vm7, %v13562_v25 }
 0x64c   : > { %v3628_v59 = vpop.f32.mrf.mxu1 }
 0x64d   : > { %v3907_v24 = vmul.f32 0.5, %v3628_v59 }
 0x64e   : > { %v3992_v34 = vpop.xlane.xlu2 %3991  ;;  %v3989_v33 = vpop.xlane.xlu1 %3988 }
 0x64f   : > { %v4084_v23 = vsub.f32 %v13609_v16, %v3992_v34  ;;  %v3995_v9 = vpop.xlane.xlu0 %3994  ;;  %v4083_v10 = vsub.f32 %v13611_v37, %v3989_v33  ;;  %v13758_v45 = vadd.f32 %v3939_v3, %v3907_v24 }
 0x650   : > { %v4085_v49 = vsub.f32 %v13615_v36, %v3995_v9  ;;  %v3940_v9 = vld [vmem:[#allocation2 + $0x90] sm:$0xff] }
 0x651   : > { %v4117_v21 = vmul.f32 1.442695, %v4084_v23  ;;  %v4115_v58 = vmul.f32 1.442695, %v4083_v10  ;;  %v4038_v56 = vsel %vm3986_vm8, %v13758_v45, -inf }
 0x652   : > { %v4119_v19 = vmul.f32 1.442695, %v4085_v49  ;;  %4039 = vmax.xlane.f32.xlu1 %v4038_v56 }
 0x653   : > { %10983 = vpow2.f32 %v4117_v21 }
 0x654   : > { %10985 = vpow2.f32 %v4119_v19  ;;  %v3662_v59 = vpop.f32.mrf.mxu1 }
 0x655   : > { %10987 = vpow2.f32 %v4115_v58  ;;  %v3908_v24 = vmul.f32 0.5, %v3662_v59 }
 0x656   : > { %v3998_v26 = vpop.xlane.xlu2 %3997 }
 0x657   : > { %v4086_v16 = vsub.f32 %v13627_v41, %v3998_v26  ;;  %v3941_v41 = vld [vmem:[#allocation2 + $0x98] sm:$0xff]  ;;  %v13778_v49 = vadd.f32 %v3940_v9, %v3908_v24 }
 0x659   : > { %v13764_v34 = vpop.eup %10983  ;;  %v4121_v37 = vmul.f32 1.442695, %v4086_v16  ;;  %v4041_v16 = vsel %vm3986_vm8, %v13778_v49, -inf }
 0x65a   : > { %v13766_v3 = vpop.eup %10985  ;;  %v4182_v23 = vsel %vm3986_vm8, %v13764_v34, 0.0 }
 0x65b   : > { %v13770_v36 = vpop.eup %10987  ;;  %10989 = vpow2.f32 %v4121_v37  ;;  %4183 = vadd.xlane.f32.xlu1 %v4182_v23  ;;  %v4185_v19 = vsel %vm3986_vm8, %v13766_v3, 0.0  ;;  %v4007_v37 = vpop.xlane.xlu1 %4006 }
 0x65c   : > { %4186 = vadd.xlane.f32.xlu2 %v4185_v19  ;;  %v4179_v26 = vsel %vm3986_vm8, %v13770_v36, 0.0  ;;  %v3665_v58 = vpop.f32.mrf.mxu1 }
 0x65d   : > { %4180 = vadd.xlane.f32.xlu0 %v4179_v26  ;;  %v3909_v33 = vmul.f32 0.5, %v3665_v58  ;;  %v3942_v58 = vld [vmem:[#allocation2 + $0xa0] sm:$0xff] }
 0x65e   : > { %v4001_v23 = vpop.xlane.xlu2 %4000 }
 0x65f   : > { %v13776_v10 = vadd.f32 %v3941_v41, %v3909_v33  ;;  %v4087_v19 = vsub.f32 %v13641_v12, %v4001_v23  ;;  %v3943_v12 = vld [vmem:[#allocation2 + $0xa8] sm:$0xff] }
 0x661   : > { %v13780_v21 = vpop.eup %10989  ;;  %v4044_v56 = vsel %vm3986_vm8, %v13776_v10, -inf  ;;  %v4123_v24 = vmul.f32 1.442695, %v4087_v19 }
 0x662   : > { %v4188_v59 = vsel %vm3986_vm8, %v13780_v21, 0.0 }
 0x663   : > { %4045 = vmax.xlane.f32.xlu1 %v4044_v56  ;;  %v4010_v41 = vpop.xlane.xlu1 %4009  ;;  %10991 = vpow2.f32 %v4123_v24 }
 0x664   : > { %4189 = vadd.xlane.f32.xlu2 %v4188_v59  ;;  %v4089_v59 = vsub.f32 %v13633_v7, %v4007_v37  ;;  %v4090_v24 = vsub.f32 %v13645_v42, %v4010_v41 }
 0x665   : > { %4042 = vmax.xlane.f32.xlu0 %v4041_v16 }
 0x666   : > { %v4004_v33 = vpop.xlane.xlu2 %4003  ;;  %v4127_v23 = vmul.f32 1.442695, %v4089_v59  ;;  %v4129_v37 = vmul.f32 1.442695, %v4090_v24  ;;  %v3945_v24 = vld [vmem:[#allocation2 + $0xb8] sm:$0xff] }
 0x667   : > { %v4088_v56 = vsub.f32 %v13652_v40, %v4004_v33  ;;  %v3944_v33 = vld [vmem:[#allocation2 + $0xb0] sm:$0xff] }
 0x669   : > { %v4125_v44 = vmul.f32 1.442695, %v4088_v56  ;;  %v13795_v13 = vpop.eup %10991 }
 0x66a   : > { %v4191_v7 = vsel %vm3986_vm8, %v13795_v13, 0.0 }
 0x66b   : > { %v4013_v19 = vpop.xlane.xlu1 %4012  ;;  %10993 = vpow2.f32 %v4125_v44 }
 0x66c   : > { %10995 = vpow2.f32 %v4127_v23 }
 0x66d   : > { %10997 = vpow2.f32 %v4129_v37 }
 0x670   : > { %v3699_v26 = vpop.f32.mrf.mxu1 }
 0x671   : > { %v3910_v9 = vmul.f32 0.5, %v3699_v26  ;;  %v13804_v56 = vpop.eup %10993 }
 0x672   : > { %v4194_v59 = vsel %vm3986_vm8, %v13804_v56, 0.0 }
 0x673   : > { %v13789_v35 = vadd.f32 %v3942_v58, %v3910_v9 }
 0x675   : > { %v4047_v16 = vsel %vm3986_vm8, %v13789_v35, -inf }
 0x676   : > { %4048 = vmax.xlane.f32.xlu2 %v4047_v16 }
 0x678   : > { %v3702_v18 = vpop.f32.mrf.mxu1 }
 0x679   : > { %v3911_v15 = vmul.f32 0.5, %v3702_v18  ;;  %v4019_v18 = vpop.xlane.xlu1 %4018 }
 0x67a   : > { %v4093_v44 = vsub.f32 %v13682_v61, %v4019_v18  ;;  %v4091_v61 = vsub.f32 %v13659_v43, %v4013_v19 }
 0x67b   : > { %v13797_v26 = vadd.f32 %v3943_v12, %v3911_v15  ;;  %v13806_v15 = vpop.eup %10995 }
 0x67c   : > { %v4197_v16 = vsel %vm3986_vm8, %v13806_v15, 0.0  ;;  %v4135_v12 = vmul.f32 1.442695, %v4093_v44  ;;  %v4131_v18 = vmul.f32 1.442695, %v4091_v61  ;;  %v3946_v44 = vld [vmem:[#allocation2 + $0xc0] sm:$0xff] }
 0x67d   : > { %v4050_v40 = vsel %vm3986_vm8, %v13797_v26, -inf  ;;  %v3947_v61 = vld [vmem:[#allocation2 + $0xc8] sm:$0xff] }
 0x67e   : > { %4192 = vadd.xlane.f32.xlu2 %v4191_v7  ;;  %4051 = vmax.xlane.f32.xlu0 %v4050_v40  ;;  %v13817_v40 = vpop.eup %10997  ;;  %10999 = vpow2.f32 %v4135_v12 }
 0x67f   : > { %11001 = vpow2.f32 %v4131_v18 }
 0x680   : > { %v3736_v58 = vpop.f32.mrf.mxu1 }
 0x681   : > { %v3912_v9 = vmul.f32 0.5, %v3736_v58 }
 0x683   : > { %v13808_v42 = vadd.f32 %v3944_v33, %v3912_v9  ;;  %v4200_v33 = vsel %vm3986_vm8, %v13817_v40, 0.0 }
 0x685   : > { %v4053_v41 = vsel %vm3986_vm8, %v13808_v42, -inf }
 0x686   : > { %4054 = vmax.xlane.f32.xlu1 %v4053_v41  ;;  %4195 = vadd.xlane.f32.xlu0 %v4194_v59  ;;  %v4016_v41 = vpop.xlane.xlu0 %4015 }
 0x687   : > { %4198 = vadd.xlane.f32.xlu2 %v4197_v16  ;;  %v13826_v16 = vpop.eup %10999  ;;  %v4092_v43 = vsub.f32 %v13670_v50, %v4016_v41 }
 0x688   : > { %v3739_v23 = vpop.f32.mrf.mxu1  ;;  %v4209_v12 = vsel %vm3986_vm8, %v13826_v16, 0.0 }
 0x689   : > { %v3913_v7 = vmul.f32 0.5, %v3739_v23 }
 0x68b   : > { %v13819_v37 = vadd.f32 %v3945_v24, %v3913_v7  ;;  %v4133_v24 = vmul.f32 1.442695, %v4092_v43 }
 0x68d   : > { %v4056_v58 = vsel %vm3986_vm8, %v13819_v37, -inf  ;;  %11003 = vpow2.f32 %v4133_v24 }
 0x68e   : > { %4201 = vadd.xlane.f32.xlu0 %v4200_v33 }
 0x68f   : > { %4057 = vmax.xlane.f32.xlu2 %v4056_v58  ;;  %v4022_v58 = vpop.xlane.xlu0 %4021 }
 0x690   : > { %v3773_v9 = vpop.f32.mrf.mxu1  ;;  %v4094_v50 = vsub.f32 %v13692_v20, %v4022_v58 }
 0x691   : > { %v3914_v59 = vmul.f32 0.5, %v3773_v9  ;;  %v13835_v9 = vpop.eup %11001 }
 0x692   : > { %v4203_v41 = vsel %vm3986_vm8, %v13835_v9, 0.0 }
 0x693   : > { %v13828_v23 = vadd.f32 %v3946_v44, %v3914_v59  ;;  %v4137_v59 = vmul.f32 1.442695, %v4094_v50  ;;  %v13844_v2 = vpop.eup %11003 }
 0x694   : > { %v4206_v58 = vsel %vm3986_vm8, %v13844_v2, 0.0 }
 0x695   : > { %v4059_v19 = vsel %vm3986_vm8, %v13828_v23, -inf  ;;  %11005 = vpow2.f32 %v4137_v59 }
 0x696   : > { %4060 = vmax.xlane.f32.xlu1 %v4059_v19  ;;  %4210 = vadd.xlane.f32.xlu0 %v4209_v12  ;;  %v3948_v19 = vld [vmem:[#allocation2 + $0xd0] sm:$0xff] }
 0x698   : > { %v3776_v7 = vpop.f32.mrf.mxu1  ;;  %v4028_v12 = vpop.xlane.xlu0 %4027 }
 0x699   : > { %v3915_v33 = vmul.f32 0.5, %v3776_v7  ;;  %v4096_v20 = vsub.f32 %v13719_v47, %v4028_v12 }
 0x69b   : > { %v13837_v44 = vadd.f32 %v3947_v61, %v3915_v33  ;;  %v4141_v33 = vmul.f32 1.442695, %v4096_v20  ;;  %v13853_v30 = vpop.eup %11005 }
 0x69c   : > { %v4212_v12 = vsel %vm3986_vm8, %v13853_v30, 0.0 }
 0x69d   : > { %v4062_v18 = vsel %vm3986_vm8, %v13837_v44, -inf  ;;  %11007 = vpow2.f32 %v4141_v33 }
 0x69e   : > { %4063 = vmax.xlane.f32.xlu2 %v4062_v18  ;;  %4204 = vadd.xlane.f32.xlu1 %v4203_v41  ;;  %v3949_v18 = vld [vmem:[#allocation2 + $0xd8] sm:$0xff]  ;;  %v4025_v41 = vpop.xlane.xlu2 %4024 }
 0x69f   : > { %v4095_v59 = vsub.f32 %v13708_v31, %v4025_v41 }
 0x6a0   : > { %v3810_v43 = vpop.f32.mrf.mxu1 }
 0x6a1   : > { %v3916_v7 = vmul.f32 0.5, %v3810_v43 }
 0x6a3   : > { %v13846_v61 = vadd.f32 %v3948_v19, %v3916_v7  ;;  %v4139_v7 = vmul.f32 1.442695, %v4095_v59  ;;  %v13862_v25 = vpop.eup %11007 }
 0x6a4   : > { %v4218_v33 = vsel %vm3986_vm8, %v13862_v25, 0.0 }
 0x6a5   : > { %v4065_v24 = vsel %vm3986_vm8, %v13846_v61, -inf  ;;  %11009 = vpow2.f32 %v4139_v7 }
 0x6a6   : > { %4066 = vmax.xlane.f32.xlu2 %v4065_v24  ;;  %4207 = vadd.xlane.f32.xlu1 %v4206_v58  ;;  %v3950_v24 = vld [vmem:[#allocation2 + $0xe0] sm:$0xff]  ;;  %v4031_v58 = vpop.xlane.xlu2 %4030 }
 0x6a7   : > { %v4097_v31 = vsub.f32 %v13728_v11, %v4031_v58 }
 0x6a8   : > { %v3813_v50 = vpop.f32.mrf.mxu1 }
 0x6a9   : > { %v3917_v43 = vmul.f32 0.5, %v3813_v50 }
 0x6ab   : > { %v13855_v19 = vadd.f32 %v3949_v18, %v3917_v43  ;;  %v4143_v43 = vmul.f32 1.442695, %v4097_v31  ;;  %v13871_v27 = vpop.eup %11009 }
 0x6ad   : > { %v4068_v47 = vsel %vm3986_vm8, %v13855_v19, -inf  ;;  %11011 = vpow2.f32 %v4143_v43 }
 0x6ae   : > { %4069 = vmax.xlane.f32.xlu2 %v4068_v47  ;;  %4213 = vadd.xlane.f32.xlu1 %v4212_v12  ;;  %v3951_v47 = vld [vmem:[#allocation2 + $0xe8] sm:$0xff]  ;;  %v4034_v12 = vpop.xlane.xlu0 %4033 }
 0x6af   : > { %v4098_v11 = vsub.f32 %v13735_v39, %v4034_v12 }
 0x6b0   : > { %v3847_v20 = vpop.f32.mrf.mxu1 }
 0x6b1   : > { %v3918_v50 = vmul.f32 0.5, %v3847_v20 }
 0x6b3   : > { %v13864_v18 = vadd.f32 %v3950_v24, %v3918_v50  ;;  %v4215_v50 = vsel %vm3986_vm8, %v13871_v27, 0.0 }
 0x6b5   : > { %v4071_v41 = vsel %vm3986_vm8, %v13864_v18, -inf }
 0x6b6   : > { %4219 = vadd.xlane.f32.xlu1 %v4218_v33  ;;  %4072 = vmax.xlane.f32.xlu0 %v4071_v41  ;;  %v4145_v33 = vmul.f32 1.442695, %v4098_v11 }
 0x6b8   : > { %v3850_v59 = vpop.f32.mrf.mxu1 }
 0x6b9   : > { %v3919_v20 = vmul.f32 0.5, %v3850_v59 }
 0x6bb   : > { %v13873_v24 = vadd.f32 %v3951_v47, %v3919_v20  ;;  %v13881_v20 = vpop.eup %11011 }
 0x6bd   : > { %v4037_v7 = vpop.xlane.xlu2 %4036  ;;  %v4074_v58 = vsel %vm3986_vm8, %v13873_v24, -inf }
 0x6be   : > { %v4099_v31 = vsub.f32 %v13750_v22, %v4037_v7  ;;  %4075 = vmax.xlane.f32.xlu2 %v4074_v58  ;;  %4216 = vadd.xlane.f32.xlu0 %v4215_v50  ;;  %v4221_v22 = vsel %vm3986_vm8, %v13881_v20, 0.0 }
 0x6c0   : > { %v4147_v41 = vmul.f32 1.442695, %v4099_v31  ;;  %v3884_v59 = vpop.f32.mrf.mxu1  ;;  %v3953_v31 = vld [vmem:[#allocation2 + $0xf8] sm:$0xff] }
 0x6c1   : > { %v3920_v47 = vmul.f32 0.5, %v3884_v59 }
 0x6c2   : > { %11013 = vpow2.f32 %v4147_v41 }
 0x6c3   : > { %v13883_v39 = vadd.f32 %v3952_v5, %v3920_v47  ;;  %11015 = vpow2.f32 %v4145_v33 }
 0x6c5   : > { %17486 = vst [vmem:[#allocation149_spill] sm:$0xff] %v13883_v39  ;;  %v4040_v43 = vpop.xlane.xlu1 %4039  ;;  %v4077_v12 = vsel %vm3986_vm8, %v13883_v39, -inf }
 0x6c6   : > { %v4100_v7 = vsub.f32 %v13758_v45, %v4040_v43  ;;  %4078 = vmax.xlane.f32.xlu1 %v4077_v12  ;;  %4222 = vadd.xlane.f32.xlu0 %v4221_v22 }
 0x6c8   : > { %v13890_v11 = vpop.eup %11013  ;;  %v4149_v58 = vmul.f32 1.442695, %v4100_v7  ;;  %v3887_v50 = vpop.f32.mrf.mxu1 }
 0x6c9   : > { %v3921_v41 = vmul.f32 0.5, %v3887_v50  ;;  %v4227_v5 = vsel %vm3986_vm8, %v13890_v11, 0.0  ;;  %v13894_v33 = vpop.eup %11015 }
 0x6ca   : > { %4228 = vadd.xlane.f32.xlu2 %v4227_v5  ;;  %11017 = vpow2.f32 %v4149_v58  ;;  %v4224_v47 = vsel %vm3986_vm8, %v13894_v33, 0.0 }
 0x6cb   : > { %v13896_v59 = vadd.f32 %v3953_v31, %v3921_v41 }
 0x6cd   : > { %17487 = vst [vmem:[#allocation150_spill] sm:$0xff] %v13896_v59  ;;  %v4080_v45 = vsel %vm3986_vm8, %v13896_v59, -inf  ;;  %v10807_v59 = vunpack.i.l.bf16 %v13678_v63 }
 0x6ce   : > { %v4184_v43 = vpop.xlane.xlu1 %4183  ;;  %4081 = vmax.xlane.f32.xlu1 %v4080_v45  ;;  %4225 = vadd.xlane.f32.xlu0 %v4224_v47 }
 0x6cf   : > { %v4187_v12 = vpop.xlane.xlu2 %4186 }
 0x6d0   : > { %11019 = vrcp.f32 %v4187_v12  ;;  %v4181_v22 = vpop.xlane.xlu0 %4180  ;;  %v13902_v7 = vpop.eup %11017 }
 0x6d1   : > { %11021 = vrcp.f32 %v4181_v22  ;;  %v4230_v50 = vsel %vm3986_vm8, %v13902_v7, 0.0  ;;  %v10788_v22 = vunpack.i.h.bf16 %v13574_v52 }
 0x6d2   : > { %11023 = vrcp.f32 %v4184_v43 }
 0x6d6   : > { %v11020_v31 = vpop.eup %11019  ;;  %4231 = vadd.xlane.f32.xlu1 %v4230_v50  ;;  %v4046_v47 = vpop.xlane.xlu1 %4045  ;;  %v10802_v50 = vunpack.i.l.bf16 %v13667_v14 }
 0x6d7   : > { %v11022_v58 = vpop.eup %11021  ;;  %v4309_v41 = vmul.f32 %v11020_v31, %v13766_v3  ;;  %v4190_v5 = vpop.xlane.xlu2 %4189  ;;  %v10783_v3 = vunpack.i.h.bf16 %v13598_v32  ;;  %v4102_v43 = vsub.f32 %v13776_v10, %v4046_v47 }
 0x6d8   : > { %v4307_v45 = vmul.f32 %v11022_v58, %v13770_v36  ;;  %11025 = vrcp.f32 %v4190_v5  ;;  %v4043_v12 = vpop.xlane.xlu0 %4042  ;;  %v11024_v36 = vpop.eup %11023 }
 0x6d9   : > { %v4101_v39 = vsub.f32 %v13778_v49, %v4043_v12  ;;  %10345 = vmatmul.msk.f32.vlgmr.msra.gmra.mxu3 %vm3986_vm8, %v4309_v41  ;;  %v4153_v58 = vmul.f32 1.442695, %v4102_v43  ;;  %v4308_v41 = vmul.f32 %v11024_v36, %v13764_v34 }
 0x6da   : > { %10343 = vmatmul.msk.f32.vlgmr.msra.gmra.mxu2 %vm3986_vm8, %v4307_v45  ;;  %4680 = vmatpush.msra.mxu3 %v10807_v59 }
 0x6db   : > { %v4151_v31 = vmul.f32 1.442695, %v4101_v39  ;;  %4645 = vmatpush.msra.mxu2 %v10788_v22 }
 0x6dc   : > { %4681 = vmatpush.msra.mxu3 %v10802_v50 }
 0x6dd   : > { %11027 = vpow2.f32 %v4151_v31  ;;  %4646 = vmatpush.msra.mxu2 %v10783_v3 }
 0x6de   : > { %v11026_v52 = vpop.eup %11025  ;;  %11029 = vpow2.f32 %v4153_v58 }
 0x6df   : > { %v4310_v49 = vmul.f32 %v11026_v52, %v13780_v21  ;;  %v10798_v52 = vunpack.i.h.bf16 %v13607_v54 }
 0x6e1   : > { %10346 = vmatmul.msk.f32.gmra.mxu3 %vm3986_vm8, %v4310_v49 }
 0x6e2   : > { %10344 = vmatmul.msk.f32.gmra.mxu2 %vm3986_vm8, %v4308_v41  ;;  %v10793_v41 = vunpack.i.h.bf16 %v13603_v1 }
 0x6e3   : > { %v13920_v59 = vpop.eup %11027 }
 0x6e4   : > { %v4233_v32 = vsel %vm3986_vm8, %v13920_v59, 0.0  ;;  %v13924_v10 = vpop.eup %11029 }
 0x6e5   : > { %4234 = vadd.xlane.f32.xlu0 %v4233_v32  ;;  %v4236_v34 = vsel %vm3986_vm8, %v13924_v10, 0.0 }
 0x6e9   : > { %v4049_v39 = vpop.xlane.xlu2 %4048 }
 0x6ea   : > { %v4103_v5 = vsub.f32 %v13789_v35, %v4049_v39 }
 0x6ec   : > { %v4155_v45 = vmul.f32 1.442695, %v4103_v5 }
 0x6ed   : > { %4237 = vadd.xlane.f32.xlu0 %v4236_v34 }
 0x6ee   : > { %11031 = vpow2.f32 %v4155_v45 }
 0x6f1   : > { %v4193_v21 = vpop.xlane.xlu2 %4192  ;;  %v4052_v47 = vpop.xlane.xlu0 %4051 }
 0x6f2   : > { %11033 = vrcp.f32 %v4193_v21  ;;  %v4104_v12 = vsub.f32 %v13797_v26, %v4052_v47  ;;  %v10822_v21 = vunpack.i.l.bf16 %v13710_v4 }
 0x6f4   : > { %v13930_v22 = vpop.eup %11031  ;;  %v4157_v50 = vmul.f32 1.442695, %v4104_v12  ;;  %v10817_v12 = vunpack.i.l.bf16 %v13706_v0 }
 0x6f5   : > { %v4239_v3 = vsel %vm3986_vm8, %v13930_v22, 0.0 }
 0x6f6   : > { %11035 = vpow2.f32 %v4157_v50  ;;  %4240 = vadd.xlane.f32.xlu1 %v4239_v3 }
 0x6f8   : > { %v11034_v35 = vpop.eup %11033 }
 0x6f9   : > { %v4311_v43 = vmul.f32 %v11034_v35, %v13795_v13  ;;  %v4196_v31 = vpop.xlane.xlu0 %4195  ;;  %v4055_v36 = vpop.xlane.xlu1 %4054 }
 0x6fa   : > { %11037 = vrcp.f32 %v4196_v31  ;;  %v4199_v58 = vpop.xlane.xlu2 %4198  ;;  %v4105_v49 = vsub.f32 %v13808_v42, %v4055_v36 }
 0x6fb   : > { %11039 = vrcp.f32 %v4199_v58  ;;  %10347 = vmatmul.msk.f32.vlgmr.msrb.gmra.mxu0 %vm3986_vm8, %v4311_v43 }
 0x6fc   : > { %v13938_v26 = vpop.eup %11035  ;;  %v4159_v32 = vmul.f32 1.442695, %v4105_v49  ;;  %4715 = vmatpush.msrb.mxu0 %v10798_v52 }
 0x6fd   : > { %v4242_v13 = vsel %vm3986_vm8, %v13938_v26, 0.0 }
 0x6fe   : > { %11041 = vpow2.f32 %v4159_v32  ;;  %4716 = vmatpush.msrb.mxu0 %v10793_v41  ;;  %4243 = vadd.xlane.f32.xlu1 %v4242_v13 }
 0x700   : > { %v11038_v54 = vpop.eup %11037 }
 0x701   : > { %v11040_v39 = vpop.eup %11039  ;;  %v4202_v5 = vpop.xlane.xlu0 %4201  ;;  %v4312_v42 = vmul.f32 %v11038_v54, %v13804_v56  ;;  %v10813_v54 = vunpack.i.h.bf16 %v13694_v8 }
 0x702   : > { %v4313_v45 = vmul.f32 %v11040_v39, %v13806_v15  ;;  %v4058_v34 = vpop.xlane.xlu2 %4057  ;;  %11043 = vrcp.f32 %v4202_v5 }
 0x703   : > { %v4106_v1 = vsub.f32 %v13819_v37, %v4058_v34  ;;  %10348 = vmatmul.msk.f32.gmra.mxu0 %vm3986_vm8, %v4312_v42  ;;  %v10808_v34 = vunpack.i.h.bf16 %v13678_v63 }
 0x704   : > { %v13948_v47 = vpop.eup %11041  ;;  %10349 = vmatmul.msk.f32.vlgmr.msra.gmra.mxu1 %vm3986_vm8, %v4313_v45 }
 0x705   : > { %v4161_v50 = vmul.f32 1.442695, %v4106_v1  ;;  %4750 = vmatpush.msra.mxu1 %v10822_v21  ;;  %v4245_v56 = vsel %vm3986_vm8, %v13948_v47, 0.0  ;;  %v10803_v1 = vunpack.i.h.bf16 %v13667_v14 }
 0x706   : > { %4246 = vadd.xlane.f32.xlu2 %v4245_v56 }
 0x707   : > { %11045 = vpow2.f32 %v4161_v50  ;;  %4751 = vmatpush.msra.mxu1 %v10817_v12 }
 0x708   : > { %v11044_v15 = vpop.eup %11043 }
 0x709   : > { %v4211_v3 = vpop.xlane.xlu0 %4210  ;;  %v4061_v35 = vpop.xlane.xlu1 %4060  ;;  %v4314_v37 = vmul.f32 %v11044_v15, %v13817_v40  ;;  %v10812_v40 = vunpack.i.l.bf16 %v13694_v8 }
 0x70a   : > { %11047 = vrcp.f32 %v4211_v3  ;;  %v4107_v43 = vsub.f32 %v13828_v23, %v4061_v35 }
 0x70c   : > { %v4163_v31 = vmul.f32 1.442695, %v4107_v43  ;;  %10350 = vmatmul.msk.f32.gmra.mxu1 %vm3986_vm8, %v4314_v37 }
 0x70d   : > { %v13957_v36 = vpop.eup %11045 }
 0x70e   : > { %11049 = vpow2.f32 %v4163_v31  ;;  %v4248_v52 = vsel %vm3986_vm8, %v13957_v36, 0.0 }
 0x70f   : > { %4249 = vadd.xlane.f32.xlu0 %v4248_v52 }
 0x710   : > { %v11048_v58 = vpop.eup %11047 }
 0x711   : > { %v4317_v49 = vmul.f32 %v11048_v58, %v13826_v16  ;;  %v4064_v41 = vpop.xlane.xlu2 %4063  ;;  %v4205_v32 = vpop.xlane.xlu1 %4204 }
 0x712   : > { %v4108_v13 = vsub.f32 %v13837_v44, %v4064_v41  ;;  %11051 = vrcp.f32 %v4205_v32  ;;  %v10823_v41 = vunpack.i.h.bf16 %v13710_v4  ;;  %v10818_v32 = vunpack.i.h.bf16 %v13706_v0 }
 0x713   : > { %10353 = vmatmul.msk.f32.vlgmr.msrb.gmra.mxu3 %vm3986_vm8, %v4317_v49  ;;  %v10828_v0 = vunpack.i.h.bf16 %v13748_v62 }
 0x714   : > { %v13965_v23 = vpop.eup %11049  ;;  %v4165_v39 = vmul.f32 1.442695, %v4108_v13  ;;  %4820 = vmatpush.msrb.mxu3 %v10812_v40 }
 0x715   : > { %v4251_v5 = vsel %vm3986_vm8, %v13965_v23, 0.0 }
 0x716   : > { %11053 = vpow2.f32 %v4165_v39  ;;  %4821 = vmatpush.msrb.mxu3 %v10813_v54  ;;  %4252 = vadd.xlane.f32.xlu2 %v4251_v5 }
 0x718   : > { %v11052_v16 = vpop.eup %11051 }
 0x719   : > { %v4315_v42 = vmul.f32 %v11052_v16, %v13835_v9  ;;  %v4067_v45 = vpop.xlane.xlu2 %4066  ;;  %v4208_v44 = vpop.xlane.xlu1 %4207  ;;  %v10827_v16 = vunpack.i.l.bf16 %v13748_v62 }
 0x71a   : > { %v4109_v21 = vsub.f32 %v13846_v61, %v4067_v45  ;;  %11055 = vrcp.f32 %v4208_v44 }
 0x71b   : > { %10351 = vmatmul.msk.f32.vlgmr.msrb.gmra.mxu2 %vm3986_vm8, %v4315_v42 }
 0x71c   : > { %v13974_v8 = vpop.eup %11053  ;;  %v4167_v12 = vmul.f32 1.442695, %v4109_v21  ;;  %4785 = vmatpush.msrb.mxu2 %v10808_v34 }
 0x71d   : > { %v4254_v50 = vsel %vm3986_vm8, %v13974_v8, 0.0 }
 0x71e   : > { %11057 = vpow2.f32 %v4167_v12  ;;  %4786 = vmatpush.msrb.mxu2 %v10803_v1  ;;  %4255 = vadd.xlane.f32.xlu0 %v4254_v50 }
 0x720   : > { %v11056_v9 = vpop.eup %11055 }
 0x721   : > { %v4214_v56 = vpop.xlane.xlu1 %4213  ;;  %v4316_v63 = vmul.f32 %v11056_v9, %v13844_v2  ;;  %v4070_v37 = vpop.xlane.xlu2 %4069 }
 0x722   : > { %11059 = vrcp.f32 %v4214_v56  ;;  %v4110_v45 = vsub.f32 %v13855_v19, %v4070_v37  ;;  %v17489_v37 = vld [vmem:[#allocation104_spill] sm:$0xff] }
 0x723   : > { %10352 = vmatmul.msk.f32.gmra.mxu2 %vm3986_vm8, %v4316_v63 }
 0x724   : > { %v13981_v61 = vpop.eup %11057  ;;  %v4169_v44 = vmul.f32 1.442695, %v4110_v45  ;;  %v17499_v45 = vld [vmem:[#allocation80_spill] sm:$0xff] }
 0x725   : > { %v4257_v14 = vsel %vm3986_vm8, %v13981_v61, 0.0 }
 0x726   : > { %4258 = vadd.xlane.f32.xlu1 %v4257_v14 }
 0x728   : > { %v11060_v15 = vpop.eup %11059 }
 0x729   : > { %v4073_v3 = vpop.xlane.xlu0 %4072  ;;  %v4318_v35 = vmul.f32 %v11060_v15, %v13853_v30  ;;  %v4220_v2 = vpop.xlane.xlu1 %4219 }
 0x72a   : > { %v4111_v21 = vsub.f32 %v13864_v18, %v4073_v3 }
 0x72b   : > { %10354 = vmatmul.msk.f32.gmra.mxu3 %vm3986_vm8, %v4318_v35 }
 0x72e   : > { %5412 = vrot.lane.b32.xlu2 %v13490_v38, %s11444_s7 }
 0x731   : > { %v4217_v43 = vpop.xlane.xlu0 %4216  ;;  %v13991_v31 = vpop.xlane.xlu2 %4075 }
 0x732   : > { %11061 = vrcp.f32 %v4217_v43  ;;  %5330 = vrot.lane.b32.xlu0 %v13415_v17, %s11445_s19  ;;  %v4112_v56 = vsub.f32 %v13873_v24, %v13991_v31 }
 0x733   : > { %11063 = vrcp.f32 %v4220_v2  ;;  %v17491_v2 = vld [vmem:[#allocation95_spill] sm:$0xff] }
 0x738   : > { %v11062_v52 = vpop.eup %11061 }
 0x739   : > { %v4319_v58 = vmul.f32 %v11062_v52, %v13871_v27  ;;  %v4223_v49 = vpop.xlane.xlu0 %4222  ;;  %v13994_v30 = vpop.xlane.xlu1 %4078  ;;  %v17492_v52 = vld [vmem:[#allocation81_spill] sm:$0xff] }
 0x73a   : > { %11065 = vrcp.f32 %v4223_v49  ;;  %v11064_v13 = vpop.eup %11063 }
 0x73b   : > { %10355 = vmatmul.msk.f32.vlgmr.msra.gmra.mxu0 %vm3986_vm8, %v4319_v58  ;;  %v4320_v4 = vmul.f32 %v11064_v13, %v13862_v25  ;;  %v17493_v58 = vld [vmem:[#allocation79_spill] sm:$0xff]  ;;  %v17496_v13 = vld [vmem:[#allocation78_spill] sm:$0xff] }
 0x73c   : > { %4855 = vmatpush.msra.mxu0 %v10823_v41  ;;  %v10844_v49 = vpack.i.bf16 %v17493_v58, %v17492_v52 }
 0x73d   : > { %v4229_v40 = vpop.xlane.xlu2 %4228 }
 0x73e   : > { %4856 = vmatpush.msra.mxu0 %v10818_v32  ;;  %11067 = vrcp.f32 %v4229_v40  ;;  %v17494_v40 = vld [vmem:[#allocation109_spill] sm:$0xff] }
 0x73f   : > { %5406 = vrot.lane.b32.xlu1 %v13487_v46, %s11445_s19 }
 0x740   : > { %v11066_v54 = vpop.eup %11065 }
 0x741   : > { %v4321_v27 = vmul.f32 %v11066_v54, %v13881_v20  ;;  %v4226_v39 = vpop.xlane.xlu0 %4225  ;;  %v14002_v5 = vpop.xlane.xlu1 %4081 }
 0x742   : > { %11069 = vrcp.f32 %v4226_v39  ;;  %v17497_v39 = vld [vmem:[#allocation105_spill] sm:$0xff] }
 0x743   : > { %10356 = vmatmul.msk.f32.gmra.mxu0 %vm3986_vm8, %v4320_v4  ;;  %10357 = vmatmul.msk.f32.vlgmr.msrb.gmra.mxu1 %vm3986_vm8, %v4321_v27 }
 0x744   : > { %4890 = vmatpush.msrb.mxu1 %v10827_v16  ;;  %v11068_v42 = vpop.eup %11067  ;;  %v17498_v16 = vld [vmem:[#allocation149_spill] sm:$0xff] }
 0x745   : > { %v4323_v20 = vmul.f32 %v11068_v42, %v13890_v11 }
 0x746   : > { %4891 = vmatpush.msrb.mxu1 %v10828_v0  ;;  %v4113_v0 = vsub.f32 %v17498_v16, %v13994_v30  ;;  %v17503_v30 = vld [vmem:[#allocation85_spill] sm:$0xff]  ;;  %v17527_v16 = vld [vmem:[#allocation116_spill] sm:$0xff] }
 0x747   : > { %10830 = vrot.lane.b32.xlu1 %v13035_v29, %s11446_s9  ;;  %10359 = vmatmul.msk.f32.vlgmr.msra.gmra.mxu2 %vm3986_vm8, %v4323_v20  ;;  %v4171_v29 = vmul.f32 1.442695, %v4111_v21 }
 0x748   : > { %v11070_v25 = vpop.eup %11069  ;;  %10375 = vmatpush.xpose.msk.msra.mxu2 %vm338_vm7, %v13228_v28 }
 0x749   : > { %v4232_v34 = vpop.xlane.xlu1 %4231  ;;  %v4322_v62 = vmul.f32 %v11070_v25, %v13894_v33  ;;  %v4175_v25 = vmul.f32 1.442695, %v4113_v0 }
 0x74a   : > { %11071 = vrcp.f32 %v4232_v34  ;;  %v17501_v34 = vld [vmem:[#allocation113_spill] sm:$0xff] }
 0x74b   : > { %10358 = vmatmul.msk.f32.gmra.mxu1 %vm3986_vm8, %v4322_v62  ;;  %11073 = vpow2.f32 %v4169_v44  ;;  %v17500_v44 = vld [vmem:[#allocation89_spill] sm:$0xff]  ;;  %v17504_v62 = vld [vmem:[#allocation84_spill] sm:$0xff] }
 0x74c   : > { %10376 = vmatpush.xpose.msk.msra.mxu2 %vm338_vm7, %v13213_v57  ;;  %11075 = vpow2.f32 %v4171_v29  ;;  %v10854_v21 = vpack.i.bf16 %v17504_v62, %v17503_v30  ;;  %v17505_v29 = vld [vmem:[#allocation106_spill] sm:$0xff] }
 0x74d   : > { %v17530_v62 = vld [vmem:[#allocation98_spill] sm:$0xff] }
 0x74f   : > { %5488 = vrot.lane.b32.xlu1 %v13546_v48, %s11444_s7 }
 0x750   : > { %v11072_v19 = vpop.eup %11071 }
 0x751   : > { %v4324_v11 = vmul.f32 %v11072_v19, %v13902_v7  ;;  %v14024_v28 = vpop.eup %11073  ;;  %v17507_v19 = vld [vmem:[#allocation150_spill] sm:$0xff] }
 0x752   : > { %v4260_v18 = vsel %vm3986_vm8, %v14024_v28, 0.0  ;;  %v14029_v33 = vpop.eup %11075 }
 0x753   : > { %10360 = vmatmul.msk.f32.gmra.mxu2 %vm3986_vm8, %v4324_v11  ;;  %v4263_v57 = vsel %vm3986_vm8, %v14029_v33, 0.0  ;;  %v4114_v11 = vsub.f32 %v17507_v19, %v14002_v5 }
 0x757   : > { %4261 = vadd.xlane.f32.xlu2 %v4260_v18  ;;  %v17508_v18 = vld [vmem:[#allocation87_spill] sm:$0xff] }
 0x758   : > { %v4235_v1 = vpop.xlane.xlu0 %4234 }
 0x759   : > { %11077 = vrcp.f32 %v4235_v1 }
 0x75c   : > { %4264 = vadd.xlane.f32.xlu0 %v4263_v57  ;;  %v4177_v57 = vmul.f32 1.442695, %v4114_v11  ;;  %v17535_v11 = vld [vmem:[#allocation102_spill] sm:$0xff] }
 0x75f   : > { %v11078_v12 = vpop.eup %11077 }
 0x760   : > { %v4325_v7 = vmul.f32 %v11078_v12, %v13920_v59  ;;  %v4238_v50 = vpop.xlane.xlu0 %4237  ;;  %v4173_v59 = vmul.f32 1.442695, %v4112_v56  ;;  %v17511_v56 = vld [vmem:[#allocation144_spill] sm:$0xff] }
 0x761   : > { %11079 = vrcp.f32 %v4238_v50  ;;  %v17510_v50 = vld [vmem:[#allocation146_spill] sm:$0xff] }
 0x762   : > { %10361 = vmatmul.msk.f32.vlgmr.msra.gmra.mxu3 %vm3986_vm8, %v4325_v7  ;;  %v17509_v7 = vld [vmem:[#allocation108_spill] sm:$0xff] }
 0x763   : > { %10379 = vmatpush.xpose.msk.msra.mxu3 %vm338_vm7, %v13274_v6 }
 0x767   : > { %v11080_v9 = vpop.eup %11079  ;;  %10380 = vmatpush.xpose.msk.msra.mxu3 %vm338_vm7, %v13260_v60 }
 0x768   : > { %v4326_v63 = vmul.f32 %v11080_v9, %v13924_v10 }
 0x769   : > { %v4241_v14 = vpop.xlane.xlu1 %4240 }
 0x76a   : > { %10362 = vmatmul.msk.f32.gmra.mxu3 %vm3986_vm8, %v4326_v63  ;;  %11081 = vrcp.f32 %v4241_v14  ;;  %v17512_v63 = vld [vmem:[#allocation112_spill] sm:$0xff] }
 0x76b   : > { %11083 = vpow2.f32 %v4173_v59 }
 0x76f   : > { %5408 = vrot.lane.b32.xlu2 %v13490_v38, %s11445_s19 }
 0x770   : > { %v11082_v15 = vpop.eup %11081  ;;  %5410 = vrot.lane.b32.xlu0 %v13487_v46, %s11444_s7  ;;  %v17488_v46 = vld [vmem:[#allocation123_spill] sm:$0xff] }
 0x771   : > { %v4327_v6 = vmul.f32 %v11082_v15, %v13930_v22  ;;  %v4244_v24 = vpop.xlane.xlu1 %4243  ;;  %v14051_v60 = vpop.eup %11083 }
 0x772   : > { %11085 = vrcp.f32 %v4244_v24  ;;  %v4266_v38 = vsel %vm3986_vm8, %v14051_v60, 0.0  ;;  %v17513_v24 = vld [vmem:[#allocation121_spill] sm:$0xff] }
 0x773   : > { %10363 = vmatmul.msk.f32.vlgmr.msrb.gmra.mxu0 %vm3986_vm8, %v4327_v6 }
 0x774   : > { %10383 = vmatpush.xpose.msk.msrb.mxu0 %vm338_vm7, %v13342_v55 }
 0x777   : > { %5445 = vrot.lane.b32.xlu2 %v13507_v51, %s11445_s19 }
 0x778   : > { %v11086_v10 = vpop.eup %11085  ;;  %10384 = vmatpush.xpose.msk.msrb.mxu0 %vm338_vm7, %v13318_v53  ;;  %5451 = vrot.lane.b32.xlu0 %v17488_v46, %s11444_s7 }
 0x779   : > { %4267 = vadd.xlane.f32.xlu1 %v4266_v38  ;;  %v4247_v22 = vpop.xlane.xlu2 %4246  ;;  %v4328_v3 = vmul.f32 %v11086_v10, %v13938_v26  ;;  %v17490_v26 = vld [vmem:[#allocation129_spill] sm:$0xff]  ;;  %v17514_v38 = vld [vmem:[#allocation83_spill] sm:$0xff] }
 0x77a   : > { %11087 = vrcp.f32 %v4247_v22  ;;  %v17515_v22 = vld [vmem:[#allocation82_spill] sm:$0xff] }
 0x77b   : > { %10364 = vmatmul.msk.f32.gmra.mxu0 %vm3986_vm8, %v4328_v3  ;;  %v10849_v3 = vpack.i.bf16 %v17515_v22, %v17514_v38 }
 0x77f   : > { %5484 = vrot.lane.b32.xlu2 %v13546_v48, %s11445_s19 }
 0x780   : > { %v11088_v55 = vpop.eup %11087  ;;  %5449 = vrot.lane.b32.xlu0 %v13507_v51, %s11444_s7 }
 0x781   : > { %v4329_v53 = vmul.f32 %v11088_v55, %v13948_v47 }
 0x782   : > { %v4250_v35 = vpop.xlane.xlu0 %4249 }
 0x783   : > { %11089 = vrcp.f32 %v4250_v35  ;;  %10365 = vmatmul.msk.f32.vlgmr.msra.gmra.mxu1 %vm3986_vm8, %v4329_v53  ;;  %v17516_v35 = vld [vmem:[#allocation133_spill] sm:$0xff] }
 0x784   : > { %10387 = vmatpush.xpose.msk.msra.mxu1 %vm338_vm7, %v17489_v37 }
 0x787   : > { %5486 = vrot.lane.b32.xlu2 %v17490_v26, %s11445_s19 }
 0x788   : > { %10388 = vmatpush.xpose.msk.msra.mxu1 %vm338_vm7, %v17491_v2  ;;  %5447 = vrot.lane.b32.xlu0 %v17488_v46, %s11445_s19 }
 0x789   : > { %v11090_v48 = vpop.eup %11089  ;;  %v4253_v43 = vpop.xlane.xlu2 %4252 }
 0x78a   : > { %11091 = vrcp.f32 %v4253_v43  ;;  %v4330_v47 = vmul.f32 %v11090_v48, %v13957_v36  ;;  %v17495_v36 = vld [vmem:[#allocation77_spill] sm:$0xff]  ;;  %v17517_v48 = vld [vmem:[#allocation142_spill] sm:$0xff]  ;;  %v17518_v43 = vld [vmem:[#allocation88_spill] sm:$0xff] }
 0x78b   : > { %v10834_v54 = vpack.i.bf16 %v17496_v13, %v17495_v36  ;;  %v17525_v36 = vld [vmem:[#allocation137_spill] sm:$0xff] }
 0x78c   : > { %10366 = vmatmul.msk.f32.gmra.mxu1 %vm3986_vm8, %v4330_v47  ;;  %v17519_v47 = vld [vmem:[#allocation86_spill] sm:$0xff] }
 0x790   : > { %v11092_v31 = vpop.eup %11091  ;;  %5490 = vrot.lane.b32.xlu0 %v17490_v26, %s11444_s7 }
 0x791   : > { %v4331_v41 = vmul.f32 %v11092_v31, %v13965_v23  ;;  %v4256_v32 = vpop.xlane.xlu0 %4255  ;;  %v5413_v15 = vpop.permute.xlu2 %5412  ;;  %v10859_v31 = vpack.i.bf16 %v17519_v47, %v17518_v43  ;;  %v5556_v43 = vld [vmem:[#allocation2 + $0x100] sm:$0xff] }
 0x792   : > { %11093 = vrcp.f32 %v4256_v32  ;;  %10845 = vrot.lane.b32.xlu1 %v10844_v49, %s11446_s9  ;;  %v17520_v49 = vld [vmem:[#allocation111_spill] sm:$0xff]  ;;  %v17523_v32 = vld [vmem:[#allocation132_spill] sm:$0xff] }
 0x793   : > { %10367 = vmatmul.msk.f32.vlgmr.msrb.gmra.mxu2 %vm3986_vm8, %v4331_v41  ;;  %v17521_v41 = vld [vmem:[#allocation148_spill] sm:$0xff] }
 0x794   : > { %10391 = vmatpush.xpose.msk.msrb.mxu2 %vm338_vm7, %v17494_v40  ;;  %v17524_v40 = vld [vmem:[#allocation119_spill] sm:$0xff] }
 0x798   : > { %v11094_v27 = vpop.eup %11093  ;;  %10392 = vmatpush.xpose.msk.msrb.mxu2 %vm338_vm7, %v17497_v39  ;;  %10835 = vrot.lane.b32.xlu0 %v10834_v54, %s11446_s9 }
 0x799   : > { %v4259_v4 = vpop.xlane.xlu1 %4258  ;;  %v4332_v23 = vmul.f32 %v11094_v27, %v13974_v8  ;;  %v17502_v8 = vld [vmem:[#allocation125_spill] sm:$0xff] }
 0x79a   : > { %11095 = vrcp.f32 %v4259_v4  ;;  %v17526_v27 = vld [vmem:[#allocation93_spill] sm:$0xff] }
 0x79b   : > { %10368 = vmatmul.msk.f32.gmra.mxu2 %vm3986_vm8, %v4332_v23  ;;  %11097 = vpow2.f32 %v4175_v25 }
 0x79c   : > { %11099 = vpow2.f32 %v4177_v57 }
 0x7a0   : > { %v11096_v42 = vpop.eup %11095  ;;  %10840 = vrot.lane.b32.xlu0 %v17499_v45, %s11446_s9 }
 0x7a1   : > { %v4333_v20 = vmul.f32 %v11096_v42, %v13981_v61  ;;  %v17506_v61 = vld [vmem:[#allocation127_spill] sm:$0xff]  ;;  %v14118_v1 = vpop.eup %11097 }
 0x7a2   : > { %v4269_v12 = vsel %vm3986_vm8, %v14118_v1, 0.0  ;;  %v14128_v5 = vpop.eup %11099 }
 0x7a3   : > { %10369 = vmatmul.msk.f32.vlgmr.msrb.gmra.mxu3 %vm3986_vm8, %v4333_v20  ;;  %10377 = vmatmul.msk.f32.vlgmr.msra.gmra.mxu2 %vm338_vm7, %v17500_v44  ;;  %v4272_v14 = vsel %vm3986_vm8, %v14128_v5, 0.0  ;;  %v17528_v20 = vld [vmem:[#allocation117_spill] sm:$0xff] }
 0x7a4   : > { %10395 = vmatpush.xpose.msk.msrb.mxu3 %vm338_vm7, %v17501_v34  ;;  %10407 = vmatpush.xpose.msk.msra.mxu2 %vm338_vm7, %v17502_v8  ;;  %v14140_v55 = vpop.permute.xlu0 %5330  ;;  %v17529_v34 = vld [vmem:[#allocation135_spill] sm:$0xff] }
 0x7a8   : > { %10396 = vmatpush.xpose.msk.msrb.mxu3 %vm338_vm7, %v17505_v29  ;;  %10408 = vmatpush.xpose.msk.msra.mxu2 %vm338_vm7, %v17506_v61  ;;  %v17532_v61 = vld [vmem:[#allocation136_spill] sm:$0xff] }
 0x7a9   : > { %10855 = vrot.lane.b32.xlu0 %v10854_v21, %s11446_s9  ;;  %v17531_v21 = vld [vmem:[#allocation138_spill] sm:$0xff] }
 0x7ab   : > { %10378 = vmatmul.msk.f32.gmra.mxu2 %vm338_vm7, %v17508_v18 }
 0x7b0   : > { %4270 = vadd.xlane.f32.xlu2 %v4269_v12 }
 0x7b1   : > { %v14126_v9 = vpop.permute.xlu1 %5406 }
 0x7b3   : > { %10393 = vmatmul.msk.f32.vlgmr.msrb.gmra.mxu2 %vm338_vm7, %v17509_v7 }
 0x7b4   : > { %10423 = vmatpush.xpose.msk.msrb.mxu2 %vm338_vm7, %v17510_v50 }
 0x7b8   : > { %10424 = vmatpush.xpose.msk.msrb.mxu2 %vm338_vm7, %v17511_v56  ;;  %v17537_v56 = vld [vmem:[#allocation122_spill] sm:$0xff] }
 0x7b9   : > { %v10831_v59 = vpop.permute.xlu1 %10830 }
 0x7ba   : > { %v10832_v6 = vunpack.i.l.bf16 %v10831_v59  ;;  %v10833_v10 = vunpack.i.h.bf16 %v10831_v59 }
 0x7bb   : > { %10394 = vmatmul.msk.f32.gmra.mxu2 %vm338_vm7, %v17512_v63 }
 0x7bc   : > { %4273 = vadd.xlane.f32.xlu1 %v4272_v14 }
 0x7c1   : > { %v14168_v54 = vpop.permute.xlu1 %5488 }
 0x7c3   : > { %10409 = vmatmul.msk.f32.vlgmr.msra.gmra.mxu2 %vm338_vm7, %v17513_v24 }
 0x7c4   : > { %5998 = vmatpush.msra.mxu2 %v10832_v6 }
 0x7c6   : > { %5999 = vmatpush.msra.mxu2 %v10833_v10 }
 0x7c8   : > { %10850 = vrot.lane.b32.xlu2 %v10849_v3, %s11446_s9 }
 0x7ca   : > { %v4262_v53 = vpop.xlane.xlu2 %4261 }
 0x7cb   : > { %11101 = vrcp.f32 %v4262_v53  ;;  %10410 = vmatmul.msk.f32.gmra.mxu2 %vm338_vm7, %v17516_v35  ;;  %v17541_v53 = vld [vmem:[#allocation141_spill] sm:$0xff] }
 0x7cf   : > { %v4265_v37 = vpop.xlane.xlu0 %4264 }
 0x7d0   : > { %11103 = vrcp.f32 %v4265_v37 }
 0x7d1   : > { %v11102_v26 = vpop.eup %11101 }
 0x7d2   : > { %v4334_v2 = vmul.f32 %v11102_v26, %v14024_v28  ;;  %v17522_v28 = vld [vmem:[#allocation91_spill] sm:$0xff]  ;;  %v5409_v8 = vpop.permute.xlu2 %5408 }
 0x7d3   : > { %10425 = vmatmul.msk.f32.vlgmr.msrb.gmra.mxu2 %vm338_vm7, %v17517_v48  ;;  %v17542_v48 = vld [vmem:[#allocation140_spill] sm:$0xff] }
 0x7d4   : > { %10370 = vmatmul.msk.f32.gmra.mxu3 %vm3986_vm8, %v4334_v2 }
 0x7d5   : > { %10860 = vrot.lane.b32.xlu1 %v10859_v31, %s11446_s9 }
 0x7d6   : > { %v11104_v52 = vpop.eup %11103 }
 0x7d7   : > { %v4335_v58 = vmul.f32 %v11104_v52, %v14029_v33  ;;  %v14166_v33 = vpop.f32.mrf.mxu2 }
 0x7d9   : > { %10371 = vmatmul.msk.f32.vlgmr.msra.gmra.mxu0 %vm3986_vm8, %v4335_v58 }
 0x7da   : > { %10399 = vmatpush.xpose.msk.msra.mxu0 %vm338_vm7, %v17520_v49  ;;  %v5446_v18 = vpop.permute.xlu2 %5445 }
 0x7db   : > { %10426 = vmatmul.msk.f32.gmra.mxu2 %vm338_vm7, %v17521_v41 }
 0x7dc   : > { %10381 = vmatmul.msk.f32.vlgmr.msra.gmra.mxu3 %vm338_vm7, %v17522_v28 }
 0x7dd   : > { %10411 = vmatpush.xpose.msk.msra.mxu3 %vm338_vm7, %v17523_v32 }
 0x7de   : > { %10400 = vmatpush.xpose.msk.msra.mxu0 %vm338_vm7, %v17524_v40 }
 0x7df   : > { %v14172_v4 = vpop.f32.mrf.mxu2 }
 0x7e1   : > { %10412 = vmatpush.xpose.msk.msra.mxu3 %vm338_vm7, %v17525_v36  ;;  %v17543_v36 = vld [vmem:[#allocation131_spill] sm:$0xff] }
 0x7e2   : > { %v5411_v13 = vpop.permute.xlu0 %5410  ;;  %v14211_v63 = vpop.permute.xlu2 %5484 }
 0x7e4   : > { %10382 = vmatmul.msk.f32.gmra.mxu3 %vm338_vm7, %v17526_v27  ;;  %v5557_v27 = vld [vmem:[#allocation2 + $0x108] sm:$0xff] }
 0x7e7   : > { %v14178_v45 = vpop.f32.mrf.mxu2 }
 0x7ea   : > { %v5452_v39 = vpop.permute.xlu0 %5451  ;;  %v14221_v6 = vpop.permute.xlu2 %5486 }
 0x7ec   : > { %v4268_v23 = vpop.xlane.xlu1 %4267  ;;  %10397 = vmatmul.msk.f32.vlgmr.msrb.gmra.mxu3 %vm338_vm7, %v17527_v16 }
 0x7ed   : > { %11105 = vrcp.f32 %v4268_v23  ;;  %10427 = vmatpush.xpose.msk.msrb.mxu3 %vm338_vm7, %v5413_v15  ;;  %v14219_v15 = vpop.f32.mrf.mxu3 }
 0x7ef   : > { %v14188_v30 = vpop.f32.mrf.mxu2 }
 0x7f1   : > { %10428 = vmatpush.xpose.msk.msrb.mxu3 %vm338_vm7, %v5411_v13 }
 0x7f2   : > { %v5450_v0 = vpop.permute.xlu0 %5449 }
 0x7f3   : > { %v11106_v42 = vpop.eup %11105 }
 0x7f4   : > { %10398 = vmatmul.msk.f32.gmra.mxu3 %vm338_vm7, %v17528_v20  ;;  %v4336_v25 = vmul.f32 %v11106_v42, %v14051_v60  ;;  %v17533_v60 = vld [vmem:[#allocation139_spill] sm:$0xff]  ;;  %v14250_v20 = vpop.f32.mrf.mxu0 }
 0x7f5   : > { %v14227_v26 = vpop.f32.mrf.mxu3 }
 0x7f6   : > { %10372 = vmatmul.msk.f32.gmra.mxu0 %vm3986_vm8, %v4336_v25 }
 0x7f7   : > { %v14200_v19 = vpop.f32.mrf.mxu2 }
 0x7f8   : > { %17534 = vst [vmem:[#allocation123_spill] sm:$0xff] %v14200_v19 }
 0x7fa   : > { %v14184_v44 = vpop.permute.xlu0 %5447 }
 0x7fc   : > { %10413 = vmatmul.msk.f32.vlgmr.msra.gmra.mxu3 %vm338_vm7, %v17529_v34 }
 0x7fd   : > { %v14238_v40 = vpop.f32.mrf.mxu3 }
 0x7fe   : > { %10385 = vmatmul.msk.f32.vlgmr.msrb.gmra.mxu0 %vm338_vm7, %v17530_v62  ;;  %v5564_v62 = vld [vmem:[#allocation2 + $0x140] sm:$0xff] }
 0x7ff   : > { %10415 = vmatpush.xpose.msk.msrb.mxu0 %vm338_vm7, %v17531_v21  ;;  %v14206_v50 = vpop.f32.mrf.mxu2 }
 0x800   : > { %17536 = vst [vmem:[#allocation104_spill] sm:$0xff] %v14206_v50 }
 0x802   : > { %v14194_v29 = vpop.permute.xlu0 %5490 }
 0x803   : > { %10416 = vmatpush.xpose.msk.msrb.mxu0 %vm338_vm7, %v17532_v61 }
 0x804   : > { %10414 = vmatmul.msk.f32.gmra.mxu3 %vm338_vm7, %v17533_v60  ;;  %v14231_v47 = vpop.permute.xlu1 %10845 }
 0x805   : > { %v14252_v25 = vpop.f32.mrf.mxu3 }
 0x806   : > { %10386 = vmatmul.msk.f32.gmra.mxu0 %vm338_vm7, %v17535_v11 }
 0x80a   : > { %v10836_v57 = vpop.permute.xlu0 %10835 }
 0x80b   : > { %v10837_v12 = vunpack.i.l.bf16 %v10836_v57  ;;  %v10838_v7 = vunpack.i.h.bf16 %v10836_v57  ;;  %v14264_v57 = vpop.f32.mrf.mxu0 }
 0x80c   : > { %10429 = vmatmul.msk.f32.vlgmr.msrb.gmra.mxu3 %vm338_vm7, %v14126_v9  ;;  %v17539_v9 = vld [vmem:[#allocation115_spill] sm:$0xff] }
 0x80d   : > { %6033 = vmatpush.msra.mxu3 %v10837_v12  ;;  %v17546_v12 = vld [vmem:[#allocation101_spill] sm:$0xff] }
 0x80e   : > { %10401 = vmatmul.msk.f32.vlgmr.msra.gmra.mxu0 %vm338_vm7, %v17537_v56 }
 0x80f   : > { %10431 = vmatpush.xpose.msk.msra.mxu0 %vm338_vm7, %v5452_v39  ;;  %6034 = vmatpush.msra.mxu3 %v10838_v7 }
 0x812   : > { %v10841_v14 = vpop.permute.xlu0 %10840 }
 0x813   : > { %10432 = vmatpush.xpose.msk.msra.mxu0 %vm338_vm7, %v5450_v0  ;;  %v10842_v38 = vunpack.i.l.bf16 %v10841_v14  ;;  %v10843_v35 = vunpack.i.h.bf16 %v10841_v14  ;;  %v17544_v0 = vld [vmem:[#allocation124_spill] sm:$0xff]  ;;  %v14270_v7 = vpop.f32.mrf.mxu0 }
 0x814   : > { %10430 = vmatmul.msk.f32.gmra.mxu3 %vm338_vm7, %v5409_v8 }
 0x816   : > { %v14215_v59 = vpop.f32.mrf.mxu2  ;;  %10402 = vmatmul.msk.f32.gmra.mxu0 %vm338_vm7, %v17539_v9 }
 0x817   : > { %17538 = vst [vmem:[#allocation129_spill] sm:$0xff] %v14215_v59 }
 0x81b   : > { %v10856_v24 = vpop.permute.xlu0 %10855 }
 0x81c   : > { %v10857_v10 = vunpack.i.l.bf16 %v10856_v24  ;;  %v10858_v22 = vunpack.i.h.bf16 %v10856_v24  ;;  %v17550_v24 = vld [vmem:[#allocation97_spill] sm:$0xff] }
 0x81e   : > { %6173 = vmatpush.msrb.mxu3 %v10857_v10  ;;  %v14223_v3 = vpop.f32.mrf.mxu2  ;;  %10417 = vmatmul.msk.f32.vlgmr.msrb.gmra.mxu0 %vm338_vm7, %v17541_v53  ;;  %v17552_v53 = vld [vmem:[#allocation128_spill] sm:$0xff] }
 0x81f   : > { %17540 = vst [vmem:[#allocation95_spill] sm:$0xff] %v14223_v3  ;;  %6068 = vmatpush.msrb.mxu0 %v10842_v38 }
 0x820   : > { %6174 = vmatpush.msrb.mxu3 %v10858_v22  ;;  %v14280_v22 = vpop.f32.mrf.mxu0 }
 0x821   : > { %6069 = vmatpush.msrb.mxu0 %v10843_v35 }
 0x823   : > { %v4271_v37 = vpop.xlane.xlu2 %4270 }
 0x824   : > { %11107 = vrcp.f32 %v4271_v37 }
 0x826   : > { %v4932_v2 = vpop.f32.mrf.mxu2  ;;  %10418 = vmatmul.msk.f32.gmra.mxu0 %vm338_vm7, %v17542_v48 }
 0x827   : > { %v5523_v31 = vmul.f32 0.5, %v4932_v2  ;;  %v17555_v2 = vld [vmem:[#allocation134_spill] sm:$0xff] }
 0x828   : > { %v14290_v37 = vpop.f32.mrf.mxu0 }
 0x829   : > { %v14233_v52 = vadd.f32 %v5556_v43, %v5523_v31  ;;  %17554 = vst [vmem:[#allocation78_spill] sm:$0xff] %v14290_v37  ;;  %v5558_v43 = vld [vmem:[#allocation2 + $0x110] sm:$0xff]  ;;  %v10847_v31 = vunpack.i.l.bf16 %v14231_v47 }
 0x82a   : > { %v11108_v58 = vpop.eup %11107 }
 0x82b   : > { %v4337_v49 = vmul.f32 %v11108_v58, %v14118_v1  ;;  %v10851_v41 = vpop.permute.xlu2 %10850  ;;  %v5620_v28 = vsel %vm3986_vm8, %v14233_v52, -inf }
 0x82c   : > { %v10852_v32 = vunpack.i.l.bf16 %v10851_v41  ;;  %5621 = vmax.xlane.f32.xlu0 %v5620_v28  ;;  %v10853_v39 = vunpack.i.h.bf16 %v10851_v41 }
 0x82d   : > { %10373 = vmatmul.msk.f32.vlgmr.msrb.gmra.mxu1 %vm3986_vm8, %v4337_v49  ;;  %v17556_v49 = vld [vmem:[#allocation145_spill] sm:$0xff] }
 0x82e   : > { %10403 = vmatpush.xpose.msk.msrb.mxu1 %vm338_vm7, %v17543_v36  ;;  %v4935_v13 = vpop.f32.mrf.mxu2  ;;  %10433 = vmatmul.msk.f32.vlgmr.msra.gmra.mxu0 %vm338_vm7, %v5446_v18  ;;  %v14262_v18 = vpop.f32.mrf.mxu3  ;;  %v5559_v36 = vld [vmem:[#allocation2 + $0x118] sm:$0xff] }
 0x82f   : > { %v5524_v23 = vmul.f32 0.5, %v4935_v13  ;;  %6138 = vmatpush.msrb.mxu2 %v10852_v32  ;;  %v4274_v1 = vpop.xlane.xlu1 %4273  ;;  %17545 = vst [vmem:[#allocation81_spill] sm:$0xff] %v14262_v18 }
 0x830   : > { %11109 = vrcp.f32 %v4274_v1 }
 0x831   : > { %6139 = vmatpush.msrb.mxu2 %v10853_v39  ;;  %v14244_v16 = vadd.f32 %v5557_v27, %v5524_v23 }
 0x832   : > { %10404 = vmatpush.xpose.msk.msrb.mxu1 %vm338_vm7, %v17544_v0  ;;  %v5565_v0 = vld [vmem:[#allocation2 + $0x148] sm:$0xff] }
 0x833   : > { %v5623_v42 = vsel %vm3986_vm8, %v14244_v16, -inf }
 0x834   : > { %5624 = vmax.xlane.f32.xlu2 %v5623_v42 }
 0x836   : > { %v11110_v34 = vpop.eup %11109  ;;  %v5088_v8 = vpop.f32.mrf.mxu2  ;;  %10434 = vmatmul.msk.f32.gmra.mxu0 %vm338_vm7, %v14184_v44  ;;  %v17547_v44 = vld [vmem:[#allocation147_spill] sm:$0xff] }
 0x837   : > { %v5531_v21 = vmul.f32 0.5, %v5088_v8  ;;  %v4338_v61 = vmul.f32 %v11110_v34, %v14128_v5  ;;  %v17548_v5 = vld [vmem:[#allocation143_spill] sm:$0xff]  ;;  %v14274_v56 = vpop.f32.mrf.mxu3 }
 0x838   : > { %17549 = vst [vmem:[#allocation79_spill] sm:$0xff] %v14274_v56  ;;  %v5566_v34 = vld [vmem:[#allocation2 + $0x150] sm:$0xff] }
 0x839   : > { %10374 = vmatmul.msk.f32.gmra.mxu1 %vm3986_vm8, %v4338_v61  ;;  %v14258_v60 = vadd.f32 %v5564_v62, %v5531_v21 }
 0x83b   : > { %v5644_v11 = vsel %vm3986_vm8, %v14258_v60, -inf }
 0x83c   : > { %5645 = vmax.xlane.f32.xlu2 %v5644_v11 }
 0x83e   : > { %v5091_v27 = vpop.f32.mrf.mxu2 }
 0x83f   : > { %v14278_v38 = vpop.f32.mrf.mxu3  ;;  %v5532_v23 = vmul.f32 0.5, %v5091_v27  ;;  %v5573_v27 = vld [vmem:[#allocation2 + $0x188] sm:$0xff] }
 0x840   : > { %17551 = vst [vmem:[#allocation109_spill] sm:$0xff] %v14278_v38 }
 0x841   : > { %10389 = vmatmul.msk.f32.vlgmr.msra.gmra.mxu1 %vm338_vm7, %v17546_v12  ;;  %v14312_v62 = vadd.f32 %v5565_v0, %v5532_v23  ;;  %v14324_v12 = vpop.f32.mrf.mxu1  ;;  %v5567_v23 = vld [vmem:[#allocation2 + $0x158] sm:$0xff] }
 0x842   : > { %10419 = vmatpush.xpose.msk.msra.mxu1 %vm338_vm7, %v17547_v44 }
 0x843   : > { %v5647_v61 = vsel %vm3986_vm8, %v14312_v62, -inf }
 0x846   : > { %10420 = vmatpush.xpose.msk.msra.mxu1 %vm338_vm7, %v17548_v5  ;;  %v5244_v44 = vpop.f32.mrf.mxu2 }
 0x847   : > { %v10861_v14 = vpop.permute.xlu1 %10860 }
 0x848   : > { %v10862_v9 = vunpack.i.l.bf16 %v10861_v14  ;;  %v10863_v10 = vunpack.i.h.bf16 %v10861_v14 }
 0x849   : > { %10390 = vmatmul.msk.f32.gmra.mxu1 %vm338_vm7, %v17550_v24  ;;  %v5539_v24 = vmul.f32 0.5, %v5244_v44 }
 0x84a   : > { %6208 = vmatpush.msra.mxu0 %v10862_v9 }
 0x84c   : > { %6209 = vmatpush.msra.mxu0 %v10863_v10 }
 0x851   : > { %10405 = vmatmul.msk.f32.vlgmr.msrb.gmra.mxu1 %vm338_vm7, %v17552_v53 }
 0x852   : > { %10435 = vmatpush.xpose.msk.msrb.mxu1 %vm338_vm7, %v14194_v29  ;;  %v10848_v29 = vunpack.i.h.bf16 %v14231_v47 }
 0x856   : > { %10436 = vmatpush.xpose.msk.msrb.mxu1 %vm338_vm7, %v14168_v54  ;;  %v14300_v54 = vpop.f32.mrf.mxu0 }
 0x857   : > { %v14288_v35 = vpop.f32.mrf.mxu3  ;;  %17557 = vst [vmem:[#allocation105_spill] sm:$0xff] %v14300_v54  ;;  %v17571_v54 = vld [vmem:[#allocation99_spill] sm:$0xff] }
 0x858   : > { %17553 = vst [vmem:[#allocation77_spill] sm:$0xff] %v14288_v35 }
 0x859   : > { %10406 = vmatmul.msk.f32.gmra.mxu1 %vm338_vm7, %v17555_v2  ;;  %v5572_v2 = vld [vmem:[#allocation2 + $0x180] sm:$0xff] }
 0x85e   : > { %v14308_v47 = vpop.f32.mrf.mxu0 }
 0x85f   : > { %v4971_v48 = vpop.f32.mrf.mxu3  ;;  %17558 = vst [vmem:[#allocation149_spill] sm:$0xff] %v14308_v47 }
 0x860   : > { %v5525_v58 = vmul.f32 0.5, %v4971_v48  ;;  %v14332_v48 = vpop.f32.mrf.mxu1 }
 0x861   : > { %10421 = vmatmul.msk.f32.vlgmr.msra.gmra.mxu1 %vm338_vm7, %v17556_v49  ;;  %v14334_v49 = vadd.f32 %v5572_v2, %v5539_v24  ;;  %v5569_v2 = vld [vmem:[#allocation2 + $0x168] sm:$0xff] }
 0x862   : > { %6103 = vmatpush.msra.mxu1 %v10847_v31  ;;  %v14298_v41 = vadd.f32 %v5558_v43, %v5525_v58  ;;  %v5561_v31 = vld [vmem:[#allocation2 + $0x128] sm:$0xff] }
 0x864   : > { %6104 = vmatpush.msra.mxu1 %v10848_v29  ;;  %v5626_v28 = vsel %vm3986_vm8, %v14298_v41, -inf }
 0x865   : > { %5627 = vmax.xlane.f32.xlu1 %v5626_v28 }
 0x867   : > { %v4974_v32 = vpop.f32.mrf.mxu3 }
 0x868   : > { %v5526_v13 = vmul.f32 0.5, %v4974_v32 }
 0x869   : > { %10422 = vmatmul.msk.f32.gmra.mxu1 %vm338_vm7, %v14140_v55 }
 0x86a   : > { %v14306_v39 = vadd.f32 %v5559_v36, %v5526_v13  ;;  %v5668_v36 = vsel %vm3986_vm8, %v14334_v49, -inf }
 0x86c   : > { %v5629_v1 = vsel %vm3986_vm8, %v14306_v39, -inf }
 0x86d   : > { %5630 = vmax.xlane.f32.xlu2 %v5629_v1  ;;  %v14342_v1 = vpop.f32.mrf.mxu1 }
 0x86e   : > { %17560 = vst [vmem:[#allocation89_spill] sm:$0xff] %v14342_v1  ;;  %v5586_v1 = vld [vmem:[#allocation2 + $0x1f0] sm:$0xff] }
 0x86f   : > { %v5127_v42 = vpop.f32.mrf.mxu3 }
 0x870   : > { %v5533_v8 = vmul.f32 0.5, %v5127_v42 }
 0x871   : > { %10437 = vmatmul.msk.f32.vlgmr.msrb.gmra.mxu1 %vm338_vm7, %v14211_v63  ;;  %v5560_v63 = vld [vmem:[#allocation2 + $0x120] sm:$0xff] }
 0x872   : > { %v14316_v21 = vadd.f32 %v5566_v34, %v5533_v8  ;;  %v5568_v34 = vld [vmem:[#allocation2 + $0x160] sm:$0xff] }
 0x873   : > { %v14318_v55 = vpop.f32.mrf.mxu0 }
 0x874   : > { %17559 = vst [vmem:[#allocation80_spill] sm:$0xff] %v14318_v55  ;;  %v5650_v11 = vsel %vm3986_vm8, %v14316_v21, -inf }
 0x875   : > { %5648 = vmax.xlane.f32.xlu2 %v5647_v61  ;;  %5651 = vmax.xlane.f32.xlu1 %v5650_v11 }
 0x877   : > { %v5130_v53 = vpop.f32.mrf.mxu3 }
 0x878   : > { %v5534_v32 = vmul.f32 0.5, %v5130_v53 }
 0x879   : > { %10438 = vmatmul.msk.f32.gmra.mxu1 %vm338_vm7, %v14221_v6  ;;  %v5247_v6 = vpop.f32.mrf.mxu2 }
 0x87a   : > { %v5540_v28 = vmul.f32 0.5, %v5247_v6  ;;  %v14346_v11 = vadd.f32 %v5567_v23, %v5534_v32 }
 0x87b   : > { %v5010_v5 = vpop.f32.mrf.mxu0 }
 0x87c   : > { %v5527_v14 = vmul.f32 0.5, %v5010_v5  ;;  %v14344_v61 = vadd.f32 %v5573_v27, %v5540_v28  ;;  %v5575_v27 = vld [vmem:[#allocation2 + $0x198] sm:$0xff] }
 0x87e   : > { %v14328_v9 = vadd.f32 %v5560_v63, %v5527_v14  ;;  %v5671_v5 = vsel %vm3986_vm8, %v14344_v61, -inf  ;;  %v5653_v63 = vsel %vm3986_vm8, %v14346_v11, -inf }
 0x87f   : > { %v5283_v0 = vpop.f32.mrf.mxu3 }
 0x880   : > { %v5632_v10 = vsel %vm3986_vm8, %v14328_v9, -inf  ;;  %v5541_v24 = vmul.f32 0.5, %v5283_v0 }
 0x881   : > { %5633 = vmax.xlane.f32.xlu0 %v5632_v10  ;;  %v5574_v10 = vld [vmem:[#allocation2 + $0x190] sm:$0xff] }
 0x882   : > { %v14358_v6 = vadd.f32 %v5574_v10, %v5541_v24  ;;  %v5562_v24 = vld [vmem:[#allocation2 + $0x130] sm:$0xff] }
 0x883   : > { %v5013_v43 = vpop.f32.mrf.mxu0 }
 0x884   : > { %v5528_v58 = vmul.f32 0.5, %v5013_v43  ;;  %v14356_v43 = vpop.f32.mrf.mxu1 }
 0x885   : > { %17561 = vst [vmem:[#allocation113_spill] sm:$0xff] %v14356_v43 }
 0x886   : > { %v14336_v29 = vadd.f32 %v5561_v31, %v5528_v58 }
 0x887   : > { %v5286_v58 = vpop.f32.mrf.mxu3 }
 0x888   : > { %v5635_v13 = vsel %vm3986_vm8, %v14336_v29, -inf  ;;  %v5542_v32 = vmul.f32 0.5, %v5286_v58 }
 0x889   : > { %5669 = vmax.xlane.f32.xlu0 %v5668_v36  ;;  %5636 = vmax.xlane.f32.xlu2 %v5635_v13  ;;  %v5674_v13 = vsel %vm3986_vm8, %v14358_v6, -inf }
 0x88a   : > { %v14368_v0 = vadd.f32 %v5575_v27, %v5542_v32 }
 0x88b   : > { %v5166_v42 = vpop.f32.mrf.mxu0 }
 0x88c   : > { %v5535_v8 = vmul.f32 0.5, %v5166_v42  ;;  %v14366_v23 = vpop.f32.mrf.mxu1  ;;  %v5677_v42 = vsel %vm3986_vm8, %v14368_v0, -inf }
 0x88d   : > { %17562 = vst [vmem:[#allocation125_spill] sm:$0xff] %v14366_v23 }
 0x88e   : > { %v14348_v44 = vadd.f32 %v5568_v34, %v5535_v8 }
 0x890   : > { %v5656_v14 = vsel %vm3986_vm8, %v14348_v44, -inf }
 0x891   : > { %5672 = vmax.xlane.f32.xlu0 %v5671_v5  ;;  %5654 = vmax.xlane.f32.xlu2 %v5653_v63  ;;  %v5400_v63 = vpop.f32.mrf.mxu2 }
 0x892   : > { %5657 = vmax.xlane.f32.xlu1 %v5656_v14  ;;  %v5547_v58 = vmul.f32 0.5, %v5400_v63 }
 0x893   : > { %v5169_v53 = vpop.f32.mrf.mxu0 }
 0x894   : > { %v5536_v31 = vmul.f32 0.5, %v5169_v53  ;;  %v14372_v34 = vpop.f32.mrf.mxu1 }
 0x895   : > { %17563 = vst [vmem:[#allocation85_spill] sm:$0xff] %v14372_v34  ;;  %v17569_v34 = vld [vmem:[#allocation94_spill] sm:$0xff] }
 0x896   : > { %v14360_v28 = vadd.f32 %v5569_v2, %v5536_v31 }
 0x898   : > { %v5659_v36 = vsel %vm3986_vm8, %v14360_v28, -inf }
 0x899   : > { %5660 = vmax.xlane.f32.xlu0 %v5659_v36  ;;  %v5580_v36 = vld [vmem:[#allocation2 + $0x1c0] sm:$0xff]  ;;  %v5403_v55 = vpop.f32.mrf.mxu2 }
 0x89a   : > { %5675 = vmax.xlane.f32.xlu1 %v5674_v13 }
 0x89f   : > { %v5622_v10 = vpop.xlane.xlu0 %5621 }
 0x8a0   : > { %v5716_v31 = vsub.f32 %v14233_v52, %v5622_v10 }
 0x8a1   : > { %5678 = vmax.xlane.f32.xlu0 %v5677_v42  ;;  %v5563_v42 = vld [vmem:[#allocation2 + $0x138] sm:$0xff] }
 0x8a2   : > { %v5748_v13 = vmul.f32 1.442695, %v5716_v31 }
 0x8a4   : > { %11111 = vpow2.f32 %v5748_v13  ;;  %v5570_v13 = vld [vmem:[#allocation2 + $0x170] sm:$0xff] }
 0x8a7   : > { %v5625_v10 = vpop.xlane.xlu2 %5624 }
 0x8aa   : > { %v14374_v8 = vpop.f32.mrf.mxu1 }
 0x8ab   : > { %17564 = vst [vmem:[#allocation84_spill] sm:$0xff] %v14374_v8 }
 0x8af   : > { %v5646_v35 = vpop.xlane.xlu2 %5645 }
 0x8b6   : > { %v14376_v5 = vpop.f32.mrf.mxu1 }
 0x8b7   : > { %17565 = vst [vmem:[#allocation106_spill] sm:$0xff] %v14376_v5  ;;  %v14383_v5 = vadd.f32 %v5580_v36, %v5547_v58  ;;  %v14393_v58 = vpop.eup %11111 }
 0x8b8   : > { %v5812_v36 = vsel %vm3986_vm8, %v14393_v58, 0.0 }
 0x8b9   : > { %v5692_v52 = vsel %vm3986_vm8, %v14383_v5, -inf }
 0x8be   : > { %v5049_v14 = vpop.f32.mrf.mxu1 }
 0x8bf   : > { %v5529_v53 = vmul.f32 0.5, %v5049_v14  ;;  %v5548_v14 = vmul.f32 0.5, %v5403_v55 }
 0x8c1   : > { %v14378_v2 = vadd.f32 %v5562_v24, %v5529_v53  ;;  %v5581_v24 = vld [vmem:[#allocation2 + $0x1c8] sm:$0xff] }
 0x8c2   : > { %v14391_v31 = vadd.f32 %v5581_v24, %v5548_v14 }
 0x8c3   : > { %v5638_v32 = vsel %vm3986_vm8, %v14378_v2, -inf }
 0x8c4   : > { %5639 = vmax.xlane.f32.xlu2 %v5638_v32  ;;  %v5695_v55 = vsel %vm3986_vm8, %v14391_v31, -inf }
 0x8c6   : > { %v5052_v27 = vpop.f32.mrf.mxu1 }
 0x8c7   : > { %v5530_v8 = vmul.f32 0.5, %v5052_v27  ;;  %v5322_v27 = vpop.f32.mrf.mxu0 }
 0x8c9   : > { %v14385_v47 = vadd.f32 %v5563_v42, %v5530_v8  ;;  %v5717_v8 = vsub.f32 %v14244_v16, %v5625_v10 }
 0x8cb   : > { %v5641_v63 = vsel %vm3986_vm8, %v14385_v47, -inf  ;;  %v5750_v42 = vmul.f32 1.442695, %v5717_v8 }
 0x8cc   : > { %5693 = vmax.xlane.f32.xlu2 %v5692_v52  ;;  %5642 = vmax.xlane.f32.xlu1 %v5641_v63  ;;  %v5571_v63 = vld [vmem:[#allocation2 + $0x178] sm:$0xff] }
 0x8cd   : > { %11113 = vpow2.f32 %v5750_v42  ;;  %v5724_v42 = vsub.f32 %v14258_v60, %v5646_v35 }
 0x8ce   : > { %v5205_v53 = vpop.f32.mrf.mxu1 }
 0x8cf   : > { %v5537_v32 = vmul.f32 0.5, %v5205_v53  ;;  %v5543_v53 = vmul.f32 0.5, %v5322_v27 }
 0x8d1   : > { %v14400_v24 = vadd.f32 %v5570_v13, %v5537_v32 }
 0x8d3   : > { %v14411_v13 = vpop.eup %11113 }
 0x8d4   : > { %5696 = vmax.xlane.f32.xlu2 %v5695_v55  ;;  %5813 = vadd.xlane.f32.xlu1 %v5812_v36  ;;  %v5662_v55 = vsel %vm3986_vm8, %v14400_v24, -inf  ;;  %v5576_v36 = vld [vmem:[#allocation2 + $0x1a0] sm:$0xff] }
 0x8d5   : > { %v14409_v32 = vadd.f32 %v5576_v36, %v5543_v53  ;;  %v5764_v53 = vmul.f32 1.442695, %v5724_v42 }
 0x8d6   : > { %v5208_v52 = vpop.f32.mrf.mxu1 }
 0x8d7   : > { %v5538_v14 = vmul.f32 0.5, %v5208_v52 }
 0x8d8   : > { %v5628_v38 = vpop.xlane.xlu1 %5627 }
 0x8d9   : > { %v5718_v16 = vsub.f32 %v14298_v41, %v5628_v38  ;;  %v14403_v10 = vadd.f32 %v5571_v63, %v5538_v14  ;;  %v5325_v38 = vpop.f32.mrf.mxu0  ;;  %v5815_v63 = vsel %vm3986_vm8, %v14411_v13, 0.0  ;;  %v5680_v14 = vsel %vm3986_vm8, %v14409_v32, -inf }
 0x8da   : > { %v5544_v52 = vmul.f32 0.5, %v5325_v38 }
 0x8db   : > { %v5752_v3 = vmul.f32 1.442695, %v5718_v16  ;;  %v5665_v8 = vsel %vm3986_vm8, %v14403_v10, -inf  ;;  %v5577_v16 = vld [vmem:[#allocation2 + $0x1a8] sm:$0xff] }
 0x8dc   : > { %5663 = vmax.xlane.f32.xlu2 %v5662_v55  ;;  %5666 = vmax.xlane.f32.xlu0 %v5665_v8  ;;  %v14422_v8 = vadd.f32 %v5577_v16, %v5544_v52  ;;  %v17566_v16 = vld [vmem:[#allocation92_spill] sm:$0xff] }
 0x8dd   : > { %11115 = vpow2.f32 %v5752_v3 }
 0x8de   : > { %v5361_v55 = vpop.f32.mrf.mxu1  ;;  %11117 = vpow2.f32 %v5764_v53  ;;  %v5683_v38 = vsel %vm3986_vm8, %v14422_v8, -inf  ;;  %v17567_v53 = vld [vmem:[#allocation90_spill] sm:$0xff] }
 0x8e0   : > { %v5631_v41 = vpop.xlane.xlu2 %5630 }
 0x8e3   : > { %v14414_v27 = vpop.eup %11115 }
 0x8e4   : > { %5816 = vadd.xlane.f32.xlu0 %v5815_v63  ;;  %5681 = vmax.xlane.f32.xlu2 %v5680_v14  ;;  %v5818_v3 = vsel %vm3986_vm8, %v14414_v27, 0.0  ;;  %v14427_v63 = vpop.eup %11117 }
 0x8e5   : > { %5819 = vadd.xlane.f32.xlu1 %v5818_v3  ;;  %v5836_v42 = vsel %vm3986_vm8, %v14427_v63, 0.0  ;;  %v5579_v3 = vld [vmem:[#allocation2 + $0x1b8] sm:$0xff] }
 0x8e6   : > { %v5364_v14 = vpop.f32.mrf.mxu1 }
 0x8e7   : > { %v5546_v52 = vmul.f32 0.5, %v5364_v14 }
 0x8e8   : > { %v5649_v60 = vpop.xlane.xlu2 %5648 }
 0x8e9   : > { %v5725_v35 = vsub.f32 %v14312_v62, %v5649_v60  ;;  %v10864_v60 = vpack.i.bf16 %v17567_v53, %v17566_v16 }
 0x8eb   : > { %v5766_v36 = vmul.f32 1.442695, %v5725_v35  ;;  %v14437_v35 = vadd.f32 %v5579_v3, %v5546_v52 }
 0x8ec   : > { %5684 = vmax.xlane.f32.xlu2 %v5683_v38  ;;  %v17568_v38 = vld [vmem:[#allocation96_spill] sm:$0xff] }
 0x8ed   : > { %11119 = vpow2.f32 %v5766_v36  ;;  %v5689_v36 = vsel %vm3986_vm8, %v14437_v35, -inf  ;;  %v10869_v14 = vpack.i.bf16 %v17569_v34, %v17568_v38 }
 0x8f3   : > { %v14429_v59 = vpop.eup %11119 }
 0x8f4   : > { %5837 = vadd.xlane.f32.xlu2 %v5836_v42  ;;  %v5839_v62 = vsel %vm3986_vm8, %v14429_v59, 0.0  ;;  %v5719_v42 = vsub.f32 %v14306_v39, %v5631_v41  ;;  %v5634_v16 = vpop.xlane.xlu0 %5633  ;;  %v5652_v39 = vpop.xlane.xlu1 %5651 }
 0x8f5   : > { %5840 = vadd.xlane.f32.xlu1 %v5839_v62  ;;  %v17570_v62 = vld [vmem:[#allocation100_spill] sm:$0xff]  ;;  %v5720_v52 = vsub.f32 %v14328_v9, %v5634_v16  ;;  %v5578_v9 = vld [vmem:[#allocation2 + $0x1b0] sm:$0xff] }
 0x8f6   : > { %v5754_v23 = vmul.f32 1.442695, %v5719_v42  ;;  %v10874_v37 = vpack.i.bf16 %v17571_v54, %v17570_v62 }
 0x8f7   : > { %v5756_v3 = vmul.f32 1.442695, %v5720_v52  ;;  %v5583_v52 = vld [vmem:[#allocation2 + $0x1d8] sm:$0xff] }
 0x8f8   : > { %10865 = vrot.lane.b32.xlu0 %v10864_v60, %s11446_s9  ;;  %11121 = vpow2.f32 %v5754_v23  ;;  %v5439_v60 = vpop.f32.mrf.mxu3  ;;  %v5726_v23 = vsub.f32 %v14316_v21, %v5652_v39 }
 0x8f9   : > { %11123 = vpow2.f32 %v5756_v3  ;;  %v5549_v50 = vmul.f32 0.5, %v5439_v60 }
 0x8fc   : > { %v5637_v41 = vpop.xlane.xlu2 %5636  ;;  %v5670_v54 = vpop.xlane.xlu0 %5669 }
 0x8fd   : > { %5690 = vmax.xlane.f32.xlu1 %v5689_v36  ;;  %v5721_v3 = vsub.f32 %v14336_v29, %v5637_v41  ;;  %v5732_v21 = vsub.f32 %v14334_v49, %v5670_v54 }
 0x8fe   : > { %v14450_v53 = vpop.eup %11121 }
 0x8ff   : > { %v5821_v34 = vsel %vm3986_vm8, %v14450_v53, 0.0  ;;  %v14454_v36 = vpop.eup %11123  ;;  %v5758_v19 = vmul.f32 1.442695, %v5721_v3  ;;  %v5780_v60 = vmul.f32 1.442695, %v5732_v21 }
 0x900   : > { %v5442_v38 = vpop.f32.mrf.mxu3 }
 0x901   : > { %v5550_v42 = vmul.f32 0.5, %v5442_v38 }
 0x903   : > { %v14462_v18 = vadd.f32 %v5583_v52, %v5550_v42 }
 0x904   : > { %v5655_v56 = vpop.xlane.xlu2 %5654  ;;  %v5673_v43 = vpop.xlane.xlu0 %5672 }
 0x905   : > { %v5658_v16 = vpop.xlane.xlu1 %5657  ;;  %v5701_v39 = vsel %vm3986_vm8, %v14462_v18, -inf  ;;  %v5727_v41 = vsub.f32 %v14346_v11, %v5655_v56  ;;  %v5733_v56 = vsub.f32 %v14344_v61, %v5673_v43 }
 0x906   : > { %v5728_v61 = vsub.f32 %v14348_v44, %v5658_v16  ;;  %v17572_v16 = vld [vmem:[#allocation118_spill] sm:$0xff] }
 0x907   : > { %v5770_v42 = vmul.f32 1.442695, %v5727_v41 }
 0x90c   : > { %10870 = vrot.lane.b32.xlu2 %v10869_v14, %s11446_s9  ;;  %v5545_v14 = vmul.f32 0.5, %v5361_v55 }
 0x90d   : > { %v5676_v38 = vpop.xlane.xlu1 %5675 }
 0x90e   : > { %v14459_v62 = vadd.f32 %v5578_v9, %v5545_v14 }
 0x910   : > { %v5686_v55 = vsel %vm3986_vm8, %v14459_v62, -inf }
 0x916   : > { %10875 = vrot.lane.b32.xlu1 %v10874_v37, %s11446_s9  ;;  %v5824_v37 = vsel %vm3986_vm8, %v14454_v36, 0.0 }
 0x922   : > { %5822 = vadd.xlane.f32.xlu0 %v5821_v34  ;;  %v5768_v34 = vmul.f32 1.442695, %v5726_v23 }
 0x924   : > { %11125 = vpow2.f32 %v5768_v34 }
 0x925   : > { %11127 = vpow2.f32 %v5758_v19 }
 0x926   : > { %11129 = vpow2.f32 %v5780_v60 }
 0x927   : > { %11131 = vpow2.f32 %v5770_v42 }
 0x92a   : > { %5825 = vadd.xlane.f32.xlu0 %v5824_v37  ;;  %v5582_v37 = vld [vmem:[#allocation2 + $0x1d0] sm:$0xff]  ;;  %v14472_v9 = vpop.eup %11125 }
 0x92b   : > { %v14469_v29 = vadd.f32 %v5582_v37, %v5549_v50  ;;  %v14477_v54 = vpop.eup %11127  ;;  %v14479_v50 = vpop.xlane.xlu0 %5660  ;;  %v5842_v19 = vsel %vm3986_vm8, %v14472_v9, 0.0  ;;  %v5734_v37 = vsub.f32 %v14358_v6, %v5676_v38  ;;  %v5772_v38 = vmul.f32 1.442695, %v5728_v61 }
 0x92c   : > { %v5827_v34 = vsel %vm3986_vm8, %v14477_v54, 0.0 }
 0x92d   : > { %v5698_v23 = vsel %vm3986_vm8, %v14469_v29, -inf  ;;  %v5784_v41 = vmul.f32 1.442695, %v5734_v37 }
 0x932   : > { %5687 = vmax.xlane.f32.xlu0 %v5686_v55  ;;  %v14486_v55 = vpop.eup %11129 }
 0x933   : > { %v14489_v21 = vpop.eup %11131  ;;  %v14494_v43 = vpop.xlane.xlu0 %5678 }
 0x935   : > { %5702 = vmax.xlane.f32.xlu2 %v5701_v39  ;;  %v5860_v39 = vsel %vm3986_vm8, %v14486_v55, 0.0 }
 0x937   : > { %v5640_v14 = vpop.xlane.xlu2 %5639 }
 0x938   : > { %v5722_v49 = vsub.f32 %v14378_v2, %v5640_v14  ;;  %v5782_v2 = vmul.f32 1.442695, %v5733_v56 }
 0x93a   : > { %5699 = vmax.xlane.f32.xlu0 %v5698_v23  ;;  %v5760_v11 = vmul.f32 1.442695, %v5722_v49  ;;  %v5845_v23 = vsel %vm3986_vm8, %v14489_v21, 0.0 }
 0x93c   : > { %11133 = vpow2.f32 %v5760_v11 }
 0x93d   : > { %5843 = vadd.xlane.f32.xlu2 %v5842_v19  ;;  %11135 = vpow2.f32 %v5782_v2  ;;  %v17573_v19 = vld [vmem:[#allocation110_spill] sm:$0xff] }
 0x93e   : > { %v10879_v56 = vpack.i.bf16 %v17573_v19, %v17572_v16 }
 0x93f   : > { %v5694_v52 = vpop.xlane.xlu2 %5693  ;;  %v5643_v3 = vpop.xlane.xlu1 %5642 }
 0x940   : > { %5828 = vadd.xlane.f32.xlu1 %v5827_v34  ;;  %v5723_v42 = vsub.f32 %v14385_v47, %v5643_v3  ;;  %v5740_v34 = vsub.f32 %v14383_v5, %v5694_v52 }
 0x942   : > { %v14500_v6 = vpop.eup %11133  ;;  %v5762_v2 = vmul.f32 1.442695, %v5723_v42 }
 0x943   : > { %v14503_v49 = vpop.eup %11135  ;;  %v5830_v44 = vsel %vm3986_vm8, %v14500_v6, 0.0 }
 0x944   : > { %v5863_v3 = vsel %vm3986_vm8, %v14503_v49, 0.0 }
 0x945   : > { %5861 = vadd.xlane.f32.xlu2 %v5860_v39 }
 0x947   : > { %v14496_v60 = vpop.xlane.xlu2 %5696  ;;  %v5814_v14 = vpop.xlane.xlu1 %5813 }
 0x948   : > { %11137 = vrcp.f32 %v5814_v14  ;;  %5846 = vadd.xlane.f32.xlu1 %v5845_v23 }
 0x949   : > { %11139 = vpow2.f32 %v5784_v41  ;;  %v5796_v41 = vmul.f32 1.442695, %v5740_v34  ;;  %v17575_v34 = vld [vmem:[#allocation120_spill] sm:$0xff] }
 0x94a   : > { %11141 = vpow2.f32 %v5772_v38 }
 0x94b   : > { %11143 = vpow2.f32 %v5762_v2 }
 0x94c   : > { %11145 = vpow2.f32 %v5796_v41 }
 0x94d   : > { %5831 = vadd.xlane.f32.xlu2 %v5830_v44 }
 0x94e   : > { %v11138_v11 = vpop.eup %11137  ;;  %10880 = vrot.lane.b32.xlu0 %v10879_v56, %s11446_s9  ;;  %v5478_v56 = vpop.f32.mrf.mxu0 }
 0x94f   : > { %v5940_v37 = vmul.f32 %v11138_v11, %v14393_v58  ;;  %v5664_v39 = vpop.xlane.xlu2 %5663  ;;  %v14512_v47 = vpop.xlane.xlu0 %5666  ;;  %v17574_v58 = vld [vmem:[#allocation114_spill] sm:$0xff] }
 0x950   : > { %5864 = vadd.xlane.f32.xlu1 %v5863_v3  ;;  %v14516_v61 = vpop.eup %11139  ;;  %v10889_v52 = vpack.i.bf16 %v17574_v58, %v13415_v17 }
 0x951   : > { %10439 = vmatmul.msk.f32.vlgmr.msra.gmra.mxu2 %vm3986_vm8, %v5940_v37  ;;  %v14519_v14 = vpop.eup %11141  ;;  %v5866_v5 = vsel %vm3986_vm8, %v14516_v61, 0.0  ;;  %v5551_v37 = vmul.f32 0.5, %v5478_v56 }
 0x952   : > { %v5848_v42 = vsel %vm3986_vm8, %v14519_v14, 0.0  ;;  %v14530_v16 = vpop.eup %11143 }
 0x953   : > { %v14532_v19 = vpop.eup %11145  ;;  %v5833_v17 = vsel %vm3986_vm8, %v14530_v16, 0.0 }
 0x954   : > { %v5884_v41 = vsel %vm3986_vm8, %v14532_v19, 0.0 }
 0x955   : > { %5867 = vadd.xlane.f32.xlu2 %v5866_v5 }
 0x956   : > { %10890 = vrot.lane.b32.xlu0 %v10889_v52, %s11446_s9  ;;  %v5584_v52 = vld [vmem:[#allocation2 + $0x1e0] sm:$0xff] }
 0x957   : > { %v5817_v23 = vpop.xlane.xlu0 %5816  ;;  %v14526_v38 = vpop.xlane.xlu2 %5681 }
 0x958   : > { %11147 = vrcp.f32 %v5817_v23  ;;  %5849 = vadd.xlane.f32.xlu1 %v5848_v42  ;;  %v5820_v44 = vpop.xlane.xlu1 %5819  ;;  %v14546_v23 = vadd.f32 %v5584_v52, %v5551_v37  ;;  %v5517_v42 = vpop.f32.mrf.mxu1 }
 0x959   : > { %11149 = vrcp.f32 %v5820_v44  ;;  %v5730_v44 = vsub.f32 %v14400_v24, %v5664_v39  ;;  %v5553_v56 = vmul.f32 0.5, %v5517_v42 }
 0x95d   : > { %5834 = vadd.xlane.f32.xlu2 %v5833_v17 }
 0x95e   : > { %v11148_v11 = vpop.eup %11147  ;;  %10895 = vrot.lane.b32.xlu0 %v17575_v34, %s11446_s9  ;;  %v5704_v34 = vsel %vm3986_vm8, %v14546_v23, -inf }
 0x95f   : > { %v11150_v2 = vpop.eup %11149  ;;  %v14538_v3 = vpop.xlane.xlu2 %5684  ;;  %v5941_v5 = vmul.f32 %v11148_v11, %v14411_v13  ;;  %v5776_v13 = vmul.f32 1.442695, %v5730_v44  ;;  %v14551_v11 = vadd.f32 %v5586_v1, %v5553_v56  ;;  %v17576_v44 = vld [vmem:[#allocation107_spill] sm:$0xff] }
 0x960   : > { %v5942_v58 = vmul.f32 %v11150_v2, %v14414_v27  ;;  %5885 = vadd.xlane.f32.xlu1 %v5884_v41  ;;  %v17577_v56 = vld [vmem:[#allocation103_spill] sm:$0xff] }
 0x961   : > { %10440 = vmatmul.msk.f32.gmra.mxu2 %vm3986_vm8, %v5941_v5 }
 0x962   : > { %10441 = vmatmul.msk.f32.vlgmr.msra.gmra.mxu3 %vm3986_vm8, %v5942_v58  ;;  %v5710_v58 = vsel %vm3986_vm8, %v14551_v11, -inf }
 0x967   : > { %v5838_v17 = vpop.xlane.xlu2 %5837 }
 0x968   : > { %11151 = vrcp.f32 %v5838_v17  ;;  %5705 = vmax.xlane.f32.xlu1 %v5704_v34  ;;  %v5841_v2 = vpop.xlane.xlu1 %5840  ;;  %v10884_v17 = vpack.i.bf16 %v17577_v56, %v17576_v44  ;;  %v5585_v44 = vld [vmem:[#allocation2 + $0x1e8] sm:$0xff] }
 0x969   : > { %11153 = vpow2.f32 %v5776_v13 }
 0x96a   : > { %v10866_v27 = vpop.permute.xlu0 %10865  ;;  %11155 = vrcp.f32 %v5841_v2 }
 0x96b   : > { %v10867_v41 = vunpack.i.l.bf16 %v10866_v27  ;;  %v10868_v37 = vunpack.i.h.bf16 %v10866_v27 }
 0x96d   : > { %6243 = vmatpush.msrb.mxu1 %v10867_v41  ;;  %v5736_v41 = vsub.f32 %v14409_v32, %v14526_v38  ;;  %v5481_v32 = vpop.f32.mrf.mxu0 }
 0x96e   : > { %v11152_v5 = vpop.eup %11151  ;;  %v5552_v38 = vmul.f32 0.5, %v5481_v32  ;;  %v5731_v32 = vsub.f32 %v14403_v10, %v14512_v47 }
 0x96f   : > { %v5948_v24 = vmul.f32 %v11152_v5, %v14427_v63  ;;  %6244 = vmatpush.msrb.mxu1 %v10868_v37  ;;  %v10871_v39 = vpop.permute.xlu2 %10870  ;;  %v14557_v42 = vpop.eup %11153  ;;  %v5735_v63 = vsub.f32 %v14368_v0, %v14494_v43  ;;  %v5788_v5 = vmul.f32 1.442695, %v5736_v41 }
 0x970   : > { %v10872_v52 = vunpack.i.l.bf16 %v10871_v39  ;;  %5711 = vmax.xlane.f32.xlu1 %v5710_v58  ;;  %v10873_v1 = vunpack.i.h.bf16 %v10871_v39  ;;  %v11156_v34 = vpop.eup %11155  ;;  %v5854_v13 = vsel %vm3986_vm8, %v14557_v42, 0.0  ;;  %v5691_v37 = vpop.xlane.xlu1 %5690  ;;  %v14578_v56 = vadd.f32 %v5585_v44, %v5552_v38 }
 0x971   : > { %10447 = vmatmul.msk.f32.vlgmr.msrb.gmra.mxu2 %vm3986_vm8, %v5948_v24  ;;  %v5949_v27 = vmul.f32 %v11156_v34, %v14429_v59  ;;  %v5786_v2 = vmul.f32 1.442695, %v5735_v63  ;;  %v5729_v63 = vsub.f32 %v14360_v28, %v14479_v50  ;;  %v5741_v28 = vsub.f32 %v14391_v31, %v14496_v60 }
 0x972   : > { %6278 = vmatpush.msra.mxu2 %v10872_v52  ;;  %v5739_v31 = vsub.f32 %v14437_v35, %v5691_v37 }
 0x973   : > { %11157 = vpow2.f32 %v5786_v2  ;;  %v5707_v2 = vsel %vm3986_vm8, %v14578_v56, -inf }
 0x974   : > { %6279 = vmatpush.msra.mxu2 %v10873_v1  ;;  %11159 = vpow2.f32 %v5788_v5  ;;  %v5587_v5 = vld [vmem:[#allocation2 + $0x1f8] sm:$0xff] }
 0x975   : > { %10885 = vrot.lane.b32.xlu2 %v10884_v17, %s11446_s9  ;;  %v5520_v17 = vpop.f32.mrf.mxu1 }
 0x978   : > { %5855 = vadd.xlane.f32.xlu1 %v5854_v13  ;;  %v5554_v13 = vmul.f32 0.5, %v5520_v17 }
 0x979   : > { %10448 = vmatmul.msk.f32.gmra.mxu2 %vm3986_vm8, %v5949_v27  ;;  %v14570_v24 = vpop.eup %11157 }
 0x97a   : > { %v5869_v0 = vsel %vm3986_vm8, %v14570_v24, 0.0  ;;  %v14574_v58 = vpop.eup %11159 }
 0x97b   : > { %v5872_v52 = vsel %vm3986_vm8, %v14574_v58, 0.0 }
 0x988   : > { %v10876_v43 = vpop.permute.xlu1 %10875  ;;  %5870 = vadd.xlane.f32.xlu0 %v5869_v0  ;;  %v5774_v0 = vmul.f32 1.442695, %v5729_v63 }
 0x989   : > { %v10877_v39 = vunpack.i.l.bf16 %v10876_v43  ;;  %v10878_v59 = vunpack.i.h.bf16 %v10876_v43  ;;  %v14586_v43 = vadd.f32 %v5587_v5, %v5554_v13  ;;  %v5794_v13 = vmul.f32 1.442695, %v5739_v31 }
 0x98b   : > { %6313 = vmatpush.msra.mxu3 %v10877_v39 }
 0x98d   : > { %6314 = vmatpush.msra.mxu3 %v10878_v59 }
 0x990   : > { %5873 = vadd.xlane.f32.xlu0 %v5872_v52  ;;  %v5713_v52 = vsel %vm3986_vm8, %v14586_v43, -inf }
 0x995   : > { %v5823_v1 = vpop.xlane.xlu0 %5822 }
 0x996   : > { %11161 = vrcp.f32 %v5823_v1 }
 0x99c   : > { %v11162_v34 = vpop.eup %11161 }
 0x99d   : > { %v5826_v27 = vpop.xlane.xlu0 %5825  ;;  %v5943_v41 = vmul.f32 %v11162_v34, %v14450_v53  ;;  %v5798_v53 = vmul.f32 1.442695, %v5741_v28 }
 0x99e   : > { %11163 = vrcp.f32 %v5826_v27  ;;  %5708 = vmax.xlane.f32.xlu2 %v5707_v2 }
 0x99f   : > { %10442 = vmatmul.msk.f32.gmra.mxu3 %vm3986_vm8, %v5943_v41  ;;  %11165 = vpow2.f32 %v5774_v0 }
 0x9a0   : > { %11167 = vpow2.f32 %v5798_v53 }
 0x9a4   : > { %v11164_v39 = vpop.eup %11163 }
 0x9a5   : > { %v5944_v50 = vmul.f32 %v11164_v39, %v14454_v36  ;;  %v5688_v59 = vpop.xlane.xlu0 %5687  ;;  %v14597_v44 = vpop.eup %11165  ;;  %v5778_v36 = vmul.f32 1.442695, %v5731_v32 }
 0x9a6   : > { %5714 = vmax.xlane.f32.xlu2 %v5713_v52  ;;  %v5851_v34 = vsel %vm3986_vm8, %v14597_v44, 0.0  ;;  %v14605_v35 = vpop.eup %11167  ;;  %v5738_v0 = vsub.f32 %v14459_v62, %v5688_v59 }
 0x9a7   : > { %10443 = vmatmul.msk.f32.vlgmr.msrb.gmra.mxu0 %vm3986_vm8, %v5944_v50  ;;  %v5887_v41 = vsel %vm3986_vm8, %v14605_v35, 0.0 }
 0x9a8   : > { %v5703_v38 = vpop.xlane.xlu2 %5702 }
 0x9a9   : > { %v5743_v1 = vsub.f32 %v14462_v18, %v5703_v38  ;;  %v5737_v18 = vsub.f32 %v14422_v8, %v14538_v3 }
 0x9ab   : > { %v5802_v60 = vmul.f32 1.442695, %v5743_v1  ;;  %v5790_v2 = vmul.f32 1.442695, %v5737_v18  ;;  %v5792_v1 = vmul.f32 1.442695, %v5738_v0 }
 0x9ad   : > { %11169 = vpow2.f32 %v5802_v60  ;;  %v5700_v17 = vpop.xlane.xlu0 %5699 }
 0x9ae   : > { %v5742_v63 = vsub.f32 %v14469_v29, %v5700_v17  ;;  %5852 = vadd.xlane.f32.xlu2 %v5851_v34  ;;  %11171 = vpow2.f32 %v5778_v36 }
 0x9b0   : > { %v5800_v10 = vmul.f32 1.442695, %v5742_v63  ;;  %v5844_v47 = vpop.xlane.xlu2 %5843 }
 0x9b1   : > { %11173 = vrcp.f32 %v5844_v47 }
 0x9b2   : > { %11175 = vpow2.f32 %v5800_v10 }
 0x9b3   : > { %v14607_v37 = vpop.eup %11169  ;;  %11177 = vpow2.f32 %v5794_v13  ;;  %v5829_v27 = vpop.xlane.xlu1 %5828 }
 0x9b4   : > { %11179 = vrcp.f32 %v5829_v27  ;;  %v5893_v29 = vsel %vm3986_vm8, %v14607_v37, 0.0  ;;  %v14613_v8 = vpop.eup %11171 }
 0x9b5   : > { %5894 = vadd.xlane.f32.xlu0 %v5893_v29  ;;  %11181 = vpow2.f32 %v5790_v2 }
 0x9b6   : > { %5888 = vadd.xlane.f32.xlu2 %v5887_v41 }
 0x9b7   : > { %v11174_v3 = vpop.eup %11173 }
 0x9b8   : > { %v14615_v5 = vpop.eup %11175  ;;  %v5950_v39 = vmul.f32 %v11174_v3, %v14472_v9  ;;  %v5862_v28 = vpop.xlane.xlu2 %5861  ;;  %v5857_v9 = vsel %vm3986_vm8, %v14613_v8, 0.0 }
 0x9b9   : > { %v14619_v50 = vpop.eup %11177  ;;  %11183 = vrcp.f32 %v5862_v28  ;;  %v5890_v52 = vsel %vm3986_vm8, %v14615_v5, 0.0 }
 0x9ba   : > { %v11180_v53 = vpop.eup %11179  ;;  %10449 = vmatmul.msk.f32.vlgmr.msrb.gmra.mxu3 %vm3986_vm8, %v5950_v39  ;;  %5891 = vadd.xlane.f32.xlu1 %v5890_v52  ;;  %v5881_v62 = vsel %vm3986_vm8, %v14619_v50, 0.0 }
 0x9bb   : > { %v5847_v32 = vpop.xlane.xlu1 %5846  ;;  %v5945_v38 = vmul.f32 %v11180_v53, %v14477_v54  ;;  %v14630_v59 = vpop.eup %11181 }
 0x9bc   : > { %11185 = vrcp.f32 %v5847_v32  ;;  %v5875_v34 = vsel %vm3986_vm8, %v14630_v59, 0.0 }
 0x9bd   : > { %10444 = vmatmul.msk.f32.gmra.mxu0 %vm3986_vm8, %v5945_v38  ;;  %5882 = vadd.xlane.f32.xlu0 %v5881_v62  ;;  %11187 = vpow2.f32 %v5792_v1 }
 0x9be   : > { %5858 = vadd.xlane.f32.xlu2 %v5857_v9 }
 0x9bf   : > { %v11184_v31 = vpop.eup %11183 }
 0x9c0   : > { %v5956_v60 = vmul.f32 %v11184_v31, %v14486_v55  ;;  %v10881_v36 = vpop.permute.xlu0 %10880  ;;  %v5832_v54 = vpop.xlane.xlu2 %5831  ;;  %v198_v55 = vld [vmem:[%s17121_s2 + $0xe0] sm:$0xff] }
 0x9c1   : > { %v10882_v17 = vunpack.i.l.bf16 %v10881_v36  ;;  %11189 = vrcp.f32 %v5832_v54  ;;  %v10883_v13 = vunpack.i.h.bf16 %v10881_v36  ;;  %v17578_v36 = vld [vmem:[#allocation31_spill] sm:$0xff]  ;;  %v17579_v54 = vld [vmem:[#allocation76_spill] sm:$0xff] }
 0x9c2   : > { %v11186_v63 = vpop.eup %11185  ;;  %10455 = vmatmul.msk.f32.vlgmr.msra.gmra.mxu2 %vm3986_vm8, %v5956_v60  ;;  %5876 = vadd.xlane.f32.xlu1 %v5875_v34 }
 0x9c3   : > { %v5865_v18 = vpop.xlane.xlu1 %5864  ;;  %6418 = vmatpush.msrb.mxu2 %v10882_v17  ;;  %v5951_v10 = vmul.f32 %v11186_v63, %v14489_v21  ;;  %v14641_v47 = vpop.eup %11187  ;;  %v1397_v17 = vadd.f32 %v17579_v54, %v17578_v36 }
 0x9c4   : > { %11191 = vrcp.f32 %v5865_v18  ;;  %v5878_v21 = vsel %vm3986_vm8, %v14641_v47, 0.0 }
 0x9c5   : > { %10450 = vmatmul.msk.f32.gmra.mxu3 %vm3986_vm8, %v5951_v10  ;;  %6419 = vmatpush.msrb.mxu2 %v10883_v13 }
 0x9c7   : > { %6803 = vmatpush.msra.mxu2 %v198_v55  ;;  %v11190_v27 = vpop.eup %11189 }
 0x9c8   : > { %v5946_v2 = vmul.f32 %v11190_v27, %v14500_v6  ;;  %v10891_v29 = vpop.permute.xlu0 %10890  ;;  %v5868_v41 = vpop.xlane.xlu2 %5867  ;;  %v17580_v27 = vld [vmem:[#allocation5_spill] sm:$0xff] }
 0x9c9   : > { %v10892_v3 = vunpack.i.l.bf16 %v10891_v29  ;;  %11193 = vrcp.f32 %v5868_v41  ;;  %v10893_v39 = vunpack.i.h.bf16 %v10891_v29  ;;  %v10899_v29 = vpack.i.bf16 %v13507_v51, %v17488_v46 }
 0x9ca   : > { %v11192_v0 = vpop.eup %11191  ;;  %10445 = vmatmul.msk.f32.vlgmr.msra.gmra.mxu1 %vm3986_vm8, %v5946_v2  ;;  %5879 = vadd.xlane.f32.xlu1 %v5878_v21  ;;  %v1399_v2 = vadd.f32 %v1397_v17, %v17580_v27 }
 0x9cb   : > { %v5850_v28 = vpop.xlane.xlu1 %5849  ;;  %6383 = vmatpush.msra.mxu1 %v10892_v3  ;;  %v5957_v52 = vmul.f32 %v11192_v0, %v14503_v49 }
 0x9cc   : > { %11195 = vrcp.f32 %v5850_v28 }
 0x9cd   : > { %10456 = vmatmul.msk.f32.gmra.mxu2 %vm3986_vm8, %v5957_v52  ;;  %6384 = vmatpush.msra.mxu1 %v10893_v39 }
 0x9cf   : > { %v11194_v6 = vpop.eup %11193 }
 0x9d0   : > { %v5958_v53 = vmul.f32 %v11194_v6, %v14516_v61  ;;  %v10896_v32 = vpop.permute.xlu0 %10895  ;;  %v5835_v38 = vpop.xlane.xlu2 %5834 }
 0x9d1   : > { %v10897_v1 = vunpack.i.l.bf16 %v10896_v32  ;;  %11197 = vrcp.f32 %v5835_v38  ;;  %v10898_v31 = vunpack.i.h.bf16 %v10896_v32  ;;  %v200_v32 = vld [vmem:[%s17121_s2 + $0xf0] sm:$0xff] }
 0x9d2   : > { %v11196_v62 = vpop.eup %11195  ;;  %10457 = vmatmul.msk.f32.vlgmr.msra.gmra.mxu3 %vm3986_vm8, %v5958_v53 }
 0x9d3   : > { %v5952_v9 = vmul.f32 %v11196_v62, %v14519_v14  ;;  %v5886_v60 = vpop.xlane.xlu1 %5885  ;;  %6453 = vmatpush.msrb.mxu3 %v10897_v1 }
 0x9d4   : > { %11199 = vrcp.f32 %v5886_v60  ;;  %v6001_v49 = vpop.f32.mrf.mxu2 }
 0x9d5   : > { %10451 = vmatmul.msk.f32.vlgmr.msra.gmra.mxu0 %vm3986_vm8, %v5952_v9  ;;  %6454 = vmatpush.msrb.mxu3 %v10898_v31 }
 0x9d6   : > { %6564 = vrot.lane.b32.xlu2 %v6001_v49, %s11447_s11 }
 0x9d7   : > { %v11198_v61 = vpop.eup %11197  ;;  %7848 = vmatpush.msra.mxu3 %v200_v32 }
 0x9d8   : > { %v10886_v34 = vpop.permute.xlu2 %10885  ;;  %v5947_v63 = vmul.f32 %v11198_v61, %v14530_v16 }
 0x9d9   : > { %v10887_v13 = vunpack.i.l.bf16 %v10886_v34  ;;  %v10888_v10 = vunpack.i.h.bf16 %v10886_v34 }
 0x9da   : > { %v11200_v14 = vpop.eup %11199  ;;  %10446 = vmatmul.msk.f32.gmra.mxu1 %vm3986_vm8, %v5947_v63 }
 0x9db   : > { %v5964_v18 = vmul.f32 %v11200_v14, %v14532_v19  ;;  %6348 = vmatpush.msrb.mxu0 %v10887_v13  ;;  %v5706_v55 = vpop.xlane.xlu1 %5705  ;;  %v17581_v14 = vld [vmem:[#allocation32_spill] sm:$0xff] }
 0x9dc   : > { %v5744_v0 = vsub.f32 %v14546_v23, %v5706_v55 }
 0x9dd   : > { %6349 = vmatpush.msrb.mxu0 %v10888_v10  ;;  %10463 = vmatmul.msk.f32.vlgmr.msrb.gmra.mxu2 %vm3986_vm8, %v5964_v18  ;;  %v17582_v18 = vld [vmem:[#allocation126_spill] sm:$0xff] }
 0x9de   : > { %10699 = vmatpush.msk.msrb.mxu2 %vm232_vm0, %v1399_v2  ;;  %10900 = vrot.lane.b32.xlu2 %v10899_v29, %s11446_s9  ;;  %v5804_v39 = vmul.f32 1.442695, %v5744_v0  ;;  %v1398_v10 = vadd.f32 %v17582_v18, %v17581_v14  ;;  %v17583_v2 = vld [vmem:[#allocation6_spill] sm:$0xff] }
 0x9e0   : > { %v1400_v29 = vadd.f32 %v1398_v10, %v17583_v2 }
 0x9e3   : > { %v14665_v16 = vpop.xlane.xlu1 %5711 }
 0x9e4   : > { %v6004_v41 = vpop.f32.mrf.mxu2 }
 0x9e5   : > { %v6036_v3 = vpop.f32.mrf.mxu3  ;;  %6566 = vrot.lane.b32.xlu1 %v6004_v41, %s11447_s11 }
 0x9e6   : > { %6568 = vrot.lane.b32.xlu2 %v6036_v3, %s11447_s11 }
 0x9eb   : > { %v5856_v19 = vpop.xlane.xlu1 %5855 }
 0x9ec   : > { %11201 = vrcp.f32 %v5856_v19 }
 0x9f2   : > { %v11202_v21 = vpop.eup %11201 }
 0x9f3   : > { %v5954_v51 = vmul.f32 %v11202_v21, %v14557_v42 }
 0x9f4   : > { %v6141_v36 = vpop.f32.mrf.mxu2 }
 0x9f5   : > { %10453 = vmatmul.msk.f32.vlgmr.msrb.gmra.mxu1 %vm3986_vm8, %v5954_v51 }
 0x9fb   : > { %v5871_v46 = vpop.xlane.xlu0 %5870 }
 0x9fc   : > { %11203 = vrcp.f32 %v5871_v46 }
 0x9fd   : > { %11205 = vpow2.f32 %v5804_v39 }
 0xa02   : > { %v11204_v28 = vpop.eup %11203 }
 0xa03   : > { %v5959_v52 = vmul.f32 %v11204_v28, %v14570_v24  ;;  %v14674_v6 = vpop.eup %11205  ;;  %v5874_v1 = vpop.xlane.xlu0 %5873 }
 0xa04   : > { %v5896_v53 = vsel %vm3986_vm8, %v14674_v6, 0.0 }
 0xa05   : > { %10458 = vmatmul.msk.f32.gmra.mxu3 %vm3986_vm8, %v5959_v52 }
 0xa0f   : > { %5897 = vadd.xlane.f32.xlu1 %v5896_v53 }
 0xa11   : > { %v14678_v42 = vpop.xlane.xlu2 %5708 }
 0xa19   : > { %v14683_v23 = vpop.xlane.xlu2 %5714 }
 0xa21   : > { %v5853_v38 = vpop.xlane.xlu2 %5852 }
 0xa22   : > { %11207 = vrcp.f32 %v5853_v38  ;;  %v6039_v24 = vpop.f32.mrf.mxu3  ;;  %v6144_v38 = vpop.f32.mrf.mxu2 }
 0xa23   : > { %6570 = vrot.lane.b32.xlu0 %v6039_v24, %s11447_s11  ;;  %11209 = vrcp.f32 %v5874_v1  ;;  %v5745_v24 = vsub.f32 %v14578_v56, %v14678_v42 }
 0xa24   : > { %v6071_v62 = vpop.f32.mrf.mxu0 }
 0xa25   : > { %v5806_v1 = vmul.f32 1.442695, %v5745_v24 }
 0xa28   : > { %v11208_v9 = vpop.eup %11207  ;;  %6572 = vrot.lane.b32.xlu1 %v6071_v62, %s11447_s11  ;;  %v5895_v34 = vpop.xlane.xlu0 %5894 }
 0xa29   : > { %v5889_v31 = vpop.xlane.xlu2 %5888  ;;  %v5953_v60 = vmul.f32 %v11208_v9, %v14597_v44  ;;  %v11210_v61 = vpop.eup %11209 }
 0xa2a   : > { %11211 = vrcp.f32 %v5889_v31  ;;  %v5960_v17 = vmul.f32 %v11210_v61, %v14574_v58 }
 0xa2b   : > { %10452 = vmatmul.msk.f32.gmra.mxu0 %vm3986_vm8, %v5953_v60 }
 0xa2d   : > { %v5892_v49 = vpop.xlane.xlu1 %5891 }
 0xa2e   : > { %11213 = vrcp.f32 %v5892_v49  ;;  %v5746_v49 = vsub.f32 %v14551_v11, %v14665_v16 }
 0xa30   : > { %v11212_v54 = vpop.eup %11211  ;;  %6580 = vrot.lane.b32.xlu1 %v6141_v36, %s11447_s11  ;;  %v5808_v61 = vmul.f32 1.442695, %v5746_v49 }
 0xa31   : > { %v5859_v63 = vpop.xlane.xlu2 %5858  ;;  %v5965_v13 = vmul.f32 %v11212_v54, %v14605_v35 }
 0xa32   : > { %11215 = vrcp.f32 %v5859_v63 }
 0xa33   : > { %10459 = vmatmul.msk.f32.vlgmr.msrb.gmra.mxu0 %vm3986_vm8, %v5960_v17  ;;  %10464 = vmatmul.msk.f32.gmra.mxu2 %vm3986_vm8, %v5965_v13  ;;  %11217 = vrcp.f32 %v5895_v34  ;;  %v17584_v17 = vld [vmem:[#allocation130_spill] sm:$0xff] }
 0xa34   : > { %v11214_v44 = vpop.eup %11213 }
 0xa35   : > { %v5966_v55 = vmul.f32 %v11214_v44, %v14615_v5  ;;  %v5877_v27 = vpop.xlane.xlu1 %5876 }
 0xa36   : > { %11219 = vrcp.f32 %v5877_v27 }
 0xa37   : > { %10465 = vmatmul.msk.f32.vlgmr.msrb.gmra.mxu3 %vm3986_vm8, %v5966_v55 }
 0xa38   : > { %v11216_v58 = vpop.eup %11215  ;;  %10702 = vmatpush.msk.msrb.mxu3 %vm232_vm0, %v1400_v29 }
 0xa39   : > { %v6565_v35 = vpop.permute.xlu2 %6564  ;;  %v5955_v41 = vmul.f32 %v11216_v58, %v14613_v8  ;;  %v11218_v3 = vpop.eup %11217 }
 0xa3a   : > { %v6660_v19 = vsel %vm338_vm7, %v14166_v33, %v6565_v35  ;;  %v6074_v21 = vpop.f32.mrf.mxu0  ;;  %v5967_v0 = vmul.f32 %v11218_v3, %v14607_v37  ;;  %v5883_v8 = vpop.xlane.xlu0 %5882 }
 0xa3b   : > { %6574 = vrot.lane.b32.xlu2 %v6074_v21, %s11447_s11  ;;  %10454 = vmatmul.msk.f32.gmra.mxu1 %vm3986_vm8, %v5955_v41 }
 0xa3c   : > { %v11220_v5 = vpop.eup %11219  ;;  %10471 = vmatmul.msk.f32.vlgmr.msra.gmra.mxu2 %vm2310_vm15, %v6660_v19 }
 0xa3d   : > { %v5880_v51 = vpop.xlane.xlu1 %5879  ;;  %v5961_v46 = vmul.f32 %v11220_v5, %v14630_v59  ;;  %v6176_v54 = vpop.f32.mrf.mxu3 }
 0xa3e   : > { %11221 = vrcp.f32 %v5880_v51 }
 0xa3f   : > { %10460 = vmatmul.msk.f32.gmra.mxu0 %vm3986_vm8, %v5961_v46  ;;  %10466 = vmatmul.msk.f32.gmra.mxu3 %vm3986_vm8, %v5967_v0  ;;  %11223 = vrcp.f32 %v5883_v8 }
 0xa40   : > { %11225 = vpow2.f32 %v5806_v1 }
 0xa41   : > { %v10901_v33 = vpop.permute.xlu2 %10900 }
 0xa42   : > { %v10902_v39 = vunpack.i.l.bf16 %v10901_v33  ;;  %v10903_v52 = vunpack.i.h.bf16 %v10901_v33 }
 0xa44   : > { %v11222_v28 = vpop.eup %11221  ;;  %6488 = vmatpush.msra.mxu0 %v10902_v39 }
 0xa45   : > { %v5962_v53 = vmul.f32 %v11222_v28, %v14641_v47  ;;  %v11224_v37 = vpop.eup %11223  ;;  %v6281_v63 = vpop.f32.mrf.mxu2 }
 0xa46   : > { %6489 = vmatpush.msra.mxu0 %v10903_v52  ;;  %v5963_v59 = vmul.f32 %v11224_v37, %v14619_v50  ;;  %v14722_v31 = vpop.eup %11225 }
 0xa47   : > { %v6106_v32 = vpop.f32.mrf.mxu1  ;;  %10461 = vmatmul.msk.f32.vlgmr.msra.gmra.mxu1 %vm3986_vm8, %v5962_v53  ;;  %v5899_v56 = vsel %vm3986_vm8, %v14722_v31, 0.0 }
 0xa48   : > { %6576 = vrot.lane.b32.xlu1 %v6106_v32, %s11447_s11  ;;  %v6179_v16 = vpop.f32.mrf.mxu3 }
 0xa49   : > { %v6569_v50 = vpop.permute.xlu2 %6568 }
 0xa4a   : > { %v6662_v60 = vsel %vm338_vm7, %v14219_v15, %v6569_v50 }
 0xa4f   : > { %10462 = vmatmul.msk.f32.gmra.mxu1 %vm3986_vm8, %v5963_v59  ;;  %v17585_v59 = vld [vmem:[#allocation27_spill] sm:$0xff] }
 0xa50   : > { %6582 = vrot.lane.b32.xlu1 %v6144_v38, %s11447_s11  ;;  %v6284_v18 = vpop.f32.mrf.mxu2 }
 0xa52   : > { %v6211_v14 = vpop.f32.mrf.mxu0 }
 0xa55   : > { %v6316_v58 = vpop.f32.mrf.mxu3 }
 0xa57   : > { %v6109_v62 = vpop.f32.mrf.mxu1  ;;  %v6567_v47 = vpop.permute.xlu1 %6566 }
 0xa58   : > { %v6661_v9 = vsel %vm338_vm7, %v14172_v4, %v6567_v47  ;;  %6578 = vrot.lane.b32.xlu0 %v6109_v62, %s11447_s11  ;;  %v5747_v4 = vsub.f32 %v14586_v43, %v14683_v23 }
 0xa59   : > { %10472 = vmatmul.msk.f32.gmra.mxu2 %vm2310_vm15, %v6661_v9  ;;  %v17587_v9 = vld [vmem:[#allocation29_spill] sm:$0xff] }
 0xa5a   : > { %v5810_v42 = vmul.f32 1.442695, %v5747_v4 }
 0xa5c   : > { %11227 = vpow2.f32 %v5810_v42 }
 0xa5d   : > { %11229 = vpow2.f32 %v5808_v61 }
 0xa60   : > { %v6421_v55 = vpop.f32.mrf.mxu2 }
 0xa61   : > { %10473 = vmatmul.msk.f32.gmra.mxu2 %vm2310_vm15, %v6662_v60 }
 0xa62   : > { %v14733_v36 = vpop.eup %11227 }
 0xa63   : > { %v5905_v15 = vsel %vm3986_vm8, %v14733_v36, 0.0  ;;  %v14739_v34 = vpop.eup %11229 }
 0xa64   : > { %5900 = vadd.xlane.f32.xlu2 %v5899_v56  ;;  %v5902_v43 = vsel %vm3986_vm8, %v14739_v34, 0.0  ;;  %v17589_v56 = vld [vmem:[#allocation33_spill] sm:$0xff] }
 0xa7a   : > { %5906 = vadd.xlane.f32.xlu1 %v5905_v15 }
 0xa7c   : > { %10905 = vrot.lane.b32.xlu2 %v17584_v17, %s11446_s9 }
 0xa82   : > { %5903 = vadd.xlane.f32.xlu0 %v5902_v43  ;;  %v5898_v11 = vpop.xlane.xlu1 %5897 }
 0xa83   : > { %11231 = vrcp.f32 %v5898_v11 }
 0xa84   : > { %6586 = vrot.lane.b32.xlu2 %v6179_v16, %s11447_s11 }
 0xa88   : > { %v6319_v41 = vpop.f32.mrf.mxu3 }
 0xa89   : > { %v11232_v23 = vpop.eup %11231 }
 0xa8a   : > { %v5968_v13 = vmul.f32 %v11232_v23, %v14674_v6  ;;  %v6246_v6 = vpop.f32.mrf.mxu1 }
 0xa8c   : > { %6588 = vrot.lane.b32.xlu2 %v6211_v14, %s11447_s11  ;;  %10467 = vmatmul.msk.f32.vlgmr.msra.gmra.mxu0 %vm3986_vm8, %v5968_v13 }
 0xa93   : > { %6598 = vrot.lane.b32.xlu1 %v6284_v18, %s11447_s11 }
 0xa95   : > { %v6571_v10 = vpop.permute.xlu0 %6570  ;;  %v6575_v29 = vpop.permute.xlu2 %6574 }
 0xa96   : > { %v6663_v44 = vsel %vm338_vm7, %v14227_v26, %v6571_v10  ;;  %6584 = vrot.lane.b32.xlu0 %v6176_v54, %s11447_s11  ;;  %v6665_v26 = vsel %vm338_vm7, %v14264_v57, %v6575_v29 }
 0xa97   : > { %10474 = vmatmul.msk.f32.gmra.mxu2 %vm2310_vm15, %v6663_v44 }
 0xa9a   : > { %v6573_v27 = vpop.permute.xlu1 %6572 }
 0xa9b   : > { %6612 = vrot.lane.b32.xlu1 %v6421_v55, %s11447_s11  ;;  %v6664_v2 = vsel %vm338_vm7, %v14250_v20, %v6573_v27 }
 0xa9e   : > { %6592 = vrot.lane.b32.xlu0 %v6246_v6, %s11447_s11 }
 0xa9f   : > { %10475 = vmatmul.msk.f32.gmra.mxu2 %vm2310_vm15, %v6664_v2 }
 0xaa2   : > { %v6581_v20 = vpop.permute.xlu1 %6580 }
 0xaa6   : > { %6596 = vrot.lane.b32.xlu0 %v6281_v63, %s11447_s11 }
 0xaa7   : > { %10476 = vmatmul.msk.f32.gmra.mxu2 %vm2310_vm15, %v6665_v26 }
 0xaa8   : > { %v6214_v35 = vpop.f32.mrf.mxu0 }
 0xaa9   : > { %6590 = vrot.lane.b32.xlu2 %v6214_v35, %s11447_s11 }
 0xaae   : > { %6602 = vrot.lane.b32.xlu0 %v6319_v41, %s11447_s11 }
 0xab0   : > { %v6351_v3 = vpop.f32.mrf.mxu0 }
 0xab1   : > { %6600 = vrot.lane.b32.xlu2 %v6316_v58, %s11447_s11 }
 0xab6   : > { %v6424_v19 = vpop.f32.mrf.mxu2 }
 0xab7   : > { %6614 = vrot.lane.b32.xlu0 %v6424_v19, %s11447_s11 }
 0xab8   : > { %v6249_v5 = vpop.f32.mrf.mxu1 }
 0xab9   : > { %6604 = vrot.lane.b32.xlu2 %v6351_v3, %s11447_s11 }
 0xaba   : > { %v6577_v57 = vpop.permute.xlu1 %6576  ;;  %v6456_v23 = vpop.f32.mrf.mxu3 }
 0xabb   : > { %v6666_v21 = vsel %vm338_vm7, %v14324_v12, %v6577_v57  ;;  %v6668_v12 = vsel %vm338_vm7, %v14178_v45, %v6581_v20  ;;  %v14787_v45 = vld [vmem:[%s17121_s2 + $0xe8] ss:$0 sm:$0xff]  ;;  %v17595_v57 = vld [vmem:[#allocation89_spill] sm:$0xff] }
 0xabc   : > { %10477 = vmatmul.msk.f32.gmra.mxu2 %vm2310_vm15, %v6666_v21  ;;  %v6354_v51 = vpop.f32.mrf.mxu0 }
 0xabf   : > { %6606 = vrot.lane.b32.xlu0 %v6354_v51, %s11447_s11  ;;  %v6805_v52 = vpop.f32.mrf.mxu2 }
 0xac0   : > { %v6901_v38 = vadd.f32 %v6805_v52, %v17585_v59  ;;  %v17598_v52 = vld [vmem:[#allocation40_spill] sm:$0xff] }
 0xac1   : > { %6594 = vrot.lane.b32.xlu2 %v6249_v5, %s11447_s11  ;;  %v17596_v5 = vld [vmem:[#allocation113_spill] sm:$0xff] }
 0xac2   : > { %v6583_v28 = vpop.permute.xlu1 %6582  ;;  %v6459_v10 = vpop.f32.mrf.mxu3 }
 0xac3   : > { %v6669_v53 = vsel %vm338_vm7, %v14188_v30, %v6583_v28  ;;  %v14791_v30 = vadd.f32 %v14787_v45, %v6901_v38  ;;  %v17601_v38 = vld [vmem:[#allocation81_spill] sm:$0xff] }
 0xac4   : > { %v6386_v46 = vpop.f32.mrf.mxu1 }
 0xac5   : > { %17586 = vst [vmem:[#allocation127_spill] sm:$0xff] %v14791_v30  ;;  %v6966_v47 = vsel %vm2310_vm15, %v14791_v30, 0.0 }
 0xac9   : > { %6608 = vrot.lane.b32.xlu2 %v6386_v46, %s11447_s11 }
 0xaca   : > { %v6579_v0 = vpop.permute.xlu0 %6578 }
 0xacb   : > { %v6667_v8 = vsel %vm338_vm7, %v14332_v48, %v6579_v0 }
 0xacc   : > { %v6389_v33 = vpop.f32.mrf.mxu1  ;;  %10478 = vmatmul.msk.f32.gmra.mxu2 %vm2310_vm15, %v6667_v8  ;;  %v17597_v8 = vld [vmem:[#allocation123_spill] sm:$0xff] }
 0xacd   : > { %6610 = vrot.lane.b32.xlu1 %v6389_v33, %s11447_s11 }
 0xad4   : > { %10479 = vmatmul.msk.f32.gmra.mxu2 %vm2310_vm15, %v6668_v12 }
 0xad7   : > { %v5901_v39 = vpop.xlane.xlu2 %5900 }
 0xad8   : > { %11233 = vrcp.f32 %v5901_v39 }
 0xadc   : > { %10480 = vmatmul.msk.f32.gmra.mxu2 %vm2310_vm15, %v6669_v53  ;;  %v6808_v1 = vpop.f32.mrf.mxu2 }
 0xadd   : > { %v6902_v50 = vadd.f32 %v6808_v1, %v17587_v9 }
 0xade   : > { %v11234_v48 = vpop.eup %11233 }
 0xadf   : > { %v10906_v32 = vpop.permute.xlu2 %10905  ;;  %v5969_v37 = vmul.f32 %v11234_v48, %v14722_v31  ;;  %v14797_v60 = vadd.f32 %v14787_v45, %v6902_v50  ;;  %v17599_v48 = vld [vmem:[#allocation104_spill] sm:$0xff] }
 0xae0   : > { %v10907_v24 = vunpack.i.l.bf16 %v10906_v32  ;;  %v10908_v62 = vunpack.i.h.bf16 %v10906_v32 }
 0xae1   : > { %10468 = vmatmul.msk.f32.gmra.mxu0 %vm3986_vm8, %v5969_v37  ;;  %17588 = vst [vmem:[#allocation150_spill] sm:$0xff] %v14797_v60  ;;  %v6969_v42 = vsel %vm2310_vm15, %v14797_v60, 0.0 }
 0xae2   : > { %6523 = vmatpush.msrb.mxu1 %v10907_v24 }
 0xae4   : > { %6524 = vmatpush.msrb.mxu1 %v10908_v62  ;;  %v6811_v31 = vpop.f32.mrf.mxu2  ;;  %v17602_v62 = vld [vmem:[#allocation79_spill] sm:$0xff] }
 0xae5   : > { %v6903_v4 = vadd.f32 %v6811_v31, %v17589_v56  ;;  %v17603_v31 = vld [vmem:[#allocation39_spill] sm:$0xff] }
 0xae7   : > { %v14803_v49 = vadd.f32 %v14787_v45, %v6903_v4  ;;  %v6587_v11 = vpop.permute.xlu2 %6586  ;;  %v17604_v4 = vld [vmem:[#allocation78_spill] sm:$0xff] }
 0xae9   : > { %6967 = vadd.xlane.f32.xlu0 %v6966_v47  ;;  %17590 = vst [vmem:[#allocation87_spill] sm:$0xff] %v14803_v49  ;;  %v6972_v15 = vsel %vm2310_vm15, %v14803_v49, 0.0 }
 0xaed   : > { %v5907_v54 = vpop.xlane.xlu1 %5906 }
 0xaef   : > { %v6589_v13 = vpop.permute.xlu2 %6588 }
 0xaf2   : > { %6970 = vadd.xlane.f32.xlu2 %v6969_v42 }
 0xaf5   : > { %v5904_v61 = vpop.xlane.xlu0 %5903 }
 0xaf6   : > { %11235 = vrcp.f32 %v5904_v61 }
 0xaf7   : > { %6973 = vadd.xlane.f32.xlu1 %v6972_v15  ;;  %11237 = vrcp.f32 %v5907_v54 }
 0xafc   : > { %v11236_v17 = vpop.eup %11235 }
 0xafd   : > { %v5970_v43 = vmul.f32 %v11236_v17, %v14739_v34  ;;  %v11238_v16 = vpop.eup %11237  ;;  %v6671_v34 = vsel %vm338_vm7, %v14252_v25, %v6587_v11 }
 0xafe   : > { %v5971_v63 = vmul.f32 %v11238_v16, %v14733_v36  ;;  %v6672_v36 = vsel %vm338_vm7, %v14270_v7, %v6589_v13  ;;  %v17593_v7 = vld [vmem:[#allocation37_spill] sm:$0xff]  ;;  %v17607_v13 = vld [vmem:[#allocation42_spill] sm:$0xff] }
 0xaff   : > { %10469 = vmatmul.msk.f32.vlgmr.msrb.gmra.mxu1 %vm3986_vm8, %v5970_v43  ;;  %v17606_v43 = vld [vmem:[#allocation48_spill] sm:$0xff] }
 0xb03   : > { %v6591_v44 = vpop.permute.xlu2 %6590 }
 0xb04   : > { %v6673_v58 = vsel %vm338_vm7, %v14280_v22, %v6591_v44 }
 0xb05   : > { %v6599_v12 = vpop.permute.xlu1 %6598 }
 0xb06   : > { %v6677_v32 = vsel %vm338_vm7, %v17599_v48, %v6599_v12 }
 0xb07   : > { %10470 = vmatmul.msk.f32.gmra.mxu1 %vm3986_vm8, %v5971_v63 }
 0xb08   : > { %v6585_v14 = vpop.permute.xlu0 %6584 }
 0xb09   : > { %v6670_v18 = vsel %vm338_vm7, %v14238_v40, %v6585_v14  ;;  %v6491_v55 = vpop.f32.mrf.mxu0  ;;  %v17591_v40 = vld [vmem:[#allocation35_spill] sm:$0xff] }
 0xb0a   : > { %10481 = vmatmul.msk.f32.gmra.mxu2 %vm2310_vm15, %v6670_v18 }
 0xb0b   : > { %v6601_v27 = vpop.permute.xlu2 %6600 }
 0xb0c   : > { %v6678_v24 = vsel %vm338_vm7, %v17601_v38, %v6601_v27 }
 0xb0d   : > { %v6613_v61 = vpop.permute.xlu1 %6612 }
 0xb10   : > { %6618 = vrot.lane.b32.xlu1 %v6459_v10, %s11447_s11  ;;  %v6593_v3 = vpop.permute.xlu0 %6592  ;;  %v17608_v10 = vld [vmem:[#allocation105_spill] sm:$0xff] }
 0xb11   : > { %v6674_v21 = vsel %vm338_vm7, %v17595_v57, %v6593_v3  ;;  %v17613_v57 = vld [vmem:[#allocation53_spill] sm:$0xff] }
 0xb12   : > { %10482 = vmatmul.msk.f32.gmra.mxu2 %vm2310_vm15, %v6671_v34 }
 0xb13   : > { %v6605_v41 = vpop.permute.xlu2 %6604 }
 0xb14   : > { %v6680_v42 = vsel %vm338_vm7, %v17604_v4, %v6605_v41  ;;  %v17612_v41 = vld [vmem:[#allocation125_spill] sm:$0xff]  ;;  %v17618_v4 = vld [vmem:[#allocation55_spill] sm:$0xff] }
 0xb18   : > { %6620 = vrot.lane.b32.xlu1 %v6491_v55, %s11447_s11  ;;  %v6597_v46 = vpop.permute.xlu0 %6596 }
 0xb19   : > { %v6676_v33 = vsel %vm338_vm7, %v17597_v8, %v6597_v46 }
 0xb1a   : > { %v6814_v6 = vpop.f32.mrf.mxu2  ;;  %10483 = vmatmul.msk.f32.gmra.mxu2 %vm2310_vm15, %v6672_v36  ;;  %v17609_v36 = vld [vmem:[#allocation44_spill] sm:$0xff] }
 0xb1b   : > { %v6904_v2 = vadd.f32 %v6814_v6, %v17591_v40  ;;  %v6595_v22 = vpop.permute.xlu2 %6594 }
 0xb1c   : > { %v6675_v51 = vsel %vm338_vm7, %v17596_v5, %v6595_v22 }
 0xb1d   : > { %v14824_v29 = vadd.f32 %v14787_v45, %v6904_v2 }
 0xb1f   : > { %17592 = vst [vmem:[#allocation108_spill] sm:$0xff] %v14824_v29  ;;  %v6975_v25 = vsel %vm2310_vm15, %v14824_v29, 0.0 }
 0xb20   : > { %6976 = vadd.xlane.f32.xlu2 %v6975_v25  ;;  %v6603_v28 = vpop.permute.xlu0 %6602 }
 0xb21   : > { %v6679_v47 = vsel %vm338_vm7, %v17602_v62, %v6603_v28 }
 0xb22   : > { %v6817_v26 = vpop.f32.mrf.mxu2  ;;  %10484 = vmatmul.msk.f32.gmra.mxu2 %vm2310_vm15, %v6673_v58 }
 0xb23   : > { %v6905_v35 = vadd.f32 %v6817_v26, %v17593_v7  ;;  %v6609_v17 = vpop.permute.xlu2 %6608 }
 0xb24   : > { %v6682_v3 = vsel %vm338_vm7, %v17612_v41, %v6609_v17 }
 0xb25   : > { %v14833_v20 = vadd.f32 %v14787_v45, %v6905_v35 }
 0xb27   : > { %17594 = vst [vmem:[#allocation146_spill] sm:$0xff] %v14833_v20  ;;  %v6978_v19 = vsel %vm2310_vm15, %v14833_v20, 0.0 }
 0xb28   : > { %6979 = vadd.xlane.f32.xlu0 %v6978_v19 }
 0xb29   : > { %v6615_v1 = vpop.permute.xlu0 %6614 }
 0xb2a   : > { %10485 = vmatmul.msk.f32.gmra.mxu2 %vm2310_vm15, %v6674_v21  ;;  %v6820_v0 = vpop.f32.mrf.mxu2 }
 0xb2b   : > { %v6906_v56 = vadd.f32 %v6820_v0, %v17603_v31 }
 0xb2d   : > { %v14867_v15 = vadd.f32 %v14787_v45, %v6906_v56 }
 0xb2f   : > { %17605 = vst [vmem:[#allocation112_spill] sm:$0xff] %v14867_v15  ;;  %v6981_v18 = vsel %vm2310_vm15, %v14867_v15, 0.0 }
 0xb31   : > { %v6607_v9 = vpop.permute.xlu0 %6606 }
 0xb32   : > { %10486 = vmatmul.msk.f32.gmra.mxu2 %vm2310_vm15, %v6675_v51  ;;  %v6681_v44 = vsel %vm338_vm7, %v17608_v10, %v6607_v9 }
 0xb38   : > { %6616 = vrot.lane.b32.xlu2 %v6456_v23, %s11447_s11 }
 0xb3a   : > { %10487 = vmatmul.msk.f32.gmra.mxu2 %vm2310_vm15, %v6676_v33  ;;  %v17615_v33 = vld [vmem:[#allocation85_spill] sm:$0xff] }
 0xb3f   : > { %v6823_v39 = vpop.f32.mrf.mxu2  ;;  %v6611_v55 = vpop.permute.xlu1 %6610 }
 0xb40   : > { %v6907_v53 = vadd.f32 %v6823_v39, %v17598_v52  ;;  %v6683_v12 = vsel %vm338_vm7, %v17615_v33, %v6611_v55 }
 0xb42   : > { %v14851_v37 = vadd.f32 %v14787_v45, %v6907_v53  ;;  %10488 = vmatmul.msk.f32.gmra.mxu2 %vm2310_vm15, %v6677_v32  ;;  %v17616_v53 = vld [vmem:[#allocation129_spill] sm:$0xff] }
 0xb43   : > { %v6684_v48 = vsel %vm338_vm7, %v17616_v53, %v6613_v61  ;;  %v17626_v53 = vld [vmem:[#allocation63_spill] sm:$0xff] }
 0xb44   : > { %17600 = vst [vmem:[#allocation144_spill] sm:$0xff] %v14851_v37  ;;  %v6984_v59 = vsel %vm2310_vm15, %v14851_v37, 0.0 }
 0xb45   : > { %6985 = vadd.xlane.f32.xlu0 %v6984_v59  ;;  %v17617_v59 = vld [vmem:[#allocation95_spill] sm:$0xff] }
 0xb46   : > { %v6685_v38 = vsel %vm338_vm7, %v17617_v59, %v6615_v1 }
 0xb4a   : > { %10489 = vmatmul.msk.f32.gmra.mxu2 %vm2310_vm15, %v6678_v24 }
 0xb4f   : > { %v6826_v50 = vpop.f32.mrf.mxu2 }
 0xb50   : > { %v6908_v14 = vadd.f32 %v6826_v50, %v17607_v13 }
 0xb52   : > { %10490 = vmatmul.msk.f32.gmra.mxu2 %vm2310_vm15, %v6679_v47  ;;  %v14885_v40 = vadd.f32 %v14787_v45, %v6908_v14  ;;  %v17620_v14 = vld [vmem:[#allocation58_spill] sm:$0xff] }
 0xb54   : > { %17610 = vst [vmem:[#allocation121_spill] sm:$0xff] %v14885_v40  ;;  %v6987_v35 = vsel %vm2310_vm15, %v14885_v40, 0.0 }
 0xb57   : > { %v6829_v16 = vpop.f32.mrf.mxu2 }
 0xb58   : > { %v6909_v27 = vadd.f32 %v6829_v16, %v17609_v36 }
 0xb5a   : > { %10491 = vmatmul.msk.f32.gmra.mxu2 %vm2310_vm15, %v6680_v42  ;;  %v14889_v58 = vadd.f32 %v14787_v45, %v6909_v27 }
 0xb5c   : > { %v6968_v54 = vpop.xlane.xlu0 %6967  ;;  %17611 = vst [vmem:[#allocation83_spill] sm:$0xff] %v14889_v58  ;;  %v6990_v22 = vsel %vm2310_vm15, %v14889_v58, 0.0 }
 0xb5d   : > { %v7062_v11 = vmul.f32 %v6968_v54, %v17606_v43  ;;  %v17619_v54 = vld [vmem:[#allocation109_spill] sm:$0xff] }
 0xb5e   : > { %v6494_v23 = vpop.f32.mrf.mxu0 }
 0xb5f   : > { %v14871_v63 = vsub.f32 %v14791_v30, %v7062_v11  ;;  %6622 = vrot.lane.b32.xlu0 %v6494_v23, %s11447_s11  ;;  %v6832_v26 = vpop.f32.mrf.mxu2 }
 0xb60   : > { %v6910_v21 = vadd.f32 %v6832_v26, %v17613_v57 }
 0xb61   : > { %6982 = vadd.xlane.f32.xlu2 %v6981_v18  ;;  %v7126_v34 = vmul.f32 %v14871_v63, %v14871_v63 }
 0xb62   : > { %10492 = vmatmul.msk.f32.gmra.mxu2 %vm2310_vm15, %v6681_v44  ;;  %v14906_v46 = vadd.f32 %v14787_v45, %v6910_v21 }
 0xb63   : > { %v7158_v6 = vsel %vm2310_vm15, %v7126_v34, 0.0  ;;  %v17621_v34 = vld [vmem:[#allocation77_spill] sm:$0xff] }
 0xb64   : > { %7159 = vadd.xlane.f32.xlu1 %v7158_v6  ;;  %17614 = vst [vmem:[#allocation82_spill] sm:$0xff] %v14906_v46  ;;  %v6993_v39 = vsel %vm2310_vm15, %v14906_v46, 0.0 }
 0xb65   : > { %v6971_v2 = vpop.xlane.xlu2 %6970 }
 0xb66   : > { %v7063_v25 = vmul.f32 %v6971_v2, %v17606_v43 }
 0xb68   : > { %v14892_v7 = vsub.f32 %v14797_v60, %v7063_v25  ;;  %v17622_v25 = vld [vmem:[#allocation59_spill] sm:$0xff] }
 0xb69   : > { %6988 = vadd.xlane.f32.xlu2 %v6987_v35 }
 0xb6a   : > { %v6974_v19 = vpop.xlane.xlu1 %6973  ;;  %10493 = vmatmul.msk.f32.gmra.mxu2 %vm2310_vm15, %v6682_v3  ;;  %v7127_v51 = vmul.f32 %v14892_v7, %v14892_v7  ;;  %v17623_v3 = vld [vmem:[#allocation149_spill] sm:$0xff] }
 0xb6b   : > { %v7064_v5 = vmul.f32 %v6974_v19, %v17606_v43 }
 0xb6c   : > { %6991 = vadd.xlane.f32.xlu1 %v6990_v22  ;;  %v7161_v8 = vsel %vm2310_vm15, %v7127_v51, 0.0 }
 0xb6d   : > { %v14909_v0 = vsub.f32 %v14803_v49, %v7064_v5  ;;  %v17624_v5 = vld [vmem:[#allocation46_spill] sm:$0xff] }
 0xb6f   : > { %v7128_v28 = vmul.f32 %v14909_v0, %v14909_v0 }
 0xb71   : > { %7162 = vadd.xlane.f32.xlu2 %v7161_v8  ;;  %v7164_v52 = vsel %vm2310_vm15, %v7128_v28, 0.0 }
 0xb72   : > { %10494 = vmatmul.msk.f32.gmra.mxu2 %vm2310_vm15, %v6683_v12 }
 0xb74   : > { %6994 = vadd.xlane.f32.xlu1 %v6993_v39  ;;  %v17625_v39 = vld [vmem:[#allocation60_spill] sm:$0xff] }
 0xb79   : > { %7165 = vadd.xlane.f32.xlu2 %v7164_v52 }
 0xb7a   : > { %10495 = vmatmul.msk.f32.gmra.mxu2 %vm2310_vm15, %v6684_v48 }
 0xb7c   : > { %v6526_v32 = vpop.f32.mrf.mxu1 }
 0xb7d   : > { %6624 = vrot.lane.b32.xlu0 %v6526_v32, %s11447_s11 }
 0xb82   : > { %10496 = vmatmul.msk.f32.gmra.mxu2 %vm2310_vm15, %v6685_v38  ;;  %v6619_v23 = vpop.permute.xlu1 %6618 }
 0xb83   : > { %v6687_v55 = vsel %vm338_vm7, %v17621_v34, %v6619_v23 }
 0xb84   : > { %v6529_v24 = vpop.f32.mrf.mxu1 }
 0xb85   : > { %6626 = vrot.lane.b32.xlu0 %v6529_v24, %s11447_s11 }
 0xb8a   : > { %v6621_v2 = vpop.permute.xlu1 %6620 }
 0xb8b   : > { %v6688_v19 = vsel %vm338_vm7, %v17623_v3, %v6621_v2 }
 0xb8d   : > { %v6835_v62 = vpop.f32.mrf.mxu2 }
 0xb8e   : > { %v6911_v42 = vadd.f32 %v6835_v62, %v17618_v4 }
 0xb90   : > { %v14940_v16 = vadd.f32 %v14787_v45, %v6911_v42 }
 0xb92   : > { %v6996_v44 = vsel %vm2310_vm15, %v14940_v16, 0.0 }
 0xb93   : > { %v6977_v47 = vpop.xlane.xlu2 %6976 }
 0xb94   : > { %v7065_v9 = vmul.f32 %v6977_v47, %v17606_v43 }
 0xb95   : > { %v6838_v50 = vpop.f32.mrf.mxu2 }
 0xb96   : > { %v14930_v31 = vsub.f32 %v14824_v29, %v7065_v9  ;;  %v6912_v18 = vadd.f32 %v6838_v50, %v17620_v14  ;;  %v17627_v9 = vld [vmem:[#allocation80_spill] sm:$0xff] }
 0xb98   : > { %v7129_v56 = vmul.f32 %v14930_v31, %v14930_v31  ;;  %v14950_v27 = vadd.f32 %v14787_v45, %v6912_v18 }
 0xb9a   : > { %v7167_v1 = vsel %vm2310_vm15, %v7129_v56, 0.0  ;;  %v6999_v35 = vsel %vm2310_vm15, %v14950_v27, 0.0 }
 0xb9b   : > { %7168 = vadd.xlane.f32.xlu2 %v7167_v1  ;;  %v6617_v61 = vpop.permute.xlu2 %6616  ;;  %v6980_v13 = vpop.xlane.xlu0 %6979 }
 0xb9c   : > { %v6686_v17 = vsel %vm338_vm7, %v17619_v54, %v6617_v61  ;;  %v7066_v10 = vmul.f32 %v6980_v13, %v17606_v43 }
 0xb9d   : > { %v6841_v11 = vpop.f32.mrf.mxu2  ;;  %10497 = vmatmul.msk.f32.gmra.mxu2 %vm2310_vm15, %v6686_v17 }
 0xb9e   : > { %v14953_v6 = vsub.f32 %v14833_v20, %v7066_v10  ;;  %v6913_v26 = vadd.f32 %v6841_v11, %v17622_v25 }
 0xba0   : > { %v7130_v41 = vmul.f32 %v14953_v6, %v14953_v6  ;;  %v14964_v21 = vadd.f32 %v14787_v45, %v6913_v26 }
 0xba2   : > { %v7170_v22 = vsel %vm2310_vm15, %v7130_v41, 0.0  ;;  %v7002_v8 = vsel %vm2310_vm15, %v14964_v21, 0.0 }
 0xba3   : > { %6997 = vadd.xlane.f32.xlu2 %v6996_v44 }
 0xba5   : > { %v6844_v36 = vpop.f32.mrf.mxu2  ;;  %10498 = vmatmul.msk.f32.gmra.mxu2 %vm2310_vm15, %v6687_v55 }
 0xba6   : > { %v6914_v51 = vadd.f32 %v6844_v36, %v17624_v5 }
 0xba8   : > { %v14971_v12 = vadd.f32 %v14787_v45, %v6914_v51 }
 0xbaa   : > { %v7005_v32 = vsel %vm2310_vm15, %v14971_v12, 0.0 }
 0xbab   : > { %7000 = vadd.xlane.f32.xlu2 %v6999_v35 }
 0xbad   : > { %v6847_v57 = vpop.f32.mrf.mxu2  ;;  %10499 = vmatmul.msk.f32.gmra.mxu2 %vm2310_vm15, %v6688_v19 }
 0xbae   : > { %v6915_v48 = vadd.f32 %v6847_v57, %v17626_v53 }
 0xbaf   : > { %7171 = vadd.xlane.f32.xlu0 %v7170_v22 }
 0xbb0   : > { %v14983_v38 = vadd.f32 %v14787_v45, %v6915_v48 }
 0xbb2   : > { %v7008_v24 = vsel %vm2310_vm15, %v14983_v38, 0.0 }
 0xbb3   : > { %7003 = vadd.xlane.f32.xlu2 %v7002_v8 }
 0xbb5   : > { %v6850_v33 = vpop.f32.mrf.mxu2 }
 0xbb6   : > { %v6916_v28 = vadd.f32 %v6850_v33, %v17625_v39  ;;  %v15020_v33 = vld [vmem:[%s17121_s2 + $0x138] ss:$0 sm:$0xff] }
 0xbb8   : > { %v14975_v52 = vadd.f32 %v14787_v45, %v6916_v28  ;;  %v6986_v62 = vpop.xlane.xlu0 %6985 }
 0xbb9   : > { %v7068_v42 = vmul.f32 %v6986_v62, %v17606_v43 }
 0xbba   : > { %v7011_v59 = vsel %vm2310_vm15, %v14975_v52, 0.0 }
 0xbbb   : > { %7006 = vadd.xlane.f32.xlu2 %v7005_v32  ;;  %7012 = vadd.xlane.f32.xlu0 %v7011_v59  ;;  %v14999_v23 = vsub.f32 %v14851_v37, %v7068_v42  ;;  %v15026_v32 = vld [vmem:[%s17121_s2 + $0x140] ss:$0 sm:$0xff]  ;;  %v17628_v42 = vld [vmem:[#allocation84_spill] sm:$0xff] }
 0xbbd   : > { %v7132_v10 = vmul.f32 %v14999_v23, %v14999_v23 }
 0xbbf   : > { %v7176_v2 = vsel %vm2310_vm15, %v7132_v10, 0.0 }
 0xbc3   : > { %7009 = vadd.xlane.f32.xlu2 %v7008_v24 }
 0xbd1   : > { %v6623_v47 = vpop.permute.xlu0 %6622 }
 0xbd2   : > { %v6689_v50 = vsel %vm338_vm7, %v17627_v9, %v6623_v47 }
 0xbd3   : > { %10500 = vmatmul.msk.f32.gmra.mxu2 %vm2310_vm15, %v6689_v50 }
 0xbd4   : > { %v6983_v56 = vpop.xlane.xlu2 %6982 }
 0xbd5   : > { %v7067_v4 = vmul.f32 %v6983_v56, %v17606_v43 }
 0xbd7   : > { %v14993_v1 = vsub.f32 %v14867_v15, %v7067_v4  ;;  %v7160_v61 = vpop.xlane.xlu1 %7159 }
 0xbd8   : > { %v7254_v54 = vmul.f32 %v7160_v61, %v17606_v43 }
 0xbd9   : > { %v7131_v17 = vmul.f32 %v14993_v1, %v14993_v1 }
 0xbda   : > { %v7286_v11 = vadd.f32 1e-05, %v7254_v54 }
 0xbdb   : > { %v7173_v13 = vsel %vm2310_vm15, %v7131_v17, 0.0 }
 0xbdc   : > { %11239 = vrsqrt.f32 %v7286_v11  ;;  %v6989_v14 = vpop.xlane.xlu2 %6988  ;;  %7174 = vadd.xlane.f32.xlu1 %v7173_v13  ;;  %vm7324_vm9 = vweird.f32 %v7286_v11 }
 0xbdd   : > { %v7069_v18 = vmul.f32 %v6989_v14, %v17606_v43 }
 0xbdf   : > { %v6992_v34 = vpop.xlane.xlu1 %6991  ;;  %v15006_v36 = vsub.f32 %v14885_v40, %v7069_v18 }
 0xbe0   : > { %v7070_v3 = vmul.f32 %v6992_v34, %v17606_v43  ;;  %v6853_v34 = vpop.f32.mrf.mxu2 }
 0xbe1   : > { %v7133_v57 = vmul.f32 %v15006_v36, %v15006_v36 }
 0xbe2   : > { %v11240_v44 = vpop.eup %11239  ;;  %v15014_v51 = vsub.f32 %v14889_v58, %v7070_v3  ;;  %v17630_v3 = vld [vmem:[#allocation51_spill] sm:$0xff] }
 0xbe3   : > { %v7319_v55 = vmul.f32 %v11240_v44, %v7286_v11  ;;  %vm7325_vm0 = vweird.f32 %v11240_v44  ;;  %v7179_v8 = vsel %vm2310_vm15, %v7133_v57, 0.0  ;;  %v6917_v57 = vadd.f32 %v6853_v34, %v17630_v3 }
 0xbe4   : > { %v7163_v25 = vpop.xlane.xlu2 %7162  ;;  %7177 = vadd.xlane.f32.xlu1 %v7176_v2  ;;  %vm7326_vm3 = vmor %vm7324_vm9, %vm7325_vm0  ;;  %v7134_v50 = vmul.f32 %v15014_v51, %v15014_v51 }
 0xbe5   : > { %v7320_v26 = vmul.f32 %v11240_v44, %v7319_v55  ;;  %v7255_v35 = vmul.f32 %v7163_v25, %v17606_v43  ;;  %v17629_v25 = vld [vmem:[#allocation106_spill] sm:$0xff] }
 0xbe6   : > { %v7182_v11 = vsel %vm2310_vm15, %v7134_v50, 0.0 }
 0xbe7   : > { %v7321_v41 = vmul.f32 0.5, %v7320_v26  ;;  %v7287_v19 = vadd.f32 1e-05, %v7255_v35  ;;  %v6995_v39 = vpop.xlane.xlu1 %6994 }
 0xbe8   : > { %v7071_v62 = vmul.f32 %v6995_v39, %v17606_v43  ;;  %v6856_v50 = vpop.f32.mrf.mxu2 }
 0xbe9   : > { %v7322_v22 = vsub.f32 1.5, %v7321_v41  ;;  %11241 = vrsqrt.f32 %v7287_v19  ;;  %vm7334_vm13 = vweird.f32 %v7287_v19 }
 0xbeb   : > { %v7323_v5 = vmul.f32 %v11240_v44, %v7322_v22 }
 0xbec   : > { %v7166_v28 = vpop.xlane.xlu2 %7165  ;;  %7180 = vadd.xlane.f32.xlu1 %v7179_v8 }
 0xbed   : > { %v7327_v53 = vsel %vm7326_vm3, %v11240_v44, %v7323_v5  ;;  %v7256_v48 = vmul.f32 %v7166_v28, %v17606_v43  ;;  %v15052_v28 = vadd.f32 %v14787_v45, %v6917_v57 }
 0xbee   : > { %v7638_v59 = vmul.f32 %v7327_v53, %v14871_v63  ;;  %v15038_v63 = vsub.f32 %v14906_v46, %v7071_v62 }
 0xbef   : > { %v11242_v24 = vpop.eup %11241  ;;  %v7288_v47 = vadd.f32 1e-05, %v7256_v48  ;;  %v6625_v9 = vpop.permute.xlu0 %6624  ;;  %17631 = vst [vmem:[#allocation133_spill] sm:$0xff] %v15052_v28 }
 0xbf0   : > { %v7671_v56 = vmul.f32 %v15020_v33, %v7638_v59  ;;  %v7329_v4 = vmul.f32 %v11242_v24, %v7287_v19  ;;  %v6690_v61 = vsel %vm338_vm7, %v17628_v42, %v6625_v9  ;;  %vm7335_vm12 = vweird.f32 %v11242_v24  ;;  %v6859_v42 = vpop.f32.mrf.mxu2 }
 0xbf1   : > { %11243 = vrsqrt.f32 %v7288_v47  ;;  %10501 = vmatmul.msk.f32.gmra.mxu2 %vm2310_vm15, %v6690_v61  ;;  %v7135_v44 = vmul.f32 %v15038_v63, %v15038_v63  ;;  %vm7336_vm2 = vmor %vm7334_vm13, %vm7335_vm12  ;;  %vm7344_vm0 = vweird.f32 %v7288_v47 }
 0xbf2   : > { %v7704_v54 = vadd.f32 %v15026_v32, %v7671_v56  ;;  %v7330_v17 = vmul.f32 %v11242_v24, %v7329_v4 }
 0xbf3   : > { %v7185_v5 = vsel %vm2310_vm15, %v7135_v44, 0.0 }
 0xbf4   : > { %v7331_v13 = vmul.f32 0.5, %v7330_v17  ;;  %10503 = vmatmul.msk.f32.vlgmr.msra.gmra.mxu3 %vm2310_vm15, %v7704_v54  ;;  %7183 = vadd.xlane.f32.xlu1 %v7182_v11 }
 0xbf6   : > { %v7332_v14 = vsub.f32 1.5, %v7331_v13 }
 0xbf7   : > { %v11244_v18 = vpop.eup %11243  ;;  %v6627_v10 = vpop.permute.xlu0 %6626 }
 0xbf8   : > { %v7333_v55 = vmul.f32 %v11242_v24, %v7332_v14  ;;  %v7339_v2 = vmul.f32 %v11244_v18, %v7288_v47  ;;  %v6691_v26 = vsel %vm338_vm7, %v17629_v25, %v6627_v10  ;;  %vm7345_vm8 = vweird.f32 %v11244_v18  ;;  %v17632_v14 = vld [vmem:[#allocation64_spill] sm:$0xff]  ;;  %v6862_v44 = vpop.f32.mrf.mxu2 }
 0xbf9   : > { %10502 = vmatmul.msk.f32.gmra.mxu2 %vm2310_vm15, %v6691_v26  ;;  %vm7346_vm9 = vmor %vm7344_vm0, %vm7345_vm8 }
 0xbfa   : > { %v7337_v35 = vsel %vm7336_vm2, %v11242_v24, %v7333_v55  ;;  %v7340_v41 = vmul.f32 %v11244_v18, %v7339_v2  ;;  %v7014_v24 = vsel %vm2310_vm15, %v15052_v28, 0.0 }
 0xbfb   : > { %v7639_v22 = vmul.f32 %v7337_v35, %v14892_v7 }
 0xbfc   : > { %v7341_v8 = vmul.f32 0.5, %v7340_v41  ;;  %7186 = vadd.xlane.f32.xlu1 %v7185_v5 }
 0xbfd   : > { %v7672_v39 = vmul.f32 %v15020_v33, %v7639_v22 }
 0xbfe   : > { %v7342_v19 = vsub.f32 1.5, %v7341_v8 }
 0xbff   : > { %v7705_v53 = vadd.f32 %v15026_v32, %v7672_v39 }
 0xc00   : > { %v7343_v48 = vmul.f32 %v11244_v18, %v7342_v19  ;;  %v17634_v19 = vld [vmem:[#allocation62_spill] sm:$0xff] }
 0xc01   : > { %10504 = vmatmul.msk.f32.gmra.mxu3 %vm2310_vm15, %v7705_v53  ;;  %v6919_v53 = vadd.f32 %v6859_v42, %v17634_v19 }
 0xc02   : > { %v7347_v59 = vsel %vm7346_vm9, %v11244_v18, %v7343_v48  ;;  %v6918_v18 = vadd.f32 %v6856_v50, %v17632_v14 }
 0xc03   : > { %v7640_v7 = vmul.f32 %v7347_v59, %v14909_v0 }
 0xc04   : > { %7015 = vadd.xlane.f32.xlu1 %v7014_v24  ;;  %v15073_v26 = vadd.f32 %v14787_v45, %v6918_v18 }
 0xc05   : > { %v7673_v62 = vmul.f32 %v15020_v33, %v7640_v7 }
 0xc06   : > { %17633 = vst [vmem:[#allocation142_spill] sm:$0xff] %v15073_v26  ;;  %v7017_v39 = vsel %vm2310_vm15, %v15073_v26, 0.0 }
 0xc07   : > { %v7706_v9 = vadd.f32 %v15026_v32, %v7673_v62  ;;  %v6865_v62 = vpop.f32.mrf.mxu2 }
 0xc09   : > { %10505 = vmatmul.msk.f32.gmra.mxu3 %vm2310_vm15, %v7706_v9 }
 0xc0e   : > { %v7169_v56 = vpop.xlane.xlu2 %7168 }
 0xc0f   : > { %v7257_v47 = vmul.f32 %v7169_v56, %v17606_v43  ;;  %v15089_v56 = vadd.f32 %v14787_v45, %v6919_v53 }
 0xc11   : > { %v7289_v4 = vadd.f32 1e-05, %v7257_v47  ;;  %17635 = vst [vmem:[#allocation88_spill] sm:$0xff] %v15089_v56 }
 0xc13   : > { %11245 = vrsqrt.f32 %v7289_v4  ;;  %vm7354_vm12 = vweird.f32 %v7289_v4 }
 0xc16   : > { %v6998_v61 = vpop.xlane.xlu2 %6997 }
 0xc17   : > { %v7072_v0 = vmul.f32 %v6998_v61, %v17606_v43  ;;  %v17636_v61 = vld [vmem:[#allocation56_spill] sm:$0xff] }
 0xc19   : > { %v11246_v54 = vpop.eup %11245  ;;  %v15065_v17 = vsub.f32 %v14940_v16, %v7072_v0  ;;  %v6920_v0 = vadd.f32 %v6862_v44, %v17636_v61 }
 0xc1a   : > { %v7349_v11 = vmul.f32 %v11246_v54, %v7289_v4  ;;  %vm7355_vm3 = vweird.f32 %v11246_v54 }
 0xc1b   : > { %v7136_v13 = vmul.f32 %v15065_v17, %v15065_v17  ;;  %vm7356_vm13 = vmor %vm7354_vm12, %vm7355_vm3 }
 0xc1c   : > { %v7350_v10 = vmul.f32 %v11246_v54, %v7349_v11  ;;  %v7020_v11 = vsel %vm2310_vm15, %v15089_v56, 0.0 }
 0xc1d   : > { %v7188_v34 = vsel %vm2310_vm15, %v7136_v13, 0.0 }
 0xc1e   : > { %v7351_v55 = vmul.f32 0.5, %v7350_v10  ;;  %7189 = vadd.xlane.f32.xlu2 %v7188_v34  ;;  %v7001_v2 = vpop.xlane.xlu2 %7000 }
 0xc1f   : > { %v7073_v25 = vmul.f32 %v7001_v2, %v17606_v43  ;;  %v6868_v2 = vpop.f32.mrf.mxu2 }
 0xc20   : > { %v7352_v35 = vsub.f32 1.5, %v7351_v55  ;;  %v15104_v55 = vadd.f32 %v14787_v45, %v6920_v0  ;;  %v17640_v0 = vld [vmem:[#allocation65_spill] sm:$0xff] }
 0xc21   : > { %v15076_v41 = vsub.f32 %v14950_v27, %v7073_v25 }
 0xc22   : > { %v7353_v3 = vmul.f32 %v11246_v54, %v7352_v35  ;;  %v7172_v57 = vpop.xlane.xlu0 %7171  ;;  %17637 = vst [vmem:[#allocation86_spill] sm:$0xff] %v15104_v55 }
 0xc23   : > { %v7258_v22 = vmul.f32 %v7172_v57, %v17606_v43  ;;  %v7137_v5 = vmul.f32 %v15076_v41, %v15076_v41 }
 0xc24   : > { %v7357_v8 = vsel %vm7356_vm13, %v11246_v54, %v7353_v3 }
 0xc25   : > { %v7641_v48 = vmul.f32 %v7357_v8, %v14930_v31  ;;  %v7290_v59 = vadd.f32 1e-05, %v7258_v22  ;;  %v7191_v7 = vsel %vm2310_vm15, %v7137_v5, 0.0  ;;  %v17638_v22 = vld [vmem:[#allocation66_spill] sm:$0xff] }
 0xc26   : > { %7018 = vadd.xlane.f32.xlu2 %v7017_v39  ;;  %v7004_v24 = vpop.xlane.xlu2 %7003  ;;  %7192 = vadd.xlane.f32.xlu0 %v7191_v7  ;;  %v6921_v5 = vadd.f32 %v6865_v62, %v17638_v22  ;;  %v7023_v39 = vsel %vm2310_vm15, %v15104_v55, 0.0 }
 0xc27   : > { %11247 = vrsqrt.f32 %v7290_v59  ;;  %v7074_v9 = vmul.f32 %v7004_v24, %v17606_v43  ;;  %v7674_v50 = vmul.f32 %v15020_v33, %v7641_v48  ;;  %vm7364_vm8 = vweird.f32 %v7290_v59 }
 0xc29   : > { %v15092_v47 = vsub.f32 %v14964_v21, %v7074_v9  ;;  %v7707_v31 = vadd.f32 %v15026_v32, %v7674_v50  ;;  %v15121_v9 = vadd.f32 %v14787_v45, %v6921_v5 }
 0xc2b   : > { %10506 = vmatmul.msk.f32.gmra.mxu3 %vm2310_vm15, %v7707_v31  ;;  %v7138_v4 = vmul.f32 %v15092_v47, %v15092_v47  ;;  %17639 = vst [vmem:[#allocation111_spill] sm:$0xff] %v15121_v9  ;;  %v6871_v31 = vpop.f32.mrf.mxu2 }
 0xc2d   : > { %v11248_v42 = vpop.eup %11247  ;;  %v7194_v54 = vsel %vm2310_vm15, %v7138_v4, 0.0 }
 0xc2e   : > { %v7359_v13 = vmul.f32 %v11248_v42, %v7290_v59  ;;  %v7007_v14 = vpop.xlane.xlu2 %7006  ;;  %7195 = vadd.xlane.f32.xlu1 %v7194_v54  ;;  %7021 = vadd.xlane.f32.xlu0 %v7020_v11  ;;  %v7013_v10 = vpop.xlane.xlu0 %7012  ;;  %vm7365_vm2 = vweird.f32 %v11248_v42  ;;  %v6922_v54 = vadd.f32 %v6868_v2, %v17640_v0 }
 0xc2f   : > { %v7075_v18 = vmul.f32 %v7007_v14, %v17606_v43  ;;  %v7077_v35 = vmul.f32 %v7013_v10, %v17606_v43  ;;  %vm7366_vm0 = vmor %vm7364_vm8, %vm7365_vm2 }
 0xc30   : > { %v7360_v34 = vmul.f32 %v11248_v42, %v7359_v13  ;;  %v17641_v13 = vld [vmem:[#allocation61_spill] sm:$0xff]  ;;  %v15141_v10 = vadd.f32 %v14787_v45, %v6922_v54 }
 0xc31   : > { %v15107_v25 = vsub.f32 %v14971_v12, %v7075_v18  ;;  %v15117_v53 = vsub.f32 %v14975_v52, %v7077_v35  ;;  %v6923_v14 = vadd.f32 %v6871_v31, %v17641_v13 }
 0xc32   : > { %v7361_v44 = vmul.f32 0.5, %v7360_v34  ;;  %17642 = vst [vmem:[#allocation148_spill] sm:$0xff] %v15141_v10  ;;  %v7029_v2 = vsel %vm2310_vm15, %v15141_v10, 0.0 }
 0xc33   : > { %v7139_v3 = vmul.f32 %v15107_v25, %v15107_v25  ;;  %v7141_v59 = vmul.f32 %v15117_v53, %v15117_v53  ;;  %v15144_v34 = vadd.f32 %v14787_v45, %v6923_v14 }
 0xc34   : > { %v7362_v57 = vsub.f32 1.5, %v7361_v44 }
 0xc35   : > { %v7197_v8 = vsel %vm2310_vm15, %v7139_v3, 0.0  ;;  %v7203_v18 = vsel %vm2310_vm15, %v7141_v59, 0.0  ;;  %17643 = vst [vmem:[#allocation91_spill] sm:$0xff] %v15144_v34  ;;  %v7032_v44 = vsel %vm2310_vm15, %v15144_v34, 0.0 }
 0xc36   : > { %v7363_v19 = vmul.f32 %v11248_v42, %v7362_v57  ;;  %7198 = vadd.xlane.f32.xlu2 %v7197_v8  ;;  %v7010_v48 = vpop.xlane.xlu2 %7009  ;;  %7024 = vadd.xlane.f32.xlu1 %v7023_v39 }
 0xc37   : > { %v7076_v7 = vmul.f32 %v7010_v48, %v17606_v43 }
 0xc38   : > { %v7367_v24 = vsel %vm7366_vm0, %v11248_v42, %v7363_v19  ;;  %v7026_v42 = vsel %vm2310_vm15, %v15121_v9, 0.0 }
 0xc39   : > { %v7642_v62 = vmul.f32 %v7367_v24, %v14953_v6  ;;  %v15125_v50 = vsub.f32 %v14983_v38, %v7076_v7 }
 0xc3b   : > { %v7140_v4 = vmul.f32 %v15125_v50, %v15125_v50  ;;  %v7675_v61 = vmul.f32 %v15020_v33, %v7642_v62 }
 0xc3d   : > { %v7200_v11 = vsel %vm2310_vm15, %v7140_v4, 0.0  ;;  %v7708_v6 = vadd.f32 %v15026_v32, %v7675_v61 }
 0xc3e   : > { %7027 = vadd.xlane.f32.xlu2 %v7026_v42  ;;  %7201 = vadd.xlane.f32.xlu0 %v7200_v11 }
 0xc3f   : > { %7204 = vadd.xlane.f32.xlu1 %v7203_v18  ;;  %10507 = vmatmul.msk.f32.gmra.mxu3 %vm2310_vm15, %v7708_v6 }
 0xc46   : > { %7030 = vadd.xlane.f32.xlu0 %v7029_v2 }
 0xc47   : > { %7033 = vadd.xlane.f32.xlu1 %v7032_v44 }
 0xc4f   : > { %v7175_v35 = vpop.xlane.xlu1 %7174 }
 0xc50   : > { %v7259_v3 = vmul.f32 %v7175_v35, %v17606_v43 }
 0xc52   : > { %v7291_v57 = vadd.f32 1e-05, %v7259_v3 }
 0xc54   : > { %11249 = vrsqrt.f32 %v7291_v57  ;;  %vm7374_vm3 = vweird.f32 %v7291_v57 }
 0xc57   : > { %v7178_v22 = vpop.xlane.xlu1 %7177 }
 0xc58   : > { %v7260_v5 = vmul.f32 %v7178_v22, %v17606_v43 }
 0xc5a   : > { %v11250_v8 = vpop.eup %11249  ;;  %v7292_v39 = vadd.f32 1e-05, %v7260_v5 }
 0xc5b   : > { %v7369_v19 = vmul.f32 %v11250_v8, %v7291_v57  ;;  %vm7375_vm9 = vweird.f32 %v11250_v8 }
 0xc5c   : > { %11251 = vrsqrt.f32 %v7292_v39  ;;  %vm7376_vm12 = vmor %vm7374_vm3, %vm7375_vm9  ;;  %vm7384_vm2 = vweird.f32 %v7292_v39 }
 0xc5d   : > { %v7370_v48 = vmul.f32 %v11250_v8, %v7369_v19 }
 0xc5f   : > { %v7371_v7 = vmul.f32 0.5, %v7370_v48  ;;  %v7181_v24 = vpop.xlane.xlu1 %7180 }
 0xc60   : > { %v7261_v62 = vmul.f32 %v7181_v24, %v17606_v43 }
 0xc61   : > { %v7372_v59 = vsub.f32 1.5, %v7371_v7 }
 0xc62   : > { %v11252_v31 = vpop.eup %11251  ;;  %v7293_v4 = vadd.f32 1e-05, %v7261_v62 }
 0xc63   : > { %v7373_v61 = vmul.f32 %v11250_v8, %v7372_v59  ;;  %v7379_v0 = vmul.f32 %v11252_v31, %v7292_v39  ;;  %vm7385_vm13 = vweird.f32 %v11252_v31 }
 0xc64   : > { %11253 = vrsqrt.f32 %v7293_v4  ;;  %vm7386_vm8 = vmor %vm7384_vm2, %vm7385_vm13  ;;  %vm7394_vm9 = vweird.f32 %v7293_v4 }
 0xc65   : > { %v7377_v54 = vsel %vm7376_vm12, %v11250_v8, %v7373_v61  ;;  %v7380_v42 = vmul.f32 %v11252_v31, %v7379_v0  ;;  %v6874_v8 = vpop.f32.mrf.mxu2 }
 0xc66   : > { %v7643_v11 = vmul.f32 %v7377_v54, %v14993_v1 }
 0xc67   : > { %v7381_v6 = vmul.f32 0.5, %v7380_v42  ;;  %v7184_v13 = vpop.xlane.xlu1 %7183 }
 0xc68   : > { %v7262_v14 = vmul.f32 %v7184_v13, %v17606_v43  ;;  %v7676_v18 = vmul.f32 %v15020_v33, %v7643_v11 }
 0xc69   : > { %v7382_v2 = vsub.f32 1.5, %v7381_v6 }
 0xc6a   : > { %v11254_v44 = vpop.eup %11253  ;;  %v7294_v35 = vadd.f32 1e-05, %v7262_v14  ;;  %v7709_v3 = vadd.f32 %v15026_v32, %v7676_v18 }
 0xc6b   : > { %v7383_v57 = vmul.f32 %v11252_v31, %v7382_v2  ;;  %v7389_v22 = vmul.f32 %v11254_v44, %v7293_v4  ;;  %vm7395_vm0 = vweird.f32 %v11254_v44 }
 0xc6c   : > { %11255 = vrsqrt.f32 %v7294_v35  ;;  %10508 = vmatmul.msk.f32.gmra.mxu3 %vm2310_vm15, %v7709_v3  ;;  %vm7396_vm3 = vmor %vm7394_vm9, %vm7395_vm0  ;;  %vm7404_vm13 = vweird.f32 %v7294_v35 }
 0xc6d   : > { %v7387_v1 = vsel %vm7386_vm8, %v11252_v31, %v7383_v57  ;;  %v7390_v5 = vmul.f32 %v11254_v44, %v7389_v22  ;;  %v15169_v2 = vpop.f32.mrf.mxu2 }
 0xc6e   : > { %v7644_v19 = vmul.f32 %v7387_v1, %v14999_v23  ;;  %v15166_v23 = vld [vmem:[%s17121_s2 + $0xf8] ss:$0 sm:$0xff] }
 0xc6f   : > { %v7391_v48 = vmul.f32 0.5, %v7390_v5  ;;  %v7187_v7 = vpop.xlane.xlu1 %7186 }
 0xc70   : > { %v7263_v24 = vmul.f32 %v7187_v7, %v17606_v43  ;;  %v7677_v62 = vmul.f32 %v15020_v33, %v7644_v19 }
 0xc71   : > { %v7392_v59 = vsub.f32 1.5, %v7391_v48 }
 0xc72   : > { %v11256_v61 = vpop.eup %11255  ;;  %v7295_v39 = vadd.f32 1e-05, %v7263_v24  ;;  %v7710_v0 = vadd.f32 %v15026_v32, %v7677_v62 }
 0xc73   : > { %v7393_v54 = vmul.f32 %v11254_v44, %v7392_v59  ;;  %v7399_v42 = vmul.f32 %v11256_v61, %v7294_v35  ;;  %vm7405_vm12 = vweird.f32 %v11256_v61 }
 0xc74   : > { %11257 = vrsqrt.f32 %v7295_v39  ;;  %10509 = vmatmul.msk.f32.gmra.mxu3 %vm2310_vm15, %v7710_v0  ;;  %vm7406_vm2 = vmor %vm7404_vm13, %vm7405_vm12  ;;  %v17644_v0 = vld [vmem:[#allocation67_spill] sm:$0xff]  ;;  %vm7414_vm0 = vweird.f32 %v7295_v39 }
 0xc75   : > { %v7397_v31 = vsel %vm7396_vm3, %v11254_v44, %v7393_v54  ;;  %v7400_v11 = vmul.f32 %v11256_v61, %v7399_v42  ;;  %v6924_v54 = vadd.f32 %v6874_v8, %v17644_v0 }
 0xc76   : > { %v7645_v6 = vmul.f32 %v7397_v31, %v15006_v36 }
 0xc77   : > { %v7401_v13 = vmul.f32 0.5, %v7400_v11  ;;  %v7850_v14 = vpop.f32.mrf.mxu3  ;;  %v7016_v18 = vpop.xlane.xlu1 %7015 }
 0xc78   : > { %v15172_v4 = vadd.f32 %v15166_v23, %v7850_v14  ;;  %v7078_v3 = vmul.f32 %v7016_v18, %v17606_v43  ;;  %v7678_v57 = vmul.f32 %v15020_v33, %v7645_v6 }
 0xc79   : > { %v7402_v22 = vsub.f32 1.5, %v7401_v13 }
 0xc7a   : > { %v11258_v1 = vpop.eup %11257  ;;  %v15177_v44 = vmul.f32 0.70710677, %v15172_v4  ;;  %v15180_v36 = vsub.f32 %v15052_v28, %v7078_v3  ;;  %v7711_v5 = vadd.f32 %v15026_v32, %v7678_v57  ;;  %v15193_v3 = vadd.f32 %v14787_v45, %v6924_v54 }
 0xc7b   : > { %v7403_v19 = vmul.f32 %v11256_v61, %v7402_v22  ;;  %v7409_v48 = vmul.f32 %v11258_v1, %v7295_v39  ;;  %vm7415_vm8 = vweird.f32 %v11258_v1 }
 0xc7c   : > { %v8010_v7 = vmul.f32 %v15177_v44, %v15177_v44  ;;  %10510 = vmatmul.msk.f32.gmra.mxu3 %vm2310_vm15, %v7711_v5  ;;  %v7142_v24 = vmul.f32 %v15180_v36, %v15180_v36  ;;  %17645 = vst [vmem:[#allocation132_spill] sm:$0xff] %v15193_v3  ;;  %vm7416_vm9 = vmor %vm7414_vm0, %vm7415_vm8  ;;  %v7035_v0 = vsel %vm2310_vm15, %v15193_v3, 0.0  ;;  %vm9354_vm0 = vcmask 261120  }
 0xc7d   : > { %v7407_v62 = vsel %vm7406_vm2, %v11256_v61, %v7403_v19  ;;  %v7410_v59 = vmul.f32 %v11258_v1, %v7409_v48  ;;  %v6880_v61 = vpop.f32.mrf.mxu2 }
 0xc7e   : > { %v7646_v42 = vmul.f32 %v7407_v62, %v15014_v51  ;;  %v8011_v31 = vmin.f32 %v8010_v7, 16.0  ;;  %v7206_v11 = vsel %vm2310_vm15, %v7142_v24, 0.0 }
 0xc7f   : > { %v7411_v35 = vmul.f32 0.5, %v7410_v59  ;;  %7207 = vadd.xlane.f32.xlu2 %v7206_v11 }
 0xc80   : > { %v8012_v6 = vmul.f32 2.1237322e-06, %v8011_v31  ;;  %v8023_v13 = vmul.f32 3.8918573e-05, %v8011_v31  ;;  %v7679_v14 = vmul.f32 %v15020_v33, %v7646_v42 }
 0xc81   : > { %v7412_v18 = vsub.f32 1.5, %v7411_v35 }
 0xc82   : > { %v8013_v57 = vadd.f32 0.00028619796, %v8012_v6  ;;  %v8024_v22 = vadd.f32 0.001143296, %v8023_v13  ;;  %v7712_v8 = vadd.f32 %v15026_v32, %v7679_v14 }
 0xc83   : > { %v7413_v51 = vmul.f32 %v11258_v1, %v7412_v18  ;;  %v205_v18 = vld [vmem:[%s17121_s2 + $0x118] sm:$0xff] }
 0xc84   : > { %v8014_v5 = vmul.f32 %v8013_v57, %v8011_v31  ;;  %v8025_v19 = vmul.f32 %v8024_v22, %v8011_v31  ;;  %v7853_v48 = vpop.f32.mrf.mxu3  ;;  %10511 = vmatmul.msk.f32.gmra.mxu3 %vm2310_vm15, %v7712_v8  ;;  %9463 = vmatpush.msrb.mxu0 %v205_v18 }
 0xc85   : > { %v7417_v7 = vsel %vm7416_vm9, %v11258_v1, %v7413_v51  ;;  %v15198_v24 = vadd.f32 %v15166_v23, %v7853_v48  ;;  %v6883_v35 = vpop.f32.mrf.mxu2  ;;  %v17646_v51 = vld [vmem:[#allocation68_spill] sm:$0xff] }
 0xc86   : > { %v7647_v45 = vmul.f32 %v7417_v7, %v15038_v63  ;;  %v8015_v62 = vadd.f32 0.0036580483, %v8014_v5  ;;  %v8026_v59 = vadd.f32 0.014752088, %v8025_v19  ;;  %v6925_v5 = vadd.f32 %v15169_v2, %v17646_v51 }
 0xc87   : > { %v15204_v54 = vmul.f32 0.70710677, %v15198_v24  ;;  %7036 = vadd.xlane.f32.xlu2 %v7035_v0 }
 0xc88   : > { %v8016_v39 = vmul.f32 %v8015_v62, %v8011_v31  ;;  %v8027_v42 = vmul.f32 %v8026_v59, %v8011_v31  ;;  %v7680_v11 = vmul.f32 %v15020_v33, %v7647_v45  ;;  %v204_v45 = vld [vmem:[%s17121_s2 + $0x110] sm:$0xff]  ;;  %v17647_v62 = vld [vmem:[#allocation69_spill] sm:$0xff] }
 0xc89   : > { %v8050_v1 = vmul.f32 %v15204_v54, %v15204_v54  ;;  %v6926_v59 = vadd.f32 %v6880_v61, %v17647_v62  ;;  %9464 = vmatpush.msrb.mxu0 %v204_v45 }
 0xc8a   : > { %v8017_v6 = vadd.f32 0.05243302, %v8016_v39  ;;  %v8028_v13 = vadd.f32 0.112945676, %v8027_v42  ;;  %v7713_v63 = vadd.f32 %v15026_v32, %v7680_v11  ;;  %v17648_v42 = vld [vmem:[#allocation70_spill] sm:$0xff] }
 0xc8b   : > { %v15210_v14 = vmin.f32 %v8050_v1, 16.0  ;;  %v6927_v11 = vadd.f32 %v6883_v35, %v17648_v42 }
 0xc8c   : > { %v8018_v57 = vmul.f32 %v8017_v6, %v8011_v31  ;;  %v8029_v22 = vmul.f32 %v8028_v13, %v8011_v31  ;;  %v7856_v8 = vpop.f32.mrf.mxu3  ;;  %10512 = vmatmul.msk.f32.gmra.mxu3 %vm2310_vm15, %v7713_v63  ;;  %v15234_v63 = vld [vmem:[%s17121_s2 + $0xe8] ss:$0 sm:$0xff] }
 0xc8d   : > { %v8052_v19 = vmul.f32 2.1237322e-06, %v15210_v14  ;;  %v8063_v48 = vmul.f32 3.8918573e-05, %v15210_v14  ;;  %v15221_v7 = vadd.f32 %v15166_v23, %v7856_v8  ;;  %v15237_v18 = vadd.f32 %v15234_v63, %v6925_v5  ;;  %v6886_v62 = vpop.f32.mrf.mxu2 }
 0xc8e   : > { %v8019_v0 = vadd.f32 0.18741608, %v8018_v57  ;;  %v8030_v39 = vadd.f32 0.4994258, %v8029_v22  ;;  %v15242_v8 = vadd.f32 %v15234_v63, %v6926_v59  ;;  %v15250_v45 = vadd.f32 %v15234_v63, %v6927_v11 }
 0xc8f   : > { %v8053_v1 = vadd.f32 0.00028619796, %v8052_v19  ;;  %v8064_v2 = vadd.f32 0.001143296, %v8063_v48  ;;  %v15229_v13 = vmul.f32 0.70710677, %v15221_v7 }
 0xc90   : > { %v8031_v6 = vmul.f32 %v8030_v39, %v8011_v31  ;;  %17649 = vst [vmem:[#allocation119_spill] sm:$0xff] %v15237_v18  ;;  %v8020_v61 = vmul.f32 %v8019_v0, %v8011_v31  ;;  %v15264_v11 = vsel %vm2310_vm15, %v15237_v18, 0.0 }
 0xc91   : > { %v8054_v57 = vmul.f32 %v8053_v1, %v15210_v14  ;;  %v8065_v22 = vmul.f32 %v8064_v2, %v15210_v14  ;;  %v7190_v35 = vpop.xlane.xlu2 %7189  ;;  %17650 = vst [vmem:[#allocation137_spill] sm:$0xff] %v15242_v8  ;;  %v8090_v19 = vmul.f32 %v15229_v13, %v15229_v13  ;;  %v203_v1 = vld [vmem:[%s17121_s2 + $0x108] sm:$0xff] }
 0xc92   : > { %v15244_v51 = vadd.f32 1.0, %v8031_v6  ;;  %v7264_v48 = vmul.f32 %v7190_v35, %v17606_v43  ;;  %17651 = vst [vmem:[#allocation93_spill] sm:$0xff] %v15250_v45  ;;  %v8021_v0 = vadd.f32 1.1283791, %v8020_v61  ;;  %9465 = vmatpush.msrb.mxu0 %v203_v1  ;;  %v15268_v6 = vsel %vm2310_vm15, %v15242_v8, 0.0  ;;  %v17652_v61 = vld [vmem:[#allocation71_spill] sm:$0xff] }
 0xc93   : > { %v8055_v5 = vadd.f32 0.0036580483, %v8054_v57  ;;  %v8066_v31 = vadd.f32 0.014752088, %v8065_v22  ;;  %v15255_v42 = vmin.f32 %v8090_v19, 16.0  ;;  %v15271_v57 = vadd.f32 %v6886_v62, %v17652_v61  ;;  %v202_v19 = vld [vmem:[%s17121_s2 + $0x100] sm:$0xff] }
 0xc94   : > { %11259 = vrcp.f32 %v15244_v51  ;;  %v15260_v2 = vadd.f32 1e-05, %v7264_v48  ;;  %v15278_v48 = vsel %vm2310_vm15, %v15250_v45, 0.0  ;;  %9466 = vmatpush.msrb.mxu0 %v202_v19  ;;  %v8022_v62 = vmul.f32 %v8021_v0, %v15177_v44 }
 0xc95   : > { %v8056_v39 = vmul.f32 %v8055_v5, %v15210_v14  ;;  %v8067_v59 = vmul.f32 %v8066_v31, %v15210_v14  ;;  %v15281_v5 = vmul.f32 0.5, %v15172_v4  ;;  %v8092_v31 = vmul.f32 2.1237322e-06, %v15255_v42 }
 0xc96   : > { %v8103_v1 = vmul.f32 3.8918573e-05, %v15255_v42  ;;  %11261 = vrsqrt.f32 %v15260_v2  ;;  %v8042_v44 = vand.u32 2147483647, %v15244_v51  ;;  %vm8038_vm3 = vweird.f32 %v15244_v51 }
 0xc97   : > { %v8057_v22 = vadd.f32 0.05243302, %v8056_v39  ;;  %v8068_v35 = vadd.f32 0.112945676, %v8067_v59  ;;  %v15288_v39 = vmul.f32 0.5, %v15198_v24  ;;  %vm7424_vm8 = vweird.f32 %v15260_v2 }
 0xc98   : > { %v8093_v60 = vadd.f32 0.00028619796, %v8092_v31  ;;  %v8104_v49 = vadd.f32 0.001143296, %v8103_v1  ;;  %vm8043_vm13 = vcmp.eq.f32.partialorder %v8042_v44, 8.507059e+37 }
 0xc99   : > { %v8058_v59 = vmul.f32 %v8057_v22, %v15210_v14  ;;  %v8069_v61 = vmul.f32 %v8068_v35, %v15210_v14  ;;  %v7019_v28 = vpop.xlane.xlu2 %7018  ;;  %v7193_v30 = vpop.xlane.xlu0 %7192 }
 0xc9a   : > { %v11260_v4 = vpop.eup %11259  ;;  %v7079_v29 = vmul.f32 %v7019_v28, %v17606_v43  ;;  %v7265_v20 = vmul.f32 %v7193_v30, %v17606_v43  ;;  %v8094_v15 = vmul.f32 %v8093_v60, %v15255_v42  ;;  %v8105_v22 = vmul.f32 %v8104_v49, %v15255_v42 }
 0xc9b   : > { %v8034_v19 = vmul.f32 %v11260_v4, %v15244_v51  ;;  %v8059_v0 = vadd.f32 0.18741608, %v8058_v59  ;;  %v8070_v24 = vadd.f32 0.4994258, %v8069_v61  ;;  %v8044_v28 = vand.u32 2147483648, %v15244_v51 }
 0xc9c   : > { %v15299_v35 = vsub.f32 %v15073_v26, %v7079_v29  ;;  %v15301_v37 = vadd.f32 1e-05, %v7265_v20  ;;  %v15306_v40 = vpop.eup %11261  ;;  %v8095_v59 = vadd.f32 0.0036580483, %v8094_v15  ;;  %v8106_v60 = vadd.f32 0.014752088, %v8105_v22 }
 0xc9d   : > { %v8035_v31 = vsub.f32 1.0, %v8034_v19  ;;  %v8060_v30 = vmul.f32 %v8059_v0, %v15210_v14  ;;  %v8071_v1 = vmul.f32 %v8070_v24, %v15210_v14  ;;  %vm8039_vm12 = vweird.f32 %v11260_v4 }
 0xc9e   : > { %11263 = vrsqrt.f32 %v15301_v37  ;;  %v7419_v20 = vmul.f32 %v15306_v40, %v15260_v2  ;;  %v8096_v19 = vmul.f32 %v8095_v59, %v15255_v42  ;;  %v8107_v14 = vmul.f32 %v8106_v60, %v15255_v42  ;;  %vm8040_vm2 = vmor %vm8038_vm3, %vm8039_vm12 }
 0xc9f   : > { %v8036_v49 = vmul.f32 %v11260_v4, %v8035_v31  ;;  %v15310_v29 = vadd.f32 1.0, %v8071_v1  ;;  %v8061_v61 = vadd.f32 1.1283791, %v8060_v30  ;;  %v7143_v0 = vmul.f32 %v15299_v35, %v15299_v35 }
 0xca0   : > { %v8045_v15 = vor.u32 1.1754944e-38, %v8044_v28  ;;  %v8097_v31 = vadd.f32 0.05243302, %v8096_v19  ;;  %v7420_v1 = vmul.f32 %v15306_v40, %v7419_v20  ;;  %v8108_v59 = vadd.f32 0.112945676, %v8107_v14 }
 0xca1   : > { %v8037_v24 = vadd.f32 %v11260_v4, %v8036_v49  ;;  %11265 = vrcp.f32 %v15310_v29  ;;  %v7196_v22 = vpop.xlane.xlu1 %7195  ;;  %v7209_v49 = vsel %vm2310_vm15, %v7143_v0, 0.0  ;;  %v15328_v26 = vmul.f32 %v8061_v61, %v15204_v54 }
 0xca2   : > { %v7266_v60 = vmul.f32 %v7196_v22, %v17606_v43  ;;  %v8098_v51 = vmul.f32 %v8097_v31, %v15255_v42  ;;  %vm7425_vm9 = vweird.f32 %v15306_v40  ;;  %7210 = vadd.xlane.f32.xlu0 %v7209_v49  ;;  %v8109_v19 = vmul.f32 %v8108_v59, %v15255_v42 }
 0xca3   : > { %v8041_v30 = vsel %vm8040_vm2, %v11260_v4, %v8037_v24  ;;  %v7421_v4 = vmul.f32 0.5, %v7420_v1  ;;  %v7022_v24 = vpop.xlane.xlu0 %7021  ;;  %vm8078_vm3 = vweird.f32 %v15310_v29  ;;  %v8082_v0 = vand.u32 2147483647, %v15310_v29  ;;  %vm7426_vm2 = vmor %vm7424_vm8, %vm7425_vm9 }
 0xca4   : > { %v15325_v44 = vpop.eup %11263  ;;  %v8046_v28 = vsel %vm8043_vm13, %v8045_v15, %v8041_v30  ;;  %v8099_v15 = vadd.f32 0.18741608, %v8098_v51  ;;  %v15337_v54 = vadd.f32 1e-05, %v7266_v60  ;;  %v8110_v31 = vadd.f32 0.4994258, %v8109_v19 }
 0xca5   : > { %v8047_v20 = vmul.f32 %v8046_v28, %v8022_v62  ;;  %v7429_v14 = vmul.f32 %v15325_v44, %v15301_v37  ;;  %v7422_v30 = vsub.f32 1.5, %v7421_v4  ;;  %vm7434_vm12 = vweird.f32 %v15301_v37 }
 0xca6   : > { %v8100_v59 = vmul.f32 %v8099_v15, %v15255_v42  ;;  %11267 = vrsqrt.f32 %v15337_v54  ;;  %v7080_v49 = vmul.f32 %v7022_v24, %v17606_v43  ;;  %v8111_v60 = vmul.f32 %v8110_v31, %v15255_v42 }
 0xca7   : > { %v11266_v61 = vpop.eup %11265  ;;  %v10535_v22 = vclamps-f32 %v8047_v20, 1.0  ;;  %v7430_v62 = vmul.f32 %v15325_v44, %v7429_v14  ;;  %v7423_v51 = vmul.f32 %v15306_v40, %v7422_v30  ;;  %vm15347_vm13 = vcmp.eq.f32.partialorder %v8082_v0, 8.507059e+37 }
 0xca8   : > { %v8074_v1 = vmul.f32 %v11266_v61, %v15310_v29  ;;  %v8084_v46 = vand.u32 2147483648, %v15310_v29  ;;  %v8101_v15 = vadd.f32 1.1283791, %v8100_v59  ;;  %v15357_v24 = vadd.f32 1.0, %v8111_v60 }
 0xca9   : > { %v9290_v28 = vadd.f32 1.0, %v10535_v22  ;;  %v7431_v20 = vmul.f32 0.5, %v7430_v62  ;;  %v7199_v19 = vpop.xlane.xlu2 %7198  ;;  %v7025_v4 = vpop.xlane.xlu1 %7024  ;;  %v7427_v22 = vsel %vm7426_vm2, %v15306_v40, %v7423_v51  ;;  %vm8079_vm1 = vweird.f32 %v11266_v61 }
 0xcaa   : > { %v8075_v58 = vsub.f32 1.0, %v8074_v1  ;;  %vm7435_vm10 = vweird.f32 %v15325_v44  ;;  %v7267_v0 = vmul.f32 %v7199_v19, %v17606_v43  ;;  %7039 = vadd.xlane.f32.xlu0 %v15264_v11  ;;  %11269 = vrcp.f32 %v15357_v24  ;;  %vm8080_vm8 = vmor %vm8078_vm3, %vm8079_vm1 }
 0xcab   : > { %v9322_v42 = vmul.f32 %v9290_v28, %v15281_v5  ;;  %v7432_v31 = vsub.f32 1.5, %v7431_v20  ;;  %v8124_v2 = vand.u32 2147483648, %v15357_v24  ;;  %v7648_v62 = vmul.f32 %v7427_v22, %v15065_v17  ;;  %vm15391_vm1 = vmor %vm7434_vm12, %vm7435_vm10 }
 0xcac   : > { %v8076_v30 = vmul.f32 %v11266_v61, %v8075_v58  ;;  %v15367_v5 = vsub.f32 %v15089_v56, %v7080_v49  ;;  %v15370_v40 = vpop.eup %11267  ;;  %v15373_v59 = vadd.f32 1e-05, %v7267_v0  ;;  %v7081_v11 = vmul.f32 %v7025_v4, %v17606_v43 }
 0xcad   : > { %10567 = vmatmul.msk.f32.vlgmr.msrb.gmra.mxu0 %vm9354_vm0, %v9322_v42  ;;  %v7433_v1 = vmul.f32 %v15325_v44, %v7432_v31  ;;  %v8085_v28 = vor.u32 1.1754944e-38, %v8084_v46  ;;  %v15379_v17 = vmul.f32 %v8101_v15, %v15229_v13  ;;  %v7439_v49 = vmul.f32 %v15370_v40, %v15337_v54 }
 0xcae   : > { %v8077_v58 = vadd.f32 %v11266_v61, %v8076_v30  ;;  %vm7444_vm9 = vweird.f32 %v15337_v54  ;;  %v7859_v60 = vpop.f32.mrf.mxu3  ;;  %v8122_v20 = vand.u32 2147483647, %v15357_v24  ;;  %v15385_v19 = vor.u32 1.1754944e-38, %v8124_v2 }
 0xcaf   : > { %11271 = vrsqrt.f32 %v15373_v59  ;;  %v7437_v29 = vsel %vm15391_vm1, %v15325_v44, %v7433_v1  ;;  %v15403_v4 = vsub.f32 %v15104_v55, %v7081_v11  ;;  %vm8118_vm10 = vweird.f32 %v15357_v24 }
 0xcb0   : > { %v8081_v51 = vsel %vm8080_vm8, %v11266_v61, %v8077_v58  ;;  %v7440_v61 = vmul.f32 %v15370_v40, %v7439_v49  ;;  %v7144_v42 = vmul.f32 %v15367_v5, %v15367_v5  ;;  %v15410_v14 = vadd.f32 %v15166_v23, %v7859_v60  ;;  %v11270_v44 = vpop.eup %11269 }
 0xcb1   : > { %v8086_v13 = vsel %vm15347_vm13, %v8085_v28, %v8081_v51  ;;  %v7028_v15 = vpop.xlane.xlu2 %7027  ;;  %v7681_v22 = vmul.f32 %v15020_v33, %v7648_v62  ;;  %vm7445_vm3 = vweird.f32 %v15370_v40  ;;  %v7202_v2 = vpop.xlane.xlu0 %7201  ;;  %v8114_v1 = vmul.f32 %v11270_v44, %v15357_v24 }
 0xcb2   : > { %v8087_v37 = vmul.f32 %v8086_v13, %v15328_v26  ;;  %v7205_v31 = vpop.xlane.xlu1 %7204  ;;  %v7441_v30 = vmul.f32 0.5, %v7440_v61  ;;  %v7082_v0 = vmul.f32 %v7028_v15, %v17606_v43  ;;  %v7145_v26 = vmul.f32 %v15403_v4, %v15403_v4  ;;  %vm7446_vm2 = vmor %vm7444_vm9, %vm7445_vm3 }
 0xcb3   : > { %vm15418_vm12 = vcmp.eq.f32.partialorder %v8122_v20, 8.507059e+37  ;;  %v7212_v62 = vsel %vm2310_vm15, %v7144_v42, 0.0  ;;  %v7269_v28 = vmul.f32 %v7205_v31, %v17606_v43  ;;  %v7649_v49 = vmul.f32 %v7437_v29, %v15076_v41  ;;  %v15435_v42 = vpop.f32.mrf.mxu2 }
 0xcb4   : > { %v10536_v58 = vclamps-f32 %v8087_v37, 1.0  ;;  %v7442_v60 = vsub.f32 1.5, %v7441_v30  ;;  %7213 = vadd.xlane.f32.xlu1 %v7212_v62  ;;  %v15426_v51 = vmul.f32 0.70710677, %v15410_v14  ;;  %v7714_v46 = vadd.f32 %v15026_v32, %v7681_v22 }
 0xcb5   : > { %v15429_v13 = vpop.eup %11271  ;;  %v8115_v20 = vsub.f32 1.0, %v8114_v1  ;;  %v15432_v15 = vsub.f32 %v15121_v9, %v7082_v0  ;;  %v7215_v37 = vsel %vm2310_vm15, %v7145_v26, 0.0  ;;  %vm8119_vm13 = vweird.f32 %v11270_v44 }
 0xcb6   : > { %v9291_v61 = vadd.f32 1.0, %v10536_v58  ;;  %v7443_v41 = vmul.f32 %v15370_v40, %v7442_v60  ;;  %v7449_v29 = vmul.f32 %v15429_v13, %v15373_v59  ;;  %v8130_v22 = vmul.f32 %v15426_v51, %v15426_v51  ;;  %10513 = vmatmul.msk.f32.gmra.mxu3 %vm2310_vm15, %v7714_v46  ;;  %7216 = vadd.xlane.f32.xlu2 %v7215_v37  ;;  %vm8120_vm9 = vmor %vm8118_vm10, %vm8119_vm13 }
 0xcb7   : > { %v8116_v30 = vmul.f32 %v11270_v44, %v8115_v20  ;;  %v15448_v0 = vadd.f32 1e-05, %v7269_v28  ;;  %v7268_v26 = vmul.f32 %v7202_v2, %v17606_v43  ;;  %v7682_v60 = vmul.f32 %v15020_v33, %v7649_v49 }
 0xcb8   : > { %v9323_v31 = vmul.f32 %v9291_v61, %v15288_v39  ;;  %v7447_v58 = vsel %vm7446_vm2, %v15370_v40, %v7443_v41  ;;  %v7450_v1 = vmul.f32 %v15429_v13, %v7449_v29  ;;  %v15453_v62 = vmin.f32 %v8130_v22, 16.0 }
 0xcb9   : > { %v8117_v46 = vadd.f32 %v11270_v44, %v8116_v30  ;;  %v7650_v39 = vmul.f32 %v7447_v58, %v15092_v47  ;;  %vm7455_vm8 = vweird.f32 %v15429_v13  ;;  %11273 = vrsqrt.f32 %v15448_v0  ;;  %v7031_v22 = vpop.xlane.xlu0 %7030  ;;  %v15499_v58 = vld [vmem:[%s17121_s2 + $0x138] ss:$0 sm:$0xff] }
 0xcba   : > { %v7034_v54 = vpop.xlane.xlu1 %7033  ;;  %10568 = vmatmul.msk.f32.gmra.mxu0 %vm9354_vm0, %v9323_v31  ;;  %v7451_v40 = vmul.f32 0.5, %v7450_v1  ;;  %v8132_v2 = vmul.f32 2.1237322e-06, %v15453_v62  ;;  %v8143_v28 = vmul.f32 3.8918573e-05, %v15453_v62  ;;  %v7715_v33 = vadd.f32 %v15026_v32, %v7682_v60 }
 0xcbb   : > { %v8121_v49 = vsel %vm8120_vm9, %v11270_v44, %v8117_v46  ;;  %v15466_v47 = vadd.f32 1e-05, %v7268_v26  ;;  %v7146_v61 = vmul.f32 %v15432_v15, %v15432_v15  ;;  %v7084_v20 = vmul.f32 %v7034_v54, %v17606_v43  ;;  %v6892_v30 = vpop.f32.mrf.mxu2 }
 0xcbc   : > { %v8126_v24 = vsel %vm15418_vm12, %v15385_v19, %v8121_v49  ;;  %v7452_v37 = vsub.f32 1.5, %v7451_v40  ;;  %v8133_v41 = vadd.f32 0.00028619796, %v8132_v2  ;;  %v8144_v29 = vadd.f32 0.001143296, %v8143_v28  ;;  %7042 = vadd.xlane.f32.xlu1 %v15268_v6  ;;  %v17660_v40 = vld [vmem:[#allocation72_spill] sm:$0xff] }
 0xcbd   : > { %v15477_v32 = vadd.f32 %v15234_v63, %v15271_v57  ;;  %v8127_v44 = vmul.f32 %v8126_v24, %v15379_v17  ;;  %11275 = vrsqrt.f32 %v15466_v47  ;;  %v7218_v31 = vsel %vm2310_vm15, %v7146_v61, 0.0  ;;  %v15516_v24 = vld [vmem:[%s17121_s2 + $0x140] ss:$0 sm:$0xff] }
 0xcbe   : > { %v7453_v11 = vmul.f32 %v15429_v13, %v7452_v37  ;;  %vm7454_vm1 = vweird.f32 %v15373_v59  ;;  %v8134_v19 = vmul.f32 %v8133_v41, %v15453_v62  ;;  %v8145_v6 = vmul.f32 %v8144_v29, %v15453_v62  ;;  %10514 = vmatmul.msk.f32.gmra.mxu3 %vm2310_vm15, %v7715_v33  ;;  %7045 = vadd.xlane.f32.xlu2 %v15278_v48 }
 0xcbf   : > { %17659 = vst [vmem:[#allocation116_spill] sm:$0xff] %v15477_v32  ;;  %v15488_v57 = vpop.eup %11273  ;;  %v10537_v17 = vclamps-f32 %v8127_v44, 1.0  ;;  %vm7456_vm10 = vmor %vm7454_vm1, %vm7455_vm8  ;;  %7219 = vadd.xlane.f32.xlu0 %v7218_v31  ;;  %v15493_v26 = vsub.f32 %v15144_v34, %v7084_v20  ;;  %v7083_v59 = vmul.f32 %v7031_v22, %v17606_v43  ;;  %v7683_v1 = vmul.f32 %v15499_v58, %v7650_v39 }
 0xcc0   : > { %v7457_v48 = vsel %vm7456_vm10, %v15429_v13, %v7453_v11  ;;  %v8135_v60 = vadd.f32 0.0036580483, %v8134_v19  ;;  %v8146_v46 = vadd.f32 0.014752088, %v8145_v6  ;;  %v7469_v54 = vmul.f32 %v15488_v57, %v15448_v0 }
 0xcc1   : > { %v6930_v2 = vadd.f32 %v6892_v30, %v17660_v40  ;;  %v7948_v28 = vmul.f32 0.5, %v15221_v7  ;;  %v9292_v33 = vadd.f32 1.0, %v10537_v17  ;;  %v15508_v49 = vsub.f32 %v15141_v10, %v7083_v59  ;;  %v17661_v17 = vld [vmem:[#allocation73_spill] sm:$0xff] }
 0xcc2   : > { %v7862_v61 = vpop.f32.mrf.mxu3  ;;  %v7651_v20 = vmul.f32 %v7457_v48, %v15107_v25  ;;  %v8147_v39 = vmul.f32 %v8146_v46, %v15453_v62  ;;  %v7470_v13 = vmul.f32 %v15488_v57, %v7469_v54  ;;  %v7716_v37 = vadd.f32 %v15516_v24, %v7683_v1 }
 0xcc3   : > { %v11276_v41 = vpop.eup %11275  ;;  %v9324_v7 = vmul.f32 %v9292_v33, %v7948_v28  ;;  %v7148_v29 = vmul.f32 %v15493_v26, %v15493_v26  ;;  %v7147_v22 = vmul.f32 %v15508_v49, %v15508_v49  ;;  %v15524_v25 = vadd.f32 %v15166_v23, %v7862_v61 }
 0xcc4   : > { %v8136_v44 = vmul.f32 %v8135_v60, %v15453_v62  ;;  %v8148_v31 = vadd.f32 0.112945676, %v8147_v39  ;;  %v7459_v30 = vmul.f32 %v11276_v41, %v15466_v47  ;;  %v7471_v11 = vmul.f32 0.5, %v7470_v13 }
 0xcc5   : > { %v7224_v19 = vsel %vm2310_vm15, %v7148_v29, 0.0  ;;  %v7221_v6 = vsel %vm2310_vm15, %v7147_v22, 0.0  ;;  %10569 = vmatmul.msk.f32.gmra.mxu0 %vm9354_vm0, %v9324_v7  ;;  %v6929_v59 = vadd.f32 %v15435_v42, %v17661_v17  ;;  %v7047_v60 = vsel %vm2310_vm15, %v15477_v32, 0.0 }
 0xcc6   : > { %v8149_v1 = vmul.f32 %v8148_v31, %v15453_v62  ;;  %v7460_v48 = vmul.f32 %v11276_v41, %v7459_v30  ;;  %10515 = vmatmul.msk.f32.gmra.mxu3 %vm2310_vm15, %v7716_v37  ;;  %7225 = vadd.xlane.f32.xlu2 %v7224_v19  ;;  %v15538_v46 = vadd.f32 %v15234_v63, %v6930_v2  ;;  %v15541_v54 = vmul.f32 0.70710677, %v15524_v25 }
 0xcc7   : > { %7048 = vadd.xlane.f32.xlu0 %v7047_v60  ;;  %7222 = vadd.xlane.f32.xlu1 %v7221_v6  ;;  %v7684_v40 = vmul.f32 %v15499_v58, %v7651_v20  ;;  %v8137_v42 = vadd.f32 0.05243302, %v8136_v44  ;;  %v7472_v61 = vsub.f32 1.5, %v7471_v11  ;;  %v15547_v13 = vadd.f32 %v15234_v63, %v6929_v59 }
 0xcc8   : > { %v8150_v28 = vadd.f32 0.4994258, %v8149_v1  ;;  %v7461_v33 = vmul.f32 0.5, %v7460_v48  ;;  %v8170_v39 = vmul.f32 %v15541_v54, %v15541_v54  ;;  %vm7465_vm3 = vweird.f32 %v11276_v41 }
 0xcc9   : > { %v7717_v7 = vadd.f32 %v15516_v24, %v7684_v40  ;;  %v7053_v20 = vsel %vm2310_vm15, %v15538_v46, 0.0  ;;  %v8138_v22 = vmul.f32 %v8137_v42, %v15453_v62  ;;  %vm7464_vm12 = vweird.f32 %v15466_v47 }
 0xcca   : > { %v8151_v2 = vmul.f32 %v8150_v28, %v15453_v62  ;;  %v7462_v37 = vsub.f32 1.5, %v7461_v33  ;;  %v15551_v29 = vmin.f32 %v8170_v39, 16.0  ;;  %v7473_v30 = vmul.f32 %v15488_v57, %v7472_v61  ;;  %vm7466_vm2 = vmor %vm7464_vm12, %vm7465_vm3 }
 0xccb   : > { %vm7475_vm13 = vweird.f32 %v15488_v57  ;;  %v7050_v6 = vsel %vm2310_vm15, %v15547_v13, 0.0  ;;  %vm7474_vm8 = vweird.f32 %v15448_v0  ;;  %v8139_v1 = vadd.f32 0.18741608, %v8138_v22 }
 0xccc   : > { %v8152_v44 = vadd.f32 1.0, %v8151_v2  ;;  %v7463_v31 = vmul.f32 %v11276_v41, %v7462_v37  ;;  %v8172_v11 = vmul.f32 2.1237322e-06, %v15551_v29  ;;  %v8183_v19 = vmul.f32 3.8918573e-05, %v15551_v29  ;;  %vm7476_vm9 = vmor %vm7474_vm8, %vm7475_vm13 }
 0xccd   : > { %v7477_v60 = vsel %vm7476_vm9, %v15488_v57, %v7473_v30  ;;  %v8140_v0 = vmul.f32 %v8139_v1, %v15453_v62 }
 0xcce   : > { %11277 = vrcp.f32 %v8152_v44  ;;  %10516 = vmatmul.msk.f32.gmra.mxu3 %vm2310_vm15, %v7717_v7  ;;  %7054 = vadd.xlane.f32.xlu2 %v7053_v20  ;;  %v7467_v17 = vsel %vm7466_vm2, %v11276_v41, %v7463_v31  ;;  %v8173_v47 = vadd.f32 0.00028619796, %v8172_v11  ;;  %v8184_v59 = vadd.f32 0.001143296, %v8183_v19 }
 0xccf   : > { %7051 = vadd.xlane.f32.xlu1 %v7050_v6  ;;  %v7652_v48 = vmul.f32 %v7467_v17, %v15125_v50  ;;  %v7653_v41 = vmul.f32 %v7477_v60, %v15117_v53  ;;  %v8141_v20 = vadd.f32 1.1283791, %v8140_v0  ;;  %v8164_v22 = vand.u32 2147483648, %v8152_v44 }
 0xcd0   : > { %v8174_v40 = vmul.f32 %v8173_v47, %v15551_v29  ;;  %v8185_v42 = vmul.f32 %v8184_v59, %v15551_v29  ;;  %v8162_v62 = vand.u32 2147483647, %v8152_v44  ;;  %vm8158_vm10 = vweird.f32 %v8152_v44 }
 0xcd1   : > { %v7685_v28 = vmul.f32 %v15499_v58, %v7652_v48  ;;  %v7686_v30 = vmul.f32 %v15499_v58, %v7653_v41  ;;  %v8165_v17 = vor.u32 1.1754944e-38, %v8164_v22  ;;  %v8142_v1 = vmul.f32 %v8141_v20, %v15426_v51 }
 0xcd2   : > { %v8186_v33 = vadd.f32 0.014752088, %v8185_v42  ;;  %v8175_v39 = vadd.f32 0.0036580483, %v8174_v40  ;;  %vm8163_vm12 = vcmp.eq.f32.partialorder %v8162_v62, 8.507059e+37  ;;  %v7949_v0 = vmul.f32 0.5, %v15410_v14 }
 0xcd3   : > { %v7718_v2 = vadd.f32 %v15516_v24, %v7685_v28  ;;  %v7719_v59 = vadd.f32 %v15516_v24, %v7686_v30 }
 0xcd4   : > { %v11278_v61 = vpop.eup %11277  ;;  %v8187_v50 = vmul.f32 %v8186_v33, %v15551_v29  ;;  %v8176_v31 = vmul.f32 %v8175_v39, %v15551_v29 }
 0xcd5   : > { %v8154_v37 = vmul.f32 %v11278_v61, %v8152_v44  ;;  %vm8159_vm1 = vweird.f32 %v11278_v61 }
 0xcd6   : > { %10517 = vmatmul.msk.f32.gmra.mxu3 %vm2310_vm15, %v7718_v2  ;;  %v8188_v7 = vadd.f32 0.112945676, %v8187_v50  ;;  %vm8160_vm3 = vmor %vm8158_vm10, %vm8159_vm1  ;;  %v8177_v47 = vadd.f32 0.05243302, %v8176_v31 }
 0xcd7   : > { %v8155_v57 = vsub.f32 1.0, %v8154_v37 }
 0xcd8   : > { %v8189_v53 = vmul.f32 %v8188_v7, %v15551_v29  ;;  %v8178_v33 = vmul.f32 %v8177_v47, %v15551_v29 }
 0xcd9   : > { %v8156_v11 = vmul.f32 %v11278_v61, %v8155_v57 }
 0xcda   : > { %v8190_v6 = vadd.f32 0.4994258, %v8189_v53  ;;  %v8179_v39 = vadd.f32 0.18741608, %v8178_v33 }
 0xcdb   : > { %v8157_v19 = vadd.f32 %v11278_v61, %v8156_v11 }
 0xcdc   : > { %v8191_v60 = vmul.f32 %v8190_v6, %v15551_v29  ;;  %v8180_v51 = vmul.f32 %v8179_v39, %v15551_v29 }
 0xcdd   : > { %v8161_v48 = vsel %vm8160_vm3, %v11278_v61, %v8157_v19 }
 0xcde   : > { %v8166_v40 = vsel %vm8163_vm12, %v8165_v17, %v8161_v48  ;;  %10518 = vmatmul.msk.f32.gmra.mxu3 %vm2310_vm15, %v7719_v59  ;;  %v8192_v28 = vadd.f32 1.0, %v8191_v60  ;;  %v8181_v7 = vadd.f32 1.1283791, %v8180_v51  ;;  %v6895_v51 = vpop.f32.mrf.mxu2 }
 0xcdf   : > { %v8167_v42 = vmul.f32 %v8166_v40, %v8142_v1  ;;  %v7950_v40 = vmul.f32 0.5, %v15524_v25 }
 0xce0   : > { %11279 = vrcp.f32 %v8192_v28  ;;  %v8204_v57 = vand.u32 2147483648, %v8192_v28  ;;  %v8202_v22 = vand.u32 2147483647, %v8192_v28  ;;  %vm8198_vm2 = vweird.f32 %v8192_v28 }
 0xce1   : > { %v10538_v44 = vclamps-f32 %v8167_v42, 1.0  ;;  %v8182_v62 = vmul.f32 %v8181_v7, %v15541_v54 }
 0xce2   : > { %v8205_v14 = vor.u32 1.1754944e-38, %v8204_v57  ;;  %vm8203_vm9 = vcmp.eq.f32.partialorder %v8202_v22, 8.507059e+37 }
 0xce3   : > { %v9293_v41 = vadd.f32 1.0, %v10538_v44 }
 0xce5   : > { %v9325_v2 = vmul.f32 %v9293_v41, %v7949_v0 }
 0xce6   : > { %v11280_v37 = vpop.eup %11279 }
 0xce7   : > { %10570 = vmatmul.msk.f32.gmra.mxu0 %vm9354_vm0, %v9325_v2  ;;  %v8194_v61 = vmul.f32 %v11280_v37, %v8192_v28  ;;  %vm8199_vm13 = vweird.f32 %v11280_v37 }
 0xce8   : > { %vm8200_vm8 = vmor %vm8198_vm2, %vm8199_vm13 }
 0xce9   : > { %v8195_v50 = vsub.f32 1.0, %v8194_v61 }
 0xceb   : > { %v8196_v20 = vmul.f32 %v11280_v37, %v8195_v50 }
 0xced   : > { %v8197_v31 = vadd.f32 %v11280_v37, %v8196_v20 }
 0xcef   : > { %v7865_v30 = vpop.f32.mrf.mxu3  ;;  %v8201_v53 = vsel %vm8200_vm8, %v11280_v37, %v8197_v31 }
 0xcf0   : > { %v15587_v11 = vadd.f32 %v15166_v23, %v7865_v30  ;;  %v8206_v29 = vsel %vm8203_vm9, %v8205_v14, %v8201_v53  ;;  %v17662_v14 = vld [vmem:[#allocation74_spill] sm:$0xff] }
 0xcf1   : > { %v8207_v17 = vmul.f32 %v8206_v29, %v8182_v62  ;;  %v6931_v62 = vadd.f32 %v6895_v51, %v17662_v14 }
 0xcf2   : > { %v15591_v19 = vmul.f32 0.70710677, %v15587_v11  ;;  %v7208_v6 = vpop.xlane.xlu2 %7207 }
 0xcf3   : > { %v7270_v47 = vmul.f32 %v7208_v6, %v17606_v43  ;;  %v10539_v1 = vclamps-f32 %v8207_v17, 1.0 }
 0xcf4   : > { %v8210_v59 = vmul.f32 %v15591_v19, %v15591_v19 }
 0xcf5   : > { %v7302_v48 = vadd.f32 1e-05, %v7270_v47  ;;  %v9294_v54 = vadd.f32 1.0, %v10539_v1 }
 0xcf6   : > { %v15596_v60 = vmin.f32 %v8210_v59, 16.0 }
 0xcf7   : > { %11281 = vrsqrt.f32 %v7302_v48  ;;  %v7868_v42 = vpop.f32.mrf.mxu3  ;;  %v9326_v0 = vmul.f32 %v9294_v54, %v7950_v40  ;;  %vm7484_vm10 = vweird.f32 %v7302_v48 }
 0xcf8   : > { %v8212_v28 = vmul.f32 2.1237322e-06, %v15596_v60  ;;  %v8223_v33 = vmul.f32 3.8918573e-05, %v15596_v60  ;;  %v15602_v44 = vadd.f32 %v15166_v23, %v7868_v42 }
 0xcf9   : > { %10571 = vmatmul.msk.f32.gmra.mxu0 %vm9354_vm0, %v9326_v0  ;;  %v15630_v0 = vadd.f32 %v15234_v63, %v6931_v62 }
 0xcfa   : > { %v8213_v41 = vadd.f32 0.00028619796, %v8212_v28  ;;  %v8224_v39 = vadd.f32 0.001143296, %v8223_v33  ;;  %v7037_v2 = vpop.xlane.xlu2 %7036  ;;  %v15605_v37 = vmul.f32 0.70710677, %v15602_v44 }
 0xcfb   : > { %v7085_v25 = vmul.f32 %v7037_v2, %v17606_v43 }
 0xcfc   : > { %v8214_v61 = vmul.f32 %v8213_v41, %v15596_v60  ;;  %v8225_v50 = vmul.f32 %v8224_v39, %v15596_v60  ;;  %v8250_v7 = vmul.f32 %v15605_v37, %v15605_v37 }
 0xcfd   : > { %v11282_v57 = vpop.eup %11281  ;;  %v15614_v20 = vsub.f32 %v15193_v3, %v7085_v25 }
 0xcfe   : > { %v8215_v22 = vadd.f32 0.0036580483, %v8214_v61  ;;  %v8226_v31 = vadd.f32 0.014752088, %v8225_v50  ;;  %v7479_v30 = vmul.f32 %v11282_v57, %v7302_v48  ;;  %v15617_v53 = vmin.f32 %v8250_v7, 16.0 }
 0xcff   : > { %v7871_v29 = vpop.f32.mrf.mxu3  ;;  %v7149_v6 = vmul.f32 %v15614_v20, %v15614_v20  ;;  %vm7485_vm1 = vweird.f32 %v11282_v57 }
 0xd00   : > { %v8216_v17 = vmul.f32 %v8215_v22, %v15596_v60  ;;  %v8227_v47 = vmul.f32 %v8226_v31, %v15596_v60  ;;  %v7480_v59 = vmul.f32 %v11282_v57, %v7479_v30  ;;  %v15624_v1 = vadd.f32 %v15166_v23, %v7871_v29  ;;  %vm7486_vm3 = vmor %vm7484_vm10, %vm7485_vm1 }
 0xd01   : > { %v8252_v40 = vmul.f32 2.1237322e-06, %v15617_v53  ;;  %v8263_v54 = vmul.f32 3.8918573e-05, %v15617_v53  ;;  %v7227_v42 = vsel %vm2310_vm15, %v7149_v6, 0.0 }
 0xd02   : > { %v8228_v28 = vadd.f32 0.112945676, %v8227_v47  ;;  %v7481_v33 = vmul.f32 0.5, %v7480_v59  ;;  %7228 = vadd.xlane.f32.xlu0 %v7227_v42  ;;  %v15633_v2 = vmul.f32 0.70710677, %v15624_v1  ;;  %v7056_v59 = vsel %vm2310_vm15, %v15630_v0, 0.0 }
 0xd03   : > { %v8253_v41 = vadd.f32 0.00028619796, %v8252_v40  ;;  %v8264_v39 = vadd.f32 0.001143296, %v8263_v54  ;;  %v8217_v25 = vadd.f32 0.05243302, %v8216_v17 }
 0xd04   : > { %v8229_v23 = vmul.f32 %v8228_v28, %v15596_v60  ;;  %v7482_v51 = vsub.f32 1.5, %v7481_v33  ;;  %v8290_v7 = vmul.f32 %v15633_v2, %v15633_v2  ;;  %v6898_v28 = vpop.f32.mrf.mxu2 }
 0xd05   : > { %v8254_v61 = vmul.f32 %v8253_v41, %v15617_v53  ;;  %v8265_v50 = vmul.f32 %v8264_v39, %v15617_v53  ;;  %v8218_v6 = vmul.f32 %v8217_v25, %v15596_v60 }
 0xd06   : > { %v8230_v22 = vadd.f32 0.4994258, %v8229_v23  ;;  %v7483_v31 = vmul.f32 %v11282_v57, %v7482_v51  ;;  %v15640_v62 = vmin.f32 %v8290_v7, 16.0 }
 0xd07   : > { %v8255_v30 = vadd.f32 0.0036580483, %v8254_v61  ;;  %v8266_v14 = vadd.f32 0.014752088, %v8265_v50  ;;  %v7874_v29 = vpop.f32.mrf.mxu3  ;;  %v17663_v61 = vld [vmem:[#allocation75_spill] sm:$0xff] }
 0xd08   : > { %v8231_v17 = vmul.f32 %v8230_v22, %v15596_v60  ;;  %v7487_v47 = vsel %vm7486_vm3, %v11282_v57, %v7483_v31  ;;  %v8292_v42 = vmul.f32 2.1237322e-06, %v15640_v62  ;;  %v8303_v41 = vmul.f32 3.8918573e-05, %v15640_v62  ;;  %v15656_v57 = vld [vmem:[%s17121_s2 + $0xf8] ss:$0 sm:$0xff] }
 0xd09   : > { %v7654_v40 = vmul.f32 %v7487_v47, %v15180_v36  ;;  %v8256_v54 = vmul.f32 %v8255_v30, %v15617_v53  ;;  %v8267_v48 = vmul.f32 %v8266_v14, %v15617_v53  ;;  %v15659_v39 = vadd.f32 %v15656_v57, %v7874_v29 }
 0xd0a   : > { %v15650_v33 = vadd.f32 1.0, %v8231_v17  ;;  %7057 = vadd.xlane.f32.xlu0 %v7056_v59  ;;  %v8293_v23 = vadd.f32 0.00028619796, %v8292_v42  ;;  %v6932_v50 = vadd.f32 %v6898_v28, %v17663_v61  ;;  %v8219_v7 = vadd.f32 0.18741608, %v8218_v6 }
 0xd0b   : > { %v8257_v36 = vadd.f32 0.05243302, %v8256_v54  ;;  %v8268_v25 = vadd.f32 0.112945676, %v8267_v48  ;;  %v7687_v51 = vmul.f32 %v15499_v58, %v7654_v40  ;;  %v8304_v14 = vadd.f32 0.001143296, %v8303_v41 }
 0xd0c   : > { %11283 = vrcp.f32 %v15650_v33  ;;  %v8294_v31 = vmul.f32 %v8293_v23, %v15640_v62  ;;  %v15668_v29 = vmul.f32 0.70710677, %v15659_v39  ;;  %v15676_v48 = vadd.f32 %v15234_v63, %v6932_v50 }
 0xd0d   : > { %v8269_v22 = vmul.f32 %v8268_v25, %v15617_v53  ;;  %v8258_v30 = vmul.f32 %v8257_v36, %v15617_v53  ;;  %v7720_v17 = vadd.f32 %v15516_v24, %v7687_v51  ;;  %v8305_v40 = vmul.f32 %v8304_v14, %v15640_v62 }
 0xd0e   : > { %v8295_v59 = vadd.f32 0.0036580483, %v8294_v31  ;;  %v8330_v54 = vmul.f32 %v15668_v29, %v15668_v29  ;;  %v8220_v42 = vmul.f32 %v8219_v7, %v15596_v60  ;;  %v8242_v28 = vand.u32 2147483647, %v15650_v33 }
 0xd0f   : > { %v8270_v47 = vadd.f32 0.4994258, %v8269_v22  ;;  %v7877_v6 = vpop.f32.mrf.mxu3  ;;  %10519 = vmatmul.msk.f32.gmra.mxu3 %vm2310_vm15, %v7720_v17  ;;  %v8259_v25 = vadd.f32 0.18741608, %v8258_v30  ;;  %v8306_v51 = vadd.f32 0.014752088, %v8305_v40  ;;  %vm8238_vm12 = vweird.f32 %v15650_v33 }
 0xd10   : > { %v8296_v23 = vmul.f32 %v8295_v59, %v15640_v62  ;;  %v15682_v61 = vmin.f32 %v8330_v54, 16.0  ;;  %v8244_v31 = vand.u32 2147483648, %v15650_v33  ;;  %v15689_v63 = vadd.f32 %v15656_v57, %v7877_v6 }
 0xd11   : > { %v8271_v41 = vmul.f32 %v8270_v47, %v15617_v53  ;;  %v8307_v50 = vmul.f32 %v8306_v51, %v15640_v62  ;;  %v7951_v17 = vmul.f32 0.5, %v15587_v11  ;;  %v8221_v47 = vadd.f32 1.1283791, %v8220_v42 }
 0xd12   : > { %v11284_v36 = vpop.eup %11283  ;;  %v8297_v60 = vadd.f32 0.05243302, %v8296_v23  ;;  %v8332_v7 = vmul.f32 2.1237322e-06, %v15682_v61  ;;  %v8343_v30 = vmul.f32 3.8918573e-05, %v15682_v61  ;;  %v8260_v40 = vmul.f32 %v8259_v25, %v15617_v53 }
 0xd13   : > { %v8234_v22 = vmul.f32 %v11284_v36, %v15650_v33  ;;  %v15686_v14 = vadd.f32 1.0, %v8271_v41  ;;  %vm8239_vm13 = vweird.f32 %v11284_v36  ;;  %v8308_v54 = vadd.f32 0.112945676, %v8307_v50 }
 0xd14   : > { %v8333_v41 = vadd.f32 0.00028619796, %v8332_v7  ;;  %v8344_v23 = vadd.f32 0.001143296, %v8343_v30  ;;  %v15699_v51 = vmul.f32 0.70710677, %v15689_v63  ;;  %v8298_v42 = vmul.f32 %v8297_v60, %v15640_v62  ;;  %vm8240_vm8 = vmor %vm8238_vm12, %vm8239_vm13 }
 0xd15   : > { %v8235_v59 = vsub.f32 1.0, %v8234_v22  ;;  %11285 = vrcp.f32 %v15686_v14  ;;  %vm15701_vm2 = vcmp.eq.f32.partialorder %v8242_v28, 8.507059e+37  ;;  %v8245_v11 = vor.u32 1.1754944e-38, %v8244_v31  ;;  %v7211_v50 = vpop.xlane.xlu0 %7210 }
 0xd16   : > { %v8309_v22 = vmul.f32 %v8308_v54, %v15640_v62  ;;  %v8334_v9 = vmul.f32 %v8333_v41, %v15682_v61  ;;  %v8345_v53 = vmul.f32 %v8344_v23, %v15682_v61  ;;  %v8370_v25 = vmul.f32 %v15699_v51, %v15699_v51 }
 0xd17   : > { %v8236_v6 = vmul.f32 %v11284_v36, %v8235_v59  ;;  %v8222_v7 = vmul.f32 %v8221_v47, %v15591_v19  ;;  %v8261_v28 = vadd.f32 1.1283791, %v8260_v40  ;;  %v8282_v31 = vand.u32 2147483647, %v15686_v14 }
 0xd18   : > { %v8310_v60 = vadd.f32 0.4994258, %v8309_v22  ;;  %v8335_v54 = vadd.f32 0.0036580483, %v8334_v9  ;;  %v15716_v41 = vmin.f32 %v8370_v25, 16.0  ;;  %v7271_v47 = vmul.f32 %v7211_v50, %v17606_v43 }
 0xd19   : > { %v8237_v55 = vadd.f32 %v11284_v36, %v8236_v6  ;;  %v8346_v6 = vadd.f32 0.014752088, %v8345_v53  ;;  %v8299_v19 = vadd.f32 0.18741608, %v8298_v42  ;;  %v8284_v9 = vand.u32 2147483648, %v15686_v14 }
 0xd1a   : > { %v8311_v40 = vmul.f32 %v8310_v60, %v15640_v62  ;;  %v8336_v34 = vmul.f32 %v8335_v54, %v15682_v61  ;;  %v8383_v56 = vmul.f32 3.8918573e-05, %v15716_v41  ;;  %vm8278_vm1 = vweird.f32 %v15686_v14 }
 0xd1b   : > { %v11286_v30 = vpop.eup %11285  ;;  %v8241_v59 = vsel %vm8240_vm8, %v11284_v36, %v8237_v55  ;;  %v8347_v22 = vmul.f32 %v8346_v6, %v15682_v61  ;;  %v8372_v36 = vmul.f32 2.1237322e-06, %v15716_v41  ;;  %v8285_v6 = vor.u32 1.1754944e-38, %v8284_v9 }
 0xd1c   : > { %v8246_v23 = vsel %vm15701_vm2, %v8245_v11, %v8241_v59  ;;  %v8274_v10 = vmul.f32 %v11286_v30, %v15686_v14  ;;  %v15728_v53 = vadd.f32 1.0, %v8311_v40  ;;  %v8337_v42 = vadd.f32 0.05243302, %v8336_v34 }
 0xd1d   : > { %v8247_v33 = vmul.f32 %v8246_v23, %v8222_v7  ;;  %v8348_v25 = vadd.f32 0.112945676, %v8347_v22  ;;  %vm8279_vm9 = vweird.f32 %v11286_v30  ;;  %v8373_v7 = vadd.f32 0.00028619796, %v8372_v36 }
 0xd1e   : > { %v8275_v55 = vsub.f32 1.0, %v8274_v10  ;;  %v8384_v60 = vadd.f32 0.001143296, %v8383_v56  ;;  %11287 = vrcp.f32 %v15728_v53  ;;  %v15732_v10 = vadd.f32 1e-05, %v7271_v47  ;;  %vm8280_vm10 = vmor %vm8278_vm1, %vm8279_vm9 }
 0xd1f   : > { %v10540_v11 = vclamps-f32 %v8247_v33, 1.0  ;;  %v8300_v23 = vmul.f32 %v8299_v19, %v15640_v62  ;;  %v8349_v33 = vmul.f32 %v8348_v25, %v15682_v61  ;;  %v8338_v34 = vmul.f32 %v8337_v42, %v15682_v61 }
 0xd20   : > { %v8276_v50 = vmul.f32 %v11286_v30, %v8275_v55  ;;  %v8374_v22 = vmul.f32 %v8373_v7, %v15716_v41  ;;  %v8385_v55 = vmul.f32 %v8384_v60, %v15716_v41  ;;  %v8262_v14 = vmul.f32 %v8261_v28, %v15605_v37 }
 0xd21   : > { %v9295_v59 = vadd.f32 1.0, %v10540_v11  ;;  %vm8283_vm3 = vcmp.eq.f32.partialorder %v8282_v31, 8.507059e+37  ;;  %v8350_v47 = vadd.f32 0.4994258, %v8349_v33  ;;  %11289 = vrsqrt.f32 %v15732_v10 }
 0xd22   : > { %v8277_v54 = vadd.f32 %v11286_v30, %v8276_v50  ;;  %v8375_v11 = vadd.f32 0.0036580483, %v8374_v22  ;;  %v8386_v9 = vadd.f32 0.014752088, %v8385_v55  ;;  %v7952_v62 = vmul.f32 0.5, %v15602_v44 }
 0xd23   : > { %v9327_v40 = vmul.f32 %v9295_v59, %v7951_v17  ;;  %v8351_v19 = vmul.f32 %v8350_v47, %v15682_v61  ;;  %v15746_v42 = vsel %vm2310_vm15, %v15676_v48, 0.0  ;;  %v8301_v28 = vadd.f32 1.1283791, %v8300_v23 }
 0xd24   : > { %v8281_v36 = vsel %vm8280_vm10, %v11286_v30, %v8277_v54  ;;  %v11288_v37 = vpop.eup %11287  ;;  %v8339_v31 = vadd.f32 0.18741608, %v8338_v34  ;;  %v8376_v30 = vmul.f32 %v8375_v11, %v15716_v41  ;;  %v8387_v25 = vmul.f32 %v8386_v9, %v15716_v41  ;;  %v7040_v54 = vpop.xlane.xlu0 %7039 }
 0xd25   : > { %v8286_v56 = vsel %vm8283_vm3, %v8285_v6, %v8281_v36  ;;  %10572 = vmatmul.msk.f32.gmra.mxu0 %vm9354_vm0, %v9327_v40  ;;  %v15751_v7 = vmul.f32 0.5, %v15624_v1  ;;  %v8314_v44 = vmul.f32 %v11288_v37, %v15728_v53  ;;  %v8322_v60 = vand.u32 2147483647, %v15728_v53 }
 0xd26   : > { %v8287_v17 = vmul.f32 %v8286_v56, %v8262_v14  ;;  %v15756_v6 = vmul.f32 0.5, %v15659_v39  ;;  %v15758_v33 = vadd.f32 1.0, %v8351_v19  ;;  %v8377_v23 = vadd.f32 0.05243302, %v8376_v30 }
 0xd27   : > { %v7214_v59 = vpop.xlane.xlu1 %7213  ;;  %v8388_v40 = vadd.f32 0.112945676, %v8387_v25  ;;  %v8315_v22 = vsub.f32 1.0, %v8314_v44  ;;  %v8324_v55 = vand.u32 2147483648, %v15728_v53  ;;  %v15762_v36 = vpop.eup %11289  ;;  %v8302_v47 = vmul.f32 %v8301_v28, %v15633_v2 }
 0xd28   : > { %v10541_v50 = vclamps-f32 %v8287_v17, 1.0  ;;  %v7272_v1 = vmul.f32 %v7214_v59, %v17606_v43  ;;  %v8340_v56 = vmul.f32 %v8339_v31, %v15682_v61  ;;  %11291 = vrcp.f32 %v15758_v33 }
 0xd29   : > { %v7217_v14 = vpop.xlane.xlu2 %7216  ;;  %v7086_v39 = vmul.f32 %v7040_v54, %v17606_v43  ;;  %v8316_v9 = vmul.f32 %v11288_v37, %v8315_v22  ;;  %vm8319_vm12 = vweird.f32 %v11288_v37  ;;  %v8389_v17 = vmul.f32 %v8388_v40, %v15716_v41 }
 0xd2a   : > { %v9296_v34 = vadd.f32 1.0, %v10541_v50  ;;  %vm8318_vm13 = vweird.f32 %v15728_v53  ;;  %vm15770_vm2 = vcmp.eq.f32.partialorder %v8322_v60, 8.507059e+37  ;;  %v8378_v30 = vmul.f32 %v8377_v23, %v15716_v41 }
 0xd2b   : > { %v7489_v2 = vmul.f32 %v15762_v36, %v15732_v10  ;;  %v8317_v61 = vadd.f32 %v11288_v37, %v8316_v9  ;;  %v8325_v28 = vor.u32 1.1754944e-38, %v8324_v55  ;;  %v8390_v31 = vadd.f32 0.4994258, %v8389_v17  ;;  %vm8320_vm8 = vmor %vm8318_vm13, %vm8319_vm12 }
 0xd2c   : > { %v9328_v11 = vmul.f32 %v9296_v34, %v7952_v62  ;;  %v15777_v25 = vadd.f32 1e-05, %v7272_v1  ;;  %v8341_v62 = vadd.f32 1.1283791, %v8340_v56  ;;  %vm7494_vm9 = vweird.f32 %v15732_v10 }
 0xd2d   : > { %v7490_v53 = vmul.f32 %v15762_v36, %v7489_v2  ;;  %v7273_v50 = vmul.f32 %v7217_v14, %v17606_v43  ;;  %v8321_v44 = vsel %vm8320_vm8, %v11288_v37, %v8317_v61  ;;  %v8391_v60 = vmul.f32 %v8390_v31, %v15716_v41 }
 0xd2e   : > { %10573 = vmatmul.msk.f32.gmra.mxu0 %vm9354_vm0, %v9328_v11  ;;  %11293 = vrsqrt.f32 %v15777_v25  ;;  %v15786_v59 = vsub.f32 %v15237_v18, %v7086_v39  ;;  %v11292_v54 = vpop.eup %11291  ;;  %v8326_v23 = vsel %vm15770_vm2, %v8325_v28, %v8321_v44  ;;  %v8379_v40 = vadd.f32 0.18741608, %v8378_v30 }
 0xd2f   : > { %v7491_v34 = vmul.f32 0.5, %v7490_v53  ;;  %v15790_v22 = vadd.f32 1e-05, %v7273_v50  ;;  %v7043_v55 = vpop.xlane.xlu1 %7042  ;;  %v8327_v1 = vmul.f32 %v8326_v23, %v8302_v47  ;;  %v8354_v14 = vmul.f32 %v11292_v54, %v15758_v33 }
 0xd30   : > { %v8362_v37 = vand.u32 2147483647, %v15758_v33  ;;  %v8364_v56 = vand.u32 2147483648, %v15758_v33  ;;  %v15795_v11 = vadd.f32 1.0, %v8391_v60  ;;  %vm7495_vm1 = vweird.f32 %v15762_v36 }
 0xd31   : > { %v7492_v39 = vsub.f32 1.5, %v7491_v34  ;;  %11295 = vrsqrt.f32 %v15790_v22  ;;  %v10542_v9 = vclamps-f32 %v8327_v1, 1.0  ;;  %v8355_v17 = vsub.f32 1.0, %v8354_v14  ;;  %v7046_v30 = vpop.xlane.xlu2 %7045  ;;  %vm7496_vm13 = vmor %vm7494_vm9, %vm7495_vm1 }
 0xd32   : > { %v7087_v19 = vmul.f32 %v7043_v55, %v17606_v43  ;;  %v7150_v47 = vmul.f32 %v15786_v59, %v15786_v59  ;;  %v8342_v2 = vmul.f32 %v8341_v62, %v15668_v29  ;;  %vm8359_vm10 = vweird.f32 %v11292_v54  ;;  %v7220_v34 = vpop.xlane.xlu0 %7219 }
 0xd33   : > { %v8380_v61 = vmul.f32 %v8379_v40, %v15716_v41  ;;  %11297 = vrcp.f32 %v15795_v11  ;;  %v9297_v31 = vadd.f32 1.0, %v10542_v9  ;;  %v8356_v53 = vmul.f32 %v11292_v54, %v8355_v17 }
 0xd34   : > { %v15805_v28 = vpop.eup %11293  ;;  %v7493_v50 = vmul.f32 %v15762_v36, %v7492_v39  ;;  %v15809_v44 = vsub.f32 %v15242_v8, %v7087_v19  ;;  %vm8358_vm3 = vweird.f32 %v15758_v33  ;;  %vm15812_vm12 = vcmp.eq.f32.partialorder %v8362_v37, 8.507059e+37 }
 0xd35   : > { %v8365_v29 = vor.u32 1.1754944e-38, %v8364_v56  ;;  %v7499_v41 = vmul.f32 %v15805_v28, %v15777_v25  ;;  %v9329_v62 = vmul.f32 %v9297_v31, %v15751_v7  ;;  %v8357_v23 = vadd.f32 %v11292_v54, %v8356_v53  ;;  %vm8360_vm2 = vmor %vm8358_vm3, %vm8359_vm10 }
 0xd36   : > { %v7497_v40 = vsel %vm7496_vm13, %v15762_v36, %v7493_v50  ;;  %v7230_v33 = vsel %vm2310_vm15, %v7150_v47, 0.0  ;;  %v8381_v1 = vadd.f32 1.1283791, %v8380_v61  ;;  %vm7504_vm8 = vweird.f32 %v15777_v25 }
 0xd37   : > { %v15825_v55 = vpop.eup %11295  ;;  %v7500_v14 = vmul.f32 %v15805_v28, %v7499_v41  ;;  %7231 = vadd.xlane.f32.xlu1 %v7230_v33  ;;  %v7088_v10 = vmul.f32 %v7046_v30, %v17606_v43  ;;  %v8361_v37 = vsel %vm8360_vm2, %v11292_v54, %v8357_v23  ;;  %v7655_v7 = vmul.f32 %v7497_v40, %v15299_v35 }
 0xd38   : > { %v7509_v36 = vmul.f32 %v15825_v55, %v15790_v22  ;;  %v7151_v56 = vmul.f32 %v15809_v44, %v15809_v44  ;;  %10574 = vmatmul.msk.f32.gmra.mxu0 %vm9354_vm0, %v9329_v62  ;;  %v8366_v17 = vsel %vm15812_vm12, %v8365_v29, %v8361_v37  ;;  %v8404_v19 = vand.u32 2147483648, %v15795_v11 }
 0xd39   : > { %v7880_v39 = vpop.f32.mrf.mxu3  ;;  %v11298_v9 = vpop.eup %11297  ;;  %v7501_v47 = vmul.f32 0.5, %v7500_v14  ;;  %v7274_v54 = vmul.f32 %v7220_v34, %v17606_v43  ;;  %v8367_v30 = vmul.f32 %v8366_v17, %v8342_v2  ;;  %v15844_v31 = vsub.f32 %v15250_v45, %v7088_v10 }
 0xd3a   : > { %v8394_v35 = vmul.f32 %v11298_v9, %v15795_v11  ;;  %v7510_v61 = vmul.f32 %v15825_v55, %v7509_v36  ;;  %v7233_v50 = vsel %vm2310_vm15, %v7151_v56, 0.0  ;;  %v15850_v60 = vadd.f32 %v15656_v57, %v7880_v39  ;;  %v7226_v23 = vpop.xlane.xlu2 %7225  ;;  %v7223_v36 = vpop.xlane.xlu1 %7222 }
 0xd3b   : > { %v7502_v53 = vsub.f32 1.5, %v7501_v47  ;;  %v15847_v41 = vadd.f32 1e-05, %v7274_v54  ;;  %v10543_v29 = vclamps-f32 %v8367_v30, 1.0  ;;  %vm7505_vm9 = vweird.f32 %v15805_v28  ;;  %7234 = vadd.xlane.f32.xlu2 %v7233_v50 }
 0xd3c   : > { %v8395_v62 = vsub.f32 1.0, %v8394_v35  ;;  %v7688_v2 = vmul.f32 %v15499_v58, %v7655_v7  ;;  %vm8399_vm1 = vweird.f32 %v11298_v9  ;;  %v8402_v40 = vand.u32 2147483647, %v15795_v11  ;;  %vm15863_vm3 = vmor %vm7504_vm8, %vm7505_vm9 }
 0xd3d   : > { %v7503_v33 = vmul.f32 %v15805_v28, %v7502_v53  ;;  %11299 = vrsqrt.f32 %v15847_v41  ;;  %v9298_v34 = vadd.f32 1.0, %v10543_v29  ;;  %v7511_v10 = vmul.f32 0.5, %v7510_v61 }
 0xd3e   : > { %v8396_v14 = vmul.f32 %v11298_v9, %v8395_v62  ;;  %v15858_v37 = vmul.f32 0.70710677, %v15850_v60  ;;  %vm8398_vm10 = vweird.f32 %v15795_v11  ;;  %v7721_v56 = vadd.f32 %v15516_v24, %v7688_v2 }
 0xd3f   : > { %7060 = vadd.xlane.f32.xlu1 %v15746_v42  ;;  %v7152_v39 = vmul.f32 %v15844_v31, %v15844_v31  ;;  %v7276_v17 = vmul.f32 %v7226_v23, %v17606_v43  ;;  %v9330_v47 = vmul.f32 %v9298_v34, %v15756_v6  ;;  %v8405_v30 = vor.u32 1.1754944e-38, %v8404_v19  ;;  %vm8400_vm12 = vmor %vm8398_vm10, %vm8399_vm1 }
 0xd40   : > { %v8397_v54 = vadd.f32 %v11298_v9, %v8396_v14  ;;  %v7507_v25 = vsel %vm15863_vm3, %v15805_v28, %v7503_v33  ;;  %v8410_v42 = vmul.f32 %v15858_v37, %v15858_v37  ;;  %10520 = vmatmul.msk.f32.gmra.mxu3 %vm2310_vm15, %v7721_v56  ;;  %v7275_v6 = vmul.f32 %v7223_v36, %v17606_v43  ;;  %v7049_v28 = vpop.xlane.xlu0 %7048 }
 0xd41   : > { %v7883_v11 = vpop.f32.mrf.mxu3  ;;  %v7236_v35 = vsel %vm2310_vm15, %v7152_v39, 0.0  ;;  %v15881_v61 = vadd.f32 1e-05, %v7276_v17  ;;  %v8382_v19 = vmul.f32 %v8381_v1, %v15699_v51  ;;  %vm8403_vm13 = vcmp.eq.f32.partialorder %v8402_v40, 8.507059e+37  ;;  %10575 = vmatmul.msk.f32.gmra.mxu0 %vm9354_vm0, %v9330_v47 }
 0xd42   : > { %v8401_v53 = vsel %vm8400_vm12, %v11298_v9, %v8397_v54  ;;  %v7512_v50 = vsub.f32 1.5, %v7511_v10  ;;  %7237 = vadd.xlane.f32.xlu0 %v7236_v35  ;;  %v15887_v2 = vmin.f32 %v8410_v42, 16.0  ;;  %v7656_v33 = vmul.f32 %v7507_v25, %v15367_v5 }
 0xd43   : > { %v15885_v29 = vpop.eup %11299  ;;  %v8406_v62 = vsel %vm8403_vm13, %v8405_v30, %v8401_v53  ;;  %11301 = vrsqrt.f32 %v15881_v61  ;;  %vm7515_vm2 = vweird.f32 %v15825_v55  ;;  %v15897_v40 = vadd.f32 1e-05, %v7275_v6 }
 0xd44   : > { %v8407_v23 = vmul.f32 %v8406_v62, %v8382_v19  ;;  %v7519_v51 = vmul.f32 %v15885_v29, %v15847_v41  ;;  %v8412_v1 = vmul.f32 2.1237322e-06, %v15887_v2  ;;  %v8423_v9 = vmul.f32 3.8918573e-05, %v15887_v2 }
 0xd45   : > { %v7089_v34 = vmul.f32 %v7049_v28, %v17606_v43  ;;  %v7513_v10 = vmul.f32 %v15825_v55, %v7512_v50  ;;  %v15903_v5 = vadd.f32 %v15656_v57, %v7883_v11  ;;  %v7955_v7 = vmul.f32 0.5, %v15689_v63 }
 0xd46   : > { %v10544_v14 = vclamps-f32 %v8407_v23, 1.0  ;;  %v7520_v36 = vmul.f32 %v15885_v29, %v7519_v51  ;;  %v8413_v56 = vadd.f32 0.00028619796, %v8412_v1  ;;  %v8424_v39 = vadd.f32 0.001143296, %v8423_v9 }
 0xd47   : > { %11303 = vrsqrt.f32 %v15897_v40  ;;  %vm7514_vm8 = vweird.f32 %v15790_v22  ;;  %v15909_v54 = vmul.f32 0.70710677, %v15903_v5  ;;  %v15922_v35 = vsub.f32 %v15477_v32, %v7089_v34  ;;  %v7055_v34 = vpop.xlane.xlu2 %7054 }
 0xd48   : > { %v9299_v17 = vadd.f32 1.0, %v10544_v14  ;;  %v7521_v47 = vmul.f32 0.5, %v7520_v36  ;;  %vm15915_vm9 = vmor %vm7514_vm8, %vm7515_vm2  ;;  %v8414_v63 = vmul.f32 %v8413_v56, %v15887_v2  ;;  %v8425_v42 = vmul.f32 %v8424_v39, %v15887_v2 }
 0xd49   : > { %v7886_v30 = vpop.f32.mrf.mxu3  ;;  %v15911_v25 = vpop.eup %11301  ;;  %v7689_v22 = vmul.f32 %v15499_v58, %v7656_v33  ;;  %v7517_v19 = vsel %vm15915_vm9, %v15825_v55, %v7513_v10  ;;  %v8450_v62 = vmul.f32 %v15909_v54, %v15909_v54  ;;  %v7153_v14 = vmul.f32 %v15922_v35, %v15922_v35 }
 0xd4a   : > { %v9331_v6 = vmul.f32 %v9299_v17, %v7955_v7  ;;  %v7539_v53 = vmul.f32 %v15911_v25, %v15881_v61  ;;  %v8415_v50 = vadd.f32 0.0036580483, %v8414_v63  ;;  %v8426_v28 = vadd.f32 0.014752088, %v8425_v42  ;;  %v7052_v17 = vpop.xlane.xlu1 %7051 }
 0xd4b   : > { %v7722_v23 = vadd.f32 %v15516_v24, %v7689_v22  ;;  %v7522_v51 = vsub.f32 1.5, %v7521_v47  ;;  %v15939_v9 = vmin.f32 %v8450_v62, 16.0  ;;  %v7657_v24 = vmul.f32 %v7517_v19, %v15403_v4 }
 0xd4c   : > { %v7540_v1 = vmul.f32 %v15911_v25, %v7539_v53  ;;  %10576 = vmatmul.msk.f32.gmra.mxu0 %vm9354_vm0, %v9331_v6  ;;  %v8416_v33 = vmul.f32 %v8415_v50, %v15887_v2  ;;  %v8427_v55 = vmul.f32 %v8426_v28, %v15887_v2  ;;  %vm7524_vm1 = vweird.f32 %v15847_v41 }
 0xd4d   : > { %v15935_v58 = vpop.eup %11303  ;;  %10521 = vmatmul.msk.f32.gmra.mxu3 %vm2310_vm15, %v7722_v23  ;;  %vm7525_vm10 = vweird.f32 %v15885_v29  ;;  %v8452_v39 = vmul.f32 2.1237322e-06, %v15939_v9  ;;  %vm7544_vm3 = vweird.f32 %v15881_v61  ;;  %v8463_v11 = vmul.f32 3.8918573e-05, %v15939_v9 }
 0xd4e   : > { %v7541_v10 = vmul.f32 0.5, %v7540_v1  ;;  %v7529_v36 = vmul.f32 %v15935_v58, %v15897_v40  ;;  %v8417_v7 = vadd.f32 0.05243302, %v8416_v33  ;;  %v8428_v56 = vadd.f32 0.112945676, %v8427_v55  ;;  %vm15972_vm12 = vmor %vm7524_vm1, %vm7525_vm10 }
 0xd4f   : > { %v7091_v4 = vmul.f32 %v7055_v34, %v17606_v43  ;;  %v7523_v63 = vmul.f32 %v15885_v29, %v7522_v51  ;;  %v8453_v22 = vadd.f32 0.00028619796, %v8452_v39  ;;  %v7239_v6 = vsel %vm2310_vm15, %v7153_v14, 0.0  ;;  %v15966_v51 = vld [vmem:[%s17121_s2 + $0x20] sm:$0xff] }
 0xd50   : > { %v7530_v47 = vmul.f32 %v15935_v58, %v7529_v36  ;;  %v8429_v42 = vmul.f32 %v8428_v56, %v15887_v2  ;;  %v7542_v53 = vsub.f32 1.5, %v7541_v10  ;;  %v8464_v28 = vadd.f32 0.001143296, %v8463_v11  ;;  %7240 = vadd.xlane.f32.xlu2 %v7239_v6  ;;  %10700 = vmatmul.msk.f32.vlgmr.msrb.gmra.mxu2 %vm338_vm7, %v15966_v51  ;;  %v16036_v34 = vld [vmem:[%s17121_s2 + $0x140] ss:$0 sm:$0xff] }
 0xd51   : > { %v7889_v19 = vpop.f32.mrf.mxu3  ;;  %v7090_v62 = vmul.f32 %v7052_v17, %v17606_v43  ;;  %v8418_v23 = vmul.f32 %v8417_v7, %v15887_v2  ;;  %v8454_v33 = vmul.f32 %v8453_v22, %v15939_v9  ;;  %v15961_v55 = vadd.f32 %v15656_v57, %v7886_v30 }
 0xd52   : > { %v7531_v50 = vmul.f32 0.5, %v7530_v47  ;;  %v8430_v1 = vadd.f32 0.4994258, %v8429_v42  ;;  %vm7545_vm13 = vweird.f32 %v15911_v25  ;;  %v8465_v10 = vmul.f32 %v8464_v28, %v15939_v9 }
 0xd53   : > { %v15979_v30 = vsub.f32 %v15538_v46, %v7091_v4  ;;  %v7527_v36 = vsel %vm15972_vm12, %v15885_v29, %v7523_v63  ;;  %vm7535_vm2 = vweird.f32 %v15935_v58  ;;  %v8455_v7 = vadd.f32 0.0036580483, %v8454_v33  ;;  %v16001_v29 = vld [vmem:[%s17121_s2 + $0x138] ss:$0 sm:$0xff]  ;;  %vm16016_vm8 = vmor %vm7544_vm3, %vm7545_vm13 }
 0xd54   : > { %v7532_v14 = vsub.f32 1.5, %v7531_v50  ;;  %v8431_v41 = vmul.f32 %v8430_v1, %v15887_v2  ;;  %v7543_v56 = vmul.f32 %v15911_v25, %v7542_v53  ;;  %v8466_v39 = vadd.f32 0.014752088, %v8465_v10 }
 0xd55   : > { %v15990_v17 = vsub.f32 %v15547_v13, %v7090_v62  ;;  %v15993_v47 = vmul.f32 0.70710677, %v15961_v55  ;;  %v8419_v11 = vadd.f32 0.18741608, %v8418_v23  ;;  %v8456_v42 = vmul.f32 %v8455_v7, %v15939_v9 }
 0xd56   : > { %v15995_v4 = vadd.f32 1.0, %v8431_v41  ;;  %v7690_v63 = vmul.f32 %v16001_v29, %v7657_v24  ;;  %v7533_v22 = vmul.f32 %v15935_v58, %v7532_v14  ;;  %v8467_v6 = vmul.f32 %v8466_v39, %v15939_v9 }
 0xd57   : > { %v8490_v53 = vmul.f32 %v15993_v47, %v15993_v47  ;;  %v7155_v50 = vmul.f32 %v15979_v30, %v15979_v30  ;;  %v7658_v28 = vmul.f32 %v7527_v36, %v15432_v15  ;;  %v7547_v62 = vsel %vm16016_vm8, %v15911_v25, %v7543_v56 }
 0xd58   : > { %11305 = vrcp.f32 %v15995_v4  ;;  %vm7534_vm9 = vweird.f32 %v15897_v40  ;;  %v8457_v23 = vadd.f32 0.05243302, %v8456_v42  ;;  %v8468_v1 = vadd.f32 0.112945676, %v8467_v6 }
 0xd59   : > { %v8420_v15 = vmul.f32 %v8419_v11, %v15887_v2  ;;  %vm16027_vm1 = vmor %vm7534_vm9, %vm7535_vm2  ;;  %v16031_v61 = vmin.f32 %v8490_v53, 16.0  ;;  %v7723_v25 = vadd.f32 %v16036_v34, %v7690_v63  ;;  %v7245_v40 = vsel %vm2310_vm15, %v7155_v50, 0.0  ;;  %v7892_v14 = vpop.f32.mrf.mxu3 }
 0xd5a   : > { %v7537_v2 = vsel %vm16027_vm1, %v15935_v58, %v7533_v22  ;;  %v8458_v10 = vmul.f32 %v8457_v23, %v15939_v9  ;;  %v8469_v36 = vmul.f32 %v8468_v1, %v15939_v9  ;;  %7246 = vadd.xlane.f32.xlu0 %v7245_v40  ;;  %v7154_v41 = vmul.f32 %v15990_v17, %v15990_v17 }
 0xd5b   : > { %v8492_v7 = vmul.f32 2.1237322e-06, %v16031_v61  ;;  %v8503_v56 = vmul.f32 3.8918573e-05, %v16031_v61  ;;  %10522 = vmatmul.msk.f32.gmra.mxu3 %vm2310_vm15, %v7723_v25  ;;  %v16051_v39 = vadd.f32 %v15656_v57, %v7889_v19  ;;  %v7691_v11 = vmul.f32 %v16001_v29, %v7658_v28 }
 0xd5c   : > { %v16055_v58 = vmul.f32 0.5, %v15850_v60  ;;  %v8470_v42 = vadd.f32 0.4994258, %v8469_v36  ;;  %v7242_v63 = vsel %vm2310_vm15, %v7154_v41, 0.0  ;;  %v16059_v22 = vadd.f32 %v15656_v57, %v7892_v14 }
 0xd5d   : > { %v8421_v53 = vadd.f32 1.1283791, %v8420_v15  ;;  %v16062_v50 = vmul.f32 %v7547_v62, %v15493_v26  ;;  %v8493_v24 = vadd.f32 0.00028619796, %v8492_v7  ;;  %v8504_v23 = vadd.f32 0.001143296, %v8503_v56  ;;  %7243 = vadd.xlane.f32.xlu1 %v7242_v63 }
 0xd5e   : > { %v11306_v6 = vpop.eup %11305  ;;  %v7659_v28 = vmul.f32 %v7537_v2, %v15508_v49  ;;  %v8459_v60 = vadd.f32 0.18741608, %v8458_v10  ;;  %v8471_v1 = vmul.f32 %v8470_v42, %v15939_v9  ;;  %v16070_v40 = vmul.f32 0.70710677, %v16051_v39 }
 0xd5f   : > { %v8434_v19 = vmul.f32 %v11306_v6, %v15995_v4  ;;  %v8494_v33 = vmul.f32 %v8493_v24, %v16031_v61  ;;  %v8505_v25 = vmul.f32 %v8504_v23, %v16031_v61  ;;  %v7724_v26 = vadd.f32 %v16036_v34, %v7691_v11 }
 0xd60   : > { %v8442_v15 = vand.u32 2147483647, %v15995_v4  ;;  %v16074_v14 = vadd.f32 1.0, %v8471_v1  ;;  %v16077_v36 = vmul.f32 0.70710677, %v16059_v22  ;;  %v8444_v49 = vand.u32 2147483648, %v15995_v4 }
 0xd61   : > { %v8435_v62 = vsub.f32 1.0, %v8434_v19  ;;  %v8495_v2 = vadd.f32 0.0036580483, %v8494_v33  ;;  %v8506_v10 = vadd.f32 0.014752088, %v8505_v25  ;;  %v8530_v41 = vmul.f32 %v16070_v40, %v16070_v40 }
 0xd62   : > { %v8422_v7 = vmul.f32 %v8421_v53, %v15858_v37  ;;  %vm8439_vm10 = vweird.f32 %v11306_v6  ;;  %11307 = vrcp.f32 %v16074_v14  ;;  %v8460_v11 = vmul.f32 %v8459_v60, %v15939_v9 }
 0xd63   : > { %v8436_v56 = vmul.f32 %v11306_v6, %v8435_v62  ;;  %v8496_v42 = vmul.f32 %v8495_v2, %v16031_v61  ;;  %v8507_v63 = vmul.f32 %v8506_v10, %v16031_v61  ;;  %10523 = vmatmul.msk.f32.gmra.mxu3 %vm2310_vm15, %v7724_v26  ;;  %v7692_v24 = vmul.f32 %v16001_v29, %v7659_v28 }
 0xd64   : > { %vm8438_vm3 = vweird.f32 %v15995_v4  ;;  %v16090_v19 = vmin.f32 %v8530_v41, 16.0  ;;  %v8570_v37 = vmul.f32 %v16077_v36, %v16077_v36  ;;  %vm8443_vm13 = vcmp.eq.f32.partialorder %v8442_v15, 8.507059e+37 }
 0xd65   : > { %v8437_v23 = vadd.f32 %v11306_v6, %v8436_v56  ;;  %vm8440_vm12 = vmor %vm8438_vm3, %vm8439_vm10  ;;  %v8445_v53 = vor.u32 1.1754944e-38, %v8444_v49  ;;  %v8497_v9 = vadd.f32 0.05243302, %v8496_v42  ;;  %v8508_v60 = vadd.f32 0.112945676, %v8507_v63 }
 0xd66   : > { %v8532_v33 = vmul.f32 2.1237322e-06, %v16090_v19  ;;  %v8543_v25 = vmul.f32 3.8918573e-05, %v16090_v19  ;;  %v16096_v26 = vmin.f32 %v8570_v37, 16.0  ;;  %v7725_v2 = vadd.f32 %v16036_v34, %v7692_v24 }
 0xd67   : > { %v8441_v1 = vsel %vm8440_vm12, %v11306_v6, %v8437_v23  ;;  %v8461_v62 = vadd.f32 1.1283791, %v8460_v11  ;;  %v8509_v4 = vmul.f32 %v8508_v60, %v16031_v61  ;;  %v8482_v42 = vand.u32 2147483647, %v16074_v14 }
 0xd68   : > { %v8446_v28 = vsel %vm8443_vm13, %v8445_v53, %v8441_v1  ;;  %v11308_v10 = vpop.eup %11307  ;;  %v8533_v56 = vadd.f32 0.00028619796, %v8532_v33  ;;  %v8544_v15 = vadd.f32 0.001143296, %v8543_v25  ;;  %v8572_v49 = vmul.f32 2.1237322e-06, %v16096_v26 }
 0xd69   : > { %v8447_v41 = vmul.f32 %v8446_v28, %v8422_v7  ;;  %v8474_v6 = vmul.f32 %v11308_v10, %v16074_v14  ;;  %v8498_v63 = vmul.f32 %v8497_v9, %v16031_v61  ;;  %v8510_v23 = vadd.f32 0.4994258, %v8509_v4 }
 0xd6a   : > { %v8534_v11 = vmul.f32 %v8533_v56, %v16090_v19  ;;  %v8545_v53 = vmul.f32 %v8544_v15, %v16090_v19  ;;  %v8573_v60 = vadd.f32 0.00028619796, %v8572_v49  ;;  %v8484_v7 = vand.u32 2147483648, %v16074_v14  ;;  %v7895_v15 = vpop.f32.mrf.mxu3 }
 0xd6b   : > { %v10545_v37 = vclamps-f32 %v8447_v41, 1.0  ;;  %v8475_v24 = vsub.f32 1.0, %v8474_v6  ;;  %v8511_v1 = vmul.f32 %v8510_v23, %v16031_v61  ;;  %v8583_v33 = vmul.f32 3.8918573e-05, %v16096_v26  ;;  %10524 = vmatmul.msk.f32.gmra.mxu3 %vm2310_vm15, %v7725_v2 }
 0xd6c   : > { %v8535_v28 = vadd.f32 0.0036580483, %v8534_v11  ;;  %v8546_v3 = vadd.f32 0.014752088, %v8545_v53  ;;  %v8574_v9 = vmul.f32 %v8573_v60, %v16096_v26  ;;  %vm8479_vm2 = vweird.f32 %v11308_v10 }
 0xd6d   : > { %v9300_v25 = vadd.f32 1.0, %v10545_v37  ;;  %v8476_v4 = vmul.f32 %v11308_v10, %v8475_v24  ;;  %v16111_v41 = vadd.f32 1.0, %v8511_v1  ;;  %v8584_v56 = vadd.f32 0.001143296, %v8583_v33 }
 0xd6e   : > { %v8499_v6 = vadd.f32 0.18741608, %v8498_v63  ;;  %v8536_v23 = vmul.f32 %v8535_v28, %v16090_v19  ;;  %v8547_v18 = vmul.f32 %v8546_v3, %v16090_v19  ;;  %9631 = vrot.lane.b32.xlu0 %v15966_v51, %s11445_s19  ;;  %v8462_v2 = vmul.f32 %v8461_v62, %v15909_v54 }
 0xd6f   : > { %v9332_v49 = vmul.f32 %v9300_v25, %v16055_v58  ;;  %v8477_v37 = vadd.f32 %v11308_v10, %v8476_v4  ;;  %vm8478_vm8 = vweird.f32 %v16074_v14  ;;  %11309 = vrcp.f32 %v16111_v41 }
 0xd70   : > { %vm8480_vm9 = vmor %vm8478_vm8, %vm8479_vm2  ;;  %vm8483_vm1 = vcmp.eq.f32.partialorder %v8482_v42, 8.507059e+37  ;;  %v8485_v11 = vor.u32 1.1754944e-38, %v8484_v7  ;;  %v8575_v53 = vadd.f32 0.0036580483, %v8574_v9  ;;  %v16122_v58 = vadd.f32 %v15656_v57, %v7895_v15  ;;  %v195_v42 = vld [vmem:[%s17121_s2 + $0x38] sm:$0xf] }
 0xd71   : > { %10577 = vmatmul.msk.f32.gmra.mxu0 %vm9354_vm0, %v9332_v49  ;;  %v8481_v3 = vsel %vm8480_vm9, %v11308_v10, %v8477_v37  ;;  %v8537_v63 = vadd.f32 0.05243302, %v8536_v23  ;;  %v8548_v60 = vadd.f32 0.112945676, %v8547_v18  ;;  %v8585_v51 = vmul.f32 %v8584_v56, %v16096_v26 }
 0xd72   : > { %v8486_v54 = vsel %vm8483_vm1, %v8485_v11, %v8481_v3  ;;  %v8500_v62 = vmul.f32 %v8499_v6, %v16031_v61  ;;  %v7957_v57 = vmul.f32 0.5, %v15903_v5  ;;  %v8576_v7 = vmul.f32 %v8575_v53, %v16096_v26 }
 0xd73   : > { %v8487_v14 = vmul.f32 %v8486_v54, %v8462_v2  ;;  %v8549_v24 = vmul.f32 %v8548_v60, %v16090_v19  ;;  %v8586_v1 = vadd.f32 0.014752088, %v8585_v51  ;;  %v16134_v10 = vmul.f32 0.70710677, %v16122_v58 }
 0xd74   : > { %v7693_v18 = vmul.f32 %v16001_v29, %v16062_v50  ;;  %v8538_v25 = vmul.f32 %v8537_v63, %v16090_v19  ;;  %v8501_v4 = vadd.f32 1.1283791, %v8500_v62  ;;  %v8522_v5 = vand.u32 2147483647, %v16111_v41 }
 0xd75   : > { %v11310_v33 = vpop.eup %11309  ;;  %v10546_v61 = vclamps-f32 %v8487_v14, 1.0  ;;  %v8550_v28 = vadd.f32 0.4994258, %v8549_v24  ;;  %v8587_v9 = vmul.f32 %v8586_v1, %v16096_v26  ;;  %v8610_v15 = vmul.f32 %v16134_v10, %v16134_v10 }
 0xd76   : > { %v8514_v56 = vmul.f32 %v11310_v33, %v16111_v41  ;;  %9944 = vperm.xlu0 %10747, %v195_v42   ;;  %v8524_v6 = vand.u32 2147483648, %v16111_v41  ;;  %v8577_v37 = vadd.f32 0.05243302, %v8576_v7  ;;  %v7726_v53 = vadd.f32 %v16036_v34, %v7693_v18 }
 0xd77   : > { %v9301_v49 = vadd.f32 1.0, %v10546_v61  ;;  %v8551_v50 = vmul.f32 %v8550_v28, %v16090_v19  ;;  %v8588_v23 = vadd.f32 0.112945676, %v8587_v9  ;;  %v16146_v11 = vmin.f32 %v8610_v15, 16.0 }
 0xd78   : > { %v8515_v2 = vsub.f32 1.0, %v8514_v56  ;;  %v8539_v63 = vadd.f32 0.18741608, %v8538_v25  ;;  %vm8519_vm10 = vweird.f32 %v11310_v33  ;;  %10525 = vmatmul.msk.f32.gmra.mxu3 %vm2310_vm15, %v7726_v53  ;;  %vm8518_vm3 = vweird.f32 %v16111_v41  ;;  %v7229_v56 = vpop.xlane.xlu0 %7228 }
 0xd79   : > { %v9333_v3 = vmul.f32 %v9301_v49, %v7957_v57  ;;  %v16149_v60 = vadd.f32 1.0, %v8551_v50  ;;  %v8589_v51 = vmul.f32 %v8588_v23, %v16096_v26  ;;  %v8612_v62 = vmul.f32 2.1237322e-06, %v16146_v11  ;;  %vm8520_vm12 = vmor %vm8518_vm3, %vm8519_vm10 }
 0xd7a   : > { %v8516_v54 = vmul.f32 %v11310_v33, %v8515_v2  ;;  %v8623_v14 = vmul.f32 3.8918573e-05, %v16146_v11  ;;  %v8502_v57 = vmul.f32 %v8501_v4, %v15993_v47  ;;  %v8525_v7 = vor.u32 1.1754944e-38, %v8524_v6 }
 0xd7b   : > { %11311 = vrcp.f32 %v16149_v60  ;;  %10578 = vmatmul.msk.f32.gmra.mxu0 %vm9354_vm0, %v9333_v3  ;;  %v8590_v1 = vadd.f32 0.4994258, %v8589_v51  ;;  %v8613_v42 = vadd.f32 0.00028619796, %v8612_v62  ;;  %v8578_v18 = vmul.f32 %v8577_v37, %v16096_v26 }
 0xd7c   : > { %v8517_v24 = vadd.f32 %v11310_v33, %v8516_v54  ;;  %v8624_v61 = vadd.f32 0.001143296, %v8623_v14  ;;  %vm8523_vm13 = vcmp.eq.f32.partialorder %v8522_v5, 8.507059e+37  ;;  %v8540_v28 = vmul.f32 %v8539_v63, %v16090_v19 }
 0xd7d   : > { %v8591_v9 = vmul.f32 %v8590_v1, %v16096_v26  ;;  %v8614_v49 = vmul.f32 %v8613_v42, %v16146_v11  ;;  %v7277_v50 = vmul.f32 %v7229_v56, %v17606_v43  ;;  %v8579_v23 = vadd.f32 0.18741608, %v8578_v18 }
 0xd7e   : > { %v8521_v25 = vsel %vm8520_vm12, %v11310_v33, %v8517_v24  ;;  %v8625_v41 = vmul.f32 %v8624_v61, %v16146_v11  ;;  %v7958_v37 = vmul.f32 0.5, %v15961_v55  ;;  %v8541_v53 = vadd.f32 1.1283791, %v8540_v28 }
 0xd7f   : > { %v8526_v15 = vsel %vm8523_vm13, %v8525_v7, %v8521_v25  ;;  %v16165_v4 = vadd.f32 1.0, %v8591_v9  ;;  %v16167_v33 = vadd.f32 1e-05, %v7277_v50  ;;  %v8615_v3 = vadd.f32 0.0036580483, %v8614_v49 }
 0xd80   : > { %v8527_v47 = vmul.f32 %v8526_v15, %v8502_v57  ;;  %v8626_v2 = vadd.f32 0.014752088, %v8625_v41  ;;  %v8562_v62 = vand.u32 2147483647, %v16149_v60  ;;  %v8564_v14 = vand.u32 2147483648, %v16149_v60  ;;  %v7058_v7 = vpop.xlane.xlu0 %7057 }
 0xd81   : > { %v11312_v6 = vpop.eup %11311  ;;  %11313 = vrcp.f32 %v16165_v4  ;;  %v8580_v24 = vmul.f32 %v8579_v23, %v16096_v26  ;;  %v8616_v55 = vmul.f32 %v8615_v3, %v16146_v11  ;;  %v7092_v18 = vmul.f32 %v7058_v7, %v17606_v43 }
 0xd82   : > { %v10547_v5 = vclamps-f32 %v8527_v47, 1.0  ;;  %v8554_v19 = vmul.f32 %v11312_v6, %v16149_v60  ;;  %v8627_v54 = vmul.f32 %v8626_v2, %v16146_v11  ;;  %11315 = vrsqrt.f32 %v16167_v33 }
 0xd83   : > { %vm8559_vm2 = vweird.f32 %v11312_v6  ;;  %v8542_v25 = vmul.f32 %v8541_v53, %v16070_v40  ;;  %vm8558_vm8 = vweird.f32 %v16149_v60  ;;  %v8565_v26 = vor.u32 1.1754944e-38, %v8564_v14 }
 0xd84   : > { %v9302_v63 = vadd.f32 1.0, %v10547_v5  ;;  %v8555_v51 = vsub.f32 1.0, %v8554_v19  ;;  %v8628_v57 = vadd.f32 0.112945676, %v8627_v54  ;;  %vm8560_vm9 = vmor %vm8558_vm8, %vm8559_vm2  ;;  %v8581_v56 = vadd.f32 1.1283791, %v8580_v24 }
 0xd85   : > { %v16185_v49 = vsub.f32 %v15630_v0, %v7092_v18  ;;  %vm8563_vm1 = vcmp.eq.f32.partialorder %v8562_v62, 8.507059e+37  ;;  %v8602_v40 = vand.u32 2147483647, %v16165_v4  ;;  %v8617_v2 = vadd.f32 0.05243302, %v8616_v55 }
 0xd86   : > { %v9334_v1 = vmul.f32 %v9302_v63, %v7958_v37  ;;  %v8556_v42 = vmul.f32 %v11312_v6, %v8555_v51  ;;  %v8629_v9 = vmul.f32 %v8628_v57, %v16146_v11  ;;  %v8604_v37 = vand.u32 2147483648, %v16165_v4 }
 0xd87   : > { %v11314_v61 = vpop.eup %11313  ;;  %v7156_v3 = vmul.f32 %v16185_v49, %v16185_v49  ;;  %v7959_v63 = vmul.f32 0.5, %v16051_v39  ;;  %v8582_v62 = vmul.f32 %v8581_v56, %v16077_v36  ;;  %vm8598_vm3 = vweird.f32 %v16165_v4  ;;  %v16201_v36 = vld [vmem:[%s17121_s2 + $0xf8] ss:$0 sm:$0xff] }
 0xd88   : > { %v8557_v28 = vadd.f32 %v11312_v6, %v8556_v42  ;;  %10579 = vmatmul.msk.f32.gmra.mxu0 %vm9354_vm0, %v9334_v1  ;;  %v8594_v15 = vmul.f32 %v11314_v61, %v16165_v4  ;;  %v11316_v41 = vpop.eup %11315  ;;  %v8630_v47 = vadd.f32 0.4994258, %v8629_v9  ;;  %vm8599_vm10 = vweird.f32 %v11314_v61 }
 0xd89   : > { %v7549_v5 = vmul.f32 %v11316_v41, %v16167_v33  ;;  %v7248_v24 = vsel %vm2310_vm15, %v7156_v3, 0.0  ;;  %v8618_v42 = vmul.f32 %v8617_v2, %v16146_v11  ;;  %vm8600_vm12 = vmor %vm8598_vm3, %vm8599_vm10  ;;  %vm8603_vm13 = vcmp.eq.f32.partialorder %v8602_v40, 8.507059e+37 }
 0xd8a   : > { %v8561_v50 = vsel %vm8560_vm9, %v11312_v6, %v8557_v28  ;;  %v8595_v60 = vsub.f32 1.0, %v8594_v15  ;;  %v8631_v53 = vmul.f32 %v8630_v47, %v16146_v11  ;;  %7249 = vadd.xlane.f32.xlu2 %v7248_v24  ;;  %v8605_v39 = vor.u32 1.1754944e-38, %v8604_v37 }
 0xd8b   : > { %v8566_v23 = vsel %vm8563_vm1, %v8565_v26, %v8561_v50  ;;  %v7550_v51 = vmul.f32 %v11316_v41, %v7549_v5  ;;  %vm7555_vm2 = vweird.f32 %v11316_v41  ;;  %v8619_v56 = vadd.f32 0.18741608, %v8618_v42 }
 0xd8c   : > { %v8567_v19 = vmul.f32 %v8566_v23, %v8542_v25  ;;  %v8596_v6 = vmul.f32 %v11314_v61, %v8595_v60  ;;  %v8632_v14 = vadd.f32 1.0, %v8631_v53  ;;  %vm7554_vm8 = vweird.f32 %v16167_v33 }
 0xd8d   : > { %v7551_v57 = vmul.f32 0.5, %v7550_v51  ;;  %vm7556_vm9 = vmor %vm7554_vm8, %vm7555_vm2  ;;  %v7960_v2 = vmul.f32 0.5, %v16059_v22 }
 0xd8e   : > { %v10548_v54 = vclamps-f32 %v8567_v19, 1.0  ;;  %v8597_v1 = vadd.f32 %v11314_v61, %v8596_v6  ;;  %11317 = vrcp.f32 %v8632_v14  ;;  %v8620_v19 = vmul.f32 %v8619_v56, %v16146_v11  ;;  %v16219_v6 = vpop.f32.mrf.mxu0 }
 0xd8f   : > { %v7552_v25 = vsub.f32 1.5, %v7551_v57  ;;  %v8642_v11 = vand.u32 2147483647, %v8632_v14  ;;  %vm8638_vm10 = vweird.f32 %v8632_v14 }
 0xd90   : > { %v9303_v55 = vadd.f32 1.0, %v10548_v54  ;;  %v8601_v18 = vsel %vm8600_vm12, %v11314_v61, %v8597_v1  ;;  %v8621_v22 = vadd.f32 1.1283791, %v8620_v19 }
 0xd91   : > { %v8606_v9 = vsel %vm8603_vm13, %v8605_v39, %v8601_v18  ;;  %v7553_v15 = vmul.f32 %v11316_v41, %v7552_v25  ;;  %vm8643_vm12 = vcmp.eq.f32.partialorder %v8642_v11, 8.507059e+37 }
 0xd92   : > { %v7898_v7 = vpop.f32.mrf.mxu3  ;;  %v9335_v28 = vmul.f32 %v9303_v55, %v7959_v63  ;;  %v8607_v26 = vmul.f32 %v8606_v9, %v8582_v62  ;;  %v8622_v39 = vmul.f32 %v8621_v22, %v16134_v10 }
 0xd93   : > { %v16204_v4 = vadd.f32 %v16201_v36, %v7898_v7  ;;  %v7557_v40 = vsel %vm7556_vm9, %v11316_v41, %v7553_v15  ;;  %v8644_v41 = vand.u32 2147483648, %v8632_v14 }
 0xd94   : > { %10580 = vmatmul.msk.f32.gmra.mxu0 %vm9354_vm0, %v9335_v28  ;;  %v10549_v50 = vclamps-f32 %v8607_v26, 1.0  ;;  %v11318_v47 = vpop.eup %11317  ;;  %v7661_v23 = vmul.f32 %v7557_v40, %v15614_v20  ;;  %v7961_v40 = vmul.f32 0.5, %v16122_v58 }
 0xd95   : > { %v16209_v61 = vmul.f32 0.70710677, %v16204_v4  ;;  %v8634_v33 = vmul.f32 %v11318_v47, %v8632_v14  ;;  %vm8639_vm1 = vweird.f32 %v11318_v47  ;;  %v8645_v57 = vor.u32 1.1754944e-38, %v8644_v41 }
 0xd96   : > { %v9304_v5 = vadd.f32 1.0, %v10549_v50  ;;  %v7694_v53 = vmul.f32 %v16001_v29, %v7661_v23  ;;  %vm8640_vm3 = vmor %vm8638_vm10, %vm8639_vm1  ;;  %v16229_v56 = vpop.f32.mrf.mxu0 }
 0xd97   : > { %v8650_v60 = vmul.f32 %v16209_v61, %v16209_v61  ;;  %v8635_v63 = vsub.f32 1.0, %v8634_v33 }
 0xd98   : > { %v9336_v3 = vmul.f32 %v9304_v5, %v7960_v2  ;;  %v7727_v54 = vadd.f32 %v16036_v34, %v7694_v53 }
 0xd99   : > { %v16216_v37 = vmin.f32 %v8650_v60, 16.0  ;;  %v8636_v62 = vmul.f32 %v11318_v47, %v8635_v63 }
 0xd9a   : > { %10526 = vmatmul.msk.f32.gmra.mxu3 %vm2310_vm15, %v7727_v54 }
 0xd9b   : > { %v8652_v20 = vmul.f32 2.1237322e-06, %v16216_v37  ;;  %v8663_v51 = vmul.f32 3.8918573e-05, %v16216_v37  ;;  %v8637_v42 = vadd.f32 %v11318_v47, %v8636_v62 }
 0xd9c   : > { %10581 = vmatmul.msk.f32.gmra.mxu0 %vm9354_vm0, %v9336_v3 }
 0xd9d   : > { %v8653_v24 = vadd.f32 0.00028619796, %v8652_v20  ;;  %v8664_v1 = vadd.f32 0.001143296, %v8663_v51  ;;  %v8641_v18 = vsel %vm8640_vm3, %v11318_v47, %v8637_v42 }
 0xd9e   : > { %v8646_v25 = vsel %vm8643_vm12, %v8645_v57, %v8641_v18  ;;  %v16238_v63 = vpop.f32.mrf.mxu0 }
 0xd9f   : > { %v8654_v7 = vmul.f32 %v8653_v24, %v16216_v37  ;;  %v8665_v55 = vmul.f32 %v8664_v1, %v16216_v37  ;;  %v8647_v9 = vmul.f32 %v8646_v25, %v8622_v39 }
 0xda1   : > { %v8666_v28 = vadd.f32 0.014752088, %v8665_v55  ;;  %v8655_v26 = vadd.f32 0.0036580483, %v8654_v7  ;;  %v10550_v50 = vclamps-f32 %v8647_v9, 1.0 }
 0xda3   : > { %v8667_v15 = vmul.f32 %v8666_v28, %v16216_v37  ;;  %v9305_v23 = vadd.f32 1.0, %v10550_v50  ;;  %v8656_v60 = vmul.f32 %v8655_v26, %v16216_v37 }
 0xda5   : > { %v8668_v14 = vadd.f32 0.112945676, %v8667_v15  ;;  %v9337_v10 = vmul.f32 %v9305_v23, %v7961_v40  ;;  %v8657_v19 = vadd.f32 0.05243302, %v8656_v60 }
 0xda6   : > { %v16246_v7 = vpop.f32.mrf.mxu0 }
 0xda7   : > { %v8669_v2 = vmul.f32 %v8668_v14, %v16216_v37  ;;  %10582 = vmatmul.msk.f32.gmra.mxu0 %vm9354_vm0, %v9337_v10  ;;  %v8658_v58 = vmul.f32 %v8657_v19, %v16216_v37 }
 0xda9   : > { %v8670_v47 = vadd.f32 0.4994258, %v8669_v2  ;;  %v8659_v22 = vadd.f32 0.18741608, %v8658_v58 }
 0xdaa   : > { %v7232_v5 = vpop.xlane.xlu1 %7231 }
 0xdab   : > { %v7278_v33 = vmul.f32 %v7232_v5, %v17606_v43  ;;  %v8671_v53 = vmul.f32 %v8670_v47, %v16216_v37  ;;  %v8660_v18 = vmul.f32 %v8659_v22, %v16216_v37 }
 0xdad   : > { %v7310_v3 = vadd.f32 1e-05, %v7278_v33  ;;  %v8672_v41 = vadd.f32 1.0, %v8671_v53  ;;  %v8661_v60 = vadd.f32 1.1283791, %v8660_v18 }
 0xdae   : > { %v7235_v20 = vpop.xlane.xlu2 %7234  ;;  %v16256_v19 = vpop.f32.mrf.mxu0 }
 0xdaf   : > { %11319 = vrsqrt.f32 %v7310_v3  ;;  %v7279_v51 = vmul.f32 %v7235_v20, %v17606_v43  ;;  %v8684_v14 = vand.u32 2147483648, %v8672_v41  ;;  %v8682_v37 = vand.u32 2147483647, %v8672_v41 }
 0xdb0   : > { %11321 = vrcp.f32 %v8672_v41  ;;  %vm8678_vm8 = vweird.f32 %v8672_v41  ;;  %vm7564_vm1 = vweird.f32 %v7310_v3  ;;  %v8662_v20 = vmul.f32 %v8661_v60, %v16209_v61 }
 0xdb1   : > { %v7311_v62 = vadd.f32 1e-05, %v7279_v51  ;;  %v8685_v33 = vor.u32 1.1754944e-38, %v8684_v14  ;;  %vm8683_vm10 = vcmp.eq.f32.partialorder %v8682_v37, 8.507059e+37  ;;  %v7962_v61 = vmul.f32 0.5, %v16204_v4 }
 0xdb2   : > { %v7061_v54 = vpop.xlane.xlu1 %7060 }
 0xdb3   : > { %v7093_v11 = vmul.f32 %v7061_v54, %v17606_v43  ;;  %11323 = vrsqrt.f32 %v7311_v62 }
 0xdb5   : > { %v11320_v24 = vpop.eup %11319  ;;  %v16244_v1 = vsub.f32 %v15676_v48, %v7093_v11  ;;  %v7238_v42 = vpop.xlane.xlu0 %7237 }
 0xdb6   : > { %v11322_v57 = vpop.eup %11321  ;;  %v7559_v55 = vmul.f32 %v11320_v24, %v7310_v3  ;;  %v7280_v39 = vmul.f32 %v7238_v42, %v17606_v43  ;;  %vm7565_vm2 = vweird.f32 %v11320_v24  ;;  %v16267_v60 = vpop.f32.mrf.mxu0 }
 0xdb7   : > { %v8674_v25 = vmul.f32 %v11322_v57, %v8672_v41  ;;  %v7157_v28 = vmul.f32 %v16244_v1, %v16244_v1  ;;  %vm8679_vm13 = vweird.f32 %v11322_v57  ;;  %vm7566_vm3 = vmor %vm7564_vm1, %vm7565_vm2 }
 0xdb8   : > { %v7560_v9 = vmul.f32 %v11320_v24, %v7559_v55  ;;  %v16252_v26 = vadd.f32 1e-05, %v7280_v39  ;;  %vm8680_vm9 = vmor %vm8678_vm8, %vm8679_vm13  ;;  %vm7574_vm13 = vweird.f32 %v7311_v62 }
 0xdb9   : > { %v8675_v15 = vsub.f32 1.0, %v8674_v25  ;;  %v7251_v50 = vsel %vm2310_vm15, %v7157_v28, 0.0  ;;  %v11324_v23 = vpop.eup %11323 }
 0xdba   : > { %v7561_v40 = vmul.f32 0.5, %v7560_v9  ;;  %7252 = vadd.xlane.f32.xlu1 %v7251_v50  ;;  %11325 = vrsqrt.f32 %v16252_v26  ;;  %v7569_v47 = vmul.f32 %v11324_v23, %v7311_v62  ;;  %vm7575_vm12 = vweird.f32 %v11324_v23 }
 0xdbb   : > { %v8676_v2 = vmul.f32 %v11322_v57, %v8675_v15  ;;  %vm7576_vm2 = vmor %vm7574_vm13, %vm7575_vm12 }
 0xdbc   : > { %v7562_v10 = vsub.f32 1.5, %v7561_v40  ;;  %v7570_v58 = vmul.f32 %v11324_v23, %v7569_v47 }
 0xdbd   : > { %v8677_v5 = vadd.f32 %v11322_v57, %v8676_v2 }
 0xdbe   : > { %v7563_v53 = vmul.f32 %v11320_v24, %v7562_v10  ;;  %v7571_v42 = vmul.f32 0.5, %v7570_v58 }
 0xdbf   : > { %v8681_v51 = vsel %vm8680_vm9, %v11322_v57, %v8677_v5  ;;  %vm7584_vm9 = vweird.f32 %v16252_v26 }
 0xdc0   : > { %v11326_v54 = vpop.eup %11325  ;;  %v8686_v22 = vsel %vm8683_vm10, %v8685_v33, %v8681_v51  ;;  %v7567_v11 = vsel %vm7566_vm3, %v11320_v24, %v7563_v53  ;;  %v7572_v18 = vsub.f32 1.5, %v7571_v42 }
 0xdc1   : > { %v8687_v55 = vmul.f32 %v8686_v22, %v8662_v20  ;;  %v7662_v39 = vmul.f32 %v7567_v11, %v15786_v59  ;;  %v7579_v41 = vmul.f32 %v11326_v54, %v16252_v26  ;;  %vm7585_vm8 = vweird.f32 %v11326_v54 }
 0xdc2   : > { %v7573_v57 = vmul.f32 %v11324_v23, %v7572_v18  ;;  %vm7586_vm1 = vmor %vm7584_vm9, %vm7585_vm8 }
 0xdc3   : > { %v10551_v25 = vclamps-f32 %v8687_v55, 1.0  ;;  %v7580_v28 = vmul.f32 %v11326_v54, %v7579_v41  ;;  %v7695_v3 = vmul.f32 %v16001_v29, %v7662_v39  ;;  %v7901_v9 = vpop.f32.mrf.mxu3  ;;  %v7241_v50 = vpop.xlane.xlu2 %7240 }
 0xdc4   : > { %v16264_v14 = vadd.f32 %v16201_v36, %v7901_v9  ;;  %v7577_v40 = vsel %vm7576_vm2, %v11324_v23, %v7573_v57  ;;  %v7281_v2 = vmul.f32 %v7241_v50, %v17606_v43  ;;  %v16288_v55 = vpop.f32.mrf.mxu0 }
 0xdc5   : > { %v9306_v15 = vadd.f32 1.0, %v10551_v25  ;;  %v7581_v24 = vmul.f32 0.5, %v7580_v28  ;;  %v7728_v59 = vadd.f32 %v16036_v34, %v7695_v3  ;;  %v7663_v4 = vmul.f32 %v7577_v40, %v15809_v44 }
 0xdc6   : > { %v7313_v62 = vadd.f32 1e-05, %v7281_v2  ;;  %v16273_v47 = vmul.f32 0.70710677, %v16264_v14 }
 0xdc7   : > { %v9338_v37 = vmul.f32 %v9306_v15, %v7962_v61  ;;  %v7582_v10 = vsub.f32 1.5, %v7581_v24  ;;  %10527 = vmatmul.msk.f32.gmra.mxu3 %vm2310_vm15, %v7728_v59  ;;  %v7696_v23 = vmul.f32 %v16001_v29, %v7663_v4 }
 0xdc8   : > { %11327 = vrsqrt.f32 %v7313_v62  ;;  %v8690_v44 = vmul.f32 %v16273_v47, %v16273_v47  ;;  %vm7594_vm3 = vweird.f32 %v7313_v62 }
 0xdc9   : > { %v7583_v5 = vmul.f32 %v11326_v54, %v7582_v10  ;;  %10583 = vmatmul.msk.f32.gmra.mxu0 %vm9354_vm0, %v9338_v37  ;;  %v7729_v53 = vadd.f32 %v16036_v34, %v7696_v23 }
 0xdca   : > { %v16282_v20 = vmin.f32 %v8690_v44, 16.0 }
 0xdcb   : > { %v7587_v33 = vsel %vm7586_vm1, %v11326_v54, %v7583_v5 }
 0xdcc   : > { %v7664_v58 = vmul.f32 %v7587_v33, %v15844_v31  ;;  %v8692_v51 = vmul.f32 2.1237322e-06, %v16282_v20  ;;  %v8703_v26 = vmul.f32 3.8918573e-05, %v16282_v20  ;;  %v194_v31 = vld [vmem:[%s17121_s2 + $0x30] sm:$0xff] }
 0xdcd   : > { %v7247_v22 = vpop.xlane.xlu0 %7246 }
 0xdce   : > { %v7697_v11 = vmul.f32 %v16001_v29, %v7664_v58  ;;  %v11328_v42 = vpop.eup %11327  ;;  %v8693_v39 = vadd.f32 0.00028619796, %v8692_v51  ;;  %v8704_v54 = vadd.f32 0.001143296, %v8703_v26  ;;  %v7283_v41 = vmul.f32 %v7247_v22, %v17606_v43 }
 0xdcf   : > { %10528 = vmatmul.msk.f32.gmra.mxu3 %vm2310_vm15, %v7729_v53  ;;  %v7589_v25 = vmul.f32 %v11328_v42, %v7313_v62  ;;  %vm7595_vm10 = vweird.f32 %v11328_v42 }
 0xdd0   : > { %v7904_v18 = vpop.f32.mrf.mxu3  ;;  %v8694_v3 = vmul.f32 %v8693_v39, %v16282_v20  ;;  %v8705_v61 = vmul.f32 %v8704_v54, %v16282_v20  ;;  %v7244_v57 = vpop.xlane.xlu1 %7243  ;;  %v16299_v9 = vadd.f32 1e-05, %v7283_v41  ;;  %v7730_v59 = vadd.f32 %v16036_v34, %v7697_v11  ;;  %vm7596_vm12 = vmor %vm7594_vm3, %vm7595_vm10 }
 0xdd1   : > { %v16295_v28 = vadd.f32 %v16201_v36, %v7904_v18  ;;  %v7590_v15 = vmul.f32 %v11328_v42, %v7589_v25  ;;  %v7282_v24 = vmul.f32 %v7244_v57, %v17606_v43  ;;  %v16321_v39 = vpop.f32.mrf.mxu0 }
 0xdd2   : > { %v8695_v40 = vadd.f32 0.0036580483, %v8694_v3  ;;  %v8706_v2 = vadd.f32 0.014752088, %v8705_v61  ;;  %11329 = vrsqrt.f32 %v16299_v9  ;;  %vm7614_vm8 = vweird.f32 %v16299_v9 }
 0xdd3   : > { %v16303_v50 = vmul.f32 0.70710677, %v16295_v28  ;;  %9939 = vperm.xlu1 %10748, %v194_v31   ;;  %v7591_v37 = vmul.f32 0.5, %v7590_v15  ;;  %v16307_v4 = vadd.f32 1e-05, %v7282_v24 }
 0xdd4   : > { %v8696_v5 = vmul.f32 %v8695_v40, %v16282_v20  ;;  %v8707_v23 = vmul.f32 %v8706_v2, %v16282_v20 }
 0xdd5   : > { %v8730_v10 = vmul.f32 %v16303_v50, %v16303_v50  ;;  %v7592_v44 = vsub.f32 1.5, %v7591_v37  ;;  %11331 = vrsqrt.f32 %v16307_v4  ;;  %vm7604_vm9 = vweird.f32 %v16307_v4 }
 0xdd6   : > { %v8697_v53 = vadd.f32 0.05243302, %v8696_v5  ;;  %v8708_v58 = vadd.f32 0.112945676, %v8707_v23 }
 0xdd7   : > { %v16314_v33 = vmin.f32 %v8730_v10, 16.0  ;;  %10529 = vmatmul.msk.f32.gmra.mxu3 %vm2310_vm15, %v7730_v59  ;;  %v7593_v51 = vmul.f32 %v11328_v42, %v7592_v44 }
 0xdd8   : > { %v16319_v11 = vpop.eup %11329  ;;  %v8709_v54 = vmul.f32 %v8708_v58, %v16282_v20  ;;  %v8698_v25 = vmul.f32 %v8697_v53, %v16282_v20 }
 0xdd9   : > { %v8732_v26 = vmul.f32 2.1237322e-06, %v16314_v33  ;;  %v8743_v22 = vmul.f32 3.8918573e-05, %v16314_v33  ;;  %v7597_v41 = vsel %vm7596_vm12, %v11328_v42, %v7593_v51  ;;  %v7609_v18 = vmul.f32 %v16319_v11, %v16299_v9 }
 0xdda   : > { %v8710_v3 = vadd.f32 0.4994258, %v8709_v54  ;;  %v7665_v24 = vmul.f32 %v7597_v41, %v15922_v35  ;;  %v8699_v10 = vadd.f32 0.18741608, %v8698_v25  ;;  %vm7615_vm13 = vweird.f32 %v16319_v11  ;;  %v16343_v41 = vpop.f32.mrf.mxu0 }
 0xddb   : > { %v8733_v31 = vadd.f32 0.00028619796, %v8732_v26  ;;  %v8744_v62 = vadd.f32 0.001143296, %v8743_v22  ;;  %v11332_v61 = vpop.eup %11331  ;;  %v7610_v57 = vmul.f32 %v16319_v11, %v7609_v18  ;;  %vm16355_vm1 = vmor %vm7614_vm8, %vm7615_vm13 }
 0xddc   : > { %v8711_v59 = vmul.f32 %v8710_v3, %v16282_v20  ;;  %v7599_v40 = vmul.f32 %v11332_v61, %v16307_v4  ;;  %v7698_v35 = vmul.f32 %v16001_v29, %v7665_v24  ;;  %v8700_v54 = vmul.f32 %v8699_v10, %v16282_v20 }
 0xddd   : > { %v8734_v15 = vmul.f32 %v8733_v31, %v16314_v33  ;;  %v7611_v42 = vmul.f32 0.5, %v7610_v57  ;;  %v8745_v37 = vmul.f32 %v8744_v62, %v16314_v33  ;;  %vm7605_vm2 = vweird.f32 %v11332_v61 }
 0xdde   : > { %v16333_v5 = vadd.f32 1.0, %v8711_v59  ;;  %v7600_v23 = vmul.f32 %v11332_v61, %v7599_v40  ;;  %v7907_v44 = vpop.f32.mrf.mxu3  ;;  %v7731_v20 = vadd.f32 %v16036_v34, %v7698_v35  ;;  %v8701_v40 = vadd.f32 1.1283791, %v8700_v54  ;;  %vm7606_vm10 = vmor %vm7604_vm9, %vm7605_vm2 }
 0xddf   : > { %v8735_v2 = vadd.f32 0.0036580483, %v8734_v15  ;;  %v7612_v53 = vsub.f32 1.5, %v7611_v42  ;;  %v8746_v58 = vadd.f32 0.014752088, %v8745_v37  ;;  %v16336_v51 = vadd.f32 %v16201_v36, %v7907_v44 }
 0xde0   : > { %11333 = vrcp.f32 %v16333_v5  ;;  %v7601_v26 = vmul.f32 0.5, %v7600_v23  ;;  %10530 = vmatmul.msk.f32.gmra.mxu3 %vm2310_vm15, %v7731_v20  ;;  %v8722_v37 = vand.u32 2147483647, %v16333_v5  ;;  %vm8718_vm12 = vweird.f32 %v16333_v5 }
 0xde1   : > { %v8736_v22 = vmul.f32 %v8735_v2, %v16314_v33  ;;  %v8747_v18 = vmul.f32 %v8746_v58, %v16314_v33  ;;  %v16347_v31 = vmul.f32 0.70710677, %v16336_v51  ;;  %v7613_v3 = vmul.f32 %v16319_v11, %v7612_v53 }
 0xde2   : > { %v7602_v25 = vsub.f32 1.5, %v7601_v26  ;;  %v8724_v26 = vand.u32 2147483648, %v16333_v5  ;;  %vm8723_vm2 = vcmp.eq.f32.partialorder %v8722_v37, 8.507059e+37 }
 0xde3   : > { %v8748_v29 = vadd.f32 0.112945676, %v8747_v18  ;;  %v8770_v62 = vmul.f32 %v16347_v31, %v16347_v31  ;;  %v8737_v24 = vadd.f32 0.05243302, %v8736_v22  ;;  %v7617_v10 = vsel %vm16355_vm1, %v16319_v11, %v7613_v3 }
 0xde4   : > { %v7603_v57 = vmul.f32 %v11332_v61, %v7602_v25 }
 0xde5   : > { %v8749_v42 = vmul.f32 %v8748_v29, %v16314_v33  ;;  %v16360_v9 = vmin.f32 %v8770_v62, 16.0  ;;  %v8738_v22 = vmul.f32 %v8737_v24, %v16314_v33  ;;  %v7667_v29 = vmul.f32 %v7617_v10, %v15979_v30 }
 0xde6   : > { %v11334_v59 = vpop.eup %11333  ;;  %v7910_v2 = vpop.f32.mrf.mxu3  ;;  %v7607_v4 = vsel %vm7606_vm10, %v11332_v61, %v7603_v57  ;;  %v8702_v10 = vmul.f32 %v8701_v40, %v16273_v47 }
 0xde7   : > { %v8714_v34 = vmul.f32 %v11334_v59, %v16333_v5  ;;  %v7666_v23 = vmul.f32 %v7607_v4, %v15990_v17  ;;  %v8750_v44 = vadd.f32 0.4994258, %v8749_v42  ;;  %v8772_v53 = vmul.f32 2.1237322e-06, %v16360_v9  ;;  %v16380_v17 = vld [vmem:[%s17121_s2 + $0x138] ss:$0 sm:$0xff]  ;;  %v16389_v57 = vpop.f32.mrf.mxu0 }
 0xde8   : > { %v8783_v58 = vmul.f32 3.8918573e-05, %v16360_v9  ;;  %v16374_v54 = vadd.f32 %v16201_v36, %v7910_v2  ;;  %vm8719_vm3 = vweird.f32 %v11334_v59  ;;  %v16396_v42 = vld [vmem:[%s17121_s2 + $0x140] ss:$0 sm:$0xff]  ;;  %v8739_v30 = vadd.f32 0.18741608, %v8738_v22 }
 0xde9   : > { %v8715_v35 = vsub.f32 1.0, %v8714_v34  ;;  %v8751_v61 = vmul.f32 %v8750_v44, %v16314_v33  ;;  %v8773_v18 = vadd.f32 0.00028619796, %v8772_v53  ;;  %v7699_v11 = vmul.f32 %v16380_v17, %v7666_v23  ;;  %vm8720_vm13 = vmor %vm8718_vm12, %vm8719_vm3 }
 0xdea   : > { %v8784_v25 = vadd.f32 0.001143296, %v8783_v58  ;;  %v16385_v62 = vmul.f32 0.70710677, %v16374_v54  ;;  %v8725_v23 = vor.u32 1.1754944e-38, %v8724_v26  ;;  %v8740_v40 = vmul.f32 %v8739_v30, %v16314_v33 }
 0xdeb   : > { %v8716_v3 = vmul.f32 %v11334_v59, %v8715_v35  ;;  %v16387_v20 = vadd.f32 1.0, %v8751_v61  ;;  %v8774_v15 = vmul.f32 %v8773_v18, %v16360_v9  ;;  %v7732_v2 = vadd.f32 %v16396_v42, %v7699_v11 }
 0xdec   : > { %v8785_v24 = vmul.f32 %v8784_v25, %v16360_v9  ;;  %v8810_v4 = vmul.f32 %v16385_v62, %v16385_v62  ;;  %v7700_v18 = vmul.f32 %v16380_v17, %v7667_v29 }
 0xded   : > { %v8717_v34 = vadd.f32 %v11334_v59, %v8716_v3  ;;  %11335 = vrcp.f32 %v16387_v20  ;;  %10531 = vmatmul.msk.f32.gmra.mxu3 %vm2310_vm15, %v7732_v2  ;;  %v8775_v58 = vadd.f32 0.0036580483, %v8774_v15  ;;  %vm8758_vm9 = vweird.f32 %v16387_v20 }
 0xdee   : > { %v7913_v44 = vpop.f32.mrf.mxu3  ;;  %v8786_v35 = vadd.f32 0.014752088, %v8785_v24  ;;  %v16405_v61 = vmin.f32 %v8810_v4, 16.0  ;;  %v7733_v33 = vadd.f32 %v16396_v42, %v7700_v18  ;;  %v7963_v4 = vmul.f32 0.5, %v16264_v14 }
 0xdef   : > { %v8721_v53 = vsel %vm8720_vm13, %v11334_v59, %v8717_v34  ;;  %v16408_v22 = vadd.f32 %v16201_v36, %v7913_v44  ;;  %v8776_v3 = vmul.f32 %v8775_v58, %v16360_v9  ;;  %v16422_v30 = vpop.f32.mrf.mxu0  ;;  %v8764_v14 = vand.u32 2147483648, %v16387_v20 }
 0xdf0   : > { %v8726_v5 = vsel %vm8723_vm2, %v8725_v23, %v8721_v53  ;;  %v8787_v37 = vmul.f32 %v8786_v35, %v16360_v9  ;;  %v8812_v26 = vmul.f32 2.1237322e-06, %v16405_v61  ;;  %v8823_v25 = vmul.f32 3.8918573e-05, %v16405_v61 }
 0xdf1   : > { %v8727_v47 = vmul.f32 %v8726_v5, %v8702_v10  ;;  %v16416_v59 = vmul.f32 0.70710677, %v16408_v22  ;;  %v8741_v23 = vadd.f32 1.1283791, %v8740_v40 }
 0xdf2   : > { %v8788_v15 = vadd.f32 0.112945676, %v8787_v37  ;;  %v8813_v2 = vadd.f32 0.00028619796, %v8812_v26  ;;  %v8824_v34 = vadd.f32 0.001143296, %v8823_v25 }
 0xdf3   : > { %v10552_v11 = vclamps-f32 %v8727_v47, 1.0  ;;  %v11336_v24 = vpop.eup %11335  ;;  %v8850_v29 = vmul.f32 %v16416_v59, %v16416_v59  ;;  %v8762_v37 = vand.u32 2147483647, %v16387_v20  ;;  %v8777_v26 = vadd.f32 0.05243302, %v8776_v3 }
 0xdf4   : > { %v8754_v44 = vmul.f32 %v11336_v24, %v16387_v20  ;;  %v8789_v53 = vmul.f32 %v8788_v15, %v16360_v9  ;;  %v8814_v58 = vmul.f32 %v8813_v2, %v16405_v61  ;;  %v8825_v35 = vmul.f32 %v8824_v34, %v16405_v61 }
 0xdf5   : > { %v9307_v10 = vadd.f32 1.0, %v10552_v11  ;;  %v16429_v5 = vmin.f32 %v8850_v29, 16.0  ;;  %10532 = vmatmul.msk.f32.gmra.mxu3 %vm2310_vm15, %v7733_v33  ;;  %vm8759_vm8 = vweird.f32 %v11336_v24  ;;  %vm8763_vm10 = vcmp.eq.f32.partialorder %v8762_v37, 8.507059e+37 }
 0xdf6   : > { %v8755_v18 = vsub.f32 1.0, %v8754_v44  ;;  %v8790_v40 = vadd.f32 0.4994258, %v8789_v53  ;;  %v8826_v25 = vadd.f32 0.014752088, %v8825_v35  ;;  %v8742_v53 = vmul.f32 %v8741_v23, %v16303_v50  ;;  %vm8760_vm1 = vmor %vm8758_vm9, %vm8759_vm8 }
 0xdf7   : > { %v9339_v47 = vmul.f32 %v9307_v10, %v7963_v4  ;;  %v8852_v15 = vmul.f32 2.1237322e-06, %v16429_v5  ;;  %v8863_v2 = vmul.f32 3.8918573e-05, %v16429_v5  ;;  %v8815_v29 = vadd.f32 0.0036580483, %v8814_v58 }
 0xdf8   : > { %v8756_v11 = vmul.f32 %v11336_v24, %v8755_v18  ;;  %v8791_v34 = vmul.f32 %v8790_v40, %v16360_v9  ;;  %v8827_v33 = vmul.f32 %v8826_v25, %v16405_v61  ;;  %v8778_v4 = vmul.f32 %v8777_v26, %v16360_v9 }
 0xdf9   : > { %10584 = vmatmul.msk.f32.gmra.mxu0 %vm9354_vm0, %v9339_v47  ;;  %v8853_v10 = vadd.f32 0.00028619796, %v8852_v15  ;;  %v8864_v44 = vadd.f32 0.001143296, %v8863_v2  ;;  %v8765_v35 = vor.u32 1.1754944e-38, %v8764_v14  ;;  %v8816_v26 = vmul.f32 %v8815_v29, %v16405_v61 }
 0xdfa   : > { %v8757_v3 = vadd.f32 %v11336_v24, %v8756_v11  ;;  %v16442_v18 = vadd.f32 1.0, %v8791_v34  ;;  %v8828_v8 = vadd.f32 0.112945676, %v8827_v33  ;;  %v16448_v11 = vpop.f32.mrf.mxu0  ;;  %v8779_v23 = vadd.f32 0.18741608, %v8778_v4 }
 0xdfb   : > { %v8854_v20 = vmul.f32 %v8853_v10, %v16429_v5  ;;  %v8865_v58 = vmul.f32 %v8864_v44, %v16429_v5  ;;  %v7916_v40 = vpop.f32.mrf.mxu3  ;;  %v8817_v33 = vadd.f32 0.05243302, %v8816_v26  ;;  %v7964_v44 = vmul.f32 0.5, %v16295_v28 }
 0xdfc   : > { %v8761_v47 = vsel %vm8760_vm1, %v11336_v24, %v8757_v3  ;;  %11337 = vrcp.f32 %v16442_v18  ;;  %v8829_v14 = vmul.f32 %v8828_v8, %v16405_v61  ;;  %v16452_v24 = vadd.f32 %v16201_v36, %v7916_v40 }
 0xdfd   : > { %v8766_v25 = vsel %vm8763_vm10, %v8765_v35, %v8761_v47  ;;  %v8855_v15 = vadd.f32 0.0036580483, %v8854_v20  ;;  %v8866_v2 = vadd.f32 0.014752088, %v8865_v58  ;;  %v7250_v29 = vpop.xlane.xlu2 %7249  ;;  %v8780_v4 = vmul.f32 %v8779_v23, %v16360_v9 }
 0xdfe   : > { %v8767_v50 = vmul.f32 %v8766_v25, %v8742_v53  ;;  %v8830_v34 = vadd.f32 0.4994258, %v8829_v14  ;;  %v16456_v10 = vmul.f32 0.70710677, %v16452_v24  ;;  %v7284_v40 = vmul.f32 %v7250_v29, %v17606_v43 }
 0xdff   : > { %v8867_v3 = vmul.f32 %v8866_v2, %v16429_v5  ;;  %v8856_v47 = vmul.f32 %v8855_v15, %v16429_v5  ;;  %v8781_v14 = vadd.f32 1.1283791, %v8780_v4  ;;  %v8802_v15 = vand.u32 2147483647, %v16442_v18 }
 0xe00   : > { %v10553_v37 = vclamps-f32 %v8767_v50, 1.0  ;;  %v8831_v8 = vmul.f32 %v8830_v34, %v16405_v61  ;;  %v8890_v58 = vmul.f32 %v16456_v10, %v16456_v10  ;;  %v8818_v50 = vmul.f32 %v8817_v33, %v16405_v61 }
 0xe01   : > { %v8868_v20 = vadd.f32 0.112945676, %v8867_v3  ;;  %v8857_v34 = vadd.f32 0.05243302, %v8856_v47  ;;  %v16478_v33 = vadd.f32 1e-05, %v7284_v40  ;;  %vm8798_vm12 = vweird.f32 %v16442_v18 }
 0xe02   : > { %v9308_v53 = vadd.f32 1.0, %v10553_v37  ;;  %v11338_v35 = vpop.eup %11337  ;;  %v16467_v28 = vadd.f32 1.0, %v8831_v8  ;;  %v16470_v23 = vmin.f32 %v8890_v58, 16.0  ;;  %v8804_v37 = vand.u32 2147483648, %v16442_v18 }
 0xe03   : > { %v8794_v26 = vmul.f32 %v11338_v35, %v16442_v18  ;;  %v8869_v9 = vmul.f32 %v8868_v20, %v16429_v5  ;;  %vm8799_vm3 = vweird.f32 %v11338_v35  ;;  %v8819_v4 = vadd.f32 0.18741608, %v8818_v50 }
 0xe04   : > { %v9340_v25 = vmul.f32 %v9308_v53, %v7964_v44  ;;  %11339 = vrcp.f32 %v16467_v28  ;;  %v8892_v53 = vmul.f32 2.1237322e-06, %v16470_v23  ;;  %v8903_v8 = vmul.f32 3.8918573e-05, %v16470_v23  ;;  %vm8800_vm13 = vmor %vm8798_vm12, %vm8799_vm3 }
 0xe05   : > { %v8795_v2 = vsub.f32 1.0, %v8794_v26  ;;  %v16476_v3 = vpop.f32.mrf.mxu0  ;;  %v8870_v44 = vadd.f32 0.4994258, %v8869_v9  ;;  %v8782_v47 = vmul.f32 %v8781_v14, %v16347_v31  ;;  %v8805_v26 = vor.u32 1.1754944e-38, %v8804_v37 }
 0xe06   : > { %10585 = vmatmul.msk.f32.gmra.mxu0 %vm9354_vm0, %v9340_v25  ;;  %v8893_v25 = vadd.f32 0.00028619796, %v8892_v53  ;;  %v8904_v40 = vadd.f32 0.001143296, %v8903_v8  ;;  %11341 = vrsqrt.f32 %v16478_v33  ;;  %vm8803_vm2 = vcmp.eq.f32.partialorder %v8802_v15, 8.507059e+37 }
 0xe07   : > { %v8796_v29 = vmul.f32 %v11338_v35, %v8795_v2  ;;  %v8871_v58 = vmul.f32 %v8870_v44, %v16429_v5  ;;  %v8858_v9 = vmul.f32 %v8857_v34, %v16429_v5  ;;  %v8820_v18 = vmul.f32 %v8819_v4, %v16405_v61 }
 0xe08   : > { %v8905_v44 = vmul.f32 %v8904_v40, %v16470_v23  ;;  %v8894_v14 = vmul.f32 %v8893_v25, %v16470_v23  ;;  %v7965_v37 = vmul.f32 0.5, %v16336_v51  ;;  %v8842_v61 = vand.u32 2147483647, %v16467_v28 }
 0xe09   : > { %v8797_v20 = vadd.f32 %v11338_v35, %v8796_v29  ;;  %v16487_v50 = vadd.f32 1.0, %v8871_v58  ;;  %v8859_v34 = vadd.f32 0.18741608, %v8858_v9  ;;  %v8821_v58 = vadd.f32 1.1283791, %v8820_v18 }
 0xe0a   : > { %v11340_v45 = vpop.eup %11339  ;;  %v8906_v8 = vadd.f32 0.014752088, %v8905_v44  ;;  %v8844_v4 = vand.u32 2147483648, %v16467_v28  ;;  %v8895_v25 = vadd.f32 0.0036580483, %v8894_v14  ;;  %vm8838_vm9 = vweird.f32 %v16467_v28 }
 0xe0b   : > { %v8801_v2 = vsel %vm8800_vm13, %v11338_v35, %v8797_v20  ;;  %v8834_v31 = vmul.f32 %v11340_v45, %v16467_v28  ;;  %11343 = vrcp.f32 %v16487_v50  ;;  %vm8839_vm8 = vweird.f32 %v11340_v45 }
 0xe0c   : > { %v8806_v29 = vsel %vm8803_vm2, %v8805_v26, %v8801_v2  ;;  %v11342_v20 = vpop.eup %11341  ;;  %v8907_v51 = vmul.f32 %v8906_v8, %v16470_v23  ;;  %v8860_v18 = vmul.f32 %v8859_v34, %v16429_v5  ;;  %vm8840_vm1 = vmor %vm8838_vm9, %vm8839_vm8  ;;  %v8845_v32 = vor.u32 1.1754944e-38, %v8844_v4 }
 0xe0d   : > { %v8807_v53 = vmul.f32 %v8806_v29, %v8782_v47  ;;  %v8835_v15 = vsub.f32 1.0, %v8834_v31  ;;  %v7619_v2 = vmul.f32 %v11342_v20, %v16478_v33  ;;  %v8822_v31 = vmul.f32 %v8821_v58, %v16385_v62 }
 0xe0e   : > { %v8908_v44 = vadd.f32 0.112945676, %v8907_v51  ;;  %vm8843_vm10 = vcmp.eq.f32.partialorder %v8842_v61, 8.507059e+37  ;;  %v8896_v28 = vmul.f32 %v8895_v25, %v16470_v23  ;;  %v8882_v62 = vand.u32 2147483647, %v16487_v50 }
 0xe0f   : > { %v10554_v35 = vclamps-f32 %v8807_v53, 1.0  ;;  %v8836_v40 = vmul.f32 %v11340_v45, %v8835_v15  ;;  %v8884_v58 = vand.u32 2147483648, %v16487_v50  ;;  %vm7625_vm3 = vweird.f32 %v11342_v20 }
 0xe10   : > { %v8909_v8 = vmul.f32 %v8908_v44, %v16470_v23  ;;  %v8897_v25 = vadd.f32 0.05243302, %v8896_v28  ;;  %vm7624_vm13 = vweird.f32 %v16478_v33  ;;  %vm8878_vm2 = vweird.f32 %v16487_v50 }
 0xe11   : > { %v16497_v47 = vpop.f32.mrf.mxu0  ;;  %v9309_v26 = vadd.f32 1.0, %v10554_v35  ;;  %v8837_v29 = vadd.f32 %v11340_v45, %v8836_v40  ;;  %v11344_v53 = vpop.eup %11343  ;;  %v7620_v35 = vmul.f32 %v11342_v20, %v7619_v2  ;;  %v7966_v2 = vmul.f32 0.5, %v16374_v54  ;;  %vm7626_vm8 = vmor %vm7624_vm13, %vm7625_vm3 }
 0xe12   : > { %v8874_v14 = vmul.f32 %v11344_v53, %v16487_v50  ;;  %v8910_v4 = vadd.f32 0.4994258, %v8909_v8  ;;  %vm8879_vm12 = vweird.f32 %v11344_v53 }
 0xe13   : > { %v9341_v9 = vmul.f32 %v9309_v26, %v7965_v37  ;;  %v8841_v15 = vsel %vm8840_vm1, %v11340_v45, %v8837_v29  ;;  %v7621_v5 = vmul.f32 0.5, %v7620_v35  ;;  %v8861_v26 = vadd.f32 1.1283791, %v8860_v18  ;;  %vm8880_vm9 = vmor %vm8878_vm2, %vm8879_vm12 }
 0xe14   : > { %v8846_v37 = vsel %vm8843_vm10, %v8845_v32, %v8841_v15  ;;  %v8875_v40 = vsub.f32 1.0, %v8874_v14  ;;  %v8911_v32 = vmul.f32 %v8910_v4, %v16470_v23  ;;  %vm8883_vm1 = vcmp.eq.f32.partialorder %v8882_v62, 8.507059e+37 }
 0xe15   : > { %10586 = vmatmul.msk.f32.gmra.mxu0 %vm9354_vm0, %v9341_v9  ;;  %v8847_v34 = vmul.f32 %v8846_v37, %v8822_v31  ;;  %v7622_v45 = vsub.f32 1.5, %v7621_v5  ;;  %v8862_v44 = vmul.f32 %v8861_v26, %v16416_v59  ;;  %v8885_v35 = vor.u32 1.1754944e-38, %v8884_v58 }
 0xe16   : > { %v8876_v51 = vmul.f32 %v11344_v53, %v8875_v40  ;;  %v8912_v15 = vadd.f32 1.0, %v8911_v32  ;;  %v8898_v37 = vmul.f32 %v8897_v25, %v16470_v23 }
 0xe17   : > { %v10555_v61 = vclamps-f32 %v8847_v34, 1.0  ;;  %v7623_v9 = vmul.f32 %v11342_v20, %v7622_v45 }
 0xe18   : > { %v8877_v31 = vadd.f32 %v11344_v53, %v8876_v51  ;;  %11345 = vrcp.f32 %v8912_v15  ;;  %v8899_v40 = vadd.f32 0.18741608, %v8898_v37  ;;  %vm8918_vm3 = vweird.f32 %v8912_v15 }
 0xe19   : > { %v9510_v29 = vpop.f32.mrf.mxu0  ;;  %v9310_v18 = vadd.f32 1.0, %v10555_v61  ;;  %v7627_v14 = vsel %vm7626_vm8, %v11342_v20, %v7623_v9 }
 0xe1a   : > { %v8881_v54 = vsel %vm8880_vm9, %v11344_v53, %v8877_v31  ;;  %v7668_v8 = vmul.f32 %v7627_v14, %v16185_v49  ;;  %v7967_v49 = vmul.f32 0.5, %v16408_v22  ;;  %v8900_v51 = vmul.f32 %v8899_v40, %v16470_v23 }
 0xe1b   : > { %v9342_v28 = vmul.f32 %v9310_v18, %v7966_v2  ;;  %v8886_v5 = vsel %vm8883_vm1, %v8885_v35, %v8881_v54  ;;  %v9578_v9 = vadd.f32 %v9510_v29, %v14983_v38  ;;  %v8922_v23 = vand.u32 2147483647, %v8912_v15 }
 0xe1c   : > { %v8887_v34 = vmul.f32 %v8886_v5, %v8862_v44  ;;  %v7701_v50 = vmul.f32 %v16380_v17, %v7668_v8  ;;  %v8924_v44 = vand.u32 2147483648, %v8912_v15  ;;  %v8901_v14 = vadd.f32 1.1283791, %v8900_v51 }
 0xe1d   : > { %v7919_v33 = vpop.f32.mrf.mxu3  ;;  %10587 = vmatmul.msk.f32.gmra.mxu0 %vm9354_vm0, %v9342_v28  ;;  %v9577_v8 = vadd.f32 %v16497_v47, %v14971_v12  ;;  %vm8923_vm13 = vcmp.eq.f32.partialorder %v8922_v23, 8.507059e+37  ;;  %v9576_v47 = vadd.f32 %v16476_v3, %v14964_v21  ;;  %v17682_v23 = vld [vmem:[#allocation82_spill] sm:$0xff] }
 0xe1e   : > { %v16520_v59 = vadd.f32 %v16201_v36, %v7919_v33  ;;  %v10556_v26 = vclamps-f32 %v8887_v34, 1.0  ;;  %v7734_v53 = vadd.f32 %v16396_v42, %v7701_v50  ;;  %v11346_v4 = vpop.eup %11345  ;;  %v16534_v36 = vld [vmem:[%s17121_s2 + $0x120] ss:$0 sm:$0xff]  ;;  %v8925_v5 = vor.u32 1.1754944e-38, %v8924_v44 }
 0xe1f   : > { %v8914_v25 = vmul.f32 %v11346_v4, %v8912_v15  ;;  %vm8919_vm10 = vweird.f32 %v11346_v4  ;;  %v9611_v33 = vadd.f32 %v16534_v36, %v9578_v9  ;;  %v8902_v40 = vmul.f32 %v8901_v14, %v16456_v10 }
 0xe20   : > { %v16524_v20 = vmul.f32 0.70710677, %v16520_v59  ;;  %v9311_v62 = vadd.f32 1.0, %v10556_v26  ;;  %10533 = vmatmul.msk.f32.gmra.mxu3 %vm2310_vm15, %v7734_v53  ;;  %vm8920_vm12 = vmor %vm8918_vm3, %vm8919_vm10 }
 0xe21   : > { %v8915_v32 = vsub.f32 1.0, %v8914_v25  ;;  %v9575_v25 = vadd.f32 %v16448_v11, %v14950_v27 }
 0xe22   : > { %v8930_v58 = vmul.f32 %v16524_v20, %v16524_v20  ;;  %v9343_v61 = vmul.f32 %v9311_v62, %v7967_v49  ;;  %v9610_v62 = vadd.f32 %v16534_v36, %v9577_v8 }
 0xe23   : > { %v8916_v28 = vmul.f32 %v11346_v4, %v8915_v32 }
 0xe24   : > { %v9513_v45 = vpop.f32.mrf.mxu0  ;;  %v16538_v22 = vmin.f32 %v8930_v58, 16.0 }
 0xe25   : > { %v9579_v2 = vadd.f32 %v9513_v45, %v14975_v52  ;;  %10588 = vmatmul.msk.f32.gmra.mxu0 %vm9354_vm0, %v9343_v61  ;;  %v8917_v29 = vadd.f32 %v11346_v4, %v8916_v28  ;;  %v7968_v61 = vmul.f32 0.5, %v16452_v24  ;;  %v9608_v24 = vadd.f32 %v16534_v36, %v9575_v25 }
 0xe26   : > { %v8932_v31 = vmul.f32 2.1237322e-06, %v16538_v22  ;;  %v8943_v35 = vmul.f32 3.8918573e-05, %v16538_v22 }
 0xe27   : > { %v9612_v18 = vadd.f32 %v16534_v36, %v9579_v2  ;;  %v8921_v53 = vsel %vm8920_vm12, %v11346_v4, %v8917_v29  ;;  %v9609_v2 = vadd.f32 %v16534_v36, %v9576_v47 }
 0xe28   : > { %v8933_v54 = vadd.f32 0.00028619796, %v8932_v31  ;;  %v8944_v37 = vadd.f32 0.001143296, %v8943_v35  ;;  %v9574_v31 = vadd.f32 %v16422_v30, %v14940_v16 }
 0xe29   : > { %10599 = vmatpush.xpose.msk.msra.mxu1 %vm2310_vm15, %v9612_v18 }
 0xe2a   : > { %v8934_v34 = vmul.f32 %v8933_v54, %v16538_v22  ;;  %v8945_v50 = vmul.f32 %v8944_v37, %v16538_v22  ;;  %v9607_v54 = vadd.f32 %v16534_v36, %v9574_v31 }
 0xe2c   : > { %v8935_v15 = vadd.f32 0.0036580483, %v8934_v34  ;;  %v8946_v49 = vadd.f32 0.014752088, %v8945_v50  ;;  %v17684_v34 = vld [vmem:[#allocation121_spill] sm:$0xff] }
 0xe2d   : > { %v7253_v52 = vpop.xlane.xlu1 %7252  ;;  %10600 = vmatpush.xpose.msk.msra.mxu1 %vm2310_vm15, %v9611_v33  ;;  %v9571_v50 = vadd.f32 %v16321_v39, %v17684_v34 }
 0xe2e   : > { %v7285_v38 = vmul.f32 %v7253_v52, %v17606_v43  ;;  %v8926_v43 = vsel %vm8923_vm13, %v8925_v5, %v8921_v53  ;;  %v8947_v58 = vmul.f32 %v8946_v49, %v16538_v22  ;;  %v8936_v10 = vmul.f32 %v8935_v15, %v16538_v22  ;;  %v17685_v49 = vld [vmem:[#allocation144_spill] sm:$0xff] }
 0xe2f   : > { %v8927_v12 = vmul.f32 %v8926_v43, %v8902_v40  ;;  %v9573_v52 = vadd.f32 %v16389_v57, %v17682_v23 }
 0xe30   : > { %v7317_v26 = vadd.f32 1e-05, %v7285_v38  ;;  %v8948_v4 = vadd.f32 0.112945676, %v8947_v58  ;;  %v8937_v18 = vadd.f32 0.05243302, %v8936_v10 }
 0xe31   : > { %v10557_v45 = vclamps-f32 %v8927_v12, 1.0  ;;  %10601 = vmatpush.xpose.msk.msra.mxu1 %vm2310_vm15, %v9610_v62  ;;  %v17683_v38 = vld [vmem:[#allocation83_spill] sm:$0xff]  ;;  %v9606_v8 = vadd.f32 %v16534_v36, %v9573_v52  ;;  %v9604_v12 = vadd.f32 %v16534_v36, %v9571_v50  ;;  %v17686_v10 = vld [vmem:[#allocation112_spill] sm:$0xff] }
 0xe32   : > { %11347 = vrsqrt.f32 %v7317_v26  ;;  %v8949_v21 = vmul.f32 %v8948_v4, %v16538_v22  ;;  %v8938_v14 = vmul.f32 %v8937_v18, %v16538_v22  ;;  %vm7634_vm8 = vweird.f32 %v7317_v26  ;;  %v17687_v18 = vld [vmem:[#allocation146_spill] sm:$0xff]  ;;  %v17688_v52 = vld [vmem:[#allocation108_spill] sm:$0xff] }
 0xe33   : > { %v9312_v51 = vadd.f32 1.0, %v10557_v45  ;;  %v9572_v29 = vadd.f32 %v16343_v41, %v17683_v38  ;;  %v9569_v4 = vadd.f32 %v16267_v60, %v17686_v10  ;;  %v9568_v60 = vadd.f32 %v16256_v19, %v17687_v18 }
 0xe34   : > { %v8950_v44 = vadd.f32 0.4994258, %v8949_v21  ;;  %v8939_v30 = vadd.f32 0.18741608, %v8938_v14  ;;  %v7969_v14 = vmul.f32 0.5, %v16520_v59 }
 0xe35   : > { %v9344_v3 = vmul.f32 %v9312_v51, %v7968_v61  ;;  %10602 = vmatpush.xpose.msk.msra.mxu1 %vm2310_vm15, %v9609_v2  ;;  %v9605_v53 = vadd.f32 %v16534_v36, %v9572_v29 }
 0xe36   : > { %v8951_v27 = vmul.f32 %v8950_v44, %v16538_v22  ;;  %v9602_v44 = vadd.f32 %v16534_v36, %v9569_v4 }
 0xe37   : > { %10589 = vmatmul.msk.f32.gmra.mxu0 %vm9354_vm0, %v9344_v3 }
 0xe38   : > { %v11348_v32 = vpop.eup %11347  ;;  %v8952_v28 = vadd.f32 1.0, %v8951_v27 }
 0xe39   : > { %v7629_v9 = vmul.f32 %v11348_v32, %v7317_v26  ;;  %10603 = vmatpush.xpose.msk.msra.mxu1 %vm2310_vm15, %v9608_v24  ;;  %vm7635_vm2 = vweird.f32 %v11348_v32  ;;  %v8940_v26 = vmul.f32 %v8939_v30, %v16538_v22 }
 0xe3a   : > { %11349 = vrcp.f32 %v8952_v28  ;;  %vm7636_vm9 = vmor %vm7634_vm8, %vm7635_vm2  ;;  %v8964_v62 = vand.u32 2147483648, %v8952_v28  ;;  %vm8958_vm10 = vweird.f32 %v8952_v28 }
 0xe3b   : > { %v7630_v35 = vmul.f32 %v11348_v32, %v7629_v9  ;;  %v8941_v47 = vadd.f32 1.1283791, %v8940_v26 }
 0xe3c   : > { %v8965_v51 = vor.u32 1.1754944e-38, %v8964_v62 }
 0xe3d   : > { %v7631_v11 = vmul.f32 0.5, %v7630_v35  ;;  %10604 = vmatpush.xpose.msk.msra.mxu1 %vm2310_vm15, %v9607_v54  ;;  %v8942_v25 = vmul.f32 %v8941_v47, %v16524_v20  ;;  %v11380_v20 = vld [vmem:[%s17121_s2 + $0x20] sm:$0xff]  ;;  %v9567_v54 = vadd.f32 %v16246_v7, %v17688_v52 }
 0xe3f   : > { %v7632_v37 = vsub.f32 1.5, %v7631_v11  ;;  %v9600_v50 = vadd.f32 %v16534_v36, %v9567_v54  ;;  %v16681_v54 = vpop.permute.xlu0 %9631 }
 0xe40   : > { %v11350_v57 = vpop.eup %11349 }
 0xe41   : > { %v7633_v16 = vmul.f32 %v11348_v32, %v7632_v37  ;;  %10605 = vmatpush.xpose.msk.msra.mxu1 %vm2310_vm15, %v9606_v8  ;;  %v8954_v43 = vmul.f32 %v11350_v57, %v8952_v28  ;;  %vm8959_vm1 = vweird.f32 %v11350_v57 }
 0xe42   : > { %vm8960_vm3 = vmor %vm8958_vm10, %vm8959_vm1 }
 0xe43   : > { %v7637_v33 = vsel %vm7636_vm9, %v11348_v32, %v7633_v16  ;;  %v8955_v15 = vsub.f32 1.0, %v8954_v43  ;;  %v9601_v16 = vadd.f32 %v16534_v36, %v9568_v60 }
 0xe44   : > { %v7669_v5 = vmul.f32 %v7637_v33, %v16244_v1  ;;  %v9570_v1 = vadd.f32 %v16288_v55, %v17685_v49 }
 0xe45   : > { %10606 = vmatpush.xpose.msk.msra.mxu1 %vm2310_vm15, %v9605_v53  ;;  %v8956_v22 = vmul.f32 %v11350_v57, %v8955_v15 }
 0xe46   : > { %v7702_v40 = vmul.f32 %v16380_v17, %v7669_v5  ;;  %v8962_v17 = vand.u32 2147483647, %v8952_v28  ;;  %v9603_v61 = vadd.f32 %v16534_v36, %v9570_v1 }
 0xe47   : > { %v8957_v45 = vadd.f32 %v11350_v57, %v8956_v22 }
 0xe48   : > { %v7735_v41 = vadd.f32 %v16396_v42, %v7702_v40  ;;  %v16596_v42 = vld [vmem:[%s17121_s2 + $0xf8] ss:$0 sm:$0xff]  ;;  %vm8963_vm12 = vcmp.eq.f32.partialorder %v8962_v17, 8.507059e+37 }
 0xe49   : > { %10607 = vmatpush.xpose.msk.msra.mxu1 %vm2310_vm15, %v9604_v12  ;;  %v8961_v2 = vsel %vm8960_vm3, %v11350_v57, %v8957_v45  ;;  %v17689_v57 = vld [vmem:[#allocation87_spill] sm:$0xff]  ;;  %v17690_v12 = vld [vmem:[#allocation150_spill] sm:$0xff] }
 0xe4a   : > { %v7922_v39 = vpop.f32.mrf.mxu3  ;;  %10534 = vmatmul.msk.f32.gmra.mxu3 %vm2310_vm15, %v7735_v41  ;;  %v8966_v21 = vsel %vm8963_vm12, %v8965_v51, %v8961_v2  ;;  %v9566_v34 = vadd.f32 %v16238_v63, %v17689_v57  ;;  %v9565_v47 = vadd.f32 %v16229_v56, %v17690_v12  ;;  %v17691_v56 = vld [vmem:[#allocation127_spill] sm:$0xff] }
 0xe4b   : > { %v16599_v58 = vadd.f32 %v16596_v42, %v7922_v39  ;;  %v8967_v3 = vmul.f32 %v8966_v21, %v8942_v25  ;;  %v9564_v2 = vadd.f32 %v16219_v6, %v17691_v56 }
 0xe4c   : > { %v9599_v62 = vadd.f32 %v16534_v36, %v9566_v34 }
 0xe4d   : > { %v16603_v55 = vmul.f32 0.70710677, %v16599_v58  ;;  %10608 = vmatpush.xpose.msk.msra.mxu1 %vm2310_vm15, %v9603_v61  ;;  %v10558_v24 = vclamps-f32 %v8967_v3, 1.0  ;;  %v9597_v6 = vadd.f32 %v16534_v36, %v9564_v2 }
 0xe4f   : > { %v8970_v32 = vmul.f32 %v16603_v55, %v16603_v55  ;;  %v9313_v19 = vadd.f32 1.0, %v10558_v24 }
 0xe51   : > { %v16612_v9 = vmin.f32 %v8970_v32, 16.0  ;;  %10609 = vmatpush.xpose.msk.msra.mxu1 %vm2310_vm15, %v9602_v44  ;;  %v9345_v30 = vmul.f32 %v9313_v19, %v7969_v14  ;;  %v9598_v32 = vadd.f32 %v16534_v36, %v9565_v47 }
 0xe52   : > { %v7925_v31 = vpop.f32.mrf.mxu3  ;;  %10703 = vmatmul.msk.f32.vlgmr.msrb.gmra.mxu3 %vm338_vm7, %v11380_v20 }
 0xe53   : > { %v8972_v35 = vmul.f32 2.1237322e-06, %v16612_v9  ;;  %v8983_v27 = vmul.f32 3.8918573e-05, %v16612_v9  ;;  %v16624_v11 = vadd.f32 %v16596_v42, %v7925_v31  ;;  %10590 = vmatmul.msk.f32.gmra.mxu0 %vm9354_vm0, %v9345_v30 }
 0xe55   : > { %v8973_v28 = vadd.f32 0.00028619796, %v8972_v35  ;;  %v8984_v23 = vadd.f32 0.001143296, %v8983_v27  ;;  %v16631_v37 = vmul.f32 0.70710677, %v16624_v11  ;;  %10610 = vmatpush.xpose.msk.msra.mxu1 %vm2310_vm15, %v9601_v16 }
 0xe57   : > { %v8974_v38 = vmul.f32 %v8973_v28, %v16612_v9  ;;  %v8985_v29 = vmul.f32 %v8984_v23, %v16612_v9  ;;  %v9010_v59 = vmul.f32 %v16631_v37, %v16631_v37 }
 0xe59   : > { %v8975_v8 = vadd.f32 0.0036580483, %v8974_v38  ;;  %v8986_v33 = vadd.f32 0.014752088, %v8985_v29  ;;  %v16640_v7 = vmin.f32 %v9010_v59, 16.0  ;;  %10611 = vmatpush.xpose.msk.msra.mxu1 %vm2310_vm15, %v9600_v50 }
 0xe5a   : > { %v7928_v5 = vpop.f32.mrf.mxu3 }
 0xe5b   : > { %v8987_v26 = vmul.f32 %v8986_v33, %v16612_v9  ;;  %v16647_v40 = vadd.f32 %v16596_v42, %v7928_v5  ;;  %v9012_v53 = vmul.f32 2.1237322e-06, %v16640_v7  ;;  %v9023_v43 = vmul.f32 3.8918573e-05, %v16640_v7 }
 0xe5c   : > { %v8976_v41 = vmul.f32 %v8975_v8, %v16612_v9 }
 0xe5d   : > { %v8988_v15 = vadd.f32 0.112945676, %v8987_v26  ;;  %v9013_v49 = vadd.f32 0.00028619796, %v9012_v53  ;;  %v9024_v1 = vadd.f32 0.001143296, %v9023_v43  ;;  %10612 = vmatpush.xpose.msk.msra.mxu1 %vm2310_vm15, %v9599_v62 }
 0xe5e   : > { %v16654_v63 = vmul.f32 0.70710677, %v16647_v40  ;;  %v8977_v10 = vadd.f32 0.05243302, %v8976_v41 }
 0xe5f   : > { %v8989_v39 = vmul.f32 %v8988_v15, %v16612_v9  ;;  %v9014_v22 = vmul.f32 %v9013_v49, %v16640_v7  ;;  %v9025_v17 = vmul.f32 %v9024_v1, %v16640_v7 }
 0xe60   : > { %v9050_v45 = vmul.f32 %v16654_v63, %v16654_v63  ;;  %v8978_v44 = vmul.f32 %v8977_v10, %v16612_v9 }
 0xe61   : > { %v8990_v4 = vadd.f32 0.4994258, %v8989_v39  ;;  %v9015_v61 = vadd.f32 0.0036580483, %v9014_v22  ;;  %v9026_v51 = vadd.f32 0.014752088, %v9025_v17  ;;  %10613 = vmatpush.xpose.msk.msra.mxu1 %vm2310_vm15, %v9598_v32 }
 0xe62   : > { %v16665_v25 = vmin.f32 %v9050_v45, 16.0  ;;  %v8979_v28 = vadd.f32 0.18741608, %v8978_v44 }
 0xe63   : > { %v8991_v21 = vmul.f32 %v8990_v4, %v16612_v9  ;;  %v9016_v3 = vmul.f32 %v9015_v61, %v16640_v7  ;;  %v9027_v18 = vmul.f32 %v9026_v51, %v16640_v7  ;;  %v7931_v29 = vpop.f32.mrf.mxu3 }
 0xe64   : > { %v9052_v60 = vmul.f32 2.1237322e-06, %v16665_v25  ;;  %v9063_v20 = vmul.f32 3.8918573e-05, %v16665_v25  ;;  %v16687_v59 = vadd.f32 %v16596_v42, %v7931_v29  ;;  %v8980_v33 = vmul.f32 %v8979_v28, %v16612_v9 }
 0xe65   : > { %v8992_v31 = vadd.f32 1.0, %v8991_v21  ;;  %v9028_v24 = vadd.f32 0.112945676, %v9027_v18  ;;  %v9017_v27 = vadd.f32 0.05243302, %v9016_v3  ;;  %10614 = vmatpush.xpose.msk.msra.mxu1 %vm2310_vm15, %v9597_v6 }
 0xe66   : > { %v9053_v35 = vadd.f32 0.00028619796, %v9052_v60  ;;  %v9064_v23 = vadd.f32 0.001143296, %v9063_v20  ;;  %v16697_v43 = vmul.f32 0.70710677, %v16687_v59 }
 0xe67   : > { %11351 = vrcp.f32 %v8992_v31  ;;  %v9029_v14 = vmul.f32 %v9028_v24, %v16640_v7  ;;  %v9018_v16 = vmul.f32 %v9017_v27, %v16640_v7  ;;  %v8981_v15 = vadd.f32 1.1283791, %v8980_v33 }
 0xe68   : > { %v9054_v19 = vmul.f32 %v9053_v35, %v16665_v25  ;;  %v9065_v38 = vmul.f32 %v9064_v23, %v16665_v25  ;;  %10615 = vmatmul.msk.f32.vlgmr.msra.gmra.mxu1 %vm2310_vm15, %v16681_v54  ;;  %v9004_v49 = vand.u32 2147483648, %v8992_v31  ;;  %v9002_v9 = vand.u32 2147483647, %v8992_v31 }
 0xe69   : > { %v9030_v52 = vadd.f32 0.4994258, %v9029_v14  ;;  %v9019_v50 = vadd.f32 0.18741608, %v9018_v16  ;;  %v9090_v47 = vmul.f32 %v16697_v43, %v16697_v43  ;;  %vm8998_vm2 = vweird.f32 %v8992_v31 }
 0xe6a   : > { %v9055_v30 = vadd.f32 0.0036580483, %v9054_v19  ;;  %v9066_v5 = vadd.f32 0.014752088, %v9065_v38  ;;  %v8982_v4 = vmul.f32 %v8981_v15, %v16603_v55  ;;  %v9005_v61 = vor.u32 1.1754944e-38, %v9004_v49 }
 0xe6b   : > { %v9031_v36 = vmul.f32 %v9030_v52, %v16640_v7  ;;  %v9020_v62 = vmul.f32 %v9019_v50, %v16640_v7  ;;  %v16704_v10 = vmin.f32 %v9090_v47, 16.0  ;;  %vm9003_vm9 = vcmp.eq.f32.partialorder %v9002_v9, 8.507059e+37 }
 0xe6c   : > { %v9056_v26 = vmul.f32 %v9055_v30, %v16665_v25  ;;  %v9067_v53 = vmul.f32 %v9066_v5, %v16665_v25 }
 0xe6d   : > { %v11352_v8 = vpop.eup %11351  ;;  %v16692_v34 = vadd.f32 1.0, %v9031_v36  ;;  %v9092_v7 = vmul.f32 2.1237322e-06, %v16704_v10  ;;  %v9103_v21 = vmul.f32 3.8918573e-05, %v16704_v10  ;;  %v7970_v36 = vmul.f32 0.5, %v16599_v58 }
 0xe6e   : > { %v8994_v57 = vmul.f32 %v11352_v8, %v8992_v31  ;;  %v9068_v1 = vadd.f32 0.112945676, %v9067_v53  ;;  %vm8999_vm13 = vweird.f32 %v11352_v8  ;;  %v9057_v39 = vadd.f32 0.05243302, %v9056_v26 }
 0xe6f   : > { %11353 = vrcp.f32 %v16692_v34  ;;  %vm9000_vm8 = vmor %vm8998_vm2, %vm8999_vm13  ;;  %v9021_v18 = vadd.f32 1.1283791, %v9020_v62  ;;  %v9093_v20 = vadd.f32 0.00028619796, %v9092_v7  ;;  %v9104_v24 = vadd.f32 0.001143296, %v9103_v21 }
 0xe70   : > { %v8995_v41 = vsub.f32 1.0, %v8994_v57  ;;  %v9069_v22 = vmul.f32 %v9068_v1, %v16665_v25  ;;  %v7934_v17 = vpop.f32.mrf.mxu3  ;;  %v9058_v44 = vmul.f32 %v9057_v39, %v16665_v25  ;;  %v9042_v6 = vand.u32 2147483647, %v16692_v34 }
 0xe71   : > { %v16708_v56 = vadd.f32 %v16596_v42, %v7934_v17  ;;  %v9044_v27 = vand.u32 2147483648, %v16692_v34  ;;  %v9094_v23 = vmul.f32 %v9093_v20, %v16704_v10  ;;  %v9105_v52 = vmul.f32 %v9104_v24, %v16704_v10 }
 0xe72   : > { %v8996_v12 = vmul.f32 %v11352_v8, %v8995_v41  ;;  %v9070_v51 = vadd.f32 0.4994258, %v9069_v22  ;;  %v9059_v30 = vadd.f32 0.18741608, %v9058_v44  ;;  %v9022_v33 = vmul.f32 %v9021_v18, %v16631_v37 }
 0xe73   : > { %v16718_v14 = vmul.f32 0.70710677, %v16708_v56  ;;  %vm9038_vm10 = vweird.f32 %v16692_v34  ;;  %v9045_v57 = vor.u32 1.1754944e-38, %v9044_v27  ;;  %v9106_v50 = vadd.f32 0.014752088, %v9105_v52 }
 0xe74   : > { %v8997_v45 = vadd.f32 %v11352_v8, %v8996_v12  ;;  %v9071_v31 = vmul.f32 %v9070_v51, %v16665_v25  ;;  %v9095_v53 = vadd.f32 0.0036580483, %v9094_v23  ;;  %vm9043_vm12 = vcmp.eq.f32.partialorder %v9042_v6, 8.507059e+37 }
 0xe75   : > { %v11354_v2 = vpop.eup %11353  ;;  %v9130_v38 = vmul.f32 %v16718_v14, %v16718_v14  ;;  %v9060_v58 = vmul.f32 %v9059_v30, %v16665_v25  ;;  %v9107_v37 = vmul.f32 %v9106_v50, %v16704_v10  ;;  %v7971_v25 = vmul.f32 0.5, %v16624_v11 }
 0xe76   : > { %v9001_v32 = vsel %vm9000_vm8, %v11352_v8, %v8997_v45  ;;  %v9034_v60 = vmul.f32 %v11354_v2, %v16692_v34  ;;  %v16720_v28 = vadd.f32 1.0, %v9071_v31  ;;  %vm9039_vm1 = vweird.f32 %v11354_v2 }
 0xe77   : > { %v9006_v3 = vsel %vm9003_vm9, %v9005_v61, %v9001_v32  ;;  %vm9040_vm3 = vmor %vm9038_vm10, %vm9039_vm1  ;;  %v16730_v41 = vmin.f32 %v9130_v38, 16.0  ;;  %v9108_v47 = vadd.f32 0.112945676, %v9107_v37  ;;  %v9096_v22 = vmul.f32 %v9095_v53, %v16704_v10 }
 0xe78   : > { %v9007_v55 = vmul.f32 %v9006_v3, %v8982_v4  ;;  %v9035_v35 = vsub.f32 1.0, %v9034_v60  ;;  %v7937_v29 = vpop.f32.mrf.mxu3  ;;  %11355 = vrcp.f32 %v16720_v28  ;;  %v9061_v61 = vadd.f32 1.1283791, %v9060_v58 }
 0xe79   : > { %v16733_v15 = vadd.f32 %v16596_v42, %v7937_v29  ;;  %v9132_v12 = vmul.f32 2.1237322e-06, %v16730_v41  ;;  %v9143_v34 = vmul.f32 3.8918573e-05, %v16730_v41  ;;  %v9082_v60 = vand.u32 2147483647, %v16720_v28 }
 0xe7a   : > { %v10559_v19 = vclamps-f32 %v9007_v55, 1.0  ;;  %v9036_v16 = vmul.f32 %v11354_v2, %v9035_v35  ;;  %v9084_v44 = vand.u32 2147483648, %v16720_v28  ;;  %v9097_v11 = vadd.f32 0.05243302, %v9096_v22 }
 0xe7b   : > { %v16741_v62 = vmul.f32 0.70710677, %v16733_v15  ;;  %v9133_v17 = vadd.f32 0.00028619796, %v9132_v12  ;;  %v9144_v45 = vadd.f32 0.001143296, %v9143_v34  ;;  %v9062_v6 = vmul.f32 %v9061_v61, %v16654_v63 }
 0xe7c   : > { %v9314_v8 = vadd.f32 1.0, %v10559_v19  ;;  %v9037_v5 = vadd.f32 %v11354_v2, %v9036_v16  ;;  %vm9078_vm2 = vweird.f32 %v16720_v28  ;;  %v9085_v38 = vor.u32 1.1754944e-38, %v9084_v44 }
 0xe7d   : > { %v9134_v32 = vmul.f32 %v9133_v17, %v16730_v41  ;;  %v9145_v7 = vmul.f32 %v9144_v45, %v16730_v41  ;;  %v9170_v21 = vmul.f32 %v16741_v62, %v16741_v62  ;;  %v9098_v29 = vmul.f32 %v9097_v11, %v16704_v10 }
 0xe7e   : > { %v9346_v26 = vmul.f32 %v9314_v8, %v7970_v36  ;;  %v9041_v49 = vsel %vm9040_vm3, %v11354_v2, %v9037_v5  ;;  %v11356_v39 = vpop.eup %11355  ;;  %v9109_v2 = vmul.f32 %v9108_v47, %v16704_v10  ;;  %vm9083_vm9 = vcmp.eq.f32.partialorder %v9082_v60, 8.507059e+37 }
 0xe7f   : > { %v9046_v1 = vsel %vm9043_vm12, %v9045_v57, %v9041_v49  ;;  %v9074_v51 = vmul.f32 %v11356_v39, %v16720_v28  ;;  %v9146_v31 = vadd.f32 0.014752088, %v9145_v7  ;;  %vm9079_vm13 = vweird.f32 %v11356_v39 }
 0xe80   : > { %10591 = vmatmul.msk.f32.gmra.mxu0 %vm9354_vm0, %v9346_v26  ;;  %v9047_v9 = vmul.f32 %v9046_v1, %v9022_v33  ;;  %v9110_v55 = vadd.f32 0.4994258, %v9109_v2  ;;  %v16753_v35 = vmin.f32 %v9170_v21, 16.0  ;;  %v9135_v19 = vadd.f32 0.0036580483, %v9134_v32  ;;  %vm9080_vm8 = vmor %vm9078_vm2, %vm9079_vm13 }
 0xe81   : > { %v9075_v18 = vsub.f32 1.0, %v9074_v51  ;;  %v9147_v23 = vmul.f32 %v9146_v31, %v16730_v41  ;;  %v9099_v53 = vadd.f32 0.18741608, %v9098_v29 }
 0xe82   : > { %v10560_v4 = vclamps-f32 %v9047_v9, 1.0  ;;  %v9111_v27 = vmul.f32 %v9110_v55, %v16704_v10  ;;  %v9172_v16 = vmul.f32 2.1237322e-06, %v16753_v35  ;;  %v9183_v30 = vmul.f32 3.8918573e-05, %v16753_v35 }
 0xe83   : > { %v9076_v24 = vmul.f32 %v11356_v39, %v9075_v18  ;;  %v9148_v63 = vadd.f32 0.112945676, %v9147_v23  ;;  %v9136_v28 = vmul.f32 %v9135_v19, %v16730_v41  ;;  %v7972_v9 = vmul.f32 0.5, %v16647_v40 }
 0xe84   : > { %v9315_v3 = vadd.f32 1.0, %v10560_v4  ;;  %v9112_v36 = vadd.f32 1.0, %v9111_v27  ;;  %v9173_v33 = vadd.f32 0.00028619796, %v9172_v16  ;;  %v9184_v5 = vadd.f32 0.001143296, %v9183_v30 }
 0xe85   : > { %v9077_v52 = vadd.f32 %v11356_v39, %v9076_v24  ;;  %v9149_v26 = vmul.f32 %v9148_v63, %v16730_v41  ;;  %v9137_v12 = vadd.f32 0.05243302, %v9136_v28  ;;  %v9100_v17 = vmul.f32 %v9099_v53, %v16704_v10 }
 0xe86   : > { %v9347_v20 = vmul.f32 %v9315_v3, %v7971_v25  ;;  %11357 = vrcp.f32 %v9112_v36  ;;  %v9174_v49 = vmul.f32 %v9173_v33, %v16753_v35  ;;  %v9185_v58 = vmul.f32 %v9184_v5, %v16753_v35 }
 0xe87   : > { %v9081_v8 = vsel %vm9080_vm8, %v11356_v39, %v9077_v52  ;;  %v9150_v1 = vadd.f32 0.4994258, %v9149_v26  ;;  %v9138_v51 = vmul.f32 %v9137_v12, %v16730_v41  ;;  %v9101_v21 = vadd.f32 1.1283791, %v9100_v17 }
 0xe88   : > { %10592 = vmatmul.msk.f32.gmra.mxu0 %vm9354_vm0, %v9347_v20  ;;  %v9086_v57 = vsel %vm9083_vm9, %v9085_v38, %v9081_v8  ;;  %v9186_v34 = vadd.f32 0.014752088, %v9185_v58  ;;  %v9175_v45 = vadd.f32 0.0036580483, %v9174_v49  ;;  %v9124_v40 = vand.u32 2147483648, %v9112_v36 }
 0xe89   : > { %v9087_v50 = vmul.f32 %v9086_v57, %v9062_v6  ;;  %v9151_v39 = vmul.f32 %v9150_v1, %v16730_v41  ;;  %v9122_v10 = vand.u32 2147483647, %v9112_v36  ;;  %v9139_v44 = vadd.f32 0.18741608, %v9138_v51 }
 0xe8a   : > { %v9187_v25 = vmul.f32 %v9186_v34, %v16753_v35  ;;  %v9176_v3 = vmul.f32 %v9175_v45, %v16753_v35  ;;  %vm9118_vm10 = vweird.f32 %v9112_v36  ;;  %v9125_v31 = vor.u32 1.1754944e-38, %v9124_v40 }
 0xe8b   : > { %v10561_v37 = vclamps-f32 %v9087_v50, 1.0  ;;  %v9152_v2 = vadd.f32 1.0, %v9151_v39  ;;  %v9102_v24 = vmul.f32 %v9101_v21, %v16697_v43  ;;  %vm9123_vm12 = vcmp.eq.f32.partialorder %v9122_v10, 8.507059e+37 }
 0xe8c   : > { %v11358_v22 = vpop.eup %11357  ;;  %v9188_v32 = vadd.f32 0.112945676, %v9187_v25  ;;  %v9177_v20 = vadd.f32 0.05243302, %v9176_v3  ;;  %v9140_v52 = vmul.f32 %v9139_v44, %v16730_v41  ;;  %v7973_v8 = vmul.f32 0.5, %v16687_v59 }
 0xe8d   : > { %v9316_v47 = vadd.f32 1.0, %v10561_v37  ;;  %v9114_v61 = vmul.f32 %v11358_v22, %v9112_v36  ;;  %11359 = vrcp.f32 %v9152_v2  ;;  %vm9119_vm1 = vweird.f32 %v11358_v22 }
 0xe8e   : > { %v9189_v60 = vmul.f32 %v9188_v32, %v16753_v35  ;;  %vm9120_vm3 = vmor %vm9118_vm10, %vm9119_vm1  ;;  %v9178_v38 = vmul.f32 %v9177_v20, %v16753_v35  ;;  %v9141_v33 = vadd.f32 1.1283791, %v9140_v52  ;;  %v9164_v5 = vand.u32 2147483648, %v9152_v2 }
 0xe8f   : > { %v9348_v4 = vmul.f32 %v9316_v47, %v7972_v9  ;;  %v9115_v7 = vsub.f32 1.0, %v9114_v61  ;;  %v9162_v28 = vand.u32 2147483647, %v9152_v2  ;;  %vm9158_vm2 = vweird.f32 %v9152_v2 }
 0xe90   : > { %v9190_v55 = vadd.f32 0.4994258, %v9189_v60  ;;  %v9179_v50 = vadd.f32 0.18741608, %v9178_v38  ;;  %v9165_v41 = vor.u32 1.1754944e-38, %v9164_v5  ;;  %v9142_v49 = vmul.f32 %v9141_v33, %v16718_v14 }
 0xe91   : > { %10593 = vmatmul.msk.f32.gmra.mxu0 %vm9354_vm0, %v9348_v4  ;;  %v9116_v18 = vmul.f32 %v11358_v22, %v9115_v7  ;;  %vm9163_vm9 = vcmp.eq.f32.partialorder %v9162_v28, 8.507059e+37  ;;  %v7974_v39 = vmul.f32 0.5, %v16708_v56 }
 0xe92   : > { %v9191_v27 = vmul.f32 %v9190_v55, %v16753_v35  ;;  %v9180_v1 = vmul.f32 %v9179_v50, %v16753_v35 }
 0xe93   : > { %v9117_v11 = vadd.f32 %v11358_v22, %v9116_v18  ;;  %v11360_v19 = vpop.eup %11359 }
 0xe94   : > { %v9154_v30 = vmul.f32 %v11360_v19, %v9152_v2  ;;  %v9192_v29 = vadd.f32 1.0, %v9191_v27  ;;  %vm9159_vm13 = vweird.f32 %v11360_v19 }
 0xe95   : > { %v9121_v6 = vsel %vm9120_vm3, %v11358_v22, %v9117_v11  ;;  %vm9160_vm8 = vmor %vm9158_vm2, %vm9159_vm13  ;;  %v9181_v22 = vadd.f32 1.1283791, %v9180_v1  ;;  %v7975_v11 = vmul.f32 0.5, %v16733_v15 }
 0xe96   : > { %v9126_v23 = vsel %vm9123_vm12, %v9125_v31, %v9121_v6  ;;  %v9155_v63 = vsub.f32 1.0, %v9154_v30  ;;  %11361 = vrcp.f32 %v9192_v29  ;;  %v9204_v17 = vand.u32 2147483648, %v9192_v29 }
 0xe97   : > { %v9127_v16 = vmul.f32 %v9126_v23, %v9102_v24  ;;  %v9202_v14 = vand.u32 2147483647, %v9192_v29  ;;  %vm9198_vm10 = vweird.f32 %v9192_v29  ;;  %v9182_v7 = vmul.f32 %v9181_v22, %v16741_v62 }
 0xe98   : > { %v9156_v57 = vmul.f32 %v11360_v19, %v9155_v63  ;;  %v9205_v35 = vor.u32 1.1754944e-38, %v9204_v17 }
 0xe99   : > { %v10562_v36 = vclamps-f32 %v9127_v16, 1.0  ;;  %vm9203_vm12 = vcmp.eq.f32.partialorder %v9202_v14, 8.507059e+37 }
 0xe9a   : > { %v9157_v53 = vadd.f32 %v11360_v19, %v9156_v57 }
 0xe9b   : > { %v9317_v43 = vadd.f32 1.0, %v10562_v36 }
 0xe9c   : > { %v9161_v58 = vsel %vm9160_vm8, %v11360_v19, %v9157_v53  ;;  %v11362_v59 = vpop.eup %11361 }
 0xe9d   : > { %v9349_v26 = vmul.f32 %v9317_v43, %v7973_v8  ;;  %v9166_v37 = vsel %vm9163_vm9, %v9165_v41, %v9161_v58  ;;  %v9194_v34 = vmul.f32 %v11362_v59, %v9192_v29  ;;  %vm9199_vm1 = vweird.f32 %v11362_v59 }
 0xe9e   : > { %v9167_v12 = vmul.f32 %v9166_v37, %v9142_v49  ;;  %vm9200_vm3 = vmor %vm9198_vm10, %vm9199_vm1 }
 0xe9f   : > { %10594 = vmatmul.msk.f32.gmra.mxu0 %vm9354_vm0, %v9349_v26  ;;  %v9195_v47 = vsub.f32 1.0, %v9194_v34 }
 0xea0   : > { %v10563_v9 = vclamps-f32 %v9167_v12, 1.0 }
 0xea1   : > { %v9196_v25 = vmul.f32 %v11362_v59, %v9195_v47 }
 0xea2   : > { %v9318_v45 = vadd.f32 1.0, %v10563_v9 }
 0xea3   : > { %v7940_v4 = vpop.f32.mrf.mxu3  ;;  %v9197_v2 = vadd.f32 %v11362_v59, %v9196_v25 }
 0xea4   : > { %v16785_v61 = vadd.f32 %v16596_v42, %v7940_v4  ;;  %v9350_v51 = vmul.f32 %v9318_v45, %v7974_v39 }
 0xea5   : > { %v9201_v56 = vsel %vm9200_vm3, %v11362_v59, %v9197_v2 }
 0xea6   : > { %v8008_v32 = vmul.f32 0.70710677, %v16785_v61  ;;  %v9206_v21 = vsel %vm9203_vm12, %v9205_v35, %v9201_v56  ;;  %v7976_v2 = vmul.f32 0.5, %v16785_v61 }
 0xea7   : > { %10595 = vmatmul.msk.f32.gmra.mxu0 %vm9354_vm0, %v9350_v51  ;;  %v9207_v3 = vmul.f32 %v9206_v21, %v9182_v7 }
 0xea8   : > { %v9210_v40 = vmul.f32 %v8008_v32, %v8008_v32 }
 0xea9   : > { %v10564_v10 = vclamps-f32 %v9207_v3, 1.0 }
 0xeaa   : > { %v9211_v18 = vmin.f32 %v9210_v40, 16.0 }
 0xeab   : > { %v9319_v55 = vadd.f32 1.0, %v10564_v10 }
 0xeac   : > { %v9212_v60 = vmul.f32 2.1237322e-06, %v9211_v18  ;;  %v9223_v44 = vmul.f32 3.8918573e-05, %v9211_v18 }
 0xead   : > { %v9351_v24 = vmul.f32 %v9319_v55, %v7975_v11 }
 0xeae   : > { %v9213_v31 = vadd.f32 0.00028619796, %v9212_v60  ;;  %v9224_v20 = vadd.f32 0.001143296, %v9223_v44 }
 0xeaf   : > { %10596 = vmatmul.msk.f32.gmra.mxu0 %vm9354_vm0, %v9351_v24 }
 0xeb0   : > { %v9214_v6 = vmul.f32 %v9213_v31, %v9211_v18  ;;  %v9225_v27 = vmul.f32 %v9224_v20, %v9211_v18 }
 0xeb2   : > { %v9226_v62 = vadd.f32 0.014752088, %v9225_v27  ;;  %v9215_v19 = vadd.f32 0.0036580483, %v9214_v6  ;;  %v16798_v6 = vpop.f32.mrf.mxu0 }
 0xeb4   : > { %v9227_v23 = vmul.f32 %v9226_v62, %v9211_v18  ;;  %v9216_v16 = vmul.f32 %v9215_v19, %v9211_v18 }
 0xeb6   : > { %v9228_v52 = vadd.f32 0.112945676, %v9227_v23  ;;  %v9217_v29 = vadd.f32 0.05243302, %v9216_v16 }
 0xeb8   : > { %v9229_v30 = vmul.f32 %v9228_v52, %v9211_v18  ;;  %v9218_v8 = vmul.f32 %v9217_v29, %v9211_v18 }
 0xeba   : > { %v9230_v38 = vadd.f32 0.4994258, %v9229_v30  ;;  %v9219_v15 = vadd.f32 0.18741608, %v9218_v8 }
 0xebc   : > { %v9231_v36 = vmul.f32 %v9230_v38, %v9211_v18  ;;  %v9220_v57 = vmul.f32 %v9219_v15, %v9211_v18 }
 0xebe   : > { %v9232_v63 = vadd.f32 1.0, %v9231_v36  ;;  %v9221_v49 = vadd.f32 1.1283791, %v9220_v57 }
 0xec0   : > { %11363 = vrcp.f32 %v9232_v63  ;;  %v9244_v53 = vand.u32 2147483648, %v9232_v63  ;;  %v9242_v59 = vand.u32 2147483647, %v9232_v63  ;;  %vm9238_vm2 = vweird.f32 %v9232_v63 }
 0xec2   : > { %v9245_v12 = vor.u32 1.1754944e-38, %v9244_v53  ;;  %vm9243_vm9 = vcmp.eq.f32.partialorder %v9242_v59, 8.507059e+37 }
 0xec6   : > { %v11364_v5 = vpop.eup %11363 }
 0xec7   : > { %v9234_v28 = vmul.f32 %v11364_v5, %v9232_v63  ;;  %vm9239_vm13 = vweird.f32 %v11364_v5  ;;  %v16800_v63 = vpop.f32.mrf.mxu0 }
 0xec8   : > { %vm9240_vm8 = vmor %vm9238_vm2, %vm9239_vm13 }
 0xec9   : > { %v9235_v26 = vsub.f32 1.0, %v9234_v28 }
 0xecb   : > { %v9236_v58 = vmul.f32 %v11364_v5, %v9235_v26 }
 0xecd   : > { %v7943_v33 = vpop.f32.mrf.mxu3  ;;  %v9237_v1 = vadd.f32 %v11364_v5, %v9236_v58  ;;  %v193_v58 = vld [vmem:[%s17121_s2 + $0x28] sm:$0xf] }
 0xece   : > { %v16793_v43 = vadd.f32 %v16596_v42, %v7943_v33  ;;  %v9222_v42 = vmul.f32 %v9221_v49, %v8008_v32  ;;  %9633 = vrot.lane.b32.xlu2 %v193_v58, %s11445_s19  ;;  %10701 = vmatmul.msk.f32.gmra.mxu2 %vm338_vm7, %v193_v58 }
 0xecf   : > { %v9241_v47 = vsel %vm9240_vm8, %v11364_v5, %v9237_v1  ;;  %v9522_v57 = vpop.f32.mrf.mxu0  ;;  %10704 = vmatmul.msk.f32.gmra.mxu3 %vm338_vm7, %v193_v58  ;;  %v17717_v58 = vld [vmem:[#allocation16_spill] sm:$0xff] }
 0xed0   : > { %v8009_v50 = vmul.f32 0.70710677, %v16793_v43  ;;  %v9246_v39 = vsel %vm9243_vm9, %v9245_v12, %v9241_v47  ;;  %v7977_v15 = vmul.f32 0.5, %v16793_v43 }
 0xed1   : > { %v9247_v45 = vmul.f32 %v9246_v39, %v9222_v42  ;;  %v11381_v39 = vld [vmem:[%s17121_s2 + $0x120] ss:$0 sm:$0xff] }
 0xed2   : > { %v9250_v41 = vmul.f32 %v8009_v50, %v8009_v50 }
 0xed3   : > { %v10565_v4 = vclamps-f32 %v9247_v45, 1.0 }
 0xed4   : > { %v9251_v37 = vmin.f32 %v9250_v41, 16.0 }
 0xed5   : > { %v9320_v35 = vadd.f32 1.0, %v10565_v4 }
 0xed6   : > { %v9252_v34 = vmul.f32 2.1237322e-06, %v9251_v37  ;;  %v9263_v9 = vmul.f32 3.8918573e-05, %v9251_v37 }
 0xed7   : > { %v9352_v21 = vmul.f32 %v9320_v35, %v7976_v2  ;;  %v9525_v28 = vpop.f32.mrf.mxu0 }
 0xed8   : > { %v9253_v22 = vadd.f32 0.00028619796, %v9252_v34  ;;  %v9264_v17 = vadd.f32 0.001143296, %v9263_v9 }
 0xed9   : > { %10597 = vmatmul.msk.f32.gmra.mxu0 %vm9354_vm0, %v9352_v21  ;;  %v17695_v21 = vld [vmem:[#allocation119_spill] sm:$0xff] }
 0xeda   : > { %v9254_v25 = vmul.f32 %v9253_v22, %v9251_v37  ;;  %v9265_v14 = vmul.f32 %v9264_v17, %v9251_v37 }
 0xedc   : > { %v9266_v51 = vadd.f32 0.014752088, %v9265_v14  ;;  %v9255_v7 = vadd.f32 0.0036580483, %v9254_v25 }
 0xede   : > { %v9267_v56 = vmul.f32 %v9266_v51, %v9251_v37  ;;  %v9256_v3 = vmul.f32 %v9255_v7, %v9251_v37  ;;  %v17693_v51 = vld [vmem:[#allocation93_spill] sm:$0xff] }
 0xedf   : > { %v9528_v26 = vpop.f32.mrf.mxu0  ;;  %v17694_v7 = vld [vmem:[#allocation137_spill] sm:$0xff] }
 0xee0   : > { %v9268_v40 = vadd.f32 0.112945676, %v9267_v56  ;;  %v9257_v10 = vadd.f32 0.05243302, %v9256_v3 }
 0xee2   : > { %v9269_v32 = vmul.f32 %v9268_v40, %v9251_v37  ;;  %v9258_v11 = vmul.f32 %v9257_v10, %v9251_v37 }
 0xee4   : > { %v9270_v18 = vadd.f32 0.4994258, %v9269_v32  ;;  %v9259_v55 = vadd.f32 0.18741608, %v9258_v11  ;;  %v17696_v32 = vld [vmem:[#allocation132_spill] sm:$0xff] }
 0xee6   : > { %v9271_v60 = vmul.f32 %v9270_v18, %v9251_v37  ;;  %v9260_v20 = vmul.f32 %v9259_v55, %v9251_v37  ;;  %v17698_v55 = vld [vmem:[#allocation148_spill] sm:$0xff] }
 0xee7   : > { %v9531_v53 = vpop.f32.mrf.mxu0 }
 0xee8   : > { %v9272_v44 = vadd.f32 1.0, %v9271_v60  ;;  %v9261_v62 = vadd.f32 1.1283791, %v9260_v20  ;;  %v17697_v60 = vld [vmem:[#allocation91_spill] sm:$0xff] }
 0xeea   : > { %11365 = vrcp.f32 %v9272_v44  ;;  %v9284_v27 = vand.u32 2147483648, %v9272_v44  ;;  %v9282_v23 = vand.u32 2147483647, %v9272_v44  ;;  %vm9278_vm10 = vweird.f32 %v9272_v44 }
 0xeeb   : > { %v9262_v30 = vmul.f32 %v9261_v62, %v8009_v50  ;;  %v17700_v62 = vld [vmem:[#allocation86_spill] sm:$0xff] }
 0xeec   : > { %v9285_v16 = vor.u32 1.1754944e-38, %v9284_v27  ;;  %vm9283_vm12 = vcmp.eq.f32.partialorder %v9282_v23, 8.507059e+37 }
 0xeef   : > { %v9534_v41 = vpop.f32.mrf.mxu0 }
 0xef0   : > { %v11366_v31 = vpop.eup %11365 }
 0xef1   : > { %v9274_v24 = vmul.f32 %v11366_v31, %v9272_v44  ;;  %vm9279_vm1 = vweird.f32 %v11366_v31  ;;  %v9586_v44 = vadd.f32 %v9534_v41, %v17697_v60  ;;  %v17710_v41 = vld [vmem:[#allocation20_spill] sm:$0xff]  ;;  %v11382_v60 = vld [vmem:[%s11487_s24] sm:$0xff] }
 0xef2   : > { %vm9280_vm3 = vmor %vm9278_vm10, %vm9279_vm1 }
 0xef3   : > { %v9275_v61 = vsub.f32 1.0, %v9274_v24  ;;  %v9619_v20 = vadd.f32 %v11381_v39, %v9586_v44  ;;  %v17699_v24 = vld [vmem:[#allocation111_spill] sm:$0xff] }
 0xef5   : > { %v9276_v19 = vmul.f32 %v11366_v31, %v9275_v61  ;;  %v9584_v61 = vadd.f32 %v9528_v26, %v17699_v24  ;;  %v17706_v26 = vld [vmem:[#allocation7_spill] sm:$0xff] }
 0xef7   : > { %v9277_v52 = vadd.f32 %v11366_v31, %v9276_v19  ;;  %v9537_v49 = vpop.f32.mrf.mxu0  ;;  %v9583_v19 = vadd.f32 %v9525_v28, %v17700_v62  ;;  %v9617_v23 = vadd.f32 %v11381_v39, %v9584_v61  ;;  %v17704_v28 = vmov 1.0  }
 0xef8   : > { %v9587_v18 = vadd.f32 %v9537_v49, %v17696_v32  ;;  %v17713_v49 = vld [vmem:[#allocation18_spill] sm:$0xff] }
 0xef9   : > { %v9281_v38 = vsel %vm9280_vm3, %v11366_v31, %v9277_v52  ;;  %v9585_v31 = vadd.f32 %v9531_v53, %v17698_v55  ;;  %v17701_v52 = vld [vmem:[#allocation88_spill] sm:$0xff]  ;;  %v17709_v53 = vld [vmem:[#allocation21_spill] sm:$0xff] }
 0xefa   : > { %v9286_v29 = vsel %vm9283_vm12, %v9285_v16, %v9281_v38  ;;  %v9620_v11 = vadd.f32 %v11381_v39, %v9587_v18  ;;  %v9582_v16 = vadd.f32 %v9522_v57, %v17701_v52  ;;  %v17702_v38 = vld [vmem:[#allocation142_spill] sm:$0xff]  ;;  %v17705_v57 = vld [vmem:[#allocation24_spill] sm:$0xff] }
 0xefb   : > { %v9287_v36 = vmul.f32 %v9286_v29, %v9262_v30  ;;  %v9618_v27 = vadd.f32 %v11381_v39, %v9585_v31  ;;  %v9616_v30 = vadd.f32 %v11381_v39, %v9583_v19  ;;  %v9581_v29 = vadd.f32 %v16800_v63, %v17702_v38  ;;  %v17707_v63 = vld [vmem:[#allocation23_spill] sm:$0xff] }
 0xefd   : > { %v10566_v8 = vclamps-f32 %v9287_v36, 1.0  ;;  %v9615_v36 = vadd.f32 %v11381_v39, %v9582_v16  ;;  %v9945_v16 = vpop.permute.xlu0 %9944 }
 0xeff   : > { %v9321_v33 = vadd.f32 1.0, %v10566_v8  ;;  %v9540_v50 = vpop.f32.mrf.mxu0  ;;  %v17703_v8 = vld [vmem:[#allocation133_spill] sm:$0xff] }
 0xf01   : > { %v9353_v5 = vmul.f32 %v9321_v33, %v7977_v15  ;;  %v9580_v15 = vadd.f32 %v16798_v6, %v17703_v8  ;;  %v9614_v33 = vadd.f32 %v11381_v39, %v9581_v29  ;;  %v17708_v6 = vld [vmem:[#allocation22_spill] sm:$0xff] }
 0xf02   : > { %v11384_v8 = vld [vmem:[%s11487_s24 + $0x8] sm:$0xff] }
 0xf03   : > { %10598 = vmatmul.msk.f32.gmra.mxu0 %vm9354_vm0, %v9353_v5  ;;  %v9613_v5 = vadd.f32 %v11381_v39, %v9580_v15 }
 0xf07   : > { %v9543_v43 = vpop.f32.mrf.mxu0 }
 0xf0f   : > { %v9546_v59 = vpop.f32.mrf.mxu0 }
 0xf10   : > { %v9590_v2 = vadd.f32 %v9546_v59, %v17693_v51  ;;  %v17721_v59 = vld [vmem:[#allocation14_spill] sm:$0xff]  ;;  %v17753_v51 = vld [vmem:[#allocation36_spill] sm:$0xff] }
 0xf12   : > { %v9623_v56 = vadd.f32 %v11381_v39, %v9590_v2  ;;  %v17755_v2 = vld [vmem:[#allocation34_spill] sm:$0xff] }
 0xf1c   : > { %v9549_v37 = vpop.f32.mrf.mxu0 }
 0xf24   : > { %v9552_v1 = vpop.f32.mrf.mxu0 }
 0xf25   : > { %v9592_v25 = vadd.f32 %v9552_v1, %v15547_v13  ;;  %v9588_v13 = vadd.f32 %v9540_v50, %v17695_v21  ;;  %v17715_v50 = vld [vmem:[#allocation17_spill] sm:$0xff]  ;;  %v17725_v1 = vld [vmem:[#allocation12_spill] sm:$0xff] }
 0xf26   : > { %vm17726_vm0 = vcmp.eq.s32.totalorder %v17725_v1, %v17706_v26  ;;  %v17765_v21 = vld [vmem:[#allocation8_spill] sm:$0xff] }
 0xf27   : > { %v9621_v10 = vadd.f32 %v11381_v39, %v9588_v13 }
 0xf28   : > { %v9634_v3 = vpop.permute.xlu2 %9633 }
 0xf29   : > { %10616 = vmatmul.msk.f32.gmra.mxu1 %vm2310_vm15, %v9634_v3 }
 0xf2c   : > { %v9555_v12 = vpop.f32.mrf.mxu0 }
 0xf2d   : > { %v9593_v17 = vadd.f32 %v9555_v12, %v15538_v46  ;;  %v9589_v46 = vadd.f32 %v9543_v43, %v17694_v7  ;;  %v17719_v43 = vld [vmem:[#allocation15_spill] sm:$0xff]  ;;  %v17759_v7 = vld [vmem:[#allocation28_spill] sm:$0xff] }
 0xf2e   : > { %v17727_v12 = vld [vmem:[#allocation11_spill] sm:$0xff] }
 0xf2f   : > { %v9626_v14 = vadd.f32 %v11381_v39, %v9593_v17  ;;  %v9622_v40 = vadd.f32 %v11381_v39, %v9589_v46  ;;  %vm17728_vm13 = vcmp.eq.s32.totalorder %v17727_v12, %v17706_v26  ;;  %v17739_v17 = vld [vmem:[#allocation50_spill] sm:$0xff] }
 0xf30   : > { %vm17740_vm3 = vcmp.eq.s32.totalorder %v17739_v17, %v17706_v26  ;;  %v17761_v46 = vld [vmem:[#allocation26_spill] sm:$0xff] }
 0xf56   : > { %v9558_v34 = vpop.f32.mrf.mxu0 }
 0xf57   : > { %v9594_v47 = vadd.f32 %v9558_v34, %v15630_v0  ;;  %v9625_v0 = vadd.f32 %v11381_v39, %v9592_v25  ;;  %v17729_v34 = vld [vmem:[#allocation10_spill] sm:$0xff]  ;;  %v17743_v25 = vld [vmem:[#allocation47_spill] sm:$0xff] }
 0xf58   : > { %vm17730_vm2 = vcmp.eq.s32.totalorder %v17729_v34, %v17706_v26 }
 0xf59   : > { %v9627_v45 = vadd.f32 %v11381_v39, %v9594_v47  ;;  %v17733_v47 = vld [vmem:[#allocation57_spill] sm:$0xff] }
 0xf5a   : > { %vm17734_vm9 = vcmp.eq.s32.totalorder %v17733_v47, %v17706_v26 }
 0xf80   : > { %v9561_v9 = vpop.f32.mrf.mxu0 }
 0xf81   : > { %v9595_v42 = vadd.f32 %v9561_v9, %v15676_v48  ;;  %v17692_v48 = vld [vmem:[#allocation116_spill] sm:$0xff]  ;;  %v9752_v9 = vpop.f32.mrf.mxu1 }
 0xf82   : > { %v9591_v4 = vadd.f32 %v9549_v37, %v17692_v48  ;;  %v17723_v37 = vld [vmem:[#allocation13_spill] sm:$0xff]  ;;  %v17747_v48 = vld [vmem:[#allocation43_spill] sm:$0xff] }
 0xf83   : > { %v9628_v22 = vadd.f32 %v11381_v39, %v9595_v42  ;;  %v17731_v42 = vld [vmem:[#allocation9_spill] sm:$0xff] }
 0xf84   : > { %v9624_v35 = vadd.f32 %v11381_v39, %v9591_v4  ;;  %vm17732_vm8 = vcmp.eq.s32.totalorder %v17731_v42, %v17706_v26  ;;  %v17735_v39 = vld [vmem:[#allocation54_spill] sm:$0xff]  ;;  %v17749_v4 = vld [vmem:[#allocation41_spill] sm:$0xff] }
 0xf85   : > { %10617 = vmatpush.xpose.msk.msrb.mxu1 %vm2310_vm15, %v9628_v22  ;;  %vm17736_vm1 = vcmp.eq.s32.totalorder %v17735_v39, %v17706_v26  ;;  %v17737_v22 = vld [vmem:[#allocation52_spill] sm:$0xff] }
 0xf86   : > { %vm17738_vm10 = vcmp.eq.s32.totalorder %v17737_v22, %v17706_v26 }
 0xf89   : > { %10618 = vmatpush.xpose.msk.msrb.mxu1 %vm2310_vm15, %v9627_v45  ;;  %v17741_v45 = vld [vmem:[#allocation49_spill] sm:$0xff] }
 0xf8a   : > { %vm17742_vm12 = vcmp.eq.s32.totalorder %v17741_v45, %v17706_v26 }
 0xf8d   : > { %10619 = vmatpush.xpose.msk.msrb.mxu1 %vm2310_vm15, %v9626_v14  ;;  %v17745_v14 = vld [vmem:[#allocation45_spill] sm:$0xff] }
 0xf91   : > { %10620 = vmatpush.xpose.msk.msrb.mxu1 %vm2310_vm15, %v9625_v0  ;;  %v17751_v0 = vld [vmem:[#allocation38_spill] sm:$0xff] }
 0xf95   : > { %10621 = vmatpush.xpose.msk.msrb.mxu1 %vm2310_vm15, %v9624_v35  ;;  %v17757_v35 = vld [vmem:[#allocation30_spill] sm:$0xff] }
 0xf99   : > { %10622 = vmatpush.xpose.msk.msrb.mxu1 %vm2310_vm15, %v9623_v56  ;;  %v17763_v56 = vld [vmem:[#allocation25_spill] sm:$0xff] }
 0xf9d   : > { %10623 = vmatpush.xpose.msk.msrb.mxu1 %vm2310_vm15, %v9622_v40 }
 0xfa1   : > { %10624 = vmatpush.xpose.msk.msrb.mxu1 %vm2310_vm15, %v9621_v10  ;;  %v9900_v10 = vpop.f32.mrf.mxu2 }
 0xfa2   : > { %v9929_v44 = vadd.f32 %v11382_v60, %v9900_v10 }
 0xfa5   : > { %10625 = vmatpush.xpose.msk.msrb.mxu1 %vm2310_vm15, %v9620_v11 }
 0xfa6   : > { %v9755_v13 = vpop.f32.mrf.mxu1 }
 0xfa9   : > { %10626 = vmatpush.xpose.msk.msrb.mxu1 %vm2310_vm15, %v9619_v20  ;;  %v9940_v20 = vpop.permute.xlu1 %9939  ;;  %v9903_v24 = vpop.f32.mrf.mxu2 }
 0xfad   : > { %10627 = vmatpush.xpose.msk.msrb.mxu1 %vm2310_vm15, %v9618_v27  ;;  %v11383_v27 = vld [vmem:[%s11487_s24 + $0x10] sm:$0xf] }
 0xfae   : > { %v9931_v62 = vadd.f32 %v11383_v27, %v9903_v24 }
 0xfb1   : > { %10628 = vmatpush.xpose.msk.msrb.mxu1 %vm2310_vm15, %v9617_v23 }
 0xfb5   : > { %10629 = vmatpush.xpose.msk.msrb.mxu1 %vm2310_vm15, %v9616_v30 }
 0xfb9   : > { %10630 = vmatpush.xpose.msk.msrb.mxu1 %vm2310_vm15, %v9615_v36  ;;  %v9923_v36 = vpop.f32.mrf.mxu3 }
 0xfba   : > { %v9930_v15 = vadd.f32 %v11384_v8, %v9923_v36 }
 0xfbd   : > { %10631 = vmatpush.xpose.msk.msrb.mxu1 %vm2310_vm15, %v9614_v33 }
 0xfc1   : > { %10632 = vmatpush.xpose.msk.msrb.mxu1 %vm2310_vm15, %v9613_v5 }
 0xfc4   : > { %10633 = vmatmul.msk.f32.vlgmr.msrb.gmra.mxu1 %vm2310_vm15, %v16681_v54  ;;  %v17711_v54 = vld [vmem:[#allocation19_spill] sm:$0xff] }
 0xfc5   : > { %10635 = vmatpush.msk.msra.mxu1 %vm1912_vm11, %v17704_v28  ;;  %vm17712_vm7 = vcmp.eq.s32.totalorder %v17711_v54, %v17706_v26  ;;  %vm17720_vm11 = vcmp.eq.s32.totalorder %v17719_v43, %v17706_v26 }
 0xfc7   : > { %10636 = vmatpush.msk.msra.mxu1 %vm1910_vm6, %v17704_v28  ;;  %vm17714_vm6 = vcmp.eq.s32.totalorder %v17713_v49, %v17706_v26 }
 0xfc9   : > { %10637 = vmatpush.msk.msra.mxu1 %vm1908_vm14, %v17704_v28  ;;  %vm17722_vm14 = vcmp.eq.s32.totalorder %v17721_v59, %v17706_v26 }
 0xfcb   : > { %10638 = vmatpush.msk.msra.mxu1 %vm1906_vm4, %v17704_v28  ;;  %vm17716_vm4 = vcmp.eq.s32.totalorder %v17715_v50, %v17706_v26 }
 0xfcc   : > { %10634 = vmatmul.msk.f32.gmra.mxu1 %vm2310_vm15, %v9634_v3  ;;  %vm17724_vm15 = vcmp.eq.s32.totalorder %v17723_v37, %v17706_v26 }
 0xfcd   : > { %10639 = vmatpush.msk.msra.mxu1 %vm1904_vm5, %v17704_v28  ;;  %vm17718_vm5 = vcmp.eq.s32.totalorder %v17717_v58, %v17706_v26 }
 0xfcf   : > { %10640 = vmatpush.msk.msra.mxu1 %vm17712_vm7, %v17704_v28  ;;  %vm17744_vm7 = vcmp.eq.s32.totalorder %v17743_v25, %v17706_v26 }
 0xfd1   : > { %10641 = vmatpush.msk.msra.mxu1 %vm17714_vm6, %v17704_v28  ;;  %vm17746_vm6 = vcmp.eq.s32.totalorder %v17745_v14, %v17706_v26 }
 0xfd3   : > { %10642 = vmatpush.msk.msra.mxu1 %vm17716_vm4, %v17704_v28  ;;  %vm17748_vm4 = vcmp.eq.s32.totalorder %v17747_v48, %v17706_v26 }
 0xfd5   : > { %10643 = vmatpush.msk.msra.mxu1 %vm17718_vm5, %v17704_v28  ;;  %vm17750_vm5 = vcmp.eq.s32.totalorder %v17749_v4, %v17706_v26 }
 0xfd7   : > { %10644 = vmatpush.msk.msra.mxu1 %vm17720_vm11, %v17704_v28  ;;  %vm17752_vm11 = vcmp.eq.s32.totalorder %v17751_v0, %v17706_v26 }
 0xfd9   : > { %10645 = vmatpush.msk.msra.mxu1 %vm17722_vm14, %v17704_v28  ;;  %vm17754_vm14 = vcmp.eq.s32.totalorder %v17753_v51, %v17706_v26 }
 0xfdb   : > { %10646 = vmatpush.msk.msra.mxu1 %vm17724_vm15, %v17704_v28  ;;  %vm17756_vm15 = vcmp.eq.s32.totalorder %v17755_v2, %v17706_v26 }
 0xfdd   : > { %10647 = vmatpush.msk.msra.mxu1 %vm17726_vm0, %v17704_v28  ;;  %vm17758_vm0 = vcmp.eq.s32.totalorder %v17757_v35, %v17706_v26 }
 0xfdf   : > { %10648 = vmatpush.msk.msra.mxu1 %vm17728_vm13, %v17704_v28  ;;  %vm17760_vm13 = vcmp.eq.s32.totalorder %v17759_v7, %v17706_v26 }
 0xfe1   : > { %10649 = vmatpush.msk.msra.mxu1 %vm17730_vm2, %v17704_v28  ;;  %vm17762_vm2 = vcmp.eq.s32.totalorder %v17761_v46, %v17706_v26 }
 0xfe3   : > { %10650 = vmatpush.msk.msra.mxu1 %vm17732_vm8, %v17704_v28  ;;  %vm17764_vm8 = vcmp.eq.s32.totalorder %v17763_v56, %v17706_v26 }
 0xfe4   : > { %9797 = vmatmul.f32.vlgmr.msra.gmra.mxu1 %v9752_v9 }
 0xfe5   : > { %10651 = vmatpush.msk.msrb.mxu1 %vm17734_vm9, %v17704_v28  ;;  %vm17766_vm9 = vcmp.eq.s32.totalorder %v17705_v57, %v17765_v21  ;;  %v9926_v57 = vpop.f32.mrf.mxu3 }
 0xfe7   : > { %10652 = vmatpush.msk.msrb.mxu1 %vm17736_vm1, %v17704_v28  ;;  %vm17767_vm1 = vcmp.eq.s32.totalorder %v17707_v63, %v17765_v21  ;;  %v11385_v63 = vld [vmem:[%s11487_s24 + $0x18] sm:$0xf] }
 0xfe9   : > { %10653 = vmatpush.msk.msrb.mxu1 %vm17738_vm10, %v17704_v28  ;;  %vm17768_vm10 = vcmp.eq.s32.totalorder %v17708_v6, %v17765_v21  ;;  %v9932_v6 = vadd.f32 %v11385_v63, %v9926_v57 }
 0xfeb   : > { %10654 = vmatpush.msk.msrb.mxu1 %vm17740_vm3, %v17704_v28  ;;  %vm17769_vm3 = vcmp.eq.s32.totalorder %v17709_v53, %v17765_v21 }
 0xfec   : > { %9800 = vmatmul.f32.gmra.mxu1 %v9755_v13 }
 0xfed   : > { %10655 = vmatpush.msk.msrb.mxu1 %vm17742_vm12, %v17704_v28  ;;  %vm17770_vm12 = vcmp.eq.s32.totalorder %v17710_v41, %v17765_v21 }
 0xfef   : > { %10656 = vmatpush.msk.msrb.mxu1 %vm17744_vm7, %v17704_v28  ;;  %vm17771_vm7 = vcmp.eq.s32.totalorder %v17711_v54, %v17765_v21 }
 0xff1   : > { %10657 = vmatpush.msk.msrb.mxu1 %vm17746_vm6, %v17704_v28  ;;  %vm17772_vm6 = vcmp.eq.s32.totalorder %v17713_v49, %v17765_v21 }
 0xff3   : > { %10658 = vmatpush.msk.msrb.mxu1 %vm17748_vm4, %v17704_v28  ;;  %vm17773_vm4 = vcmp.eq.s32.totalorder %v17715_v50, %v17765_v21 }
 0xff5   : > { %10659 = vmatpush.msk.msrb.mxu1 %vm17750_vm5, %v17704_v28  ;;  %vm17774_vm5 = vcmp.eq.s32.totalorder %v17717_v58, %v17765_v21 }
 0xff7   : > { %10660 = vmatpush.msk.msrb.mxu1 %vm17752_vm11, %v17704_v28  ;;  %vm17775_vm11 = vcmp.eq.s32.totalorder %v17719_v43, %v17765_v21 }
 0xff9   : > { %10661 = vmatpush.msk.msrb.mxu1 %vm17754_vm14, %v17704_v28  ;;  %vm17776_vm14 = vcmp.eq.s32.totalorder %v17721_v59, %v17765_v21 }
 0xffb   : > { %10662 = vmatpush.msk.msrb.mxu1 %vm17756_vm15, %v17704_v28  ;;  %vm17777_vm15 = vcmp.eq.s32.totalorder %v17723_v37, %v17765_v21 }
 0xffd   : > { %10663 = vmatpush.msk.msrb.mxu1 %vm17758_vm0, %v17704_v28  ;;  %vm17778_vm0 = vcmp.eq.s32.totalorder %v17725_v1, %v17765_v21 }
 0xfff   : > { %10664 = vmatpush.msk.msrb.mxu1 %vm17760_vm13, %v17704_v28  ;;  %vm17779_vm13 = vcmp.eq.s32.totalorder %v17727_v12, %v17765_v21 }
0x1001   : > { %10665 = vmatpush.msk.msrb.mxu1 %vm17762_vm2, %v17704_v28  ;;  %vm17780_vm2 = vcmp.eq.s32.totalorder %v17729_v34, %v17765_v21 }
0x1003   : > { %10666 = vmatpush.msk.msrb.mxu1 %vm17764_vm8, %v17704_v28  ;;  %vm17781_vm8 = vcmp.eq.s32.totalorder %v17731_v42, %v17765_v21 }
0x1005   : > { %10667 = vmatpush.msk.msra.mxu1 %vm17766_vm9, %v17704_v28  ;;  %vm17782_vm9 = vcmp.eq.s32.totalorder %v17733_v47, %v17765_v21 }
0x1007   : > { %10668 = vmatpush.msk.msra.mxu1 %vm17767_vm1, %v17704_v28  ;;  %vm17783_vm1 = vcmp.eq.s32.totalorder %v17735_v39, %v17765_v21 }
0x1009   : > { %10669 = vmatpush.msk.msra.mxu1 %vm17768_vm10, %v17704_v28  ;;  %vm17784_vm10 = vcmp.eq.s32.totalorder %v17737_v22, %v17765_v21 }
0x100b   : > { %10670 = vmatpush.msk.msra.mxu1 %vm17769_vm3, %v17704_v28  ;;  %vm17785_vm3 = vcmp.eq.s32.totalorder %v17739_v17, %v17765_v21 }
0x100d   : > { %10671 = vmatpush.msk.msra.mxu1 %vm17770_vm12, %v17704_v28  ;;  %vm17786_vm12 = vcmp.eq.s32.totalorder %v17741_v45, %v17765_v21 }
0x100f   : > { %10672 = vmatpush.msk.msra.mxu1 %vm17771_vm7, %v17704_v28  ;;  %vm17787_vm7 = vcmp.eq.s32.totalorder %v17743_v25, %v17765_v21 }
0x1011   : > { %10673 = vmatpush.msk.msra.mxu1 %vm17772_vm6, %v17704_v28  ;;  %vm17788_vm6 = vcmp.eq.s32.totalorder %v17745_v14, %v17765_v21 }
0x1013   : > { %10674 = vmatpush.msk.msra.mxu1 %vm17773_vm4, %v17704_v28  ;;  %vm17789_vm4 = vcmp.eq.s32.totalorder %v17747_v48, %v17765_v21 }
0x1015   : > { %10675 = vmatpush.msk.msra.mxu1 %vm17774_vm5, %v17704_v28  ;;  %vm17790_vm5 = vcmp.eq.s32.totalorder %v17749_v4, %v17765_v21 }
0x1017   : > { %10676 = vmatpush.msk.msra.mxu1 %vm17775_vm11, %v17704_v28  ;;  %vm17791_vm11 = vcmp.eq.s32.totalorder %v17751_v0, %v17765_v21 }
0x1019   : > { %10677 = vmatpush.msk.msra.mxu1 %vm17776_vm14, %v17704_v28  ;;  %vm17792_vm14 = vcmp.eq.s32.totalorder %v17753_v51, %v17765_v21 }
0x101b   : > { %10678 = vmatpush.msk.msra.mxu1 %vm17777_vm15, %v17704_v28  ;;  %vm17793_vm15 = vcmp.eq.s32.totalorder %v17755_v2, %v17765_v21 }
0x101d   : > { %10679 = vmatpush.msk.msra.mxu1 %vm17778_vm0, %v17704_v28  ;;  %vm17794_vm0 = vcmp.eq.s32.totalorder %v17757_v35, %v17765_v21 }
0x101f   : > { %10680 = vmatpush.msk.msra.mxu1 %vm17779_vm13, %v17704_v28  ;;  %vm17795_vm13 = vcmp.eq.s32.totalorder %v17759_v7, %v17765_v21 }
0x1021   : > { %10681 = vmatpush.msk.msra.mxu1 %vm17780_vm2, %v17704_v28  ;;  %vm17796_vm2 = vcmp.eq.s32.totalorder %v17761_v46, %v17765_v21 }
0x1023   : > { %10682 = vmatpush.msk.msra.mxu1 %vm17781_vm8, %v17704_v28  ;;  %vm17797_vm8 = vcmp.eq.s32.totalorder %v17763_v56, %v17765_v21 }
0x1041   : > { %v9775_v40 = vpop.f32.mrf.mxu1 }
0x1042   : > { %9820 = vmatmul.f32.vlgmr.msrb.gmra.mxu1 %v9775_v40 }
0x1043   : > { %10683 = vmatpush.msk.msrb.mxu1 %vm17782_vm9, %v17704_v28 }
0x1045   : > { %10684 = vmatpush.msk.msrb.mxu1 %vm17783_vm1, %v17704_v28 }
0x1047   : > { %10685 = vmatpush.msk.msrb.mxu1 %vm17784_vm10, %v17704_v28 }
0x1049   : > { %v9778_v3 = vpop.f32.mrf.mxu1  ;;  %10686 = vmatpush.msk.msrb.mxu1 %vm17785_vm3, %v17704_v28 }
0x104a   : > { %9823 = vmatmul.f32.gmra.mxu1 %v9778_v3 }
0x104b   : > { %10687 = vmatpush.msk.msrb.mxu1 %vm17786_vm12, %v17704_v28 }
0x104d   : > { %10688 = vmatpush.msk.msrb.mxu1 %vm17787_vm7, %v17704_v28 }
0x104f   : > { %10689 = vmatpush.msk.msrb.mxu1 %vm17788_vm6, %v17704_v28 }
0x1051   : > { %10690 = vmatpush.msk.msrb.mxu1 %vm17789_vm4, %v17704_v28 }
0x1052   : > { %9843 = vmatmul.f32.vlgmr.msra.gmra.mxu1 %v9752_v9 }
0x1053   : > { %10691 = vmatpush.msk.msrb.mxu1 %vm17790_vm5, %v17704_v28 }
0x1055   : > { %10692 = vmatpush.msk.msrb.mxu1 %vm17791_vm11, %v17704_v28 }
0x1057   : > { %10693 = vmatpush.msk.msrb.mxu1 %vm17792_vm14, %v17704_v28 }
0x1059   : > { %10694 = vmatpush.msk.msrb.mxu1 %vm17793_vm15, %v17704_v28 }
0x105a   : > { %9846 = vmatmul.f32.gmra.mxu1 %v9755_v13 }
0x105b   : > { %10695 = vmatpush.msk.msrb.mxu1 %vm17794_vm0, %v17704_v28 }
0x105d   : > { %10696 = vmatpush.msk.msrb.mxu1 %vm17795_vm13, %v17704_v28 }
0x105f   : > { %10697 = vmatpush.msk.msrb.mxu1 %vm17796_vm2, %v17704_v28 }
0x1061   : > { %10698 = vmatpush.msk.msrb.mxu1 %vm17797_vm8, %v17704_v28  ;;  %v9798_v32 = vpop.f32.mrf.mxu1 }
0x1062   : > { %9866 = vmatmul.f32.vlgmr.msrb.gmra.mxu1 %v9775_v40 }
0x1069   : > { %v9801_v18 = vpop.f32.mrf.mxu1 }
0x106a   : > { %9869 = vmatmul.f32.gmra.mxu1 %v9778_v3 }
0x10bf   : > { %v9821_v11 = vpop.f32.mrf.mxu1 }
0x10c0   : > { %v9822_v55 = vadd.f32 %v9821_v11, %v9798_v32 }
0x10c2   : > { %v9933_v31 = vadd.f32 %v9929_v44, %v9822_v55 }
0x10c4   : > { %v9947_v61 = vadd.f32 %v9940_v20, %v9933_v31 }
0x10c6   : > { %9951 = vst [vmem:[%s187_s5] sm:$0xff] %v9947_v61 }
0x10c7   : > { %v9824_v19 = vpop.f32.mrf.mxu1 }
0x10c8   : > { %v9825_v23 = vadd.f32 %v9824_v19, %v9801_v18 }
0x10ca   : > { %v9935_v52 = vadd.f32 %v9931_v62, %v9825_v23 }
0x10cc   : > { %v9949_v30 = vadd.f32 %v9945_v16, %v9935_v52 }
0x10ce   : > { %9953 = vst [vmem:[%s187_s5 + $0x10] sm:$0xf] %v9949_v30 }
0x10cf   : > { %v9844_v38 = vpop.f32.mrf.mxu1 }
0x10d7   : > { %v9847_v29 = vpop.f32.mrf.mxu1 }
0x10df   : > { %v9867_v33 = vpop.f32.mrf.mxu1 }
0x10e0   : > { %v9868_v5 = vadd.f32 %v9867_v33, %v9844_v38 }
0x10e2   : > { %v9934_v28 = vadd.f32 %v9930_v15, %v9868_v5 }
0x10e4   : > { %v9948_v26 = vadd.f32 %v9940_v20, %v9934_v28 }
0x10e6   : > { %9952 = vst [vmem:[%s187_s5 + $0x8] sm:$0xff] %v9948_v26 }
0x10e7   : > { %v9870_v53 = vpop.f32.mrf.mxu1 }
0x10e8   : > { %v9871_v41 = vadd.f32 %v9870_v53, %v9847_v29 }
0x10ea   : > { %v9936_v54 = vadd.f32 %v9932_v6, %v9871_v41 }
0x10ec   : > { %v9950_v49 = vadd.f32 %v9945_v16, %v9936_v54 }
0x10ee   : > { %9954 = vst [vmem:[%s187_s5 + $0x18] sm:$0xf] %v9950_v49 }
0x10ef PF: > { %s14_s12 = sadd.s32 1, %s11426_s12  }
0x10f0   : > { %p11_p7 = scmp.ge.s32.totalorder %s14_s12, 4  }
0x10f2   :  { %13 = sbr.rel (!%p11_p7) target bundleno = 1 (0x1), region = 68 }
0x10f7   :  { %9976 = vsyncpa [#allocation3], 1 }
0x10f8   :  { %9978 = vsyncpa [#allocation3 + $0x1], 1 }

</bundles_post_ra>
